<compile_context>
chip_gen: v6e
topology: v6e:2x2x1
jax: 0.10.0
libtpu: 0.0.40
codegen_flags: <defaults>
</compile_context>

<pallas_src>
import functools

import jax
import jax.numpy as jnp
from jax.experimental import pallas as pl
from jax.experimental.pallas import tpu as pltpu


def _round_up(n, m):
    return ((n + m - 1) // m) * m


# ----------------------------------------------------------------------------
# Prepared-parameter containers (arrays = pytree leaves, tiling meta = static)
# ----------------------------------------------------------------------------
@jax.tree_util.register_pytree_node_class
class MM:
    """Pre-transposed / pre-padded bf16 matmul (or conv) weight + f32 bias."""

    def __init__(self, w, b, K, N, tk, tn, KH=1, KW=1, stride=1, pad=0):
        self.w, self.b = w, b
        self.K, self.N, self.tk, self.tn = K, N, tk, tn
        self.KH, self.KW, self.stride, self.pad = KH, KW, stride, pad

    def tree_flatten(self):
        return (self.w, self.b), (self.K, self.N, self.tk, self.tn,
                                  self.KH, self.KW, self.stride, self.pad)

    @classmethod
    def tree_unflatten(cls, aux, children):
        return cls(children[0], children[1], *aux)


@jax.tree_util.register_pytree_node_class
class GNP:
    """GroupNorm params: per-channel affine + group-membership matrix."""

    def __init__(self, gamma, beta, mgrp, group_size):
        self.gamma, self.beta, self.mgrp = gamma, beta, mgrp
        self.group_size = group_size

    def tree_flatten(self):
        return (self.gamma, self.beta, self.mgrp), (self.group_size,)

    @classmethod
    def tree_unflatten(cls, aux, children):
        return cls(children[0], children[1], children[2], aux[0])


# ----------------------------------------------------------------------------
# Pallas kernels
# ----------------------------------------------------------------------------
def _matmul_bias_kernel(a_ref, b_ref, bias_ref, o_ref, acc_ref, *, activation):
    @pl.when(pl.program_id(2) == 0)
    def _():
        acc_ref[...] = jnp.zeros_like(acc_ref)

    acc_ref[...] += jnp.dot(a_ref[...], b_ref[...],
                            preferred_element_type=jnp.float32)

    @pl.when(pl.program_id(2) == pl.num_programs(2) - 1)
    def _():
        r = acc_ref[...] + bias_ref[...]
        if activation == "relu":
            r = jnp.maximum(r, 0.0)
        elif activation == "sigmoid":
            r = 1.0 / (1.0 + jnp.exp(-r))
        o_ref[...] = r.astype(o_ref.dtype)


def _channel_att_kernel(x_ref, w1_ref, w2_ref, o_ref, *, inv_hw, c):
    x = x_ref[0]                                            # (HW, C) f32
    avg = jnp.sum(x, axis=0, keepdims=True) * inv_hw        # (1, C)
    mx = jnp.max(x, axis=0, keepdims=True)                  # (1, C)
    pooled = jnp.concatenate(
        [avg, mx, jnp.zeros((6, c), jnp.float32)], axis=0)  # (8, C)
    h = jnp.dot(pooled, w1_ref[...],
                preferred_element_type=jnp.float32)         # (8, 128)
    h = jnp.maximum(h, 0.0)
    z = jnp.dot(h, w2_ref[...],
                preferred_element_type=jnp.float32)         # (8, C)
    logits = z[0:1] + z[1:2]                                # avg_fc + max_fc
    att = 1.0 / (1.0 + jnp.exp(-logits))                    # (1, C)
    o_ref[0] = x * att


def _group_norm_kernel(x_ref, mgrp_ref, gamma_ref, beta_ref, o_ref,
                       *, inv_n, eps, c):
    x = x_ref[0]                                            # (HW, C) f32
    s = jnp.sum(x, axis=0, keepdims=True)                   # (1, C)
    ss = jnp.sum(x * x, axis=0, keepdims=True)              # (1, C)
    stacked = jnp.concatenate(
        [s, ss, jnp.zeros((6, c), jnp.float32)], axis=0)    # (8, C)
    g = jnp.dot(stacked, mgrp_ref[...],
                preferred_element_type=jnp.float32)         # (8, C) group sums
    mean = g[0:1] * inv_n
    var = jnp.maximum(g[1:2] * inv_n - mean * mean, 0.0)
    inv_std = jax.lax.rsqrt(var + eps)
    o_ref[0] = (x - mean) * (inv_std * gamma_ref[...]) + beta_ref[...]


def _row_scale_kernel(x_ref, s_ref, o_ref):
    o_ref[...] = x_ref[...] * s_ref[...]


def _max_reduce_kernel(x_ref, o_ref):
    o_ref[...] = jnp.max(x_ref[...], axis=0)


# ----------------------------------------------------------------------------
# Matmul wrapper (bf16 MXU, fused bias + activation, adaptive tiles)
# ----------------------------------------------------------------------------
def _matmul_tiles(K, N):
    Kp = _round_up(K, 128)
    tk = 128
    for cand in (512, 384, 256, 128):
        if Kp % cand == 0:
            tk = cand
            break
    tn = 128 if N <= 128 else 256
    Np = _round_up(N, tn)
    return Kp, tk, Np, tn


def prep_matmul_weight(w_kn, bias=None, KH=1, KW=1, stride=1, pad=0):
    """Pre-transpose / pre-pad / bf16-cast a (K, N) weight once at init."""
    K, N = w_kn.shape
    Kp, tk, Np, tn = _matmul_tiles(K, N)
    wp = jnp.pad(w_kn, ((0, Kp - K), (0, Np - N))).astype(jnp.bfloat16)
    if bias is None:
        bias = jnp.zeros((N,), jnp.float32)
    bp = jnp.pad(bias.astype(jnp.float32), (0, Np - N)).reshape(1, Np)
    return MM(wp, bp, K, N, tk, tn, KH, KW, stride, pad)


def prep_conv(w_oihw, bias, stride=1, pad=0):
    Cout, Cin, KH, KW = w_oihw.shape
    w_kn = jnp.transpose(w_oihw, (2, 3, 1, 0)).reshape(KH * KW * Cin, Cout)
    return prep_matmul_weight(w_kn, bias, KH, KW, stride, pad)


def matmul_bias(a, mm, activation="none"):
    """(M,K) @ prepped (K,N) + bias, fused activation. bf16 MXU, f32 acc."""
    M, K = a.shape
    assert K == mm.K, (K, mm.K)
    Kp, Np = mm.w.shape
    tk, tn = mm.tk, mm.tn
    tm = min(_round_up(max(M, 1), 8), 128)
    Mp = _round_up(M, tm)
    a_p = jnp.pad(a, ((0, Mp - M), (0, Kp - K))).astype(jnp.bfloat16)
    grid = (Mp // tm, Np // tn, Kp // tk)
    out = pl.pallas_call(
        functools.partial(_matmul_bias_kernel, activation=activation),
        out_shape=jax.ShapeDtypeStruct((Mp, Np), jnp.float32),
        grid_spec=pltpu.PrefetchScalarGridSpec(
            num_scalar_prefetch=0,
            grid=grid,
            in_specs=[
                pl.BlockSpec((tm, tk), lambda i, j, k: (i, k)),
                pl.BlockSpec((tk, tn), lambda i, j, k: (k, j)),
                pl.BlockSpec((1, tn), lambda i, j, k: (0, j)),
            ],
            out_specs=pl.BlockSpec((tm, tn), lambda i, j, k: (i, j)),
            scratch_shapes=[pltpu.VMEM((tm, tn), jnp.float32)],
        ),
        compiler_params=pltpu.CompilerParams(
            dimension_semantics=("parallel", "parallel", "arbitrary")),
    )(a_p, mm.w, mm.b)
    return out[:M, :mm.N]


# ----------------------------------------------------------------------------
# Layer wrappers
# ----------------------------------------------------------------------------
def conv2d_nhwc(x, mm, activation="none"):
    """Conv2d via im2col glue + Pallas MXU matmul (fused bias/activation)."""
    B, H, W_, Cin = x.shape
    KH, KW, stride, pad = mm.KH, mm.KW, mm.stride, mm.pad
    xp = jnp.pad(x, ((0, 0), (pad, pad), (pad, pad), (0, 0))) if pad else x
    Hp, Wp = H + 2 * pad, W_ + 2 * pad
    Ho = (Hp - KH) // stride + 1
    Wo = (Wp - KW) // stride + 1
    if KH == 1 and KW == 1 and stride == 1:
        patches = xp
    else:
        cols = []
        for dy in range(KH):
            for dx in range(KW):
                cols.append(xp[:, dy:dy + stride * Ho:stride,
                               dx:dx + stride * Wo:stride, :])
        patches = jnp.concatenate(cols, axis=-1)
    a = patches.reshape(B * Ho * Wo, KH * KW * Cin)
    out = matmul_bias(a, mm, activation=activation)
    return out.reshape(B, Ho, Wo, mm.N)


def channel_attention(x, w1p, w2p):
    """Fused CBAM channel attention: one Pallas kernel per batch element."""
    B, H, W_, C = x.shape
    HW = H * W_
    x2 = x.reshape(B, HW, C)
    out = pl.pallas_call(
        functools.partial(_channel_att_kernel, inv_hw=1.0 / float(HW), c=C),
        out_shape=jax.ShapeDtypeStruct((B, HW, C), jnp.float32),
        grid=(B,),
        in_specs=[
            pl.BlockSpec((1, HW, C), lambda b: (b, 0, 0)),
            pl.BlockSpec((C, 128), lambda b: (0, 0)),
            pl.BlockSpec((128, C), lambda b: (0, 0)),
        ],
        out_specs=pl.BlockSpec((1, HW, C), lambda b: (b, 0, 0)),
        compiler_params=pltpu.CompilerParams(
            dimension_semantics=("parallel",)),
    )(x2, w1p, w2p)
    return out.reshape(B, H, W_, C)


def row_scale(x2d, s_col):
    """out[m, c] = x[m, c] * s[m, 0] (spatial-attention broadcast multiply)."""
    M, C = x2d.shape
    tm = min(_round_up(max(M, 1), 8), 512)
    Mp, Cp = _round_up(M, tm), _round_up(C, 128)
    xp = jnp.pad(x2d, ((0, Mp - M), (0, Cp - C)))
    sp = jnp.pad(s_col, ((0, Mp - M), (0, 0)))
    out = pl.pallas_call(
        _row_scale_kernel,
        out_shape=jax.ShapeDtypeStruct((Mp, Cp), jnp.float32),
        grid=(Mp // tm,),
        in_specs=[
            pl.BlockSpec((tm, Cp), lambda i: (i, 0)),
            pl.BlockSpec((tm, 1), lambda i: (i, 0)),
        ],
        out_specs=pl.BlockSpec((tm, Cp), lambda i: (i, 0)),
        compiler_params=pltpu.CompilerParams(
            dimension_semantics=("parallel",)),
    )(xp, sp)
    return out[:M, :C]


def spatial_attention(x, sa_mm):
    """CBAM spatial attention: channel mean/max glue + 7x7 conv (Pallas matmul
    with fused sigmoid) + Pallas broadcast multiply."""
    B, H, W_, C = x.shape
    mean_c = jnp.mean(x, axis=-1, keepdims=True)
    max_c = jnp.max(x, axis=-1, keepdims=True)
    feat = jnp.concatenate([mean_c, max_c], axis=-1)          # (B,H,W,2)
    att = conv2d_nhwc(feat, sa_mm, activation="sigmoid")      # (B,H,W,1)
    out = row_scale(x.reshape(B * H * W_, C), att.reshape(B * H * W_, 1))
    return out.reshape(B, H, W_, C)


def cbam(x, p):
    x = channel_attention(x, p["ca_w1"], p["ca_w2"])
    x = spatial_attention(x, p["sa"])
    return x


def group_norm(x, gnp, eps=1e-5):
    """Fused GroupNorm (stats + normalize + affine) per batch element."""
    B, H, W_, C = x.shape
    HW = H * W_
    n = float(gnp.group_size * HW)
    x2 = x.reshape(B, HW, C)
    out = pl.pallas_call(
        functools.partial(_group_norm_kernel, inv_n=1.0 / n, eps=eps, c=C),
        out_shape=jax.ShapeDtypeStruct((B, HW, C), jnp.float32),
        grid=(B,),
        in_specs=[
            pl.BlockSpec((1, HW, C), lambda b: (b, 0, 0)),
            pl.BlockSpec((C, C), lambda b: (0, 0)),
            pl.BlockSpec((1, C), lambda b: (0, 0)),
            pl.BlockSpec((1, C), lambda b: (0, 0)),
        ],
        out_specs=pl.BlockSpec((1, HW, C), lambda b: (b, 0, 0)),
        compiler_params=pltpu.CompilerParams(
            dimension_semantics=("parallel",)),
    )(x2, gnp.mgrp, gnp.gamma, gnp.beta)
    return out.reshape(B, H, W_, C)


def maxpool_nhwc(x, k, stride, pad):
    """MaxPool2d(kernel=k, stride, pad) on NHWC via window stacking + Pallas
    max-reduce (activations here are tiny, so the k*k stack is negligible)."""
    B, H, W_, C = x.shape
    neg = -3.0e38
    if pad > 0:
        x = jnp.pad(x, ((0, 0), (pad, pad), (pad, pad), (0, 0)),
                    constant_values=neg)
    Hp, Wp = H + 2 * pad, W_ + 2 * pad
    Ho = (Hp - k) // stride + 1
    Wo = (Wp - k) // stride + 1
    wins = [x[:, dy:dy + stride * Ho:stride, dx:dx + stride * Wo:stride, :]
            for dy in range(k) for dx in range(k)]
    stacked = jnp.stack(wins, axis=0).reshape(k * k, B * Ho * Wo, C)
    M = B * Ho * Wo
    tm = min(_round_up(max(M, 1), 8), 256)
    Mp, Cp = _round_up(M, tm), _round_up(C, 128)
    sp = jnp.pad(stacked, ((0, 0), (0, Mp - M), (0, Cp - C)),
                 constant_values=neg)
    out = pl.pallas_call(
        _max_reduce_kernel,
        out_shape=jax.ShapeDtypeStruct((Mp, Cp), jnp.float32),
        grid=(Mp // tm,),
        in_specs=[pl.BlockSpec((k * k, tm, Cp), lambda i: (0, i, 0))],
        out_specs=pl.BlockSpec((tm, Cp), lambda i: (i, 0)),
        compiler_params=pltpu.CompilerParams(
            dimension_semantics=("parallel",)),
    )(sp)
    return out[:M, :C].reshape(B, Ho, Wo, C)


def adaptive_avg_pool_nhwc(x, out_hw):
    """AdaptiveAvgPool2d with exact PyTorch bin semantics (tiny glue op)."""
    B, H, W_, C = x.shape
    oh, ow = out_hw
    rows = []
    for i in range(oh):
        hs, he = (i * H) // oh, -(-((i + 1) * H) // oh)
        cols = []
        for j in range(ow):
            ws, we = (j * W_) // ow, -(-((j + 1) * W_) // ow)
            cols.append(jnp.mean(x[:, hs:he, ws:we, :], axis=(1, 2)))
        rows.append(jnp.stack(cols, axis=1))
    return jnp.stack(rows, axis=1)  # (B, oh, ow, C)


# ----------------------------------------------------------------------------
# Parameter init (deterministic, synthetic) + one-time weight prep
# ----------------------------------------------------------------------------
class _KeyGen:
    def __init__(self, key):
        self.key = key

    def __call__(self):
        self.key, sub = jax.random.split(self.key)
        return sub


def init_params(key, num_classes):
    kg = _KeyGen(key)

    def conv_w(cout, cin, kh, kw):
        fan_in = cin * kh * kw
        w = jax.random.normal(kg(), (cout, cin, kh, kw),
                              jnp.float32) / jnp.sqrt(jnp.float32(fan_in))
        b = 0.01 * jax.random.normal(kg(), (cout,), jnp.float32)
        return w, b

    def lin_w(cout, cin, bias=True):
        w = jax.random.normal(kg(), (cout, cin),
                              jnp.float32) / jnp.sqrt(jnp.float32(cin))
        b = (0.01 * jax.random.normal(kg(), (cout,), jnp.float32)
             if bias else None)
        return w, b

    def cbam_p(c, reduction=16):
        cr = c // reduction
        w1, _ = lin_w(cr, c, bias=False)      # (Cr, C)
        w2, _ = lin_w(c, cr, bias=False)      # (C, Cr)
        # pad the tiny bottleneck dim to 128 lanes once; zeros are inert.
        w1p = jnp.zeros((c, 128), jnp.float32).at[:, :cr].set(jnp.transpose(w1))
        w2p = jnp.zeros((128, c), jnp.float32).at[:cr, :].set(jnp.transpose(w2))
        sa_w = jax.random.normal(kg(), (1, 2, 7, 7),
                                 jnp.float32) / jnp.sqrt(jnp.float32(98))
        return {"ca_w1": w1p, "ca_w2": w2p,
                "sa": prep_conv(sa_w, None, stride=1, pad=3)}

    def gn_p(groups, c):
        gamma = 1.0 + 0.1 * jax.random.normal(kg(), (c,), jnp.float32)
        beta = 0.1 * jax.random.normal(kg(), (c,), jnp.float32)
        gsize = c // groups
        mgrp = jnp.kron(jnp.eye(groups, dtype=jnp.float32),
                        jnp.ones((gsize, gsize), jnp.float32))  # (C, C)
        return GNP(gamma.reshape(1, c), beta.reshape(1, c), mgrp, gsize)

    w, b = conv_w(64, 3, 11, 11);   conv1 = prep_conv(w, b, stride=4, pad=2)
    w, b = conv_w(192, 64, 5, 5);   conv2 = prep_conv(w, b, stride=1, pad=2)
    w, b = conv_w(384, 192, 3, 3);  conv3 = prep_conv(w, b, stride=1, pad=1)
    w, b = conv_w(256, 384, 3, 3);  conv4 = prep_conv(w, b, stride=1, pad=1)
    w, b = conv_w(256, 256, 3, 3);  conv5 = prep_conv(w, b, stride=1, pad=1)

    w, b = lin_w(4096, 256 * 6 * 6); fc1 = prep_matmul_weight(jnp.transpose(w), b)
    w, b = lin_w(4096, 4096);        fc2 = prep_matmul_weight(jnp.transpose(w), b)
    w, b = lin_w(num_classes, 4096); fc3 = prep_matmul_weight(jnp.transpose(w), b)

    return {
        "conv1": conv1, "conv2": conv2, "conv3": conv3,
        "conv4": conv4, "conv5": conv5,
        "cbam1": cbam_p(64), "cbam2": cbam_p(192), "cbam3": cbam_p(256),
        "gn1": gn_p(8, 64), "gn2": gn_p(24, 192), "gn3": gn_p(32, 256),
        "fc1": fc1, "fc2": fc2, "fc3": fc3,
    }


# ----------------------------------------------------------------------------
# Forward pass
# ----------------------------------------------------------------------------
def lw_cbam_alexnet_forward(x_nchw, P):
    x = jnp.transpose(x_nchw, (0, 2, 3, 1)).astype(jnp.float32)  # -> NHWC

    # features
    x = conv2d_nhwc(x, P["conv1"], activation="relu")
    x = maxpool_nhwc(x, 3, 2, 0)
    x = cbam(x, P["cbam1"])
    x = group_norm(x, P["gn1"])

    x = conv2d_nhwc(x, P["conv2"], activation="relu")
    x = maxpool_nhwc(x, 3, 2, 0)
    x = cbam(x, P["cbam2"])
    x = group_norm(x, P["gn2"])

    x = conv2d_nhwc(x, P["conv3"], activation="relu")
    x = conv2d_nhwc(x, P["conv4"], activation="relu")
    x = conv2d_nhwc(x, P["conv5"], activation="relu")
    x = maxpool_nhwc(x, 3, 2, 0)
    x = cbam(x, P["cbam3"])
    x = group_norm(x, P["gn3"])

    # avgpool + flatten (NCHW flatten order, as in x.view(B, 256*6*6))
    x = adaptive_avg_pool_nhwc(x, (6, 6))
    B = x.shape[0]
    x = jnp.transpose(x, (0, 3, 1, 2)).reshape(B, 256 * 6 * 6)

    # classifier (Dropout == identity in eval mode)
    x = matmul_bias(x, P["fc1"], activation="relu")
    x = matmul_bias(x, P["fc2"], activation="relu")
    x = matmul_bias(x, P["fc3"], activation="none")
    return x


# ----------------------------------------------------------------------------
if __name__ == "__main__":
    NUM_CLASSES = 16
    key = jax.random.PRNGKey(0)
    k_x, k_p = jax.random.split(key)

    # Small but architecture-consistent input: 96x96 RGB -> 2x2 feature map,
    # AdaptiveAvgPool2d upsample-averages to the fixed 6x6 classifier grid.
    x = jax.random.normal(k_x, (2, 3, 96, 96), jnp.float32)  # NCHW like PyTorch
    params = init_params(k_p, NUM_CLASSES)

    fwd = jax.jit(lw_cbam_alexnet_forward)
    out = fwd(x, params)
    out = jax.block_until_ready(out)

    assert out.shape == (2, NUM_CLASSES), out.shape
    assert jnp.all(jnp.isfinite(out))
    print("KERNEL_OK")
</pallas_src>

<mosaic_0001>
module attributes {stable_mosaic.version = 11 : i64} {
  func.func @_matmul_bias_kernel(%arg0: i32, %arg1: i32, %arg2: i32, %arg3: memref<128x384xbf16, #tpu.memory_space<vmem>>, %arg4: memref<384x128xbf16, #tpu.memory_space<vmem>>, %arg5: memref<1x128xf32, #tpu.memory_space<vmem>>, %arg6: memref<128x128xf32, #tpu.memory_space<vmem>>, %arg7: memref<128x128xf32, #tpu.memory_space<vmem>>) attributes {dimension_semantics = [#tpu.dimension_semantics<parallel>, #tpu.dimension_semantics<parallel>, #tpu.dimension_semantics<arbitrary>], iteration_bounds = array<i64: 9, 1, 1>, scalar_prefetch = 0 : i64, scratch_operands = 1 : i64, tpu.core_type = #tpu.core_type<tc>, window_params = [{transform_indices = @transform_0, window_bounds = array<i64: 128, 384>}, {transform_indices = @transform_1, window_bounds = array<i64: 384, 128>}, {transform_indices = @transform_2, window_bounds = array<i64: 1, 128>}, {transform_indices = @transform_3, window_bounds = array<i64: 128, 128>}]} {
    %c0_i32 = arith.constant 0 : i32
    %0 = arith.cmpi eq, %arg2, %c0_i32 : i32
    %1 = arith.extui %0 : i1 to i32
    %c0_i32_0 = arith.constant 0 : i32
    %2 = arith.cmpi ne, %1, %c0_i32_0 : i32
    scf.if %2 {
      %cst_10 = arith.constant 0.000000e+00 : f32
      %12 = vector.broadcast %cst_10 : f32 to vector<128x128xf32>
      %c0_11 = arith.constant 0 : index
      %c0_12 = arith.constant 0 : index
      %13 = vector.load %arg7[%c0_11, %c0_12] : memref<128x128xf32, #tpu.memory_space<vmem>>, vector<128x128xf32>
      tpu.vector_store %arg7[%c0_11, %c0_12], %12 {strides = array<i32>} : memref<128x128xf32, #tpu.memory_space<vmem>>, vector<128x128xf32>,
    } else {
    }
    %c0 = arith.constant 0 : index
    %c0_1 = arith.constant 0 : index
    %3 = vector.load %arg7[%c0, %c0_1] : memref<128x128xf32, #tpu.memory_space<vmem>>, vector<128x128xf32>
    %c0_2 = arith.constant 0 : index
    %c0_3 = arith.constant 0 : index
    %4 = vector.load %arg3[%c0_2, %c0_3] : memref<128x384xbf16, #tpu.memory_space<vmem>>, vector<128x384xbf16>
    %c0_4 = arith.constant 0 : index
    %c0_5 = arith.constant 0 : index
    %5 = vector.load %arg4[%c0_4, %c0_5] : memref<384x128xbf16, #tpu.memory_space<vmem>>, vector<384x128xbf16>
    %cst = arith.constant dense<0.000000e+00> : vector<128x128xf32>
    %6 = tpu.matmul %4, %5, %cst {dimension_numbers = #tpu.dot_dimension_numbers<[1], [0], [0], [1], [0, 0, 1, 1], [], []>} : vector<128x384xbf16>, vector<384x128xbf16>, vector<128x128xf32> -> vector<128x128xf32>
    %7 = arith.addf %3, %6 : vector<128x128xf32>
    %c0_6 = arith.constant 0 : index
    %c0_7 = arith.constant 0 : index
    %8 = vector.load %arg7[%c0_6, %c0_7] : memref<128x128xf32, #tpu.memory_space<vmem>>, vector<128x128xf32>
    tpu.vector_store %arg7[%c0_6, %c0_7], %7 {strides = array<i32>} : memref<128x128xf32, #tpu.memory_space<vmem>>, vector<128x128xf32>,
    %c0_i32_8 = arith.constant 0 : i32
    %9 = arith.cmpi eq, %arg2, %c0_i32_8 : i32
    %10 = arith.extui %9 : i1 to i32
    %c0_i32_9 = arith.constant 0 : i32
    %11 = arith.cmpi ne, %10, %c0_i32_9 : i32
    scf.if %11 {
      %c0_10 = arith.constant 0 : index
      %c0_11 = arith.constant 0 : index
      %12 = vector.load %arg7[%c0_10, %c0_11] : memref<128x128xf32, #tpu.memory_space<vmem>>, vector<128x128xf32>
      %c0_12 = arith.constant 0 : index
      %c0_13 = arith.constant 0 : index
      %13 = vector.load %arg5[%c0_12, %c0_13] : memref<1x128xf32, #tpu.memory_space<vmem>>, vector<1x128xf32>
      %14 = vector.broadcast %13 : vector<1x128xf32> to vector<128x128xf32>
      %15 = arith.addf %12, %14 : vector<128x128xf32>
      %cst_14 = arith.constant 0.000000e+00 : f32
      %16 = vector.broadcast %cst_14 : f32 to vector<128x128xf32>
      %17 = arith.maximumf %15, %16 : vector<128x128xf32>
      %c0_15 = arith.constant 0 : index
      %c0_16 = arith.constant 0 : index
      %18 = vector.load %arg6[%c0_15, %c0_16] : memref<128x128xf32, #tpu.memory_space<vmem>>, vector<128x128xf32>
      tpu.vector_store %arg6[%c0_15, %c0_16], %17 {strides = array<i32>} : memref<128x128xf32, #tpu.memory_space<vmem>>, vector<128x128xf32>,
    } else {
    }
    return
  }
  func.func @transform_0(%arg0: i32, %arg1: i32, %arg2: i32) -> (i32, i32) {
    %c0_i32 = arith.constant 0 : i32
    return %arg0, %arg2 : i32, i32
  }
  func.func @transform_1(%arg0: i32, %arg1: i32, %arg2: i32) -> (i32, i32) {
    %c0_i32 = arith.constant 0 : i32
    return %arg2, %arg1 : i32, i32
  }
  func.func @transform_2(%arg0: i32, %arg1: i32, %arg2: i32) -> (i32, i32) {
    %c0_i32 = arith.constant 0 : i32
    %c0_i32_0 = arith.constant 0 : i32
    return %c0_i32, %arg1 : i32, i32
  }
  func.func @transform_3(%arg0: i32, %arg1: i32, %arg2: i32) -> (i32, i32) {
    %c0_i32 = arith.constant 0 : i32
    return %arg0, %arg1 : i32, i32
  }
}

module attributes {stable_mosaic.version = 11 : i64} {
  func.func @_max_reduce_kernel(%arg0: i32, %arg1: memref<9x248x128xf32, #tpu.memory_space<vmem>>, %arg2: memref<248x128xf32, #tpu.memory_space<vmem>>) attributes {dimension_semantics = [#tpu.dimension_semantics<parallel>], iteration_bounds = array<i64: 1>, scalar_prefetch = 0 : i64, scratch_operands = 0 : i64, tpu.core_type = #tpu.core_type<tc>, window_params = [{transform_indices = @transform_0, window_bounds = array<i64: 9, 248, 128>}, {transform_indices = @transform_1, window_bounds = array<i64: 248, 128>}]} {
    %c0 = arith.constant 0 : index
    %c0_0 = arith.constant 0 : index
    %c0_1 = arith.constant 0 : index
    %0 = vector.load %arg1[%c0, %c0_0, %c0_1] : memref<9x248x128xf32, #tpu.memory_space<vmem>>, vector<9x248x128xf32>
    %cst = arith.constant dense<0xFF800000> : vector<248x128xf32>
    %1 = vector.multi_reduction <maximumf>, %0, %cst [0] : vector<9x248x128xf32> to vector<248x128xf32>
    %c0_2 = arith.constant 0 : index
    %c0_3 = arith.constant 0 : index
    %2 = vector.load %arg2[%c0_2, %c0_3] : memref<248x128xf32, #tpu.memory_space<vmem>>, vector<248x128xf32>
    tpu.vector_store %arg2[%c0_2, %c0_3], %1 {strides = array<i32>} : memref<248x128xf32, #tpu.memory_space<vmem>>, vector<248x128xf32>,
    return
  }
  func.func @transform_0(%arg0: i32) -> (i32, i32, i32) {
    %c0_i32 = arith.constant 0 : i32
    %c0_i32_0 = arith.constant 0 : i32
    %c0_i32_1 = arith.constant 0 : i32
    return %c0_i32, %arg0, %c0_i32_0 : i32, i32, i32
  }
  func.func @transform_1(%arg0: i32) -> (i32, i32) {
    %c0_i32 = arith.constant 0 : i32
    %c0_i32_0 = arith.constant 0 : i32
    return %arg0, %c0_i32 : i32, i32
  }
}

module attributes {stable_mosaic.version = 11 : i64} {
  func.func @_channel_att_kernel(%arg0: i32, %arg1: memref<1x121x64xf32, #tpu.memory_space<vmem>>, %arg2: memref<64x128xf32, #tpu.memory_space<vmem>>, %arg3: memref<128x64xf32, #tpu.memory_space<vmem>>, %arg4: memref<1x121x64xf32, #tpu.memory_space<vmem>>) attributes {dimension_semantics = [#tpu.dimension_semantics<parallel>], iteration_bounds = array<i64: 2>, scalar_prefetch = 0 : i64, scratch_operands = 0 : i64, tpu.core_type = #tpu.core_type<tc>, window_params = [{transform_indices = @transform_0, window_bounds = array<i64: 1, 121, 64>}, {pipeline_mode = #tpu.pipeline_mode<synchronous>, transform_indices = @transform_1, window_bounds = array<i64: 64, 128>}, {pipeline_mode = #tpu.pipeline_mode<synchronous>, transform_indices = @transform_2, window_bounds = array<i64: 128, 64>}, {transform_indices = @transform_3, window_bounds = array<i64: 1, 121, 64>}]} {
    %c0 = arith.constant 0 : index
    %c0_0 = arith.constant 0 : index
    %c0_1 = arith.constant 0 : index
    %0 = vector.load %arg1[%c0, %c0_0, %c0_1] : memref<1x121x64xf32, #tpu.memory_space<vmem>>, vector<1x121x64xf32>
    %1 = vector.shape_cast %0 : vector<1x121x64xf32> to vector<121x64xf32>
    %cst = arith.constant dense<0.000000e+00> : vector<64xf32>
    %2 = vector.multi_reduction <add>, %1, %cst [0] : vector<121x64xf32> to vector<64xf32>
    %3 = vector.shape_cast %2 : vector<64xf32> to vector<1x64xf32>
    %cst_2 = arith.constant 0.00826446246 : f32
    %4 = vector.broadcast %cst_2 : f32 to vector<1x64xf32>
    %5 = arith.mulf %3, %4 : vector<1x64xf32>
    %cst_3 = arith.constant dense<0xFF800000> : vector<64xf32>
    %6 = vector.multi_reduction <maximumf>, %1, %cst_3 [0] : vector<121x64xf32> to vector<64xf32>
    %7 = vector.shape_cast %6 : vector<64xf32> to vector<1x64xf32>
    %cst_4 = arith.constant 0.000000e+00 : f32
    %8 = vector.broadcast %cst_4 : f32 to vector<6x64xf32>
    %9 = tpu.concatenate %5, %7, %8 in 0 : vector<1x64xf32>, vector<1x64xf32>, vector<6x64xf32> -> vector<8x64xf32>
    %c0_5 = arith.constant 0 : index
    %c0_6 = arith.constant 0 : index
    %10 = vector.load %arg2[%c0_5, %c0_6] : memref<64x128xf32, #tpu.memory_space<vmem>>, vector<64x128xf32>
    %cst_7 = arith.constant dense<0.000000e+00> : vector<8x128xf32>
    %11 = tpu.matmul %9, %10, %cst_7 {dimension_numbers = #tpu.dot_dimension_numbers<[1], [0], [0], [1], [0, 0, 1, 1], [], []>} : vector<8x64xf32>, vector<64x128xf32>, vector<8x128xf32> -> vector<8x128xf32>
    %cst_8 = arith.constant 0.000000e+00 : f32
    %12 = vector.broadcast %cst_8 : f32 to vector<8x128xf32>
    %13 = arith.maximumf %11, %12 : vector<8x128xf32>
    %c0_9 = arith.constant 0 : index
    %c0_10 = arith.constant 0 : index
    %14 = vector.load %arg3[%c0_9, %c0_10] : memref<128x64xf32, #tpu.memory_space<vmem>>, vector<128x64xf32>
    %cst_11 = arith.constant dense<0.000000e+00> : vector<8x64xf32>
    %15 = tpu.matmul %13, %14, %cst_11 {dimension_numbers = #tpu.dot_dimension_numbers<[1], [0], [0], [1], [0, 0, 1, 1], [], []>} : vector<8x128xf32>, vector<128x64xf32>, vector<8x64xf32> -> vector<8x64xf32>
    %16 = vector.extract_strided_slice %15 {offsets = [0, 0], sizes = [1, 64], strides = [1, 1]} : vector<8x64xf32> to vector<1x64xf32>
    %17 = vector.extract_strided_slice %15 {offsets = [1, 0], sizes = [1, 64], strides = [1, 1]} : vector<8x64xf32> to vector<1x64xf32>
    %18 = arith.addf %16, %17 : vector<1x64xf32>
    %cst_12 = arith.constant 0.000000e+00 : f32
    %19 = vector.broadcast %cst_12 : f32 to vector<1x64xf32>
    %20 = arith.subf %19, %18 : vector<1x64xf32>
    %21 = math.exp %20 : vector<1x64xf32>
    %cst_13 = arith.constant 1.000000e+00 : f32
    %22 = vector.broadcast %cst_13 : f32 to vector<1x64xf32>
    %23 = arith.addf %22, %21 : vector<1x64xf32>
    %cst_14 = arith.constant 1.000000e+00 : f32
    %24 = vector.broadcast %cst_14 : f32 to vector<1x64xf32>
    %25 = arith.divf %24, %23 : vector<1x64xf32>
    %26 = vector.broadcast %25 : vector<1x64xf32> to vector<121x64xf32>
    %27 = arith.mulf %1, %26 : vector<121x64xf32>
    %c0_15 = arith.constant 0 : index
    %c0_16 = arith.constant 0 : index
    %c0_17 = arith.constant 0 : index
    %28 = vector.load %arg4[%c0_15, %c0_16, %c0_17] : memref<1x121x64xf32, #tpu.memory_space<vmem>>, vector<1x121x64xf32>
    %29 = vector.shape_cast %28 : vector<1x121x64xf32> to vector<121x64xf32>
    %30 = vector.shape_cast %27 : vector<121x64xf32> to vector<1x121x64xf32>
    tpu.vector_store %arg4[%c0_15, %c0_16, %c0_17], %30 {strides = array<i32>} : memref<1x121x64xf32, #tpu.memory_space<vmem>>, vector<1x121x64xf32>,
    return
  }
  func.func @transform_0(%arg0: i32) -> (i32, i32, i32) {
    %c0_i32 = arith.constant 0 : i32
    %c0_i32_0 = arith.constant 0 : i32
    %c0_i32_1 = arith.constant 0 : i32
    return %arg0, %c0_i32, %c0_i32_0 : i32, i32, i32
  }
  func.func @transform_1(%arg0: i32) -> (i32, i32) {
    %c0_i32 = arith.constant 0 : i32
    %c0_i32_0 = arith.constant 0 : i32
    %c0_i32_1 = arith.constant 0 : i32
    return %c0_i32, %c0_i32_0 : i32, i32
  }
  func.func @transform_2(%arg0: i32) -> (i32, i32) {
    %c0_i32 = arith.constant 0 : i32
    %c0_i32_0 = arith.constant 0 : i32
    %c0_i32_1 = arith.constant 0 : i32
    return %c0_i32, %c0_i32_0 : i32, i32
  }
  func.func @transform_3(%arg0: i32) -> (i32, i32, i32) {
    %c0_i32 = arith.constant 0 : i32
    %c0_i32_0 = arith.constant 0 : i32
    %c0_i32_1 = arith.constant 0 : i32
    return %arg0, %c0_i32, %c0_i32_0 : i32, i32, i32
  }
}

module attributes {stable_mosaic.version = 11 : i64} {
  func.func @_matmul_bias_kernel(%arg0: i32, %arg1: i32, %arg2: i32, %arg3: memref<128x128xbf16, #tpu.memory_space<vmem>>, %arg4: memref<128x128xbf16, #tpu.memory_space<vmem>>, %arg5: memref<1x128xf32, #tpu.memory_space<vmem>>, %arg6: memref<128x128xf32, #tpu.memory_space<vmem>>, %arg7: memref<128x128xf32, #tpu.memory_space<vmem>>) attributes {dimension_semantics = [#tpu.dimension_semantics<parallel>, #tpu.dimension_semantics<parallel>, #tpu.dimension_semantics<arbitrary>], iteration_bounds = array<i64: 2, 1, 1>, scalar_prefetch = 0 : i64, scratch_operands = 1 : i64, tpu.core_type = #tpu.core_type<tc>, window_params = [{transform_indices = @transform_0, window_bounds = array<i64: 128, 128>}, {transform_indices = @transform_1, window_bounds = array<i64: 128, 128>}, {transform_indices = @transform_2, window_bounds = array<i64: 1, 128>}, {transform_indices = @transform_3, window_bounds = array<i64: 128, 128>}]} {
    %c0_i32 = arith.constant 0 : i32
    %0 = arith.cmpi eq, %arg2, %c0_i32 : i32
    %1 = arith.extui %0 : i1 to i32
    %c0_i32_0 = arith.constant 0 : i32
    %2 = arith.cmpi ne, %1, %c0_i32_0 : i32
    scf.if %2 {
      %cst_10 = arith.constant 0.000000e+00 : f32
      %12 = vector.broadcast %cst_10 : f32 to vector<128x128xf32>
      %c0_11 = arith.constant 0 : index
      %c0_12 = arith.constant 0 : index
      %13 = vector.load %arg7[%c0_11, %c0_12] : memref<128x128xf32, #tpu.memory_space<vmem>>, vector<128x128xf32>
      tpu.vector_store %arg7[%c0_11, %c0_12], %12 {strides = array<i32>} : memref<128x128xf32, #tpu.memory_space<vmem>>, vector<128x128xf32>,
    } else {
    }
    %c0 = arith.constant 0 : index
    %c0_1 = arith.constant 0 : index
    %3 = vector.load %arg7[%c0, %c0_1] : memref<128x128xf32, #tpu.memory_space<vmem>>, vector<128x128xf32>
    %c0_2 = arith.constant 0 : index
    %c0_3 = arith.constant 0 : index
    %4 = vector.load %arg3[%c0_2, %c0_3] : memref<128x128xbf16, #tpu.memory_space<vmem>>, vector<128x128xbf16>
    %c0_4 = arith.constant 0 : index
    %c0_5 = arith.constant 0 : index
    %5 = vector.load %arg4[%c0_4, %c0_5] : memref<128x128xbf16, #tpu.memory_space<vmem>>, vector<128x128xbf16>
    %cst = arith.constant dense<0.000000e+00> : vector<128x128xf32>
    %6 = tpu.matmul %4, %5, %cst {dimension_numbers = #tpu.dot_dimension_numbers<[1], [0], [0], [1], [0, 0, 1, 1], [], []>} : vector<128x128xbf16>, vector<128x128xbf16>, vector<128x128xf32> -> vector<128x128xf32>
    %7 = arith.addf %3, %6 : vector<128x128xf32>
    %c0_6 = arith.constant 0 : index
    %c0_7 = arith.constant 0 : index
    %8 = vector.load %arg7[%c0_6, %c0_7] : memref<128x128xf32, #tpu.memory_space<vmem>>, vector<128x128xf32>
    tpu.vector_store %arg7[%c0_6, %c0_7], %7 {strides = array<i32>} : memref<128x128xf32, #tpu.memory_space<vmem>>, vector<128x128xf32>,
    %c0_i32_8 = arith.constant 0 : i32
    %9 = arith.cmpi eq, %arg2, %c0_i32_8 : i32
    %10 = arith.extui %9 : i1 to i32
    %c0_i32_9 = arith.constant 0 : i32
    %11 = arith.cmpi ne, %10, %c0_i32_9 : i32
    scf.if %11 {
      %c0_10 = arith.constant 0 : index
      %c0_11 = arith.constant 0 : index
      %12 = vector.load %arg7[%c0_10, %c0_11] : memref<128x128xf32, #tpu.memory_space<vmem>>, vector<128x128xf32>
      %c0_12 = arith.constant 0 : index
      %c0_13 = arith.constant 0 : index
      %13 = vector.load %arg5[%c0_12, %c0_13] : memref<1x128xf32, #tpu.memory_space<vmem>>, vector<1x128xf32>
      %14 = vector.broadcast %13 : vector<1x128xf32> to vector<128x128xf32>
      %15 = arith.addf %12, %14 : vector<128x128xf32>
      %cst_14 = arith.constant 0.000000e+00 : f32
      %16 = vector.broadcast %cst_14 : f32 to vector<128x128xf32>
      %17 = arith.subf %16, %15 : vector<128x128xf32>
      %18 = math.exp %17 : vector<128x128xf32>
      %cst_15 = arith.constant 1.000000e+00 : f32
      %19 = vector.broadcast %cst_15 : f32 to vector<128x128xf32>
      %20 = arith.addf %19, %18 : vector<128x128xf32>
      %cst_16 = arith.constant 1.000000e+00 : f32
      %21 = vector.broadcast %cst_16 : f32 to vector<128x128xf32>
      %22 = arith.divf %21, %20 : vector<128x128xf32>
      %c0_17 = arith.constant 0 : index
      %c0_18 = arith.constant 0 : index
      %23 = vector.load %arg6[%c0_17, %c0_18] : memref<128x128xf32, #tpu.memory_space<vmem>>, vector<128x128xf32>
      tpu.vector_store %arg6[%c0_17, %c0_18], %22 {strides = array<i32>} : memref<128x128xf32, #tpu.memory_space<vmem>>, vector<128x128xf32>,
    } else {
    }
    return
  }
  func.func @transform_0(%arg0: i32, %arg1: i32, %arg2: i32) -> (i32, i32) {
    %c0_i32 = arith.constant 0 : i32
    return %arg0, %arg2 : i32, i32
  }
  func.func @transform_1(%arg0: i32, %arg1: i32, %arg2: i32) -> (i32, i32) {
    %c0_i32 = arith.constant 0 : i32
    return %arg2, %arg1 : i32, i32
  }
  func.func @transform_2(%arg0: i32, %arg1: i32, %arg2: i32) -> (i32, i32) {
    %c0_i32 = arith.constant 0 : i32
    %c0_i32_0 = arith.constant 0 : i32
    return %c0_i32, %arg1 : i32, i32
  }
  func.func @transform_3(%arg0: i32, %arg1: i32, %arg2: i32) -> (i32, i32) {
    %c0_i32 = arith.constant 0 : i32
    return %arg0, %arg1 : i32, i32
  }
}

module attributes {stable_mosaic.version = 11 : i64} {
  func.func @_group_norm_kernel(%arg0: i32, %arg1: memref<1x121x64xf32, #tpu.memory_space<vmem>>, %arg2: memref<64x64xf32, #tpu.memory_space<vmem>>, %arg3: memref<1x64xf32, #tpu.memory_space<vmem>>, %arg4: memref<1x64xf32, #tpu.memory_space<vmem>>, %arg5: memref<1x121x64xf32, #tpu.memory_space<vmem>>) attributes {dimension_semantics = [#tpu.dimension_semantics<parallel>], iteration_bounds = array<i64: 2>, scalar_prefetch = 0 : i64, scratch_operands = 0 : i64, tpu.core_type = #tpu.core_type<tc>, window_params = [{transform_indices = @transform_0, window_bounds = array<i64: 1, 121, 64>}, {pipeline_mode = #tpu.pipeline_mode<synchronous>, transform_indices = @transform_1, window_bounds = array<i64: 64, 64>}, {pipeline_mode = #tpu.pipeline_mode<synchronous>, transform_indices = @transform_2, window_bounds = array<i64: 1, 64>}, {pipeline_mode = #tpu.pipeline_mode<synchronous>, transform_indices = @transform_3, window_bounds = array<i64: 1, 64>}, {transform_indices = @transform_4, window_bounds = array<i64: 1, 121, 64>}]} {
    %c0 = arith.constant 0 : index
    %c0_0 = arith.constant 0 : index
    %c0_1 = arith.constant 0 : index
    %0 = vector.load %arg1[%c0, %c0_0, %c0_1] : memref<1x121x64xf32, #tpu.memory_space<vmem>>, vector<1x121x64xf32>
    %1 = vector.shape_cast %0 : vector<1x121x64xf32> to vector<121x64xf32>
    %cst = arith.constant dense<0.000000e+00> : vector<64xf32>
    %2 = vector.multi_reduction <add>, %1, %cst [0] : vector<121x64xf32> to vector<64xf32>
    %3 = vector.shape_cast %2 : vector<64xf32> to vector<1x64xf32>
    %4 = arith.mulf %1, %1 : vector<121x64xf32>
    %cst_2 = arith.constant dense<0.000000e+00> : vector<64xf32>
    %5 = vector.multi_reduction <add>, %4, %cst_2 [0] : vector<121x64xf32> to vector<64xf32>
    %6 = vector.shape_cast %5 : vector<64xf32> to vector<1x64xf32>
    %cst_3 = arith.constant 0.000000e+00 : f32
    %7 = vector.broadcast %cst_3 : f32 to vector<6x64xf32>
    %8 = tpu.concatenate %3, %6, %7 in 0 : vector<1x64xf32>, vector<1x64xf32>, vector<6x64xf32> -> vector<8x64xf32>
    %c0_4 = arith.constant 0 : index
    %c0_5 = arith.constant 0 : index
    %9 = vector.load %arg2[%c0_4, %c0_5] : memref<64x64xf32, #tpu.memory_space<vmem>>, vector<64x64xf32>
    %cst_6 = arith.constant dense<0.000000e+00> : vector<8x64xf32>
    %10 = tpu.matmul %8, %9, %cst_6 {dimension_numbers = #tpu.dot_dimension_numbers<[1], [0], [0], [1], [0, 0, 1, 1], [], []>} : vector<8x64xf32>, vector<64x64xf32>, vector<8x64xf32> -> vector<8x64xf32>
    %11 = vector.extract_strided_slice %10 {offsets = [0, 0], sizes = [1, 64], strides = [1, 1]} : vector<8x64xf32> to vector<1x64xf32>
    %cst_7 = arith.constant 0.00103305781 : f32
    %12 = vector.broadcast %cst_7 : f32 to vector<1x64xf32>
    %13 = arith.mulf %11, %12 : vector<1x64xf32>
    %14 = vector.extract_strided_slice %10 {offsets = [1, 0], sizes = [1, 64], strides = [1, 1]} : vector<8x64xf32> to vector<1x64xf32>
    %cst_8 = arith.constant 0.00103305781 : f32
    %15 = vector.broadcast %cst_8 : f32 to vector<1x64xf32>
    %16 = arith.mulf %14, %15 : vector<1x64xf32>
    %17 = arith.mulf %13, %13 : vector<1x64xf32>
    %18 = arith.subf %16, %17 : vector<1x64xf32>
    %cst_9 = arith.constant 0.000000e+00 : f32
    %19 = vector.broadcast %cst_9 : f32 to vector<1x64xf32>
    %20 = arith.maximumf %18, %19 : vector<1x64xf32>
    %cst_10 = arith.constant 9.99999974E-6 : f32
    %21 = vector.broadcast %cst_10 : f32 to vector<1x64xf32>
    %22 = arith.addf %20, %21 : vector<1x64xf32>
    %23 = math.rsqrt %22 : vector<1x64xf32>
    %24 = vector.broadcast %13 : vector<1x64xf32> to vector<121x64xf32>
    %25 = arith.subf %1, %24 : vector<121x64xf32>
    %c0_11 = arith.constant 0 : index
    %c0_12 = arith.constant 0 : index
    %26 = vector.load %arg3[%c0_11, %c0_12] : memref<1x64xf32, #tpu.memory_space<vmem>>, vector<1x64xf32>
    %27 = arith.mulf %23, %26 : vector<1x64xf32>
    %28 = vector.broadcast %27 : vector<1x64xf32> to vector<121x64xf32>
    %29 = arith.mulf %25, %28 : vector<121x64xf32>
    %c0_13 = arith.constant 0 : index
    %c0_14 = arith.constant 0 : index
    %30 = vector.load %arg4[%c0_13, %c0_14] : memref<1x64xf32, #tpu.memory_space<vmem>>, vector<1x64xf32>
    %31 = vector.broadcast %30 : vector<1x64xf32> to vector<121x64xf32>
    %32 = arith.addf %29, %31 : vector<121x64xf32>
    %c0_15 = arith.constant 0 : index
    %c0_16 = arith.constant 0 : index
    %c0_17 = arith.constant 0 : index
    %33 = vector.load %arg5[%c0_15, %c0_16, %c0_17] : memref<1x121x64xf32, #tpu.memory_space<vmem>>, vector<1x121x64xf32>
    %34 = vector.shape_cast %33 : vector<1x121x64xf32> to vector<121x64xf32>
    %35 = vector.shape_cast %32 : vector<121x64xf32> to vector<1x121x64xf32>
    tpu.vector_store %arg5[%c0_15, %c0_16, %c0_17], %35 {strides = array<i32>} : memref<1x121x64xf32, #tpu.memory_space<vmem>>, vector<1x121x64xf32>,
    return
  }
  func.func @transform_0(%arg0: i32) -> (i32, i32, i32) {
    %c0_i32 = arith.constant 0 : i32
    %c0_i32_0 = arith.constant 0 : i32
    %c0_i32_1 = arith.constant 0 : i32
    return %arg0, %c0_i32, %c0_i32_0 : i32, i32, i32
  }
  func.func @transform_1(%arg0: i32) -> (i32, i32) {
    %c0_i32 = arith.constant 0 : i32
    %c0_i32_0 = arith.constant 0 : i32
    %c0_i32_1 = arith.constant 0 : i32
    return %c0_i32, %c0_i32_0 : i32, i32
  }
  func.func @transform_2(%arg0: i32) -> (i32, i32) {
    %c0_i32 = arith.constant 0 : i32
    %c0_i32_0 = arith.constant 0 : i32
    %c0_i32_1 = arith.constant 0 : i32
    return %c0_i32, %c0_i32_0 : i32, i32
  }
  func.func @transform_3(%arg0: i32) -> (i32, i32) {
    %c0_i32 = arith.constant 0 : i32
    %c0_i32_0 = arith.constant 0 : i32
    %c0_i32_1 = arith.constant 0 : i32
    return %c0_i32, %c0_i32_0 : i32, i32
  }
  func.func @transform_4(%arg0: i32) -> (i32, i32, i32) {
    %c0_i32 = arith.constant 0 : i32
    %c0_i32_0 = arith.constant 0 : i32
    %c0_i32_1 = arith.constant 0 : i32
    return %arg0, %c0_i32, %c0_i32_0 : i32, i32, i32
  }
}

module attributes {stable_mosaic.version = 11 : i64} {
  func.func @_row_scale_kernel(%arg0: i32, %arg1: memref<248x128xf32, #tpu.memory_space<vmem>>, %arg2: memref<248x1xf32, #tpu.memory_space<vmem>>, %arg3: memref<248x128xf32, #tpu.memory_space<vmem>>) attributes {dimension_semantics = [#tpu.dimension_semantics<parallel>], iteration_bounds = array<i64: 1>, scalar_prefetch = 0 : i64, scratch_operands = 0 : i64, tpu.core_type = #tpu.core_type<tc>, window_params = [{transform_indices = @transform_0, window_bounds = array<i64: 248, 128>}, {transform_indices = @transform_1, window_bounds = array<i64: 248, 1>}, {transform_indices = @transform_2, window_bounds = array<i64: 248, 128>}]} {
    %c0 = arith.constant 0 : index
    %c0_0 = arith.constant 0 : index
    %0 = vector.load %arg1[%c0, %c0_0] : memref<248x128xf32, #tpu.memory_space<vmem>>, vector<248x128xf32>
    %c0_1 = arith.constant 0 : index
    %c0_2 = arith.constant 0 : index
    %1 = vector.load %arg2[%c0_1, %c0_2] : memref<248x1xf32, #tpu.memory_space<vmem>>, vector<248x1xf32>
    %2 = vector.broadcast %1 : vector<248x1xf32> to vector<248x128xf32>
    %3 = arith.mulf %0, %2 : vector<248x128xf32>
    %c0_3 = arith.constant 0 : index
    %c0_4 = arith.constant 0 : index
    %4 = vector.load %arg3[%c0_3, %c0_4] : memref<248x128xf32, #tpu.memory_space<vmem>>, vector<248x128xf32>
    tpu.vector_store %arg3[%c0_3, %c0_4], %3 {strides = array<i32>} : memref<248x128xf32, #tpu.memory_space<vmem>>, vector<248x128xf32>,
    return
  }
  func.func @transform_0(%arg0: i32) -> (i32, i32) {
    %c0_i32 = arith.constant 0 : i32
    %c0_i32_0 = arith.constant 0 : i32
    return %arg0, %c0_i32 : i32, i32
  }
  func.func @transform_1(%arg0: i32) -> (i32, i32) {
    %c0_i32 = arith.constant 0 : i32
    %c0_i32_0 = arith.constant 0 : i32
    return %arg0, %c0_i32 : i32, i32
  }
  func.func @transform_2(%arg0: i32) -> (i32, i32) {
    %c0_i32 = arith.constant 0 : i32
    %c0_i32_0 = arith.constant 0 : i32
    return %arg0, %c0_i32 : i32, i32
  }
}

module attributes {stable_mosaic.version = 11 : i64} {
  func.func @_matmul_bias_kernel(%arg0: i32, %arg1: i32, %arg2: i32, %arg3: memref<128x128xbf16, #tpu.memory_space<vmem>>, %arg4: memref<128x256xbf16, #tpu.memory_space<vmem>>, %arg5: memref<1x256xf32, #tpu.memory_space<vmem>>, %arg6: memref<128x256xf32, #tpu.memory_space<vmem>>, %arg7: memref<128x256xf32, #tpu.memory_space<vmem>>) attributes {dimension_semantics = [#tpu.dimension_semantics<parallel>, #tpu.dimension_semantics<parallel>, #tpu.dimension_semantics<arbitrary>], iteration_bounds = array<i64: 2, 1, 13>, scalar_prefetch = 0 : i64, scratch_operands = 1 : i64, tpu.core_type = #tpu.core_type<tc>, window_params = [{transform_indices = @transform_0, window_bounds = array<i64: 128, 128>}, {transform_indices = @transform_1, window_bounds = array<i64: 128, 256>}, {transform_indices = @transform_2, window_bounds = array<i64: 1, 256>}, {transform_indices = @transform_3, window_bounds = array<i64: 128, 256>}]} {
    %c0_i32 = arith.constant 0 : i32
    %0 = arith.cmpi eq, %arg2, %c0_i32 : i32
    %1 = arith.extui %0 : i1 to i32
    %c0_i32_0 = arith.constant 0 : i32
    %2 = arith.cmpi ne, %1, %c0_i32_0 : i32
    scf.if %2 {
      %cst_9 = arith.constant 0.000000e+00 : f32
      %12 = vector.broadcast %cst_9 : f32 to vector<128x256xf32>
      %c0_10 = arith.constant 0 : index
      %c0_11 = arith.constant 0 : index
      %13 = vector.load %arg7[%c0_10, %c0_11] : memref<128x256xf32, #tpu.memory_space<vmem>>, vector<128x256xf32>
      tpu.vector_store %arg7[%c0_10, %c0_11], %12 {strides = array<i32>} : memref<128x256xf32, #tpu.memory_space<vmem>>, vector<128x256xf32>,
    } else {
    }
    %c0 = arith.constant 0 : index
    %c0_1 = arith.constant 0 : index
    %3 = vector.load %arg7[%c0, %c0_1] : memref<128x256xf32, #tpu.memory_space<vmem>>, vector<128x256xf32>
    %c0_2 = arith.constant 0 : index
    %c0_3 = arith.constant 0 : index
    %4 = vector.load %arg3[%c0_2, %c0_3] : memref<128x128xbf16, #tpu.memory_space<vmem>>, vector<128x128xbf16>
    %c0_4 = arith.constant 0 : index
    %c0_5 = arith.constant 0 : index
    %5 = vector.load %arg4[%c0_4, %c0_5] : memref<128x256xbf16, #tpu.memory_space<vmem>>, vector<128x256xbf16>
    %cst = arith.constant dense<0.000000e+00> : vector<128x256xf32>
    %6 = tpu.matmul %4, %5, %cst {dimension_numbers = #tpu.dot_dimension_numbers<[1], [0], [0], [1], [0, 0, 1, 1], [], []>} : vector<128x128xbf16>, vector<128x256xbf16>, vector<128x256xf32> -> vector<128x256xf32>
    %7 = arith.addf %3, %6 : vector<128x256xf32>
    %c0_6 = arith.constant 0 : index
    %c0_7 = arith.constant 0 : index
    %8 = vector.load %arg7[%c0_6, %c0_7] : memref<128x256xf32, #tpu.memory_space<vmem>>, vector<128x256xf32>
    tpu.vector_store %arg7[%c0_6, %c0_7], %7 {strides = array<i32>} : memref<128x256xf32, #tpu.memory_space<vmem>>, vector<128x256xf32>,
    %c12_i32 = arith.constant 12 : i32
    %9 = arith.cmpi eq, %arg2, %c12_i32 : i32
    %10 = arith.extui %9 : i1 to i32
    %c0_i32_8 = arith.constant 0 : i32
    %11 = arith.cmpi ne, %10, %c0_i32_8 : i32
    scf.if %11 {
      %c0_9 = arith.constant 0 : index
      %c0_10 = arith.constant 0 : index
      %12 = vector.load %arg7[%c0_9, %c0_10] : memref<128x256xf32, #tpu.memory_space<vmem>>, vector<128x256xf32>
      %c0_11 = arith.constant 0 : index
      %c0_12 = arith.constant 0 : index
      %13 = vector.load %arg5[%c0_11, %c0_12] : memref<1x256xf32, #tpu.memory_space<vmem>>, vector<1x256xf32>
      %14 = vector.broadcast %13 : vector<1x256xf32> to vector<128x256xf32>
      %15 = arith.addf %12, %14 : vector<128x256xf32>
      %cst_13 = arith.constant 0.000000e+00 : f32
      %16 = vector.broadcast %cst_13 : f32 to vector<128x256xf32>
      %17 = arith.maximumf %15, %16 : vector<128x256xf32>
      %c0_14 = arith.constant 0 : index
      %c0_15 = arith.constant 0 : index
      %18 = vector.load %arg6[%c0_14, %c0_15] : memref<128x256xf32, #tpu.memory_space<vmem>>, vector<128x256xf32>
      tpu.vector_store %arg6[%c0_14, %c0_15], %17 {strides = array<i32>} : memref<128x256xf32, #tpu.memory_space<vmem>>, vector<128x256xf32>,
    } else {
    }
    return
  }
  func.func @transform_0(%arg0: i32, %arg1: i32, %arg2: i32) -> (i32, i32) {
    %c0_i32 = arith.constant 0 : i32
    return %arg0, %arg2 : i32, i32
  }
  func.func @transform_1(%arg0: i32, %arg1: i32, %arg2: i32) -> (i32, i32) {
    %c0_i32 = arith.constant 0 : i32
    return %arg2, %arg1 : i32, i32
  }
  func.func @transform_2(%arg0: i32, %arg1: i32, %arg2: i32) -> (i32, i32) {
    %c0_i32 = arith.constant 0 : i32
    %c0_i32_0 = arith.constant 0 : i32
    return %c0_i32, %arg1 : i32, i32
  }
  func.func @transform_3(%arg0: i32, %arg1: i32, %arg2: i32) -> (i32, i32) {
    %c0_i32 = arith.constant 0 : i32
    return %arg0, %arg1 : i32, i32
  }
}

module attributes {stable_mosaic.version = 11 : i64} {
  func.func @_max_reduce_kernel(%arg0: i32, %arg1: memref<9x56x256xf32, #tpu.memory_space<vmem>>, %arg2: memref<56x256xf32, #tpu.memory_space<vmem>>) attributes {dimension_semantics = [#tpu.dimension_semantics<parallel>], iteration_bounds = array<i64: 1>, scalar_prefetch = 0 : i64, scratch_operands = 0 : i64, tpu.core_type = #tpu.core_type<tc>, window_params = [{transform_indices = @transform_0, window_bounds = array<i64: 9, 56, 256>}, {transform_indices = @transform_1, window_bounds = array<i64: 56, 256>}]} {
    %c0 = arith.constant 0 : index
    %c0_0 = arith.constant 0 : index
    %c0_1 = arith.constant 0 : index
    %0 = vector.load %arg1[%c0, %c0_0, %c0_1] : memref<9x56x256xf32, #tpu.memory_space<vmem>>, vector<9x56x256xf32>
    %cst = arith.constant dense<0xFF800000> : vector<56x256xf32>
    %1 = vector.multi_reduction <maximumf>, %0, %cst [0] : vector<9x56x256xf32> to vector<56x256xf32>
    %c0_2 = arith.constant 0 : index
    %c0_3 = arith.constant 0 : index
    %2 = vector.load %arg2[%c0_2, %c0_3] : memref<56x256xf32, #tpu.memory_space<vmem>>, vector<56x256xf32>
    tpu.vector_store %arg2[%c0_2, %c0_3], %1 {strides = array<i32>} : memref<56x256xf32, #tpu.memory_space<vmem>>, vector<56x256xf32>,
    return
  }
  func.func @transform_0(%arg0: i32) -> (i32, i32, i32) {
    %c0_i32 = arith.constant 0 : i32
    %c0_i32_0 = arith.constant 0 : i32
    %c0_i32_1 = arith.constant 0 : i32
    return %c0_i32, %arg0, %c0_i32_0 : i32, i32, i32
  }
  func.func @transform_1(%arg0: i32) -> (i32, i32) {
    %c0_i32 = arith.constant 0 : i32
    %c0_i32_0 = arith.constant 0 : i32
    return %arg0, %c0_i32 : i32, i32
  }
}

module attributes {stable_mosaic.version = 11 : i64} {
  func.func @_channel_att_kernel(%arg0: i32, %arg1: memref<1x25x192xf32, #tpu.memory_space<vmem>>, %arg2: memref<192x128xf32, #tpu.memory_space<vmem>>, %arg3: memref<128x192xf32, #tpu.memory_space<vmem>>, %arg4: memref<1x25x192xf32, #tpu.memory_space<vmem>>) attributes {dimension_semantics = [#tpu.dimension_semantics<parallel>], iteration_bounds = array<i64: 2>, scalar_prefetch = 0 : i64, scratch_operands = 0 : i64, tpu.core_type = #tpu.core_type<tc>, window_params = [{transform_indices = @transform_0, window_bounds = array<i64: 1, 25, 192>}, {pipeline_mode = #tpu.pipeline_mode<synchronous>, transform_indices = @transform_1, window_bounds = array<i64: 192, 128>}, {pipeline_mode = #tpu.pipeline_mode<synchronous>, transform_indices = @transform_2, window_bounds = array<i64: 128, 192>}, {transform_indices = @transform_3, window_bounds = array<i64: 1, 25, 192>}]} {
    %c0 = arith.constant 0 : index
    %c0_0 = arith.constant 0 : index
    %c0_1 = arith.constant 0 : index
    %0 = vector.load %arg1[%c0, %c0_0, %c0_1] : memref<1x25x192xf32, #tpu.memory_space<vmem>>, vector<1x25x192xf32>
    %1 = vector.shape_cast %0 : vector<1x25x192xf32> to vector<25x192xf32>
    %cst = arith.constant dense<0.000000e+00> : vector<192xf32>
    %2 = vector.multi_reduction <add>, %1, %cst [0] : vector<25x192xf32> to vector<192xf32>
    %3 = vector.shape_cast %2 : vector<192xf32> to vector<1x192xf32>
    %cst_2 = arith.constant 4.000000e-02 : f32
    %4 = vector.broadcast %cst_2 : f32 to vector<1x192xf32>
    %5 = arith.mulf %3, %4 : vector<1x192xf32>
    %cst_3 = arith.constant dense<0xFF800000> : vector<192xf32>
    %6 = vector.multi_reduction <maximumf>, %1, %cst_3 [0] : vector<25x192xf32> to vector<192xf32>
    %7 = vector.shape_cast %6 : vector<192xf32> to vector<1x192xf32>
    %cst_4 = arith.constant 0.000000e+00 : f32
    %8 = vector.broadcast %cst_4 : f32 to vector<6x192xf32>
    %9 = tpu.concatenate %5, %7, %8 in 0 : vector<1x192xf32>, vector<1x192xf32>, vector<6x192xf32> -> vector<8x192xf32>
    %c0_5 = arith.constant 0 : index
    %c0_6 = arith.constant 0 : index
    %10 = vector.load %arg2[%c0_5, %c0_6] : memref<192x128xf32, #tpu.memory_space<vmem>>, vector<192x128xf32>
    %cst_7 = arith.constant dense<0.000000e+00> : vector<8x128xf32>
    %11 = tpu.matmul %9, %10, %cst_7 {dimension_numbers = #tpu.dot_dimension_numbers<[1], [0], [0], [1], [0, 0, 1, 1], [], []>} : vector<8x192xf32>, vector<192x128xf32>, vector<8x128xf32> -> vector<8x128xf32>
    %cst_8 = arith.constant 0.000000e+00 : f32
    %12 = vector.broadcast %cst_8 : f32 to vector<8x128xf32>
    %13 = arith.maximumf %11, %12 : vector<8x128xf32>
    %c0_9 = arith.constant 0 : index
    %c0_10 = arith.constant 0 : index
    %14 = vector.load %arg3[%c0_9, %c0_10] : memref<128x192xf32, #tpu.memory_space<vmem>>, vector<128x192xf32>
    %cst_11 = arith.constant dense<0.000000e+00> : vector<8x192xf32>
    %15 = tpu.matmul %13, %14, %cst_11 {dimension_numbers = #tpu.dot_dimension_numbers<[1], [0], [0], [1], [0, 0, 1, 1], [], []>} : vector<8x128xf32>, vector<128x192xf32>, vector<8x192xf32> -> vector<8x192xf32>
    %16 = vector.extract_strided_slice %15 {offsets = [0, 0], sizes = [1, 192], strides = [1, 1]} : vector<8x192xf32> to vector<1x192xf32>
    %17 = vector.extract_strided_slice %15 {offsets = [1, 0], sizes = [1, 192], strides = [1, 1]} : vector<8x192xf32> to vector<1x192xf32>
    %18 = arith.addf %16, %17 : vector<1x192xf32>
    %cst_12 = arith.constant 0.000000e+00 : f32
    %19 = vector.broadcast %cst_12 : f32 to vector<1x192xf32>
    %20 = arith.subf %19, %18 : vector<1x192xf32>
    %21 = math.exp %20 : vector<1x192xf32>
    %cst_13 = arith.constant 1.000000e+00 : f32
    %22 = vector.broadcast %cst_13 : f32 to vector<1x192xf32>
    %23 = arith.addf %22, %21 : vector<1x192xf32>
    %cst_14 = arith.constant 1.000000e+00 : f32
    %24 = vector.broadcast %cst_14 : f32 to vector<1x192xf32>
    %25 = arith.divf %24, %23 : vector<1x192xf32>
    %26 = vector.broadcast %25 : vector<1x192xf32> to vector<25x192xf32>
    %27 = arith.mulf %1, %26 : vector<25x192xf32>
    %c0_15 = arith.constant 0 : index
    %c0_16 = arith.constant 0 : index
    %c0_17 = arith.constant 0 : index
    %28 = vector.load %arg4[%c0_15, %c0_16, %c0_17] : memref<1x25x192xf32, #tpu.memory_space<vmem>>, vector<1x25x192xf32>
    %29 = vector.shape_cast %28 : vector<1x25x192xf32> to vector<25x192xf32>
    %30 = vector.shape_cast %27 : vector<25x192xf32> to vector<1x25x192xf32>
    tpu.vector_store %arg4[%c0_15, %c0_16, %c0_17], %30 {strides = array<i32>} : memref<1x25x192xf32, #tpu.memory_space<vmem>>, vector<1x25x192xf32>,
    return
  }
  func.func @transform_0(%arg0: i32) -> (i32, i32, i32) {
    %c0_i32 = arith.constant 0 : i32
    %c0_i32_0 = arith.constant 0 : i32
    %c0_i32_1 = arith.constant 0 : i32
    return %arg0, %c0_i32, %c0_i32_0 : i32, i32, i32
  }
  func.func @transform_1(%arg0: i32) -> (i32, i32) {
    %c0_i32 = arith.constant 0 : i32
    %c0_i32_0 = arith.constant 0 : i32
    %c0_i32_1 = arith.constant 0 : i32
    return %c0_i32, %c0_i32_0 : i32, i32
  }
  func.func @transform_2(%arg0: i32) -> (i32, i32) {
    %c0_i32 = arith.constant 0 : i32
    %c0_i32_0 = arith.constant 0 : i32
    %c0_i32_1 = arith.constant 0 : i32
    return %c0_i32, %c0_i32_0 : i32, i32
  }
  func.func @transform_3(%arg0: i32) -> (i32, i32, i32) {
    %c0_i32 = arith.constant 0 : i32
    %c0_i32_0 = arith.constant 0 : i32
    %c0_i32_1 = arith.constant 0 : i32
    return %arg0, %c0_i32, %c0_i32_0 : i32, i32, i32
  }
}

module attributes {stable_mosaic.version = 11 : i64} {
  func.func @_row_scale_kernel(%arg0: i32, %arg1: memref<56x256xf32, #tpu.memory_space<vmem>>, %arg2: memref<56x1xf32, #tpu.memory_space<vmem>>, %arg3: memref<56x256xf32, #tpu.memory_space<vmem>>) attributes {dimension_semantics = [#tpu.dimension_semantics<parallel>], iteration_bounds = array<i64: 1>, scalar_prefetch = 0 : i64, scratch_operands = 0 : i64, tpu.core_type = #tpu.core_type<tc>, window_params = [{transform_indices = @transform_0, window_bounds = array<i64: 56, 256>}, {transform_indices = @transform_1, window_bounds = array<i64: 56, 1>}, {transform_indices = @transform_2, window_bounds = array<i64: 56, 256>}]} {
    %c0 = arith.constant 0 : index
    %c0_0 = arith.constant 0 : index
    %0 = vector.load %arg1[%c0, %c0_0] : memref<56x256xf32, #tpu.memory_space<vmem>>, vector<56x256xf32>
    %c0_1 = arith.constant 0 : index
    %c0_2 = arith.constant 0 : index
    %1 = vector.load %arg2[%c0_1, %c0_2] : memref<56x1xf32, #tpu.memory_space<vmem>>, vector<56x1xf32>
    %2 = vector.broadcast %1 : vector<56x1xf32> to vector<56x256xf32>
    %3 = arith.mulf %0, %2 : vector<56x256xf32>
    %c0_3 = arith.constant 0 : index
    %c0_4 = arith.constant 0 : index
    %4 = vector.load %arg3[%c0_3, %c0_4] : memref<56x256xf32, #tpu.memory_space<vmem>>, vector<56x256xf32>
    tpu.vector_store %arg3[%c0_3, %c0_4], %3 {strides = array<i32>} : memref<56x256xf32, #tpu.memory_space<vmem>>, vector<56x256xf32>,
    return
  }
  func.func @transform_0(%arg0: i32) -> (i32, i32) {
    %c0_i32 = arith.constant 0 : i32
    %c0_i32_0 = arith.constant 0 : i32
    return %arg0, %c0_i32 : i32, i32
  }
  func.func @transform_1(%arg0: i32) -> (i32, i32) {
    %c0_i32 = arith.constant 0 : i32
    %c0_i32_0 = arith.constant 0 : i32
    return %arg0, %c0_i32 : i32, i32
  }
  func.func @transform_2(%arg0: i32) -> (i32, i32) {
    %c0_i32 = arith.constant 0 : i32
    %c0_i32_0 = arith.constant 0 : i32
    return %arg0, %c0_i32 : i32, i32
  }
}

module attributes {stable_mosaic.version = 11 : i64} {
  func.func @_matmul_bias_kernel(%arg0: i32, %arg1: i32, %arg2: i32, %arg3: memref<56x128xbf16, #tpu.memory_space<vmem>>, %arg4: memref<128x128xbf16, #tpu.memory_space<vmem>>, %arg5: memref<1x128xf32, #tpu.memory_space<vmem>>, %arg6: memref<56x128xf32, #tpu.memory_space<vmem>>, %arg7: memref<56x128xf32, #tpu.memory_space<vmem>>) attributes {dimension_semantics = [#tpu.dimension_semantics<parallel>, #tpu.dimension_semantics<parallel>, #tpu.dimension_semantics<arbitrary>], iteration_bounds = array<i64: 1, 1, 1>, scalar_prefetch = 0 : i64, scratch_operands = 1 : i64, tpu.core_type = #tpu.core_type<tc>, window_params = [{transform_indices = @transform_0, window_bounds = array<i64: 56, 128>}, {transform_indices = @transform_1, window_bounds = array<i64: 128, 128>}, {transform_indices = @transform_2, window_bounds = array<i64: 1, 128>}, {transform_indices = @transform_3, window_bounds = array<i64: 56, 128>}]} {
    %c0_i32 = arith.constant 0 : i32
    %0 = arith.cmpi eq, %arg2, %c0_i32 : i32
    %1 = arith.extui %0 : i1 to i32
    %c0_i32_0 = arith.constant 0 : i32
    %2 = arith.cmpi ne, %1, %c0_i32_0 : i32
    scf.if %2 {
      %cst_10 = arith.constant 0.000000e+00 : f32
      %12 = vector.broadcast %cst_10 : f32 to vector<56x128xf32>
      %c0_11 = arith.constant 0 : index
      %c0_12 = arith.constant 0 : index
      %13 = vector.load %arg7[%c0_11, %c0_12] : memref<56x128xf32, #tpu.memory_space<vmem>>, vector<56x128xf32>
      tpu.vector_store %arg7[%c0_11, %c0_12], %12 {strides = array<i32>} : memref<56x128xf32, #tpu.memory_space<vmem>>, vector<56x128xf32>,
    } else {
    }
    %c0 = arith.constant 0 : index
    %c0_1 = arith.constant 0 : index
    %3 = vector.load %arg7[%c0, %c0_1] : memref<56x128xf32, #tpu.memory_space<vmem>>, vector<56x128xf32>
    %c0_2 = arith.constant 0 : index
    %c0_3 = arith.constant 0 : index
    %4 = vector.load %arg3[%c0_2, %c0_3] : memref<56x128xbf16, #tpu.memory_space<vmem>>, vector<56x128xbf16>
    %c0_4 = arith.constant 0 : index
    %c0_5 = arith.constant 0 : index
    %5 = vector.load %arg4[%c0_4, %c0_5] : memref<128x128xbf16, #tpu.memory_space<vmem>>, vector<128x128xbf16>
    %cst = arith.constant dense<0.000000e+00> : vector<56x128xf32>
    %6 = tpu.matmul %4, %5, %cst {dimension_numbers = #tpu.dot_dimension_numbers<[1], [0], [0], [1], [0, 0, 1, 1], [], []>} : vector<56x128xbf16>, vector<128x128xbf16>, vector<56x128xf32> -> vector<56x128xf32>
    %7 = arith.addf %3, %6 : vector<56x128xf32>
    %c0_6 = arith.constant 0 : index
    %c0_7 = arith.constant 0 : index
    %8 = vector.load %arg7[%c0_6, %c0_7] : memref<56x128xf32, #tpu.memory_space<vmem>>, vector<56x128xf32>
    tpu.vector_store %arg7[%c0_6, %c0_7], %7 {strides = array<i32>} : memref<56x128xf32, #tpu.memory_space<vmem>>, vector<56x128xf32>,
    %c0_i32_8 = arith.constant 0 : i32
    %9 = arith.cmpi eq, %arg2, %c0_i32_8 : i32
    %10 = arith.extui %9 : i1 to i32
    %c0_i32_9 = arith.constant 0 : i32
    %11 = arith.cmpi ne, %10, %c0_i32_9 : i32
    scf.if %11 {
      %c0_10 = arith.constant 0 : index
      %c0_11 = arith.constant 0 : index
      %12 = vector.load %arg7[%c0_10, %c0_11] : memref<56x128xf32, #tpu.memory_space<vmem>>, vector<56x128xf32>
      %c0_12 = arith.constant 0 : index
      %c0_13 = arith.constant 0 : index
      %13 = vector.load %arg5[%c0_12, %c0_13] : memref<1x128xf32, #tpu.memory_space<vmem>>, vector<1x128xf32>
      %14 = vector.broadcast %13 : vector<1x128xf32> to vector<56x128xf32>
      %15 = arith.addf %12, %14 : vector<56x128xf32>
      %cst_14 = arith.constant 0.000000e+00 : f32
      %16 = vector.broadcast %cst_14 : f32 to vector<56x128xf32>
      %17 = arith.subf %16, %15 : vector<56x128xf32>
      %18 = math.exp %17 : vector<56x128xf32>
      %cst_15 = arith.constant 1.000000e+00 : f32
      %19 = vector.broadcast %cst_15 : f32 to vector<56x128xf32>
      %20 = arith.addf %19, %18 : vector<56x128xf32>
      %cst_16 = arith.constant 1.000000e+00 : f32
      %21 = vector.broadcast %cst_16 : f32 to vector<56x128xf32>
      %22 = arith.divf %21, %20 : vector<56x128xf32>
      %c0_17 = arith.constant 0 : index
      %c0_18 = arith.constant 0 : index
      %23 = vector.load %arg6[%c0_17, %c0_18] : memref<56x128xf32, #tpu.memory_space<vmem>>, vector<56x128xf32>
      tpu.vector_store %arg6[%c0_17, %c0_18], %22 {strides = array<i32>} : memref<56x128xf32, #tpu.memory_space<vmem>>, vector<56x128xf32>,
    } else {
    }
    return
  }
  func.func @transform_0(%arg0: i32, %arg1: i32, %arg2: i32) -> (i32, i32) {
    %c0_i32 = arith.constant 0 : i32
    return %arg0, %arg2 : i32, i32
  }
  func.func @transform_1(%arg0: i32, %arg1: i32, %arg2: i32) -> (i32, i32) {
    %c0_i32 = arith.constant 0 : i32
    return %arg2, %arg1 : i32, i32
  }
  func.func @transform_2(%arg0: i32, %arg1: i32, %arg2: i32) -> (i32, i32) {
    %c0_i32 = arith.constant 0 : i32
    %c0_i32_0 = arith.constant 0 : i32
    return %c0_i32, %arg1 : i32, i32
  }
  func.func @transform_3(%arg0: i32, %arg1: i32, %arg2: i32) -> (i32, i32) {
    %c0_i32 = arith.constant 0 : i32
    return %arg0, %arg1 : i32, i32
  }
}

module attributes {stable_mosaic.version = 11 : i64} {
  func.func @_group_norm_kernel(%arg0: i32, %arg1: memref<1x25x192xf32, #tpu.memory_space<vmem>>, %arg2: memref<192x192xf32, #tpu.memory_space<vmem>>, %arg3: memref<1x192xf32, #tpu.memory_space<vmem>>, %arg4: memref<1x192xf32, #tpu.memory_space<vmem>>, %arg5: memref<1x25x192xf32, #tpu.memory_space<vmem>>) attributes {dimension_semantics = [#tpu.dimension_semantics<parallel>], iteration_bounds = array<i64: 2>, scalar_prefetch = 0 : i64, scratch_operands = 0 : i64, tpu.core_type = #tpu.core_type<tc>, window_params = [{transform_indices = @transform_0, window_bounds = array<i64: 1, 25, 192>}, {pipeline_mode = #tpu.pipeline_mode<synchronous>, transform_indices = @transform_1, window_bounds = array<i64: 192, 192>}, {pipeline_mode = #tpu.pipeline_mode<synchronous>, transform_indices = @transform_2, window_bounds = array<i64: 1, 192>}, {pipeline_mode = #tpu.pipeline_mode<synchronous>, transform_indices = @transform_3, window_bounds = array<i64: 1, 192>}, {transform_indices = @transform_4, window_bounds = array<i64: 1, 25, 192>}]} {
    %c0 = arith.constant 0 : index
    %c0_0 = arith.constant 0 : index
    %c0_1 = arith.constant 0 : index
    %0 = vector.load %arg1[%c0, %c0_0, %c0_1] : memref<1x25x192xf32, #tpu.memory_space<vmem>>, vector<1x25x192xf32>
    %1 = vector.shape_cast %0 : vector<1x25x192xf32> to vector<25x192xf32>
    %cst = arith.constant dense<0.000000e+00> : vector<192xf32>
    %2 = vector.multi_reduction <add>, %1, %cst [0] : vector<25x192xf32> to vector<192xf32>
    %3 = vector.shape_cast %2 : vector<192xf32> to vector<1x192xf32>
    %4 = arith.mulf %1, %1 : vector<25x192xf32>
    %cst_2 = arith.constant dense<0.000000e+00> : vector<192xf32>
    %5 = vector.multi_reduction <add>, %4, %cst_2 [0] : vector<25x192xf32> to vector<192xf32>
    %6 = vector.shape_cast %5 : vector<192xf32> to vector<1x192xf32>
    %cst_3 = arith.constant 0.000000e+00 : f32
    %7 = vector.broadcast %cst_3 : f32 to vector<6x192xf32>
    %8 = tpu.concatenate %3, %6, %7 in 0 : vector<1x192xf32>, vector<1x192xf32>, vector<6x192xf32> -> vector<8x192xf32>
    %c0_4 = arith.constant 0 : index
    %c0_5 = arith.constant 0 : index
    %9 = vector.load %arg2[%c0_4, %c0_5] : memref<192x192xf32, #tpu.memory_space<vmem>>, vector<192x192xf32>
    %cst_6 = arith.constant dense<0.000000e+00> : vector<8x192xf32>
    %10 = tpu.matmul %8, %9, %cst_6 {dimension_numbers = #tpu.dot_dimension_numbers<[1], [0], [0], [1], [0, 0, 1, 1], [], []>} : vector<8x192xf32>, vector<192x192xf32>, vector<8x192xf32> -> vector<8x192xf32>
    %11 = vector.extract_strided_slice %10 {offsets = [0, 0], sizes = [1, 192], strides = [1, 1]} : vector<8x192xf32> to vector<1x192xf32>
    %cst_7 = arith.constant 5.000000e-03 : f32
    %12 = vector.broadcast %cst_7 : f32 to vector<1x192xf32>
    %13 = arith.mulf %11, %12 : vector<1x192xf32>
    %14 = vector.extract_strided_slice %10 {offsets = [1, 0], sizes = [1, 192], strides = [1, 1]} : vector<8x192xf32> to vector<1x192xf32>
    %cst_8 = arith.constant 5.000000e-03 : f32
    %15 = vector.broadcast %cst_8 : f32 to vector<1x192xf32>
    %16 = arith.mulf %14, %15 : vector<1x192xf32>
    %17 = arith.mulf %13, %13 : vector<1x192xf32>
    %18 = arith.subf %16, %17 : vector<1x192xf32>
    %cst_9 = arith.constant 0.000000e+00 : f32
    %19 = vector.broadcast %cst_9 : f32 to vector<1x192xf32>
    %20 = arith.maximumf %18, %19 : vector<1x192xf32>
    %cst_10 = arith.constant 9.99999974E-6 : f32
    %21 = vector.broadcast %cst_10 : f32 to vector<1x192xf32>
    %22 = arith.addf %20, %21 : vector<1x192xf32>
    %23 = math.rsqrt %22 : vector<1x192xf32>
    %24 = vector.broadcast %13 : vector<1x192xf32> to vector<25x192xf32>
    %25 = arith.subf %1, %24 : vector<25x192xf32>
    %c0_11 = arith.constant 0 : index
    %c0_12 = arith.constant 0 : index
    %26 = vector.load %arg3[%c0_11, %c0_12] : memref<1x192xf32, #tpu.memory_space<vmem>>, vector<1x192xf32>
    %27 = arith.mulf %23, %26 : vector<1x192xf32>
    %28 = vector.broadcast %27 : vector<1x192xf32> to vector<25x192xf32>
    %29 = arith.mulf %25, %28 : vector<25x192xf32>
    %c0_13 = arith.constant 0 : index
    %c0_14 = arith.constant 0 : index
    %30 = vector.load %arg4[%c0_13, %c0_14] : memref<1x192xf32, #tpu.memory_space<vmem>>, vector<1x192xf32>
    %31 = vector.broadcast %30 : vector<1x192xf32> to vector<25x192xf32>
    %32 = arith.addf %29, %31 : vector<25x192xf32>
    %c0_15 = arith.constant 0 : index
    %c0_16 = arith.constant 0 : index
    %c0_17 = arith.constant 0 : index
    %33 = vector.load %arg5[%c0_15, %c0_16, %c0_17] : memref<1x25x192xf32, #tpu.memory_space<vmem>>, vector<1x25x192xf32>
    %34 = vector.shape_cast %33 : vector<1x25x192xf32> to vector<25x192xf32>
    %35 = vector.shape_cast %32 : vector<25x192xf32> to vector<1x25x192xf32>
    tpu.vector_store %arg5[%c0_15, %c0_16, %c0_17], %35 {strides = array<i32>} : memref<1x25x192xf32, #tpu.memory_space<vmem>>, vector<1x25x192xf32>,
    return
  }
  func.func @transform_0(%arg0: i32) -> (i32, i32, i32) {
    %c0_i32 = arith.constant 0 : i32
    %c0_i32_0 = arith.constant 0 : i32
    %c0_i32_1 = arith.constant 0 : i32
    return %arg0, %c0_i32, %c0_i32_0 : i32, i32, i32
  }
  func.func @transform_1(%arg0: i32) -> (i32, i32) {
    %c0_i32 = arith.constant 0 : i32
    %c0_i32_0 = arith.constant 0 : i32
    %c0_i32_1 = arith.constant 0 : i32
    return %c0_i32, %c0_i32_0 : i32, i32
  }
  func.func @transform_2(%arg0: i32) -> (i32, i32) {
    %c0_i32 = arith.constant 0 : i32
    %c0_i32_0 = arith.constant 0 : i32
    %c0_i32_1 = arith.constant 0 : i32
    return %c0_i32, %c0_i32_0 : i32, i32
  }
  func.func @transform_3(%arg0: i32) -> (i32, i32) {
    %c0_i32 = arith.constant 0 : i32
    %c0_i32_0 = arith.constant 0 : i32
    %c0_i32_1 = arith.constant 0 : i32
    return %c0_i32, %c0_i32_0 : i32, i32
  }
  func.func @transform_4(%arg0: i32) -> (i32, i32, i32) {
    %c0_i32 = arith.constant 0 : i32
    %c0_i32_0 = arith.constant 0 : i32
    %c0_i32_1 = arith.constant 0 : i32
    return %arg0, %c0_i32, %c0_i32_0 : i32, i32, i32
  }
}

module attributes {stable_mosaic.version = 11 : i64} {
  func.func @_matmul_bias_kernel(%arg0: i32, %arg1: i32, %arg2: i32, %arg3: memref<56x256xbf16, #tpu.memory_space<vmem>>, %arg4: memref<256x256xbf16, #tpu.memory_space<vmem>>, %arg5: memref<1x256xf32, #tpu.memory_space<vmem>>, %arg6: memref<56x256xf32, #tpu.memory_space<vmem>>, %arg7: memref<56x256xf32, #tpu.memory_space<vmem>>) attributes {dimension_semantics = [#tpu.dimension_semantics<parallel>, #tpu.dimension_semantics<parallel>, #tpu.dimension_semantics<arbitrary>], iteration_bounds = array<i64: 1, 2, 7>, scalar_prefetch = 0 : i64, scratch_operands = 1 : i64, tpu.core_type = #tpu.core_type<tc>, window_params = [{transform_indices = @transform_0, window_bounds = array<i64: 56, 256>}, {transform_indices = @transform_1, window_bounds = array<i64: 256, 256>}, {transform_indices = @transform_2, window_bounds = array<i64: 1, 256>}, {transform_indices = @transform_3, window_bounds = array<i64: 56, 256>}]} {
    %c0_i32 = arith.constant 0 : i32
    %0 = arith.cmpi eq, %arg2, %c0_i32 : i32
    %1 = arith.extui %0 : i1 to i32
    %c0_i32_0 = arith.constant 0 : i32
    %2 = arith.cmpi ne, %1, %c0_i32_0 : i32
    scf.if %2 {
      %cst_9 = arith.constant 0.000000e+00 : f32
      %12 = vector.broadcast %cst_9 : f32 to vector<56x256xf32>
      %c0_10 = arith.constant 0 : index
      %c0_11 = arith.constant 0 : index
      %13 = vector.load %arg7[%c0_10, %c0_11] : memref<56x256xf32, #tpu.memory_space<vmem>>, vector<56x256xf32>
      tpu.vector_store %arg7[%c0_10, %c0_11], %12 {strides = array<i32>} : memref<56x256xf32, #tpu.memory_space<vmem>>, vector<56x256xf32>,
    } else {
    }
    %c0 = arith.constant 0 : index
    %c0_1 = arith.constant 0 : index
    %3 = vector.load %arg7[%c0, %c0_1] : memref<56x256xf32, #tpu.memory_space<vmem>>, vector<56x256xf32>
    %c0_2 = arith.constant 0 : index
    %c0_3 = arith.constant 0 : index
    %4 = vector.load %arg3[%c0_2, %c0_3] : memref<56x256xbf16, #tpu.memory_space<vmem>>, vector<56x256xbf16>
    %c0_4 = arith.constant 0 : index
    %c0_5 = arith.constant 0 : index
    %5 = vector.load %arg4[%c0_4, %c0_5] : memref<256x256xbf16, #tpu.memory_space<vmem>>, vector<256x256xbf16>
    %cst = arith.constant dense<0.000000e+00> : vector<56x256xf32>
    %6 = tpu.matmul %4, %5, %cst {dimension_numbers = #tpu.dot_dimension_numbers<[1], [0], [0], [1], [0, 0, 1, 1], [], []>} : vector<56x256xbf16>, vector<256x256xbf16>, vector<56x256xf32> -> vector<56x256xf32>
    %7 = arith.addf %3, %6 : vector<56x256xf32>
    %c0_6 = arith.constant 0 : index
    %c0_7 = arith.constant 0 : index
    %8 = vector.load %arg7[%c0_6, %c0_7] : memref<56x256xf32, #tpu.memory_space<vmem>>, vector<56x256xf32>
    tpu.vector_store %arg7[%c0_6, %c0_7], %7 {strides = array<i32>} : memref<56x256xf32, #tpu.memory_space<vmem>>, vector<56x256xf32>,
    %c6_i32 = arith.constant 6 : i32
    %9 = arith.cmpi eq, %arg2, %c6_i32 : i32
    %10 = arith.extui %9 : i1 to i32
    %c0_i32_8 = arith.constant 0 : i32
    %11 = arith.cmpi ne, %10, %c0_i32_8 : i32
    scf.if %11 {
      %c0_9 = arith.constant 0 : index
      %c0_10 = arith.constant 0 : index
      %12 = vector.load %arg7[%c0_9, %c0_10] : memref<56x256xf32, #tpu.memory_space<vmem>>, vector<56x256xf32>
      %c0_11 = arith.constant 0 : index
      %c0_12 = arith.constant 0 : index
      %13 = vector.load %arg5[%c0_11, %c0_12] : memref<1x256xf32, #tpu.memory_space<vmem>>, vector<1x256xf32>
      %14 = vector.broadcast %13 : vector<1x256xf32> to vector<56x256xf32>
      %15 = arith.addf %12, %14 : vector<56x256xf32>
      %cst_13 = arith.constant 0.000000e+00 : f32
      %16 = vector.broadcast %cst_13 : f32 to vector<56x256xf32>
      %17 = arith.maximumf %15, %16 : vector<56x256xf32>
      %c0_14 = arith.constant 0 : index
      %c0_15 = arith.constant 0 : index
      %18 = vector.load %arg6[%c0_14, %c0_15] : memref<56x256xf32, #tpu.memory_space<vmem>>, vector<56x256xf32>
      tpu.vector_store %arg6[%c0_14, %c0_15], %17 {strides = array<i32>} : memref<56x256xf32, #tpu.memory_space<vmem>>, vector<56x256xf32>,
    } else {
    }
    return
  }
  func.func @transform_0(%arg0: i32, %arg1: i32, %arg2: i32) -> (i32, i32) {
    %c0_i32 = arith.constant 0 : i32
    return %arg0, %arg2 : i32, i32
  }
  func.func @transform_1(%arg0: i32, %arg1: i32, %arg2: i32) -> (i32, i32) {
    %c0_i32 = arith.constant 0 : i32
    return %arg2, %arg1 : i32, i32
  }
  func.func @transform_2(%arg0: i32, %arg1: i32, %arg2: i32) -> (i32, i32) {
    %c0_i32 = arith.constant 0 : i32
    %c0_i32_0 = arith.constant 0 : i32
    return %c0_i32, %arg1 : i32, i32
  }
  func.func @transform_3(%arg0: i32, %arg1: i32, %arg2: i32) -> (i32, i32) {
    %c0_i32 = arith.constant 0 : i32
    return %arg0, %arg1 : i32, i32
  }
}

module attributes {stable_mosaic.version = 11 : i64} {
  func.func @_matmul_bias_kernel(%arg0: i32, %arg1: i32, %arg2: i32, %arg3: memref<56x384xbf16, #tpu.memory_space<vmem>>, %arg4: memref<384x256xbf16, #tpu.memory_space<vmem>>, %arg5: memref<1x256xf32, #tpu.memory_space<vmem>>, %arg6: memref<56x256xf32, #tpu.memory_space<vmem>>, %arg7: memref<56x256xf32, #tpu.memory_space<vmem>>) attributes {dimension_semantics = [#tpu.dimension_semantics<parallel>, #tpu.dimension_semantics<parallel>, #tpu.dimension_semantics<arbitrary>], iteration_bounds = array<i64: 1, 1, 9>, scalar_prefetch = 0 : i64, scratch_operands = 1 : i64, tpu.core_type = #tpu.core_type<tc>, window_params = [{transform_indices = @transform_0, window_bounds = array<i64: 56, 384>}, {transform_indices = @transform_1, window_bounds = array<i64: 384, 256>}, {transform_indices = @transform_2, window_bounds = array<i64: 1, 256>}, {transform_indices = @transform_3, window_bounds = array<i64: 56, 256>}]} {
    %c0_i32 = arith.constant 0 : i32
    %0 = arith.cmpi eq, %arg2, %c0_i32 : i32
    %1 = arith.extui %0 : i1 to i32
    %c0_i32_0 = arith.constant 0 : i32
    %2 = arith.cmpi ne, %1, %c0_i32_0 : i32
    scf.if %2 {
      %cst_9 = arith.constant 0.000000e+00 : f32
      %12 = vector.broadcast %cst_9 : f32 to vector<56x256xf32>
      %c0_10 = arith.constant 0 : index
      %c0_11 = arith.constant 0 : index
      %13 = vector.load %arg7[%c0_10, %c0_11] : memref<56x256xf32, #tpu.memory_space<vmem>>, vector<56x256xf32>
      tpu.vector_store %arg7[%c0_10, %c0_11], %12 {strides = array<i32>} : memref<56x256xf32, #tpu.memory_space<vmem>>, vector<56x256xf32>,
    } else {
    }
    %c0 = arith.constant 0 : index
    %c0_1 = arith.constant 0 : index
    %3 = vector.load %arg7[%c0, %c0_1] : memref<56x256xf32, #tpu.memory_space<vmem>>, vector<56x256xf32>
    %c0_2 = arith.constant 0 : index
    %c0_3 = arith.constant 0 : index
    %4 = vector.load %arg3[%c0_2, %c0_3] : memref<56x384xbf16, #tpu.memory_space<vmem>>, vector<56x384xbf16>
    %c0_4 = arith.constant 0 : index
    %c0_5 = arith.constant 0 : index
    %5 = vector.load %arg4[%c0_4, %c0_5] : memref<384x256xbf16, #tpu.memory_space<vmem>>, vector<384x256xbf16>
    %cst = arith.constant dense<0.000000e+00> : vector<56x256xf32>
    %6 = tpu.matmul %4, %5, %cst {dimension_numbers = #tpu.dot_dimension_numbers<[1], [0], [0], [1], [0, 0, 1, 1], [], []>} : vector<56x384xbf16>, vector<384x256xbf16>, vector<56x256xf32> -> vector<56x256xf32>
    %7 = arith.addf %3, %6 : vector<56x256xf32>
    %c0_6 = arith.constant 0 : index
    %c0_7 = arith.constant 0 : index
    %8 = vector.load %arg7[%c0_6, %c0_7] : memref<56x256xf32, #tpu.memory_space<vmem>>, vector<56x256xf32>
    tpu.vector_store %arg7[%c0_6, %c0_7], %7 {strides = array<i32>} : memref<56x256xf32, #tpu.memory_space<vmem>>, vector<56x256xf32>,
    %c8_i32 = arith.constant 8 : i32
    %9 = arith.cmpi eq, %arg2, %c8_i32 : i32
    %10 = arith.extui %9 : i1 to i32
    %c0_i32_8 = arith.constant 0 : i32
    %11 = arith.cmpi ne, %10, %c0_i32_8 : i32
    scf.if %11 {
      %c0_9 = arith.constant 0 : index
      %c0_10 = arith.constant 0 : index
      %12 = vector.load %arg7[%c0_9, %c0_10] : memref<56x256xf32, #tpu.memory_space<vmem>>, vector<56x256xf32>
      %c0_11 = arith.constant 0 : index
      %c0_12 = arith.constant 0 : index
      %13 = vector.load %arg5[%c0_11, %c0_12] : memref<1x256xf32, #tpu.memory_space<vmem>>, vector<1x256xf32>
      %14 = vector.broadcast %13 : vector<1x256xf32> to vector<56x256xf32>
      %15 = arith.addf %12, %14 : vector<56x256xf32>
      %cst_13 = arith.constant 0.000000e+00 : f32
      %16 = vector.broadcast %cst_13 : f32 to vector<56x256xf32>
      %17 = arith.maximumf %15, %16 : vector<56x256xf32>
      %c0_14 = arith.constant 0 : index
      %c0_15 = arith.constant 0 : index
      %18 = vector.load %arg6[%c0_14, %c0_15] : memref<56x256xf32, #tpu.memory_space<vmem>>, vector<56x256xf32>
      tpu.vector_store %arg6[%c0_14, %c0_15], %17 {strides = array<i32>} : memref<56x256xf32, #tpu.memory_space<vmem>>, vector<56x256xf32>,
    } else {
    }
    return
  }
  func.func @transform_0(%arg0: i32, %arg1: i32, %arg2: i32) -> (i32, i32) {
    %c0_i32 = arith.constant 0 : i32
    return %arg0, %arg2 : i32, i32
  }
  func.func @transform_1(%arg0: i32, %arg1: i32, %arg2: i32) -> (i32, i32) {
    %c0_i32 = arith.constant 0 : i32
    return %arg2, %arg1 : i32, i32
  }
  func.func @transform_2(%arg0: i32, %arg1: i32, %arg2: i32) -> (i32, i32) {
    %c0_i32 = arith.constant 0 : i32
    %c0_i32_0 = arith.constant 0 : i32
    return %c0_i32, %arg1 : i32, i32
  }
  func.func @transform_3(%arg0: i32, %arg1: i32, %arg2: i32) -> (i32, i32) {
    %c0_i32 = arith.constant 0 : i32
    return %arg0, %arg1 : i32, i32
  }
}

module attributes {stable_mosaic.version = 11 : i64} {
  func.func @_matmul_bias_kernel(%arg0: i32, %arg1: i32, %arg2: i32, %arg3: memref<56x384xbf16, #tpu.memory_space<vmem>>, %arg4: memref<384x256xbf16, #tpu.memory_space<vmem>>, %arg5: memref<1x256xf32, #tpu.memory_space<vmem>>, %arg6: memref<56x256xf32, #tpu.memory_space<vmem>>, %arg7: memref<56x256xf32, #tpu.memory_space<vmem>>) attributes {dimension_semantics = [#tpu.dimension_semantics<parallel>, #tpu.dimension_semantics<parallel>, #tpu.dimension_semantics<arbitrary>], iteration_bounds = array<i64: 1, 1, 6>, scalar_prefetch = 0 : i64, scratch_operands = 1 : i64, tpu.core_type = #tpu.core_type<tc>, window_params = [{transform_indices = @transform_0, window_bounds = array<i64: 56, 384>}, {transform_indices = @transform_1, window_bounds = array<i64: 384, 256>}, {transform_indices = @transform_2, window_bounds = array<i64: 1, 256>}, {transform_indices = @transform_3, window_bounds = array<i64: 56, 256>}]} {
    %c0_i32 = arith.constant 0 : i32
    %0 = arith.cmpi eq, %arg2, %c0_i32 : i32
    %1 = arith.extui %0 : i1 to i32
    %c0_i32_0 = arith.constant 0 : i32
    %2 = arith.cmpi ne, %1, %c0_i32_0 : i32
    scf.if %2 {
      %cst_9 = arith.constant 0.000000e+00 : f32
      %12 = vector.broadcast %cst_9 : f32 to vector<56x256xf32>
      %c0_10 = arith.constant 0 : index
      %c0_11 = arith.constant 0 : index
      %13 = vector.load %arg7[%c0_10, %c0_11] : memref<56x256xf32, #tpu.memory_space<vmem>>, vector<56x256xf32>
      tpu.vector_store %arg7[%c0_10, %c0_11], %12 {strides = array<i32>} : memref<56x256xf32, #tpu.memory_space<vmem>>, vector<56x256xf32>,
    } else {
    }
    %c0 = arith.constant 0 : index
    %c0_1 = arith.constant 0 : index
    %3 = vector.load %arg7[%c0, %c0_1] : memref<56x256xf32, #tpu.memory_space<vmem>>, vector<56x256xf32>
    %c0_2 = arith.constant 0 : index
    %c0_3 = arith.constant 0 : index
    %4 = vector.load %arg3[%c0_2, %c0_3] : memref<56x384xbf16, #tpu.memory_space<vmem>>, vector<56x384xbf16>
    %c0_4 = arith.constant 0 : index
    %c0_5 = arith.constant 0 : index
    %5 = vector.load %arg4[%c0_4, %c0_5] : memref<384x256xbf16, #tpu.memory_space<vmem>>, vector<384x256xbf16>
    %cst = arith.constant dense<0.000000e+00> : vector<56x256xf32>
    %6 = tpu.matmul %4, %5, %cst {dimension_numbers = #tpu.dot_dimension_numbers<[1], [0], [0], [1], [0, 0, 1, 1], [], []>} : vector<56x384xbf16>, vector<384x256xbf16>, vector<56x256xf32> -> vector<56x256xf32>
    %7 = arith.addf %3, %6 : vector<56x256xf32>
    %c0_6 = arith.constant 0 : index
    %c0_7 = arith.constant 0 : index
    %8 = vector.load %arg7[%c0_6, %c0_7] : memref<56x256xf32, #tpu.memory_space<vmem>>, vector<56x256xf32>
    tpu.vector_store %arg7[%c0_6, %c0_7], %7 {strides = array<i32>} : memref<56x256xf32, #tpu.memory_space<vmem>>, vector<56x256xf32>,
    %c5_i32 = arith.constant 5 : i32
    %9 = arith.cmpi eq, %arg2, %c5_i32 : i32
    %10 = arith.extui %9 : i1 to i32
    %c0_i32_8 = arith.constant 0 : i32
    %11 = arith.cmpi ne, %10, %c0_i32_8 : i32
    scf.if %11 {
      %c0_9 = arith.constant 0 : index
      %c0_10 = arith.constant 0 : index
      %12 = vector.load %arg7[%c0_9, %c0_10] : memref<56x256xf32, #tpu.memory_space<vmem>>, vector<56x256xf32>
      %c0_11 = arith.constant 0 : index
      %c0_12 = arith.constant 0 : index
      %13 = vector.load %arg5[%c0_11, %c0_12] : memref<1x256xf32, #tpu.memory_space<vmem>>, vector<1x256xf32>
      %14 = vector.broadcast %13 : vector<1x256xf32> to vector<56x256xf32>
      %15 = arith.addf %12, %14 : vector<56x256xf32>
      %cst_13 = arith.constant 0.000000e+00 : f32
      %16 = vector.broadcast %cst_13 : f32 to vector<56x256xf32>
      %17 = arith.maximumf %15, %16 : vector<56x256xf32>
      %c0_14 = arith.constant 0 : index
      %c0_15 = arith.constant 0 : index
      %18 = vector.load %arg6[%c0_14, %c0_15] : memref<56x256xf32, #tpu.memory_space<vmem>>, vector<56x256xf32>
      tpu.vector_store %arg6[%c0_14, %c0_15], %17 {strides = array<i32>} : memref<56x256xf32, #tpu.memory_space<vmem>>, vector<56x256xf32>,
    } else {
    }
    return
  }
  func.func @transform_0(%arg0: i32, %arg1: i32, %arg2: i32) -> (i32, i32) {
    %c0_i32 = arith.constant 0 : i32
    return %arg0, %arg2 : i32, i32
  }
  func.func @transform_1(%arg0: i32, %arg1: i32, %arg2: i32) -> (i32, i32) {
    %c0_i32 = arith.constant 0 : i32
    return %arg2, %arg1 : i32, i32
  }
  func.func @transform_2(%arg0: i32, %arg1: i32, %arg2: i32) -> (i32, i32) {
    %c0_i32 = arith.constant 0 : i32
    %c0_i32_0 = arith.constant 0 : i32
    return %c0_i32, %arg1 : i32, i32
  }
  func.func @transform_3(%arg0: i32, %arg1: i32, %arg2: i32) -> (i32, i32) {
    %c0_i32 = arith.constant 0 : i32
    return %arg0, %arg1 : i32, i32
  }
}

module attributes {stable_mosaic.version = 11 : i64} {
  func.func @_max_reduce_kernel(%arg0: i32, %arg1: memref<9x8x256xf32, #tpu.memory_space<vmem>>, %arg2: memref<8x256xf32, #tpu.memory_space<vmem>>) attributes {dimension_semantics = [#tpu.dimension_semantics<parallel>], iteration_bounds = array<i64: 1>, scalar_prefetch = 0 : i64, scratch_operands = 0 : i64, tpu.core_type = #tpu.core_type<tc>, window_params = [{transform_indices = @transform_0, window_bounds = array<i64: 9, 8, 256>}, {transform_indices = @transform_1, window_bounds = array<i64: 8, 256>}]} {
    %c0 = arith.constant 0 : index
    %c0_0 = arith.constant 0 : index
    %c0_1 = arith.constant 0 : index
    %0 = vector.load %arg1[%c0, %c0_0, %c0_1] : memref<9x8x256xf32, #tpu.memory_space<vmem>>, vector<9x8x256xf32>
    %cst = arith.constant dense<0xFF800000> : vector<8x256xf32>
    %1 = vector.multi_reduction <maximumf>, %0, %cst [0] : vector<9x8x256xf32> to vector<8x256xf32>
    %c0_2 = arith.constant 0 : index
    %c0_3 = arith.constant 0 : index
    %2 = vector.load %arg2[%c0_2, %c0_3] : memref<8x256xf32, #tpu.memory_space<vmem>>, vector<8x256xf32>
    tpu.vector_store %arg2[%c0_2, %c0_3], %1 {strides = array<i32>} : memref<8x256xf32, #tpu.memory_space<vmem>>, vector<8x256xf32>,
    return
  }
  func.func @transform_0(%arg0: i32) -> (i32, i32, i32) {
    %c0_i32 = arith.constant 0 : i32
    %c0_i32_0 = arith.constant 0 : i32
    %c0_i32_1 = arith.constant 0 : i32
    return %c0_i32, %arg0, %c0_i32_0 : i32, i32, i32
  }
  func.func @transform_1(%arg0: i32) -> (i32, i32) {
    %c0_i32 = arith.constant 0 : i32
    %c0_i32_0 = arith.constant 0 : i32
    return %arg0, %c0_i32 : i32, i32
  }
}

module attributes {stable_mosaic.version = 11 : i64} {
  func.func @_channel_att_kernel(%arg0: i32, %arg1: memref<1x4x256xf32, #tpu.memory_space<vmem>>, %arg2: memref<256x128xf32, #tpu.memory_space<vmem>>, %arg3: memref<128x256xf32, #tpu.memory_space<vmem>>, %arg4: memref<1x4x256xf32, #tpu.memory_space<vmem>>) attributes {dimension_semantics = [#tpu.dimension_semantics<parallel>], iteration_bounds = array<i64: 2>, scalar_prefetch = 0 : i64, scratch_operands = 0 : i64, tpu.core_type = #tpu.core_type<tc>, window_params = [{transform_indices = @transform_0, window_bounds = array<i64: 1, 4, 256>}, {pipeline_mode = #tpu.pipeline_mode<synchronous>, transform_indices = @transform_1, window_bounds = array<i64: 256, 128>}, {pipeline_mode = #tpu.pipeline_mode<synchronous>, transform_indices = @transform_2, window_bounds = array<i64: 128, 256>}, {transform_indices = @transform_3, window_bounds = array<i64: 1, 4, 256>}]} {
    %c0 = arith.constant 0 : index
    %c0_0 = arith.constant 0 : index
    %c0_1 = arith.constant 0 : index
    %0 = vector.load %arg1[%c0, %c0_0, %c0_1] : memref<1x4x256xf32, #tpu.memory_space<vmem>>, vector<1x4x256xf32>
    %1 = vector.shape_cast %0 : vector<1x4x256xf32> to vector<4x256xf32>
    %cst = arith.constant dense<0.000000e+00> : vector<256xf32>
    %2 = vector.multi_reduction <add>, %1, %cst [0] : vector<4x256xf32> to vector<256xf32>
    %3 = vector.shape_cast %2 : vector<256xf32> to vector<1x256xf32>
    %cst_2 = arith.constant 2.500000e-01 : f32
    %4 = vector.broadcast %cst_2 : f32 to vector<1x256xf32>
    %5 = arith.mulf %3, %4 : vector<1x256xf32>
    %cst_3 = arith.constant dense<0xFF800000> : vector<256xf32>
    %6 = vector.multi_reduction <maximumf>, %1, %cst_3 [0] : vector<4x256xf32> to vector<256xf32>
    %7 = vector.shape_cast %6 : vector<256xf32> to vector<1x256xf32>
    %cst_4 = arith.constant 0.000000e+00 : f32
    %8 = vector.broadcast %cst_4 : f32 to vector<6x256xf32>
    %9 = tpu.concatenate %5, %7, %8 in 0 : vector<1x256xf32>, vector<1x256xf32>, vector<6x256xf32> -> vector<8x256xf32>
    %c0_5 = arith.constant 0 : index
    %c0_6 = arith.constant 0 : index
    %10 = vector.load %arg2[%c0_5, %c0_6] : memref<256x128xf32, #tpu.memory_space<vmem>>, vector<256x128xf32>
    %cst_7 = arith.constant dense<0.000000e+00> : vector<8x128xf32>
    %11 = tpu.matmul %9, %10, %cst_7 {dimension_numbers = #tpu.dot_dimension_numbers<[1], [0], [0], [1], [0, 0, 1, 1], [], []>} : vector<8x256xf32>, vector<256x128xf32>, vector<8x128xf32> -> vector<8x128xf32>
    %cst_8 = arith.constant 0.000000e+00 : f32
    %12 = vector.broadcast %cst_8 : f32 to vector<8x128xf32>
    %13 = arith.maximumf %11, %12 : vector<8x128xf32>
    %c0_9 = arith.constant 0 : index
    %c0_10 = arith.constant 0 : index
    %14 = vector.load %arg3[%c0_9, %c0_10] : memref<128x256xf32, #tpu.memory_space<vmem>>, vector<128x256xf32>
    %cst_11 = arith.constant dense<0.000000e+00> : vector<8x256xf32>
    %15 = tpu.matmul %13, %14, %cst_11 {dimension_numbers = #tpu.dot_dimension_numbers<[1], [0], [0], [1], [0, 0, 1, 1], [], []>} : vector<8x128xf32>, vector<128x256xf32>, vector<8x256xf32> -> vector<8x256xf32>
    %16 = vector.extract_strided_slice %15 {offsets = [0, 0], sizes = [1, 256], strides = [1, 1]} : vector<8x256xf32> to vector<1x256xf32>
    %17 = vector.extract_strided_slice %15 {offsets = [1, 0], sizes = [1, 256], strides = [1, 1]} : vector<8x256xf32> to vector<1x256xf32>
    %18 = arith.addf %16, %17 : vector<1x256xf32>
    %cst_12 = arith.constant 0.000000e+00 : f32
    %19 = vector.broadcast %cst_12 : f32 to vector<1x256xf32>
    %20 = arith.subf %19, %18 : vector<1x256xf32>
    %21 = math.exp %20 : vector<1x256xf32>
    %cst_13 = arith.constant 1.000000e+00 : f32
    %22 = vector.broadcast %cst_13 : f32 to vector<1x256xf32>
    %23 = arith.addf %22, %21 : vector<1x256xf32>
    %cst_14 = arith.constant 1.000000e+00 : f32
    %24 = vector.broadcast %cst_14 : f32 to vector<1x256xf32>
    %25 = arith.divf %24, %23 : vector<1x256xf32>
    %26 = vector.broadcast %25 : vector<1x256xf32> to vector<4x256xf32>
    %27 = arith.mulf %1, %26 : vector<4x256xf32>
    %c0_15 = arith.constant 0 : index
    %c0_16 = arith.constant 0 : index
    %c0_17 = arith.constant 0 : index
    %28 = vector.load %arg4[%c0_15, %c0_16, %c0_17] : memref<1x4x256xf32, #tpu.memory_space<vmem>>, vector<1x4x256xf32>
    %29 = vector.shape_cast %28 : vector<1x4x256xf32> to vector<4x256xf32>
    %30 = vector.shape_cast %27 : vector<4x256xf32> to vector<1x4x256xf32>
    tpu.vector_store %arg4[%c0_15, %c0_16, %c0_17], %30 {strides = array<i32>} : memref<1x4x256xf32, #tpu.memory_space<vmem>>, vector<1x4x256xf32>,
    return
  }
  func.func @transform_0(%arg0: i32) -> (i32, i32, i32) {
    %c0_i32 = arith.constant 0 : i32
    %c0_i32_0 = arith.constant 0 : i32
    %c0_i32_1 = arith.constant 0 : i32
    return %arg0, %c0_i32, %c0_i32_0 : i32, i32, i32
  }
  func.func @transform_1(%arg0: i32) -> (i32, i32) {
    %c0_i32 = arith.constant 0 : i32
    %c0_i32_0 = arith.constant 0 : i32
    %c0_i32_1 = arith.constant 0 : i32
    return %c0_i32, %c0_i32_0 : i32, i32
  }
  func.func @transform_2(%arg0: i32) -> (i32, i32) {
    %c0_i32 = arith.constant 0 : i32
    %c0_i32_0 = arith.constant 0 : i32
    %c0_i32_1 = arith.constant 0 : i32
    return %c0_i32, %c0_i32_0 : i32, i32
  }
  func.func @transform_3(%arg0: i32) -> (i32, i32, i32) {
    %c0_i32 = arith.constant 0 : i32
    %c0_i32_0 = arith.constant 0 : i32
    %c0_i32_1 = arith.constant 0 : i32
    return %arg0, %c0_i32, %c0_i32_0 : i32, i32, i32
  }
}

module attributes {stable_mosaic.version = 11 : i64} {
  func.func @_matmul_bias_kernel(%arg0: i32, %arg1: i32, %arg2: i32, %arg3: memref<8x128xbf16, #tpu.memory_space<vmem>>, %arg4: memref<128x128xbf16, #tpu.memory_space<vmem>>, %arg5: memref<1x128xf32, #tpu.memory_space<vmem>>, %arg6: memref<8x128xf32, #tpu.memory_space<vmem>>, %arg7: memref<8x128xf32, #tpu.memory_space<vmem>>) attributes {dimension_semantics = [#tpu.dimension_semantics<parallel>, #tpu.dimension_semantics<parallel>, #tpu.dimension_semantics<arbitrary>], iteration_bounds = array<i64: 1, 1, 1>, scalar_prefetch = 0 : i64, scratch_operands = 1 : i64, tpu.core_type = #tpu.core_type<tc>, window_params = [{transform_indices = @transform_0, window_bounds = array<i64: 8, 128>}, {transform_indices = @transform_1, window_bounds = array<i64: 128, 128>}, {transform_indices = @transform_2, window_bounds = array<i64: 1, 128>}, {transform_indices = @transform_3, window_bounds = array<i64: 8, 128>}]} {
    %c0_i32 = arith.constant 0 : i32
    %0 = arith.cmpi eq, %arg2, %c0_i32 : i32
    %1 = arith.extui %0 : i1 to i32
    %c0_i32_0 = arith.constant 0 : i32
    %2 = arith.cmpi ne, %1, %c0_i32_0 : i32
    scf.if %2 {
      %cst_10 = arith.constant 0.000000e+00 : f32
      %12 = vector.broadcast %cst_10 : f32 to vector<8x128xf32>
      %c0_11 = arith.constant 0 : index
      %c0_12 = arith.constant 0 : index
      %13 = vector.load %arg7[%c0_11, %c0_12] : memref<8x128xf32, #tpu.memory_space<vmem>>, vector<8x128xf32>
      tpu.vector_store %arg7[%c0_11, %c0_12], %12 {strides = array<i32>} : memref<8x128xf32, #tpu.memory_space<vmem>>, vector<8x128xf32>,
    } else {
    }
    %c0 = arith.constant 0 : index
    %c0_1 = arith.constant 0 : index
    %3 = vector.load %arg7[%c0, %c0_1] : memref<8x128xf32, #tpu.memory_space<vmem>>, vector<8x128xf32>
    %c0_2 = arith.constant 0 : index
    %c0_3 = arith.constant 0 : index
    %4 = vector.load %arg3[%c0_2, %c0_3] : memref<8x128xbf16, #tpu.memory_space<vmem>>, vector<8x128xbf16>
    %c0_4 = arith.constant 0 : index
    %c0_5 = arith.constant 0 : index
    %5 = vector.load %arg4[%c0_4, %c0_5] : memref<128x128xbf16, #tpu.memory_space<vmem>>, vector<128x128xbf16>
    %cst = arith.constant dense<0.000000e+00> : vector<8x128xf32>
    %6 = tpu.matmul %4, %5, %cst {dimension_numbers = #tpu.dot_dimension_numbers<[1], [0], [0], [1], [0, 0, 1, 1], [], []>} : vector<8x128xbf16>, vector<128x128xbf16>, vector<8x128xf32> -> vector<8x128xf32>
    %7 = arith.addf %3, %6 : vector<8x128xf32>
    %c0_6 = arith.constant 0 : index
    %c0_7 = arith.constant 0 : index
    %8 = vector.load %arg7[%c0_6, %c0_7] : memref<8x128xf32, #tpu.memory_space<vmem>>, vector<8x128xf32>
    tpu.vector_store %arg7[%c0_6, %c0_7], %7 {strides = array<i32>} : memref<8x128xf32, #tpu.memory_space<vmem>>, vector<8x128xf32>,
    %c0_i32_8 = arith.constant 0 : i32
    %9 = arith.cmpi eq, %arg2, %c0_i32_8 : i32
    %10 = arith.extui %9 : i1 to i32
    %c0_i32_9 = arith.constant 0 : i32
    %11 = arith.cmpi ne, %10, %c0_i32_9 : i32
    scf.if %11 {
      %c0_10 = arith.constant 0 : index
      %c0_11 = arith.constant 0 : index
      %12 = vector.load %arg7[%c0_10, %c0_11] : memref<8x128xf32, #tpu.memory_space<vmem>>, vector<8x128xf32>
      %c0_12 = arith.constant 0 : index
      %c0_13 = arith.constant 0 : index
      %13 = vector.load %arg5[%c0_12, %c0_13] : memref<1x128xf32, #tpu.memory_space<vmem>>, vector<1x128xf32>
      %14 = vector.broadcast %13 : vector<1x128xf32> to vector<8x128xf32>
      %15 = arith.addf %12, %14 : vector<8x128xf32>
      %cst_14 = arith.constant 0.000000e+00 : f32
      %16 = vector.broadcast %cst_14 : f32 to vector<8x128xf32>
      %17 = arith.subf %16, %15 : vector<8x128xf32>
      %18 = math.exp %17 : vector<8x128xf32>
      %cst_15 = arith.constant 1.000000e+00 : f32
      %19 = vector.broadcast %cst_15 : f32 to vector<8x128xf32>
      %20 = arith.addf %19, %18 : vector<8x128xf32>
      %cst_16 = arith.constant 1.000000e+00 : f32
      %21 = vector.broadcast %cst_16 : f32 to vector<8x128xf32>
      %22 = arith.divf %21, %20 : vector<8x128xf32>
      %c0_17 = arith.constant 0 : index
      %c0_18 = arith.constant 0 : index
      %23 = vector.load %arg6[%c0_17, %c0_18] : memref<8x128xf32, #tpu.memory_space<vmem>>, vector<8x128xf32>
      tpu.vector_store %arg6[%c0_17, %c0_18], %22 {strides = array<i32>} : memref<8x128xf32, #tpu.memory_space<vmem>>, vector<8x128xf32>,
    } else {
    }
    return
  }
  func.func @transform_0(%arg0: i32, %arg1: i32, %arg2: i32) -> (i32, i32) {
    %c0_i32 = arith.constant 0 : i32
    return %arg0, %arg2 : i32, i32
  }
  func.func @transform_1(%arg0: i32, %arg1: i32, %arg2: i32) -> (i32, i32) {
    %c0_i32 = arith.constant 0 : i32
    return %arg2, %arg1 : i32, i32
  }
  func.func @transform_2(%arg0: i32, %arg1: i32, %arg2: i32) -> (i32, i32) {
    %c0_i32 = arith.constant 0 : i32
    %c0_i32_0 = arith.constant 0 : i32
    return %c0_i32, %arg1 : i32, i32
  }
  func.func @transform_3(%arg0: i32, %arg1: i32, %arg2: i32) -> (i32, i32) {
    %c0_i32 = arith.constant 0 : i32
    return %arg0, %arg1 : i32, i32
  }
}

module attributes {stable_mosaic.version = 11 : i64} {
  func.func @_row_scale_kernel(%arg0: i32, %arg1: memref<8x256xf32, #tpu.memory_space<vmem>>, %arg2: memref<8x1xf32, #tpu.memory_space<vmem>>, %arg3: memref<8x256xf32, #tpu.memory_space<vmem>>) attributes {dimension_semantics = [#tpu.dimension_semantics<parallel>], iteration_bounds = array<i64: 1>, scalar_prefetch = 0 : i64, scratch_operands = 0 : i64, tpu.core_type = #tpu.core_type<tc>, window_params = [{transform_indices = @transform_0, window_bounds = array<i64: 8, 256>}, {transform_indices = @transform_1, window_bounds = array<i64: 8, 1>}, {transform_indices = @transform_2, window_bounds = array<i64: 8, 256>}]} {
    %c0 = arith.constant 0 : index
    %c0_0 = arith.constant 0 : index
    %0 = vector.load %arg1[%c0, %c0_0] : memref<8x256xf32, #tpu.memory_space<vmem>>, vector<8x256xf32>
    %c0_1 = arith.constant 0 : index
    %c0_2 = arith.constant 0 : index
    %1 = vector.load %arg2[%c0_1, %c0_2] : memref<8x1xf32, #tpu.memory_space<vmem>>, vector<8x1xf32>
    %2 = vector.broadcast %1 : vector<8x1xf32> to vector<8x256xf32>
    %3 = arith.mulf %0, %2 : vector<8x256xf32>
    %c0_3 = arith.constant 0 : index
    %c0_4 = arith.constant 0 : index
    %4 = vector.load %arg3[%c0_3, %c0_4] : memref<8x256xf32, #tpu.memory_space<vmem>>, vector<8x256xf32>
    tpu.vector_store %arg3[%c0_3, %c0_4], %3 {strides = array<i32>} : memref<8x256xf32, #tpu.memory_space<vmem>>, vector<8x256xf32>,
    return
  }
  func.func @transform_0(%arg0: i32) -> (i32, i32) {
    %c0_i32 = arith.constant 0 : i32
    %c0_i32_0 = arith.constant 0 : i32
    return %arg0, %c0_i32 : i32, i32
  }
  func.func @transform_1(%arg0: i32) -> (i32, i32) {
    %c0_i32 = arith.constant 0 : i32
    %c0_i32_0 = arith.constant 0 : i32
    return %arg0, %c0_i32 : i32, i32
  }
  func.func @transform_2(%arg0: i32) -> (i32, i32) {
    %c0_i32 = arith.constant 0 : i32
    %c0_i32_0 = arith.constant 0 : i32
    return %arg0, %c0_i32 : i32, i32
  }
}

module attributes {stable_mosaic.version = 11 : i64} {
  func.func @_group_norm_kernel(%arg0: i32, %arg1: memref<1x4x256xf32, #tpu.memory_space<vmem>>, %arg2: memref<256x256xf32, #tpu.memory_space<vmem>>, %arg3: memref<1x256xf32, #tpu.memory_space<vmem>>, %arg4: memref<1x256xf32, #tpu.memory_space<vmem>>, %arg5: memref<1x4x256xf32, #tpu.memory_space<vmem>>) attributes {dimension_semantics = [#tpu.dimension_semantics<parallel>], iteration_bounds = array<i64: 2>, scalar_prefetch = 0 : i64, scratch_operands = 0 : i64, tpu.core_type = #tpu.core_type<tc>, window_params = [{transform_indices = @transform_0, window_bounds = array<i64: 1, 4, 256>}, {pipeline_mode = #tpu.pipeline_mode<synchronous>, transform_indices = @transform_1, window_bounds = array<i64: 256, 256>}, {pipeline_mode = #tpu.pipeline_mode<synchronous>, transform_indices = @transform_2, window_bounds = array<i64: 1, 256>}, {pipeline_mode = #tpu.pipeline_mode<synchronous>, transform_indices = @transform_3, window_bounds = array<i64: 1, 256>}, {transform_indices = @transform_4, window_bounds = array<i64: 1, 4, 256>}]} {
    %c0 = arith.constant 0 : index
    %c0_0 = arith.constant 0 : index
    %c0_1 = arith.constant 0 : index
    %0 = vector.load %arg1[%c0, %c0_0, %c0_1] : memref<1x4x256xf32, #tpu.memory_space<vmem>>, vector<1x4x256xf32>
    %1 = vector.shape_cast %0 : vector<1x4x256xf32> to vector<4x256xf32>
    %cst = arith.constant dense<0.000000e+00> : vector<256xf32>
    %2 = vector.multi_reduction <add>, %1, %cst [0] : vector<4x256xf32> to vector<256xf32>
    %3 = vector.shape_cast %2 : vector<256xf32> to vector<1x256xf32>
    %4 = arith.mulf %1, %1 : vector<4x256xf32>
    %cst_2 = arith.constant dense<0.000000e+00> : vector<256xf32>
    %5 = vector.multi_reduction <add>, %4, %cst_2 [0] : vector<4x256xf32> to vector<256xf32>
    %6 = vector.shape_cast %5 : vector<256xf32> to vector<1x256xf32>
    %cst_3 = arith.constant 0.000000e+00 : f32
    %7 = vector.broadcast %cst_3 : f32 to vector<6x256xf32>
    %8 = tpu.concatenate %3, %6, %7 in 0 : vector<1x256xf32>, vector<1x256xf32>, vector<6x256xf32> -> vector<8x256xf32>
    %c0_4 = arith.constant 0 : index
    %c0_5 = arith.constant 0 : index
    %9 = vector.load %arg2[%c0_4, %c0_5] : memref<256x256xf32, #tpu.memory_space<vmem>>, vector<256x256xf32>
    %cst_6 = arith.constant dense<0.000000e+00> : vector<8x256xf32>
    %10 = tpu.matmul %8, %9, %cst_6 {dimension_numbers = #tpu.dot_dimension_numbers<[1], [0], [0], [1], [0, 0, 1, 1], [], []>} : vector<8x256xf32>, vector<256x256xf32>, vector<8x256xf32> -> vector<8x256xf32>
    %11 = vector.extract_strided_slice %10 {offsets = [0, 0], sizes = [1, 256], strides = [1, 1]} : vector<8x256xf32> to vector<1x256xf32>
    %cst_7 = arith.constant 3.125000e-02 : f32
    %12 = vector.broadcast %cst_7 : f32 to vector<1x256xf32>
    %13 = arith.mulf %11, %12 : vector<1x256xf32>
    %14 = vector.extract_strided_slice %10 {offsets = [1, 0], sizes = [1, 256], strides = [1, 1]} : vector<8x256xf32> to vector<1x256xf32>
    %cst_8 = arith.constant 3.125000e-02 : f32
    %15 = vector.broadcast %cst_8 : f32 to vector<1x256xf32>
    %16 = arith.mulf %14, %15 : vector<1x256xf32>
    %17 = arith.mulf %13, %13 : vector<1x256xf32>
    %18 = arith.subf %16, %17 : vector<1x256xf32>
    %cst_9 = arith.constant 0.000000e+00 : f32
    %19 = vector.broadcast %cst_9 : f32 to vector<1x256xf32>
    %20 = arith.maximumf %18, %19 : vector<1x256xf32>
    %cst_10 = arith.constant 9.99999974E-6 : f32
    %21 = vector.broadcast %cst_10 : f32 to vector<1x256xf32>
    %22 = arith.addf %20, %21 : vector<1x256xf32>
    %23 = math.rsqrt %22 : vector<1x256xf32>
    %24 = vector.broadcast %13 : vector<1x256xf32> to vector<4x256xf32>
    %25 = arith.subf %1, %24 : vector<4x256xf32>
    %c0_11 = arith.constant 0 : index
    %c0_12 = arith.constant 0 : index
    %26 = vector.load %arg3[%c0_11, %c0_12] : memref<1x256xf32, #tpu.memory_space<vmem>>, vector<1x256xf32>
    %27 = arith.mulf %23, %26 : vector<1x256xf32>
    %28 = vector.broadcast %27 : vector<1x256xf32> to vector<4x256xf32>
    %29 = arith.mulf %25, %28 : vector<4x256xf32>
    %c0_13 = arith.constant 0 : index
    %c0_14 = arith.constant 0 : index
    %30 = vector.load %arg4[%c0_13, %c0_14] : memref<1x256xf32, #tpu.memory_space<vmem>>, vector<1x256xf32>
    %31 = vector.broadcast %30 : vector<1x256xf32> to vector<4x256xf32>
    %32 = arith.addf %29, %31 : vector<4x256xf32>
    %c0_15 = arith.constant 0 : index
    %c0_16 = arith.constant 0 : index
    %c0_17 = arith.constant 0 : index
    %33 = vector.load %arg5[%c0_15, %c0_16, %c0_17] : memref<1x4x256xf32, #tpu.memory_space<vmem>>, vector<1x4x256xf32>
    %34 = vector.shape_cast %33 : vector<1x4x256xf32> to vector<4x256xf32>
    %35 = vector.shape_cast %32 : vector<4x256xf32> to vector<1x4x256xf32>
    tpu.vector_store %arg5[%c0_15, %c0_16, %c0_17], %35 {strides = array<i32>} : memref<1x4x256xf32, #tpu.memory_space<vmem>>, vector<1x4x256xf32>,
    return
  }
  func.func @transform_0(%arg0: i32) -> (i32, i32, i32) {
    %c0_i32 = arith.constant 0 : i32
    %c0_i32_0 = arith.constant 0 : i32
    %c0_i32_1 = arith.constant 0 : i32
    return %arg0, %c0_i32, %c0_i32_0 : i32, i32, i32
  }
  func.func @transform_1(%arg0: i32) -> (i32, i32) {
    %c0_i32 = arith.constant 0 : i32
    %c0_i32_0 = arith.constant 0 : i32
    %c0_i32_1 = arith.constant 0 : i32
    return %c0_i32, %c0_i32_0 : i32, i32
  }
  func.func @transform_2(%arg0: i32) -> (i32, i32) {
    %c0_i32 = arith.constant 0 : i32
    %c0_i32_0 = arith.constant 0 : i32
    %c0_i32_1 = arith.constant 0 : i32
    return %c0_i32, %c0_i32_0 : i32, i32
  }
  func.func @transform_3(%arg0: i32) -> (i32, i32) {
    %c0_i32 = arith.constant 0 : i32
    %c0_i32_0 = arith.constant 0 : i32
    %c0_i32_1 = arith.constant 0 : i32
    return %c0_i32, %c0_i32_0 : i32, i32
  }
  func.func @transform_4(%arg0: i32) -> (i32, i32, i32) {
    %c0_i32 = arith.constant 0 : i32
    %c0_i32_0 = arith.constant 0 : i32
    %c0_i32_1 = arith.constant 0 : i32
    return %arg0, %c0_i32, %c0_i32_0 : i32, i32, i32
  }
}

module attributes {stable_mosaic.version = 11 : i64} {
  func.func @_matmul_bias_kernel(%arg0: i32, %arg1: i32, %arg2: i32, %arg3: memref<8x512xbf16, #tpu.memory_space<vmem>>, %arg4: memref<512x256xbf16, #tpu.memory_space<vmem>>, %arg5: memref<1x256xf32, #tpu.memory_space<vmem>>, %arg6: memref<8x256xf32, #tpu.memory_space<vmem>>, %arg7: memref<8x256xf32, #tpu.memory_space<vmem>>) attributes {dimension_semantics = [#tpu.dimension_semantics<parallel>, #tpu.dimension_semantics<parallel>, #tpu.dimension_semantics<arbitrary>], iteration_bounds = array<i64: 1, 16, 18>, scalar_prefetch = 0 : i64, scratch_operands = 1 : i64, tpu.core_type = #tpu.core_type<tc>, window_params = [{transform_indices = @transform_0, window_bounds = array<i64: 8, 512>}, {transform_indices = @transform_1, window_bounds = array<i64: 512, 256>}, {transform_indices = @transform_2, window_bounds = array<i64: 1, 256>}, {transform_indices = @transform_3, window_bounds = array<i64: 8, 256>}]} {
    %c0_i32 = arith.constant 0 : i32
    %0 = arith.cmpi eq, %arg2, %c0_i32 : i32
    %1 = arith.extui %0 : i1 to i32
    %c0_i32_0 = arith.constant 0 : i32
    %2 = arith.cmpi ne, %1, %c0_i32_0 : i32
    scf.if %2 {
      %cst_9 = arith.constant 0.000000e+00 : f32
      %12 = vector.broadcast %cst_9 : f32 to vector<8x256xf32>
      %c0_10 = arith.constant 0 : index
      %c0_11 = arith.constant 0 : index
      %13 = vector.load %arg7[%c0_10, %c0_11] : memref<8x256xf32, #tpu.memory_space<vmem>>, vector<8x256xf32>
      tpu.vector_store %arg7[%c0_10, %c0_11], %12 {strides = array<i32>} : memref<8x256xf32, #tpu.memory_space<vmem>>, vector<8x256xf32>,
    } else {
    }
    %c0 = arith.constant 0 : index
    %c0_1 = arith.constant 0 : index
    %3 = vector.load %arg7[%c0, %c0_1] : memref<8x256xf32, #tpu.memory_space<vmem>>, vector<8x256xf32>
    %c0_2 = arith.constant 0 : index
    %c0_3 = arith.constant 0 : index
    %4 = vector.load %arg3[%c0_2, %c0_3] : memref<8x512xbf16, #tpu.memory_space<vmem>>, vector<8x512xbf16>
    %c0_4 = arith.constant 0 : index
    %c0_5 = arith.constant 0 : index
    %5 = vector.load %arg4[%c0_4, %c0_5] : memref<512x256xbf16, #tpu.memory_space<vmem>>, vector<512x256xbf16>
    %cst = arith.constant dense<0.000000e+00> : vector<8x256xf32>
    %6 = tpu.matmul %4, %5, %cst {dimension_numbers = #tpu.dot_dimension_numbers<[1], [0], [0], [1], [0, 0, 1, 1], [], []>} : vector<8x512xbf16>, vector<512x256xbf16>, vector<8x256xf32> -> vector<8x256xf32>
    %7 = arith.addf %3, %6 : vector<8x256xf32>
    %c0_6 = arith.constant 0 : index
    %c0_7 = arith.constant 0 : index
    %8 = vector.load %arg7[%c0_6, %c0_7] : memref<8x256xf32, #tpu.memory_space<vmem>>, vector<8x256xf32>
    tpu.vector_store %arg7[%c0_6, %c0_7], %7 {strides = array<i32>} : memref<8x256xf32, #tpu.memory_space<vmem>>, vector<8x256xf32>,
    %c17_i32 = arith.constant 17 : i32
    %9 = arith.cmpi eq, %arg2, %c17_i32 : i32
    %10 = arith.extui %9 : i1 to i32
    %c0_i32_8 = arith.constant 0 : i32
    %11 = arith.cmpi ne, %10, %c0_i32_8 : i32
    scf.if %11 {
      %c0_9 = arith.constant 0 : index
      %c0_10 = arith.constant 0 : index
      %12 = vector.load %arg7[%c0_9, %c0_10] : memref<8x256xf32, #tpu.memory_space<vmem>>, vector<8x256xf32>
      %c0_11 = arith.constant 0 : index
      %c0_12 = arith.constant 0 : index
      %13 = vector.load %arg5[%c0_11, %c0_12] : memref<1x256xf32, #tpu.memory_space<vmem>>, vector<1x256xf32>
      %14 = vector.broadcast %13 : vector<1x256xf32> to vector<8x256xf32>
      %15 = arith.addf %12, %14 : vector<8x256xf32>
      %cst_13 = arith.constant 0.000000e+00 : f32
      %16 = vector.broadcast %cst_13 : f32 to vector<8x256xf32>
      %17 = arith.maximumf %15, %16 : vector<8x256xf32>
      %c0_14 = arith.constant 0 : index
      %c0_15 = arith.constant 0 : index
      %18 = vector.load %arg6[%c0_14, %c0_15] : memref<8x256xf32, #tpu.memory_space<vmem>>, vector<8x256xf32>
      tpu.vector_store %arg6[%c0_14, %c0_15], %17 {strides = array<i32>} : memref<8x256xf32, #tpu.memory_space<vmem>>, vector<8x256xf32>,
    } else {
    }
    return
  }
  func.func @transform_0(%arg0: i32, %arg1: i32, %arg2: i32) -> (i32, i32) {
    %c0_i32 = arith.constant 0 : i32
    return %arg0, %arg2 : i32, i32
  }
  func.func @transform_1(%arg0: i32, %arg1: i32, %arg2: i32) -> (i32, i32) {
    %c0_i32 = arith.constant 0 : i32
    return %arg2, %arg1 : i32, i32
  }
  func.func @transform_2(%arg0: i32, %arg1: i32, %arg2: i32) -> (i32, i32) {
    %c0_i32 = arith.constant 0 : i32
    %c0_i32_0 = arith.constant 0 : i32
    return %c0_i32, %arg1 : i32, i32
  }
  func.func @transform_3(%arg0: i32, %arg1: i32, %arg2: i32) -> (i32, i32) {
    %c0_i32 = arith.constant 0 : i32
    return %arg0, %arg1 : i32, i32
  }
}

module attributes {stable_mosaic.version = 11 : i64} {
  func.func @_matmul_bias_kernel(%arg0: i32, %arg1: i32, %arg2: i32, %arg3: memref<8x512xbf16, #tpu.memory_space<vmem>>, %arg4: memref<512x256xbf16, #tpu.memory_space<vmem>>, %arg5: memref<1x256xf32, #tpu.memory_space<vmem>>, %arg6: memref<8x256xf32, #tpu.memory_space<vmem>>, %arg7: memref<8x256xf32, #tpu.memory_space<vmem>>) attributes {dimension_semantics = [#tpu.dimension_semantics<parallel>, #tpu.dimension_semantics<parallel>, #tpu.dimension_semantics<arbitrary>], iteration_bounds = array<i64: 1, 16, 8>, scalar_prefetch = 0 : i64, scratch_operands = 1 : i64, tpu.core_type = #tpu.core_type<tc>, window_params = [{transform_indices = @transform_0, window_bounds = array<i64: 8, 512>}, {transform_indices = @transform_1, window_bounds = array<i64: 512, 256>}, {transform_indices = @transform_2, window_bounds = array<i64: 1, 256>}, {transform_indices = @transform_3, window_bounds = array<i64: 8, 256>}]} {
    %c0_i32 = arith.constant 0 : i32
    %0 = arith.cmpi eq, %arg2, %c0_i32 : i32
    %1 = arith.extui %0 : i1 to i32
    %c0_i32_0 = arith.constant 0 : i32
    %2 = arith.cmpi ne, %1, %c0_i32_0 : i32
    scf.if %2 {
      %cst_9 = arith.constant 0.000000e+00 : f32
      %12 = vector.broadcast %cst_9 : f32 to vector<8x256xf32>
      %c0_10 = arith.constant 0 : index
      %c0_11 = arith.constant 0 : index
      %13 = vector.load %arg7[%c0_10, %c0_11] : memref<8x256xf32, #tpu.memory_space<vmem>>, vector<8x256xf32>
      tpu.vector_store %arg7[%c0_10, %c0_11], %12 {strides = array<i32>} : memref<8x256xf32, #tpu.memory_space<vmem>>, vector<8x256xf32>,
    } else {
    }
    %c0 = arith.constant 0 : index
    %c0_1 = arith.constant 0 : index
    %3 = vector.load %arg7[%c0, %c0_1] : memref<8x256xf32, #tpu.memory_space<vmem>>, vector<8x256xf32>
    %c0_2 = arith.constant 0 : index
    %c0_3 = arith.constant 0 : index
    %4 = vector.load %arg3[%c0_2, %c0_3] : memref<8x512xbf16, #tpu.memory_space<vmem>>, vector<8x512xbf16>
    %c0_4 = arith.constant 0 : index
    %c0_5 = arith.constant 0 : index
    %5 = vector.load %arg4[%c0_4, %c0_5] : memref<512x256xbf16, #tpu.memory_space<vmem>>, vector<512x256xbf16>
    %cst = arith.constant dense<0.000000e+00> : vector<8x256xf32>
    %6 = tpu.matmul %4, %5, %cst {dimension_numbers = #tpu.dot_dimension_numbers<[1], [0], [0], [1], [0, 0, 1, 1], [], []>} : vector<8x512xbf16>, vector<512x256xbf16>, vector<8x256xf32> -> vector<8x256xf32>
    %7 = arith.addf %3, %6 : vector<8x256xf32>
    %c0_6 = arith.constant 0 : index
    %c0_7 = arith.constant 0 : index
    %8 = vector.load %arg7[%c0_6, %c0_7] : memref<8x256xf32, #tpu.memory_space<vmem>>, vector<8x256xf32>
    tpu.vector_store %arg7[%c0_6, %c0_7], %7 {strides = array<i32>} : memref<8x256xf32, #tpu.memory_space<vmem>>, vector<8x256xf32>,
    %c7_i32 = arith.constant 7 : i32
    %9 = arith.cmpi eq, %arg2, %c7_i32 : i32
    %10 = arith.extui %9 : i1 to i32
    %c0_i32_8 = arith.constant 0 : i32
    %11 = arith.cmpi ne, %10, %c0_i32_8 : i32
    scf.if %11 {
      %c0_9 = arith.constant 0 : index
      %c0_10 = arith.constant 0 : index
      %12 = vector.load %arg7[%c0_9, %c0_10] : memref<8x256xf32, #tpu.memory_space<vmem>>, vector<8x256xf32>
      %c0_11 = arith.constant 0 : index
      %c0_12 = arith.constant 0 : index
      %13 = vector.load %arg5[%c0_11, %c0_12] : memref<1x256xf32, #tpu.memory_space<vmem>>, vector<1x256xf32>
      %14 = vector.broadcast %13 : vector<1x256xf32> to vector<8x256xf32>
      %15 = arith.addf %12, %14 : vector<8x256xf32>
      %cst_13 = arith.constant 0.000000e+00 : f32
      %16 = vector.broadcast %cst_13 : f32 to vector<8x256xf32>
      %17 = arith.maximumf %15, %16 : vector<8x256xf32>
      %c0_14 = arith.constant 0 : index
      %c0_15 = arith.constant 0 : index
      %18 = vector.load %arg6[%c0_14, %c0_15] : memref<8x256xf32, #tpu.memory_space<vmem>>, vector<8x256xf32>
      tpu.vector_store %arg6[%c0_14, %c0_15], %17 {strides = array<i32>} : memref<8x256xf32, #tpu.memory_space<vmem>>, vector<8x256xf32>,
    } else {
    }
    return
  }
  func.func @transform_0(%arg0: i32, %arg1: i32, %arg2: i32) -> (i32, i32) {
    %c0_i32 = arith.constant 0 : i32
    return %arg0, %arg2 : i32, i32
  }
  func.func @transform_1(%arg0: i32, %arg1: i32, %arg2: i32) -> (i32, i32) {
    %c0_i32 = arith.constant 0 : i32
    return %arg2, %arg1 : i32, i32
  }
  func.func @transform_2(%arg0: i32, %arg1: i32, %arg2: i32) -> (i32, i32) {
    %c0_i32 = arith.constant 0 : i32
    %c0_i32_0 = arith.constant 0 : i32
    return %c0_i32, %arg1 : i32, i32
  }
  func.func @transform_3(%arg0: i32, %arg1: i32, %arg2: i32) -> (i32, i32) {
    %c0_i32 = arith.constant 0 : i32
    return %arg0, %arg1 : i32, i32
  }
}

module attributes {stable_mosaic.version = 11 : i64} {
  func.func @_matmul_bias_kernel(%arg0: i32, %arg1: i32, %arg2: i32, %arg3: memref<8x512xbf16, #tpu.memory_space<vmem>>, %arg4: memref<512x128xbf16, #tpu.memory_space<vmem>>, %arg5: memref<1x128xf32, #tpu.memory_space<vmem>>, %arg6: memref<8x128xf32, #tpu.memory_space<vmem>>, %arg7: memref<8x128xf32, #tpu.memory_space<vmem>>) attributes {dimension_semantics = [#tpu.dimension_semantics<parallel>, #tpu.dimension_semantics<parallel>, #tpu.dimension_semantics<arbitrary>], iteration_bounds = array<i64: 1, 1, 8>, scalar_prefetch = 0 : i64, scratch_operands = 1 : i64, tpu.core_type = #tpu.core_type<tc>, window_params = [{transform_indices = @transform_0, window_bounds = array<i64: 8, 512>}, {transform_indices = @transform_1, window_bounds = array<i64: 512, 128>}, {transform_indices = @transform_2, window_bounds = array<i64: 1, 128>}, {transform_indices = @transform_3, window_bounds = array<i64: 8, 128>}]} {
    %c0_i32 = arith.constant 0 : i32
    %0 = arith.cmpi eq, %arg2, %c0_i32 : i32
    %1 = arith.extui %0 : i1 to i32
    %c0_i32_0 = arith.constant 0 : i32
    %2 = arith.cmpi ne, %1, %c0_i32_0 : i32
    scf.if %2 {
      %cst_9 = arith.constant 0.000000e+00 : f32
      %12 = vector.broadcast %cst_9 : f32 to vector<8x128xf32>
      %c0_10 = arith.constant 0 : index
      %c0_11 = arith.constant 0 : index
      %13 = vector.load %arg7[%c0_10, %c0_11] : memref<8x128xf32, #tpu.memory_space<vmem>>, vector<8x128xf32>
      tpu.vector_store %arg7[%c0_10, %c0_11], %12 {strides = array<i32>} : memref<8x128xf32, #tpu.memory_space<vmem>>, vector<8x128xf32>,
    } else {
    }
    %c0 = arith.constant 0 : index
    %c0_1 = arith.constant 0 : index
    %3 = vector.load %arg7[%c0, %c0_1] : memref<8x128xf32, #tpu.memory_space<vmem>>, vector<8x128xf32>
    %c0_2 = arith.constant 0 : index
    %c0_3 = arith.constant 0 : index
    %4 = vector.load %arg3[%c0_2, %c0_3] : memref<8x512xbf16, #tpu.memory_space<vmem>>, vector<8x512xbf16>
    %c0_4 = arith.constant 0 : index
    %c0_5 = arith.constant 0 : index
    %5 = vector.load %arg4[%c0_4, %c0_5] : memref<512x128xbf16, #tpu.memory_space<vmem>>, vector<512x128xbf16>
    %cst = arith.constant dense<0.000000e+00> : vector<8x128xf32>
    %6 = tpu.matmul %4, %5, %cst {dimension_numbers = #tpu.dot_dimension_numbers<[1], [0], [0], [1], [0, 0, 1, 1], [], []>} : vector<8x512xbf16>, vector<512x128xbf16>, vector<8x128xf32> -> vector<8x128xf32>
    %7 = arith.addf %3, %6 : vector<8x128xf32>
    %c0_6 = arith.constant 0 : index
    %c0_7 = arith.constant 0 : index
    %8 = vector.load %arg7[%c0_6, %c0_7] : memref<8x128xf32, #tpu.memory_space<vmem>>, vector<8x128xf32>
    tpu.vector_store %arg7[%c0_6, %c0_7], %7 {strides = array<i32>} : memref<8x128xf32, #tpu.memory_space<vmem>>, vector<8x128xf32>,
    %c7_i32 = arith.constant 7 : i32
    %9 = arith.cmpi eq, %arg2, %c7_i32 : i32
    %10 = arith.extui %9 : i1 to i32
    %c0_i32_8 = arith.constant 0 : i32
    %11 = arith.cmpi ne, %10, %c0_i32_8 : i32
    scf.if %11 {
      %c0_9 = arith.constant 0 : index
      %c0_10 = arith.constant 0 : index
      %12 = vector.load %arg7[%c0_9, %c0_10] : memref<8x128xf32, #tpu.memory_space<vmem>>, vector<8x128xf32>
      %c0_11 = arith.constant 0 : index
      %c0_12 = arith.constant 0 : index
      %13 = vector.load %arg5[%c0_11, %c0_12] : memref<1x128xf32, #tpu.memory_space<vmem>>, vector<1x128xf32>
      %14 = vector.broadcast %13 : vector<1x128xf32> to vector<8x128xf32>
      %15 = arith.addf %12, %14 : vector<8x128xf32>
      %c0_13 = arith.constant 0 : index
      %c0_14 = arith.constant 0 : index
      %16 = vector.load %arg6[%c0_13, %c0_14] : memref<8x128xf32, #tpu.memory_space<vmem>>, vector<8x128xf32>
      tpu.vector_store %arg6[%c0_13, %c0_14], %15 {strides = array<i32>} : memref<8x128xf32, #tpu.memory_space<vmem>>, vector<8x128xf32>,
    } else {
    }
    return
  }
  func.func @transform_0(%arg0: i32, %arg1: i32, %arg2: i32) -> (i32, i32) {
    %c0_i32 = arith.constant 0 : i32
    return %arg0, %arg2 : i32, i32
  }
  func.func @transform_1(%arg0: i32, %arg1: i32, %arg2: i32) -> (i32, i32) {
    %c0_i32 = arith.constant 0 : i32
    return %arg2, %arg1 : i32, i32
  }
  func.func @transform_2(%arg0: i32, %arg1: i32, %arg2: i32) -> (i32, i32) {
    %c0_i32 = arith.constant 0 : i32
    %c0_i32_0 = arith.constant 0 : i32
    return %c0_i32, %arg1 : i32, i32
  }
  func.func @transform_3(%arg0: i32, %arg1: i32, %arg2: i32) -> (i32, i32) {
    %c0_i32 = arith.constant 0 : i32
    return %arg0, %arg1 : i32, i32
  }
}

</mosaic_0001>

<bundles_post_ra>
// kernel: lw_cbam_alexnet_forward.23
= control target key start
LH: loop header
LB: loop body
LE: loop exit
PB: predicated region body
PF: predicated region fallthrough
CT: control target
= control target key end

     0   :  { %s1369_s12 = smov 0   ;;  %s1371_s13 = smov 0   ;;  %s1546_s0 = inlined_call_operand.vmem [shape: bf16[1152,384], index: 0, kind: input, shape index: {}]   ;;  %s1547_s1 = inlined_call_operand.vmem [shape: bf16[384,128], index: 1, kind: input, shape index: {}]   ;;  %s1548_s2 = inlined_call_operand.vmem [shape: f32[1,128], index: 2, kind: input, shape index: {}]   ;;  %s1549_s3 = inlined_call_operand.vmem [shape: f32[1152,128], index: 3, kind: output, shape index: {}]  }
   0x1   :  { %s1373_s14 = smov 0  }
   0x2 LB: > { %s32_s15 = sadd.s32 1, %s1343_s13  ;;  %p1076_p0 = scmp.ge.s32.totalorder %s1347_s14, 1  ;;  %s1347_s14 = sphi %s1373_s14, %s13_s14   ;;  %s1343_s13 = sphi %s1371_s13, %s1551_s13   ;;  %s1339_s12 = sphi %s1369_s12, %s1550_s12  }
   0x3   : > { %p34_p1 = scmp.ge.s32.totalorder %s32_s15, 9  ;;  %p191_p2 = scmp.lt.s32.totalorder %s1347_s14, 10 }
   0x5   : > { %s1553_s15 = smov (%p34_p1, %s32_s15), 0  ;;  %p192_p3 = pnand %p1076_p0, %p191_p2 }
   0x6   : > { %s1077_s5 = sshll.u32 (!%p192_p3), %s1339_s12, 4 }
   0x7   : > { %195 = sbr.rel (%p192_p3) target bundleno = 309 (0x135), region = 32  ;;  %p236_p4 = scmp.lt.s32.totalorder (!%p192_p3), %s1077_s5, 143 }
   0xc   : > { %v1269_v0 = vld [vmem:[%s1547_s1 + $0x78] sm:$0xff]   ;;  %v1272_v3 = vld [vmem:[%s1547_s1 + $0x70] sm:$0xff]   ;;  %v1275_v6 = vld [vmem:[%s1547_s1 + $0x68] sm:$0xff]   ;;  %s1555_s5 = smov (!%p236_p4, %s1077_s5), 143 }
   0xd   : > { %v1270_v1 = vld [vmem:[%s1547_s1 + $0x38] sm:$0xff]   ;;  %1132 = vmatprep.subr.bf16.mxu0 %v1269_v0  ;;  %v1273_v4 = vld [vmem:[%s1547_s1 + $0x30] sm:$0xff]   ;;  %v1276_v7 = vld [vmem:[%s1547_s1 + $0x28] sm:$0xff]   ;;  %s1244_s27 = smul.u32 12, %s1555_s5  ;;  %s1080_s24 = sshll.u32 %s1555_s5, 3 }
   0xe   : > { %v1271_v2 = vld [vmem:[%s1547_s1 + $0xb8] sm:$0xff]   ;;  %1133 = vmatpush3.bf16.msra.mxu0 %v1270_v1  ;;  %v1274_v5 = vld [vmem:[%s1547_s1 + $0xb0] sm:$0xff]   ;;  %v1277_v8 = vld [vmem:[%s1547_s1 + $0xa8] sm:$0xff]  }
   0xf   : > { %1212 = vmatprep.subr.bf16.mxu1 %v1271_v2  ;;  %1134 = vmatprep.subr.bf16.mxu0 %v1272_v3  ;;  %v1278_v9 = vld [vmem:[%s1547_s1 + $0x60] sm:$0xff]   ;;  %v1281_v12 = vld [vmem:[%s1547_s1 + $0x58] sm:$0xff]   ;;  %v1284_v15 = vld [vmem:[%s1547_s1 + $0x50] sm:$0xff]   ;;  %s1459_s16 = scalar_lea.vmem %s1546_s0, %s1244_s27  ;;  %s1504_s27 = scalar_lea.vmem %s1549_s3, %s1080_s24 }
  0x10   : > { %1213 = vmatpush3.bf16.msra.mxu1 %v1271_v2  ;;  %v1279_v10 = vld [vmem:[%s1547_s1 + $0x20] sm:$0xff]   ;;  %v1283_v13 = vld [vmem:[%s1547_s1 + $0x98] sm:$0xff]   ;;  %v1286_v16 = vld [vmem:[%s1547_s1 + $0x90] sm:$0xff]  }
  0x11   : > { %1214 = vmatprep.subr.bf16.mxu1 %v1274_v5  ;;  %v1280_v11 = vld [vmem:[%s1547_s1 + $0xa0] sm:$0xff]   ;;  %v1282_v14 = vld [vmem:[%s1547_s1 + $0x18] sm:$0xff]   ;;  %v1285_v17 = vld [vmem:[%s1547_s1 + $0x10] sm:$0xff]  }
  0x12   : > { %1135 = vmatpush3.bf16.msra.mxu0 %v1273_v4  ;;  %v1287_v18 = vld [vmem:[%s1547_s1 + $0x48] sm:$0xff]   ;;  %v1290_v21 = vld [vmem:[%s1547_s1 + $0x40] sm:$0xff]   ;;  %v1305_v32 = vld [vmem:[%s1459_s16 + $0x50] ss:$12 sps:$4 sm:$0xff]  }
  0x13   : > { %1136 = vmatprep.subr.bf16.mxu0 %v1275_v6  ;;  %v1288_v19 = vld [vmem:[%s1547_s1 + $0x8] sm:$0xff]   ;;  %v1292_v22 = vld [vmem:[%s1547_s1 + $0x80] sm:$0xff]   ;;  %v1303_v34 = vld [vmem:[%s1459_s16 + $0x30] ss:$12 sps:$4 sm:$0xff]  }
  0x14   : > { %1215 = vmatpush3.bf16.msra.mxu1 %v1274_v5  ;;  %v1289_v20 = vld [vmem:[%s1547_s1 + $0x88] sm:$0xff]   ;;  %v1295_v23 = vld [vmem:[%s1459_s16 + $0x4] ss:$12 sps:$4 sm:$0xff]   ;;  %v1301_v31 = vld [vmem:[%s1459_s16 + $0x34] ss:$12 sps:$4 sm:$0xff]  }
  0x15   : > { %1216 = vmatprep.subr.bf16.mxu1 %v1277_v8  ;;  %v1296_v24 = vld [vmem:[%s1459_s16 + $0x8] ss:$12 sps:$4 sm:$0xff]   ;;  %v1291_v25 = vld [vmem:[%s1547_s1] sm:$0xff]   ;;  %688 = vmatprep.mubr.bf16.mxu0 %v1295_v23  ;;  %v1306_v35 = vld [vmem:[%s1459_s16 + $0x4c] ss:$12 sps:$4 sm:$0xff]  }
  0x16   : > { %1137 = vmatpush3.bf16.msra.mxu0 %v1276_v7  ;;  %1228 = vmatprep.mubr.bf16.mxu1 %v1296_v24  ;;  %v1293_v26 = vld [vmem:[%s1459_s16] ss:$12 sps:$4 sm:$0xff]   ;;  %v1298_v27 = vld [vmem:[%s1459_s16 + $0x1c] ss:$12 sps:$4 sm:$0xff]   ;;  %v1304_v29 = vld [vmem:[%s1459_s16 + $0x38] ss:$12 sps:$4 sm:$0xff]  }
  0x17   : > { %1138 = vmatprep.subr.bf16.mxu0 %v1278_v9  ;;  %v1297_v28 = vld [vmem:[%s1459_s16 + $0x20] ss:$12 sps:$4 sm:$0xff]   ;;  %v1300_v30 = vld [vmem:[%s1459_s16 + $0x18] ss:$12 sps:$4 sm:$0xff]   ;;  %v1312_v33 = vld [vmem:[%s1459_s16 + $0x68] ss:$12 sps:$4 sm:$0xff]  }
  0x18   : > { %1217 = vmatpush3.bf16.msra.mxu1 %v1277_v8  ;;  %v1313_v36 = vld [vmem:[%s1459_s16 + $0x80] ss:$12 sps:$4 sm:$0xff]   ;;  %v1320_v37 = vld [vmem:[%s1459_s16 + $0x98] ss:$12 sps:$4 sm:$0xff]   ;;  %v1308_v38 = vld [vmem:[%s1459_s16 + $0x48] ss:$12 sps:$4 sm:$0xff]  }
  0x19   : > { %1218 = vmatprep.subr.bf16.mxu1 %v1280_v11  ;;  %v1309_v39 = vld [vmem:[%s1459_s16 + $0x64] ss:$12 sps:$4 sm:$0xff]   ;;  %v1311_v41 = vld [vmem:[%s1459_s16 + $0x60] ss:$12 sps:$4 sm:$0xff]   ;;  %v1314_v42 = vld [vmem:[%s1459_s16 + $0x7c] ss:$12 sps:$4 sm:$0xff]  }
  0x1a   : > { %1139 = vmatpush3.bf16.msra.mxu0 %v1279_v10  ;;  %v1321_v40 = vld [vmem:[%s1459_s16 + $0xb0] ss:$12 sps:$4 sm:$0xff]   ;;  %v1316_v43 = vld [vmem:[%s1459_s16 + $0x78] ss:$12 sps:$4 sm:$0xff]   ;;  %v1317_v44 = vld [vmem:[%s1459_s16 + $0x94] ss:$12 sps:$4 sm:$0xff]  }
  0x1b   : > { %1140 = vmatprep.subr.bf16.mxu0 %v1281_v12  ;;  %v1319_v45 = vld [vmem:[%s1459_s16 + $0x90] ss:$12 sps:$4 sm:$0xff]   ;;  %v1322_v46 = vld [vmem:[%s1459_s16 + $0xac] ss:$12 sps:$4 sm:$0xff]   ;;  %v1324_v47 = vld [vmem:[%s1459_s16 + $0xa8] ss:$12 sps:$4 sm:$0xff]  }
  0x1c   : > { %1219 = vmatpush3.bf16.msra.mxu1 %v1280_v11  ;;  %v1497_v54 = vld [vmem:[%s1548_s2] ss:$0 sm:$0xff] }
  0x1d   : > { %1220 = vmatprep.subr.bf16.mxu1 %v1283_v13 }
  0x1e   : > { %1141 = vmatpush3.bf16.msra.mxu0 %v1282_v14 }
  0x1f   : > { %1142 = vmatprep.subr.bf16.mxu0 %v1284_v15 }
  0x20   : > { %1221 = vmatpush3.bf16.msra.mxu1 %v1283_v13 }
  0x21   : > { %1222 = vmatprep.subr.bf16.mxu1 %v1286_v16 }
  0x22   : > { %1143 = vmatpush3.bf16.msra.mxu0 %v1285_v17 }
  0x23   : > { %1144 = vmatprep.subr.bf16.mxu0 %v1287_v18 }
  0x24   : > { %1223 = vmatpush3.bf16.msra.mxu1 %v1286_v16 }
  0x25   : > { %1224 = vmatprep.subr.bf16.mxu1 %v1289_v20 }
  0x26   : > { %1145 = vmatpush3.bf16.msra.mxu0 %v1288_v19 }
  0x27   : > { %1146 = vmatprep.subr.bf16.mxu0 %v1290_v21 }
  0x28   : > { %1225 = vmatpush3.bf16.msra.mxu1 %v1289_v20 }
  0x29   : > { %1226 = vmatprep.subr.bf16.mxu1 %v1292_v22 }
  0x2a   : > { %1147 = vmatpush3.bf16.msra.mxu0 %v1291_v25 }
  0x2c   : > { %1227 = vmatpush3.bf16.msra.mxu1 %v1292_v22 }
  0x2d   : > { %689 = vmatmul.mubr.bf16.vlgmr.msra.gmra.mxu0 %v1293_v26 }
  0x2e   : > { %696 = vmatprep.mubr.bf16.mxu0 %v1298_v27 }
  0x2f   : > { %1229 = vmatmul.mubr.bf16.vlgmr.msra.gmra.mxu1 %v1297_v28 }
  0x30   : > { %1232 = vmatprep.mubr.bf16.mxu1 %v1304_v29 }
  0x35   : > { %697 = vmatmul.mubr.bf16.gmra.mxu0 %v1300_v30 }
  0x36   : > { %704 = vmatprep.mubr.bf16.mxu0 %v1301_v31 }
  0x37   : > { %1233 = vmatmul.mubr.bf16.gmra.mxu1 %v1305_v32 }
  0x38   : > { %1236 = vmatprep.mubr.bf16.mxu1 %v1312_v33 }
  0x3d   : > { %705 = vmatmul.mubr.bf16.gmra.mxu0 %v1303_v34 }
  0x3e   : > { %712 = vmatprep.mubr.bf16.mxu0 %v1306_v35 }
  0x3f   : > { %1237 = vmatmul.mubr.bf16.gmra.mxu1 %v1313_v36 }
  0x40   : > { %1240 = vmatprep.mubr.bf16.mxu1 %v1320_v37 }
  0x45   : > { %713 = vmatmul.mubr.bf16.gmra.mxu0 %v1308_v38 }
  0x46   : > { %720 = vmatprep.mubr.bf16.mxu0 %v1309_v39 }
  0x47   : > { %1241 = vmatmul.mubr.bf16.gmra.mxu1 %v1321_v40 }
  0x4d   : > { %721 = vmatmul.mubr.bf16.gmra.mxu0 %v1311_v41 }
  0x4e   : > { %728 = vmatprep.mubr.bf16.mxu0 %v1314_v42 }
  0x55   : > { %729 = vmatmul.mubr.bf16.gmra.mxu0 %v1316_v43 }
  0x56   : > { %736 = vmatprep.mubr.bf16.mxu0 %v1317_v44 }
  0x5d   : > { %737 = vmatmul.mubr.bf16.gmra.mxu0 %v1319_v45 }
  0x5e   : > { %744 = vmatprep.mubr.bf16.mxu0 %v1322_v46 }
  0x65   : > { %745 = vmatmul.mubr.bf16.gmra.mxu0 %v1324_v47 }
  0xed   : > { %v1148_v48 = vpop.f32.mrf.mxu0 }
  0xef   : > { %v1149_v49 = vpop.f32.mrf.mxu0  ;;  %v1230_v50 = vpop.f32.mrf.mxu1 }
  0xf0   : > { %v1150_v51 = vadd.f32 %v1149_v49, %v1148_v48 }
  0xf1   : > { %v1151_v52 = vpop.f32.mrf.mxu0  ;;  %v787_v53 = vpop.f32.mrf.mxu1 }
  0xf2   : > { %v788_v55 = vadd.f32 %v1150_v51, %v787_v53 }
  0xf3   : > { %v1152_v56 = vpop.f32.mrf.mxu0  ;;  %v1231_v57 = vpop.f32.mrf.mxu1 }
  0xf4   : > { %v908_v58 = vadd.f32 %v1497_v54, %v788_v55  ;;  %v1153_v59 = vadd.f32 %v1152_v56, %v1151_v52 }
  0xf5   : > { %v1154_v60 = vpop.f32.mrf.mxu0  ;;  %v790_v61 = vpop.f32.mrf.mxu1 }
  0xf6   : > { %v924_v62 = vmax.f32 %v908_v58, 0.0  ;;  %v791_v63 = vadd.f32 %v1153_v59, %v790_v61 }
  0xf7   : > { %v1155_v0 = vpop.f32.mrf.mxu0  ;;  %v1234_v1 = vpop.f32.mrf.mxu1 }
  0xf8   : > { %940 = vst [vmem:[%s1504_s27] sm:$0xff] %v924_v62  ;;  %v909_v2 = vadd.f32 %v1497_v54, %v791_v63  ;;  %v1156_v3 = vadd.f32 %v1155_v0, %v1154_v60 }
  0xf9   : > { %v1157_v4 = vpop.f32.mrf.mxu0  ;;  %v803_v8 = vpop.f32.mrf.mxu1 }
  0xfa   : > { %v925_v5 = vmax.f32 %v909_v2, 0.0  ;;  %v796_v6 = vadd.f32 %v1230_v50, %v1156_v3 }
  0xfb   : > { %v1158_v7 = vpop.f32.mrf.mxu0  ;;  %v1235_v15 = vpop.f32.mrf.mxu1 }
  0xfc   : > { %941 = vst [vmem:[%s1504_s27 + $0x8] sm:$0xff] %v925_v5  ;;  %v910_v9 = vadd.f32 %v1497_v54, %v796_v6  ;;  %v1159_v10 = vadd.f32 %v1158_v7, %v1157_v4 }
  0xfd   : > { %v1160_v11 = vpop.f32.mrf.mxu0  ;;  %v806_v22 = vpop.f32.mrf.mxu1 }
  0xfe   : > { %v926_v12 = vmax.f32 %v910_v9, 0.0  ;;  %v799_v13 = vadd.f32 %v1231_v57, %v1159_v10 }
  0xff   : > { %v1161_v14 = vpop.f32.mrf.mxu0  ;;  %v1238_v29 = vpop.f32.mrf.mxu1 }
 0x100   : > { %942 = vst [vmem:[%s1504_s27 + $0x10] sm:$0xff] %v926_v12  ;;  %v911_v16 = vadd.f32 %v1497_v54, %v799_v13  ;;  %v1162_v17 = vadd.f32 %v1161_v14, %v1160_v11 }
 0x101   : > { %v1163_v18 = vpop.f32.mrf.mxu0  ;;  %v819_v36 = vpop.f32.mrf.mxu1 }
 0x102   : > { %v927_v19 = vmax.f32 %v911_v16, 0.0  ;;  %v804_v20 = vadd.f32 %v1162_v17, %v803_v8 }
 0x103   : > { %v1164_v21 = vpop.f32.mrf.mxu0  ;;  %v1239_v43 = vpop.f32.mrf.mxu1 }
 0x104   : > { %943 = vst [vmem:[%s1504_s27 + $0x18] sm:$0xff] %v927_v19  ;;  %v912_v23 = vadd.f32 %v1497_v54, %v804_v20  ;;  %v1165_v24 = vadd.f32 %v1164_v21, %v1163_v18 }
 0x105   : > { %v1166_v25 = vpop.f32.mrf.mxu0  ;;  %v822_v50 = vpop.f32.mrf.mxu1 }
 0x106   : > { %v928_v26 = vmax.f32 %v912_v23, 0.0  ;;  %v807_v27 = vadd.f32 %v1165_v24, %v806_v22 }
 0x107   : > { %v1167_v28 = vpop.f32.mrf.mxu0  ;;  %v1242_v58 = vpop.f32.mrf.mxu1 }
 0x108   : > { %944 = vst [vmem:[%s1504_s27 + $0x20] sm:$0xff] %v928_v26  ;;  %v913_v30 = vadd.f32 %v1497_v54, %v807_v27  ;;  %v1168_v31 = vadd.f32 %v1167_v28, %v1166_v25 }
 0x109   : > { %v1169_v32 = vpop.f32.mrf.mxu0 }
 0x10a   : > { %v929_v33 = vmax.f32 %v913_v30, 0.0  ;;  %v812_v34 = vadd.f32 %v1234_v1, %v1168_v31  ;;  %v835_v1 = vpop.f32.mrf.mxu1 }
 0x10b   : > { %v1170_v35 = vpop.f32.mrf.mxu0 }
 0x10c   : > { %945 = vst [vmem:[%s1504_s27 + $0x28] sm:$0xff] %v929_v33  ;;  %v914_v37 = vadd.f32 %v1497_v54, %v812_v34  ;;  %v1171_v38 = vadd.f32 %v1170_v35, %v1169_v32  ;;  %v1243_v8 = vpop.f32.mrf.mxu1 }
 0x10d   : > { %v1172_v39 = vpop.f32.mrf.mxu0 }
 0x10e   : > { %v930_v40 = vmax.f32 %v914_v37, 0.0  ;;  %v815_v41 = vadd.f32 %v1235_v15, %v1171_v38  ;;  %v838_v15 = vpop.f32.mrf.mxu1 }
 0x10f   : > { %v1173_v42 = vpop.f32.mrf.mxu0 }
 0x110   : > { %946 = vst [vmem:[%s1504_s27 + $0x30] sm:$0xff] %v930_v40  ;;  %v915_v44 = vadd.f32 %v1497_v54, %v815_v41  ;;  %v1174_v45 = vadd.f32 %v1173_v42, %v1172_v39 }
 0x111   : > { %v1175_v46 = vpop.f32.mrf.mxu0 }
 0x112   : > { %v931_v47 = vmax.f32 %v915_v44, 0.0  ;;  %v820_v48 = vadd.f32 %v1174_v45, %v819_v36 }
 0x113   : > { %v1176_v49 = vpop.f32.mrf.mxu0 }
 0x114   : > { %947 = vst [vmem:[%s1504_s27 + $0x38] sm:$0xff] %v931_v47  ;;  %v916_v51 = vadd.f32 %v1497_v54, %v820_v48  ;;  %v1177_v52 = vadd.f32 %v1176_v49, %v1175_v46 }
 0x115   : > { %v1178_v53 = vpop.f32.mrf.mxu0 }
 0x116   : > { %v932_v55 = vmax.f32 %v916_v51, 0.0  ;;  %v823_v56 = vadd.f32 %v1177_v52, %v822_v50 }
 0x117   : > { %v1179_v57 = vpop.f32.mrf.mxu0 }
 0x118   : > { %948 = vst [vmem:[%s1504_s27 + $0x40] sm:$0xff] %v932_v55  ;;  %v917_v59 = vadd.f32 %v1497_v54, %v823_v56  ;;  %v1180_v60 = vadd.f32 %v1179_v57, %v1178_v53 }
 0x119   : > { %v1181_v61 = vpop.f32.mrf.mxu0 }
 0x11a   : > { %v933_v62 = vmax.f32 %v917_v59, 0.0  ;;  %v828_v63 = vadd.f32 %v1238_v29, %v1180_v60 }
 0x11b   : > { %v1182_v0 = vpop.f32.mrf.mxu0 }
 0x11c   : > { %949 = vst [vmem:[%s1504_s27 + $0x48] sm:$0xff] %v933_v62  ;;  %v918_v2 = vadd.f32 %v1497_v54, %v828_v63  ;;  %v1183_v3 = vadd.f32 %v1182_v0, %v1181_v61 }
 0x11d   : > { %v1184_v4 = vpop.f32.mrf.mxu0 }
 0x11e   : > { %v934_v5 = vmax.f32 %v918_v2, 0.0  ;;  %v831_v6 = vadd.f32 %v1239_v43, %v1183_v3 }
 0x11f   : > { %v1185_v7 = vpop.f32.mrf.mxu0 }
 0x120   : > { %950 = vst [vmem:[%s1504_s27 + $0x50] sm:$0xff] %v934_v5  ;;  %v919_v9 = vadd.f32 %v1497_v54, %v831_v6  ;;  %v1186_v10 = vadd.f32 %v1185_v7, %v1184_v4 }
 0x121   : > { %v1187_v11 = vpop.f32.mrf.mxu0 }
 0x122   : > { %v935_v12 = vmax.f32 %v919_v9, 0.0  ;;  %v836_v13 = vadd.f32 %v1186_v10, %v835_v1 }
 0x123   : > { %v1188_v14 = vpop.f32.mrf.mxu0 }
 0x124   : > { %951 = vst [vmem:[%s1504_s27 + $0x58] sm:$0xff] %v935_v12  ;;  %v920_v16 = vadd.f32 %v1497_v54, %v836_v13  ;;  %v1189_v17 = vadd.f32 %v1188_v14, %v1187_v11 }
 0x125   : > { %v1190_v18 = vpop.f32.mrf.mxu0 }
 0x126   : > { %v936_v19 = vmax.f32 %v920_v16, 0.0  ;;  %v839_v20 = vadd.f32 %v1189_v17, %v838_v15 }
 0x127   : > { %v1191_v21 = vpop.f32.mrf.mxu0 }
 0x128   : > { %952 = vst [vmem:[%s1504_s27 + $0x60] sm:$0xff] %v936_v19  ;;  %v921_v22 = vadd.f32 %v1497_v54, %v839_v20  ;;  %v1192_v23 = vadd.f32 %v1191_v21, %v1190_v18 }
 0x129   : > { %v1193_v24 = vpop.f32.mrf.mxu0 }
 0x12a   : > { %v937_v25 = vmax.f32 %v921_v22, 0.0  ;;  %v844_v26 = vadd.f32 %v1242_v58, %v1192_v23 }
 0x12b   : > { %v1194_v27 = vpop.f32.mrf.mxu0 }
 0x12c   : > { %953 = vst [vmem:[%s1504_s27 + $0x68] sm:$0xff] %v937_v25  ;;  %v922_v28 = vadd.f32 %v1497_v54, %v844_v26  ;;  %v1195_v29 = vadd.f32 %v1194_v27, %v1193_v24 }
 0x12e   : > { %v938_v30 = vmax.f32 %v922_v28, 0.0  ;;  %v847_v31 = vadd.f32 %v1243_v8, %v1195_v29 }
 0x130   : > { %954 = vst [vmem:[%s1504_s27 + $0x70] sm:$0xff] %v938_v30  ;;  %v923_v32 = vadd.f32 %v1497_v54, %v847_v31 }
 0x132   : > { %v939_v33 = vmax.f32 %v923_v32, 0.0 }
 0x134   : > { %955 = vst [vmem:[%s1504_s27 + $0x78] sm:$0xff] %v939_v33 }
 0x135 PF: > { %s13_s14 = sadd.s32 1, %s1347_s14   ;;  %s1550_s12 = smov %s1343_s13 }
 0x136   : > { %p10_p5 = scmp.ge.s32.totalorder %s13_s14, 11   ;;  %s1551_s13 = smov %s1553_s15 }
 0x138   :  { %12 = sbr.rel (!%p10_p5) target bundleno = 2 (0x2), region = 76 }

// kernel: lw_cbam_alexnet_forward.25
= control target key start
LH: loop header
LB: loop body
LE: loop exit
PB: predicated region body
PF: predicated region fallthrough
CT: control target
= control target key end

     0   :  { %s675_s12 = smov 0   ;;  %s964_s0 = inlined_call_operand.vmem [shape: f32[2,121,64], index: 0, kind: input, shape index: {}]   ;;  %s965_s1 = inlined_call_operand.vmem [shape: f32[64,128], index: 1, kind: input, shape index: {}]   ;;  %s966_s2 = inlined_call_operand.vmem [shape: f32[128,64], index: 2, kind: input, shape index: {}]   ;;  %s967_s3 = inlined_call_operand.vmem [shape: f32[2,121,64], index: 3, kind: output, shape index: {}]  }
   0x1 LB: > { %s537_s13 = sadd.s32 4294967295, %s651_s12   ;;  %p541_p0 = scmp.ge.s32.totalorder %s651_s12, 1  ;;  %s651_s12 = sphi %s675_s12, %s13_s12  }
   0x2   : > { %p137_p1 = scmp.lt.s32.totalorder %s651_s12, 3 }
   0x4   : > { %p138_p2 = pnand %p541_p0, %p137_p1 }
   0x5   : > { %p161_p3 = scmp.lt.s32.totalorder (!%p138_p2), %s537_s13, 1 }
   0x6   : > { %141 = sbr.rel (%p138_p2) target bundleno = 502 (0x1f6), region = 32 }
   0xb   : > { %v275_v0 = vld [vmem:[%s965_s1 + $0x38] sm:$0xff]  ;;  %v653_v1 = vmov 0.0   ;;  %v274_v2 = vld [vmem:[%s965_s1 + $0x30] sm:$0xff]  ;;  %vm654_vm0 = vmmov 0   ;;  %s969_s13 = smov (!%p161_p3, %s537_s13), 1  ;;  %v273_v4 = vld [vmem:[%s965_s1 + $0x28] sm:$0xff] }
   0xc   : > { %577 = vmatprep.subr.mxu0 %v653_v1  ;;  %593 = vmatprep.mubr.msk.f32.mxu0 %vm654_vm0, %v653_v1  ;;  %v365_v3 = vld [vmem:[%s966_s2 + $0x78] sm:$0xff]  ;;  %v364_v5 = vld [vmem:[%s966_s2 + $0x70] sm:$0xff]  ;;  %s549_s24 = sshll.u32 %s969_s13, 7  ;;  %vm187_vm1 = vcmask 523264   ;;  %v363_v6 = vld [vmem:[%s966_s2 + $0x68] sm:$0xff]  ;;  %vm217_vm2 = vcmask 516096  }
   0xd   : > { %578 = vmatpush3.msra.mxu0 %v275_v0  ;;  %596 = vmatprep.subr.mxu1 %v653_v1  ;;  %v272_v7 = vld [vmem:[%s965_s1 + $0x20] sm:$0xff]  ;;  %s719_s4 = scalar_lea.vmem %s964_s0, %s549_s24  ;;  %v271_v12 = vld [vmem:[%s965_s1 + $0x18] sm:$0xff]  ;;  %v270_v22 = vld [vmem:[%s965_s1 + $0x10] sm:$0xff]  ;;  %vm264_vm3 = vcmask 1040384   ;;  %vm266_vm4 = vcmask 1041408   ;;  %s911_s19 = scalar_lea.vmem %s967_s3, %s549_s24 }
   0xe   : > { %579 = vmatprep.subr.mxu0 %v653_v1  ;;  %597 = vmatpush3.msra.mxu1 %v365_v3  ;;  %v362_v8 = vld [vmem:[%s966_s2 + $0x60] sm:$0xff]  ;;  %v728_v10 = vld [vmem:[%s719_s4 + $0x8] sm:$0xff]  ;;  %v731_v11 = vld [vmem:[%s719_s4 + $0x10] sm:$0xff] }
   0xf   : > { %580 = vmatpush3.msra.mxu0 %v274_v2  ;;  %598 = vmatprep.subr.mxu1 %v653_v1  ;;  %v725_v9 = vld [vmem:[%s719_s4] sm:$0xff]  ;;  %v739_v13 = vld [vmem:[%s719_s4 + $0x18] sm:$0xff]  ;;  %v189_v15 = vsel %vm187_vm1, %v728_v10, 0.0  ;;  %v191_v16 = vsel %vm187_vm1, %v731_v11, 0.0  ;;  %v754_v19 = vld [vmem:[%s719_s4 + $0x28] sm:$0xff]  ;;  %v228_v34 = vsel %vm187_vm1, %v728_v10, -inf }
  0x10   : > { %581 = vmatprep.subr.mxu0 %v653_v1  ;;  %599 = vmatpush3.msra.mxu1 %v364_v5  ;;  %v188_v14 = vsel %vm187_vm1, %v725_v9, 0.0  ;;  %v361_v17 = vld [vmem:[%s966_s2 + $0x58] sm:$0xff]  ;;  %v751_v18 = vld [vmem:[%s719_s4 + $0x20] sm:$0xff]  ;;  %v757_v20 = vld [vmem:[%s719_s4 + $0x30] sm:$0xff]  ;;  %v193_v24 = vsel %vm187_vm1, %v739_v13, 0.0  ;;  %v197_v29 = vsel %vm187_vm1, %v754_v19, 0.0 }
  0x11   : > { %582 = vmatpush3.msra.mxu0 %v273_v4  ;;  %600 = vmatprep.subr.mxu1 %v653_v1  ;;  %v190_v21 = vadd.f32 %v189_v15, %v188_v14  ;;  %v765_v23 = vld [vmem:[%s719_s4 + $0x38] sm:$0xff]  ;;  %v360_v26 = vld [vmem:[%s966_s2 + $0x50] sm:$0xff]  ;;  %v269_v27 = vld [vmem:[%s965_s1 + $0x8] sm:$0xff]  ;;  %v195_v28 = vsel %vm187_vm1, %v751_v18, 0.0  ;;  %v199_v30 = vsel %vm187_vm1, %v757_v20, 0.0  ;;  %v227_v31 = vsel %vm187_vm1, %v725_v9, -inf }
  0x12   : > { %583 = vmatprep.subr.mxu0 %v653_v1  ;;  %601 = vmatpush3.msra.mxu1 %v363_v6  ;;  %v201_v33 = vsel %vm187_vm1, %v765_v23, 0.0  ;;  %v229_v35 = vsel %vm187_vm1, %v731_v11, -inf  ;;  %v268_v36 = vld [vmem:[%s965_s1] sm:$0xff]  ;;  %v230_v37 = vsel %vm187_vm1, %v739_v13, -inf  ;;  %v231_v38 = vsel %vm187_vm1, %v751_v18, -inf  ;;  %v359_v41 = vld [vmem:[%s966_s2 + $0x48] sm:$0xff] }
  0x13   : > { %584 = vmatpush3.msra.mxu0 %v272_v7  ;;  %602 = vmatprep.subr.mxu1 %v653_v1  ;;  %v192_v25 = vadd.f32 %v191_v16, %v190_v21  ;;  %v233_v39 = vsel %vm187_vm1, %v754_v19, -inf  ;;  %v235_v40 = vsel %vm187_vm1, %v757_v20, -inf  ;;  %v808_v42 = vld [vmem:[%s719_s4 + $0x40] sm:$0xff]  ;;  %v811_v43 = vld [vmem:[%s719_s4 + $0x48] sm:$0xff]  ;;  %v814_v44 = vld [vmem:[%s719_s4 + $0x50] sm:$0xff]  ;;  %v232_v46 = vmax.f32 %v227_v31, %v231_v38 }
  0x14   : > { %585 = vmatprep.subr.mxu0 %v653_v1  ;;  %603 = vmatpush3.msra.mxu1 %v362_v8  ;;  %v234_v47 = vmax.f32 %v228_v34, %v233_v39  ;;  %v236_v48 = vmax.f32 %v229_v35, %v235_v40  ;;  %v358_v49 = vld [vmem:[%s966_s2 + $0x40] sm:$0xff]  ;;  %v821_v50 = vld [vmem:[%s719_s4 + $0x58] sm:$0xff]  ;;  %v237_v52 = vsel %vm187_vm1, %v765_v23, -inf  ;;  %v239_v53 = vsel %vm187_vm1, %v808_v42, -inf  ;;  %v836_v56 = vld [vmem:[%s719_s4 + $0x68] sm:$0xff] }
  0x15   : > { %586 = vmatpush3.msra.mxu0 %v271_v12  ;;  %604 = vmatprep.subr.mxu1 %v653_v1  ;;  %v194_v32 = vadd.f32 %v193_v24, %v192_v25  ;;  %v824_v51 = vld [vmem:[%s719_s4 + $0x60] sm:$0xff]  ;;  %v241_v54 = vsel %vm187_vm1, %v811_v43, -inf  ;;  %v243_v55 = vsel %vm187_vm1, %v814_v44, -inf  ;;  %v839_v57 = vld [vmem:[%s719_s4 + $0x70] sm:$0xff]  ;;  %v842_v58 = vld [vmem:[%s719_s4 + $0x78] sm:$0x1]  ;;  %v238_v60 = vmax.f32 %v230_v37, %v237_v52 }
  0x16   : > { %587 = vmatprep.subr.mxu0 %v653_v1  ;;  %605 = vmatpush3.msra.mxu1 %v361_v17  ;;  %v240_v61 = vmax.f32 %v232_v46, %v239_v53  ;;  %v242_v62 = vmax.f32 %v234_v47, %v241_v54  ;;  %v244_v63 = vmax.f32 %v236_v48, %v243_v55  ;;  %v245_v0 = vsel %vm187_vm1, %v821_v50, -inf  ;;  %v357_v8 = vld [vmem:[%s966_s2 + $0x38] sm:$0xff]  ;;  %v356_v24 = vld [vmem:[%s966_s2 + $0x30] sm:$0xff] }
  0x17   : > { %588 = vmatpush3.msra.mxu0 %v270_v22  ;;  %606 = vmatprep.subr.mxu1 %v653_v1  ;;  %v196_v45 = vadd.f32 %v195_v28, %v194_v32  ;;  %v247_v2 = vsel %vm187_vm1, %v824_v51, -inf  ;;  %v249_v3 = vsel %vm187_vm1, %v836_v56, -inf  ;;  %v246_v5 = vmax.f32 %v238_v60, %v245_v0  ;;  %v355_v28 = vld [vmem:[%s966_s2 + $0x28] sm:$0xff]  ;;  %v354_v32 = vld [vmem:[%s966_s2 + $0x20] sm:$0xff]  ;;  %v353_v35 = vld [vmem:[%s966_s2 + $0x18] sm:$0xff] }
  0x18   : > { %589 = vmatprep.subr.mxu0 %v653_v1  ;;  %607 = vmatpush3.msra.mxu1 %v360_v26  ;;  %v248_v6 = vmax.f32 %v240_v61, %v247_v2  ;;  %v250_v7 = vmax.f32 %v242_v62, %v249_v3  ;;  %v203_v12 = vsel %vm187_vm1, %v808_v42, 0.0  ;;  %v251_v14 = vsel %vm187_vm1, %v839_v57, -inf  ;;  %v352_v39 = vld [vmem:[%s966_s2 + $0x10] sm:$0xff] }
  0x19   : > { %590 = vmatpush3.msra.mxu0 %v269_v27  ;;  %608 = vmatprep.subr.mxu1 %v653_v1  ;;  %v198_v59 = vadd.f32 %v197_v29, %v196_v45  ;;  %v253_v15 = vsel %vm217_vm2, %v842_v58, -inf  ;;  %v252_v17 = vmax.f32 %v244_v63, %v251_v14  ;;  %v205_v25 = vsel %vm187_vm1, %v811_v43, 0.0 }
  0x1a   : > { %591 = vmatprep.subr.mxu0 %v653_v1  ;;  %609 = vmatpush3.msra.mxu1 %v359_v41  ;;  %v254_v21 = vmax.f32 %v246_v5, %v253_v15  ;;  %v255_v22 = vmax.f32 %v248_v6, %v250_v7  ;;  %v207_v29 = vsel %vm187_vm1, %v814_v44, 0.0  ;;  %v213_v40 = vsel %vm187_vm1, %v836_v56, 0.0  ;;  %v351_v6 = vld [vmem:[%s966_s2 + $0x8] sm:$0xff]  ;;  %v350_v7 = vld [vmem:[%s966_s2] sm:$0xff] }
  0x1b   : > { %592 = vmatpush3.msra.mxu0 %v268_v36  ;;  %628 = vmatprep.mubr.msk.f32.mxu1 %vm654_vm0, %v653_v1  ;;  %v200_v4 = vadd.f32 %v199_v30, %v198_v59  ;;  %v211_v36 = vsel %vm187_vm1, %v824_v51, 0.0  ;;  %v215_v45 = vsel %vm187_vm1, %v839_v57, 0.0  ;;  %v218_v48 = vsel %vm217_vm2, %v842_v58, 0.0 }
  0x1c   : > { %610 = vmatprep.subr.mxu1 %v653_v1  ;;  %v256_v27 = vmax.f32 %v252_v17, %v254_v21 }
  0x1d   : > { %611 = vmatpush3.msra.mxu1 %v358_v49  ;;  %v202_v16 = vadd.f32 %v201_v33, %v200_v4  ;;  %v209_v33 = vsel %vm187_vm1, %v821_v50, 0.0 }
  0x1e   : > { %612 = vmatprep.subr.mxu1 %v653_v1  ;;  %v257_v31 = vmax.f32 %v255_v22, %v256_v27 }
  0x1f   : > { %613 = vmatpush3.msra.mxu1 %v357_v8  ;;  %v204_v26 = vadd.f32 %v203_v12, %v202_v16 }
  0x20   : > { %614 = vmatprep.subr.mxu1 %v653_v1  ;;  %v258_v38 = vrot.slane %v257_v31, 4 }
  0x21   : > { %615 = vmatpush3.msra.mxu1 %v356_v24  ;;  %v206_v30 = vadd.f32 %v205_v25, %v204_v26 }
  0x22   : > { %616 = vmatprep.subr.mxu1 %v653_v1  ;;  %v259_v47 = vmax.f32 %v257_v31, %v258_v38 }
  0x23   : > { %617 = vmatpush3.msra.mxu1 %v355_v28  ;;  %v208_v34 = vadd.f32 %v207_v29, %v206_v30 }
  0x24   : > { %618 = vmatprep.subr.mxu1 %v653_v1  ;;  %v260_v53 = vrot.slane %v259_v47, 2 }
  0x25   : > { %619 = vmatpush3.msra.mxu1 %v354_v32  ;;  %v210_v37 = vadd.f32 %v209_v33, %v208_v34 }
  0x26   : > { %620 = vmatprep.subr.mxu1 %v653_v1  ;;  %v261_v59 = vmax.f32 %v259_v47, %v260_v53 }
  0x27   : > { %621 = vmatpush3.msra.mxu1 %v353_v35  ;;  %v212_v41 = vadd.f32 %v211_v36, %v210_v37 }
  0x28   : > { %622 = vmatprep.subr.mxu1 %v653_v1  ;;  %v262_v62 = vrot.slane %v261_v59, 1 }
  0x29   : > { %623 = vmatpush3.msra.mxu1 %v352_v39  ;;  %v214_v46 = vadd.f32 %v213_v40, %v212_v41 }
  0x2a   : > { %624 = vmatprep.subr.mxu1 %v653_v1  ;;  %v263_v2 = vmax.f32 %v261_v59, %v262_v62 }
  0x2b   : > { %v216_v49 = vadd.f32 %v215_v45, %v214_v46  ;;  %625 = vmatpush3.msra.mxu1 %v351_v6 }
  0x2c   : > { %626 = vmatprep.subr.mxu1 %v653_v1  ;;  %v446_v1 = vlaneseq }
  0x2d   : > { %v219_v52 = vadd.f32 %v218_v48, %v216_v49  ;;  %627 = vmatpush3.msra.mxu1 %v350_v7 }
  0x2e   : > { %v447_v27 = vshrl.u32 %v446_v1, 7 }
  0x2f   : > { %v220_v54 = vrot.slane %v219_v52, 4 }
  0x30   : > { %v448_v28 = vsub.s32 0, %v447_v27 }
  0x31   : > { %v221_v55 = vadd.f32 %v220_v54, %v219_v52 }
  0x33   : > { %v222_v60 = vrot.slane %v221_v55, 2 }
  0x35   : > { %v223_v61 = vadd.f32 %v222_v60, %v221_v55 }
  0x37   : > { %v224_v63 = vrot.slane %v223_v61, 1 }
  0x39   : > { %v225_v0 = vadd.f32 %v224_v63, %v223_v61 }
  0x3b   : > { %v226_v3 = vmul.f32 0.008264462, %v225_v0 }
  0x3d   : > { %v265_v4 = vsel %vm264_vm3, %v226_v3, %v263_v2 }
  0x3e   : > { %v267_v5 = vsel %vm266_vm4, %v265_v4, 0.0 }
  0x3f   : > { %594 = vmatmul.mubr.msk.f32.vlgmr.msra.gmra.mxu0 %vm187_vm1, %v267_v5 }
  0xff   : > { %v345_v8 = vpop.f32.mrf.mxu0 }
 0x100   : > { %v349_v12 = vmax.f32 %v345_v8, 0.0 }
 0x101   : > { %v595_v14 = vpop.f32.mrf.mxu0 }
 0x102   : > { %629 = vmatmul.mubr.f32.vlgmr.msra.gmra.mxu1 %v349_v12 }
 0x1c2   : > { %v432_v15 = vpop.f32.mrf.mxu1 }
 0x1c3   : > { %v437_v16 = vrot.slane %v432_v15, 1 }
 0x1c4   : > { %v630_v17 = vpop.f32.mrf.mxu1 }
 0x1c5   : > { %v439_v21 = vadd.f32 %v437_v16, %v432_v15 }
 0x1c7   : > { %v440_v22 = vsub.f32 0.0, %v439_v21 }
 0x1c9   : > { %v441_v24 = vmul.f32 1.442695, %v440_v22 }
 0x1cb   : > { %641 = vpow2.f32 %v441_v24 }
 0x1d8   : > { %v642_v25 = vpop.eup %641 }
 0x1d9   : > { %v443_v26 = vadd.f32 1.0, %v642_v25 }
 0x1db   : > { %643 = vrcp.f32 %v443_v26 }
 0x1e8   : > { %v644_v29 = vpop.eup %643 }
 0x1e9   : > { %v449_v30 = vrot.slane %v644_v29, %v448_v28 }
 0x1eb   : > { %v450_v31 = vmul.f32 %v449_v30, %v725_v9  ;;  %v451_v32 = vmul.f32 %v449_v30, %v728_v10  ;;  %v452_v33 = vmul.f32 %v449_v30, %v731_v11  ;;  %v453_v34 = vmul.f32 %v449_v30, %v739_v13 }
 0x1ec   : > { %v454_v35 = vmul.f32 %v449_v30, %v751_v18  ;;  %v455_v36 = vmul.f32 %v449_v30, %v754_v19  ;;  %v456_v37 = vmul.f32 %v449_v30, %v757_v20  ;;  %v457_v38 = vmul.f32 %v449_v30, %v765_v23 }
 0x1ed   : > { %v458_v9 = vmul.f32 %v449_v30, %v808_v42  ;;  %v459_v10 = vmul.f32 %v449_v30, %v811_v43  ;;  %v460_v11 = vmul.f32 %v449_v30, %v814_v44  ;;  %v461_v13 = vmul.f32 %v449_v30, %v821_v50  ;;  %466 = vst.msk [vmem:[%s911_s19] sm:$0xff] %vm187_vm1, %v450_v31 }
 0x1ee   : > { %467 = vst.msk [vmem:[%s911_s19 + $0x8] sm:$0xff] %vm187_vm1, %v451_v32  ;;  %468 = vst.msk [vmem:[%s911_s19 + $0x10] sm:$0xff] %vm187_vm1, %v452_v33  ;;  %v462_v18 = vmul.f32 %v449_v30, %v824_v51  ;;  %v463_v19 = vmul.f32 %v449_v30, %v836_v56  ;;  %v464_v20 = vmul.f32 %v449_v30, %v839_v57 }
 0x1ef   : > { %469 = vst.msk [vmem:[%s911_s19 + $0x18] sm:$0xff] %vm187_vm1, %v453_v34  ;;  %v465_v23 = vmul.f32 %v449_v30, %v842_v58  ;;  %470 = vst.msk [vmem:[%s911_s19 + $0x20] sm:$0xff] %vm187_vm1, %v454_v35 }
 0x1f0   : > { %471 = vst.msk [vmem:[%s911_s19 + $0x28] sm:$0xff] %vm187_vm1, %v455_v36  ;;  %472 = vst.msk [vmem:[%s911_s19 + $0x30] sm:$0xff] %vm187_vm1, %v456_v37 }
 0x1f1   : > { %473 = vst.msk [vmem:[%s911_s19 + $0x38] sm:$0xff] %vm187_vm1, %v457_v38  ;;  %474 = vst.msk [vmem:[%s911_s19 + $0x40] sm:$0xff] %vm187_vm1, %v458_v9 }
 0x1f2   : > { %475 = vst.msk [vmem:[%s911_s19 + $0x48] sm:$0xff] %vm187_vm1, %v459_v10  ;;  %476 = vst.msk [vmem:[%s911_s19 + $0x50] sm:$0xff] %vm187_vm1, %v460_v11 }
 0x1f3   : > { %477 = vst.msk [vmem:[%s911_s19 + $0x58] sm:$0xff] %vm187_vm1, %v461_v13  ;;  %478 = vst.msk [vmem:[%s911_s19 + $0x60] sm:$0xff] %vm187_vm1, %v462_v18 }
 0x1f4   : > { %479 = vst.msk [vmem:[%s911_s19 + $0x68] sm:$0xff] %vm187_vm1, %v463_v19  ;;  %480 = vst.msk [vmem:[%s911_s19 + $0x70] sm:$0xff] %vm187_vm1, %v464_v20 }
 0x1f5   : > { %481 = vst.msk [vmem:[%s911_s19 + $0x78] sm:$0x1] %vm217_vm2, %v465_v23 }
 0x1f6 PF: > { %s13_s12 = sadd.s32 1, %s651_s12  }
 0x1f7   : > { %p10_p4 = scmp.ge.s32.totalorder %s13_s12, 4  }
 0x1f9   :  { %12 = sbr.rel (!%p10_p4) target bundleno = 1 (0x1), region = 62 }

// kernel: lw_cbam_alexnet_forward.24
= control target key start
LH: loop header
LB: loop body
LE: loop exit
PB: predicated region body
PF: predicated region fallthrough
CT: control target
= control target key end

     0   :  { %s1510_s0 = inlined_call_operand.vmem [shape: f32[9,248,128], index: 0, kind: input, shape index: {}]   ;;  %s1511_s1 = inlined_call_operand.vmem [shape: f32[248,128], index: 1, kind: output, shape index: {}]  }
   0x1   :  { %v8_v0 = vld [vmem:[%s1510_s0] sm:$0xff]  ;;  %v39_v1 = vld [vmem:[%s1510_s0 + $0xf8] sm:$0xff]  ;;  %v70_v2 = vld [vmem:[%s1510_s0 + $0x1f0] sm:$0xff] }
   0x2   :  { %v287_v3 = vmax.f32 %v8_v0, %v39_v1  ;;  %v101_v4 = vld [vmem:[%s1510_s0 + $0x2e8] sm:$0xff]  ;;  %v40_v7 = vld [vmem:[%s1510_s0 + $0x100] sm:$0xff]  ;;  %v71_v8 = vld [vmem:[%s1510_s0 + $0x1f8] sm:$0xff] }
   0x3   :  { %v9_v6 = vld [vmem:[%s1510_s0 + $0x8] sm:$0xff]  ;;  %v132_v9 = vld [vmem:[%s1510_s0 + $0x3e0] sm:$0xff]  ;;  %v163_v11 = vld [vmem:[%s1510_s0 + $0x4d8] sm:$0xff] }
   0x4   :  { %v288_v5 = vmax.f32 %v287_v3, %v70_v2  ;;  %v295_v10 = vmax.f32 %v9_v6, %v40_v7  ;;  %v102_v13 = vld [vmem:[%s1510_s0 + $0x2f0] sm:$0xff]  ;;  %v41_v16 = vld [vmem:[%s1510_s0 + $0x108] sm:$0xff]  ;;  %v72_v17 = vld [vmem:[%s1510_s0 + $0x200] sm:$0xff] }
   0x5   :  { %v10_v15 = vld [vmem:[%s1510_s0 + $0x10] sm:$0xff]  ;;  %v133_v19 = vld [vmem:[%s1510_s0 + $0x3e8] sm:$0xff]  ;;  %v164_v22 = vld [vmem:[%s1510_s0 + $0x4e0] sm:$0xff] }
   0x6   :  { %v289_v12 = vmax.f32 %v288_v5, %v101_v4  ;;  %v296_v14 = vmax.f32 %v295_v10, %v71_v8  ;;  %v303_v20 = vmax.f32 %v10_v15, %v41_v16  ;;  %v194_v21 = vld [vmem:[%s1510_s0 + $0x5d0] sm:$0xff]  ;;  %v103_v24 = vld [vmem:[%s1510_s0 + $0x2f8] sm:$0xff]  ;;  %v73_v29 = vld [vmem:[%s1510_s0 + $0x208] sm:$0xff] }
   0x7   :  { %v11_v27 = vld [vmem:[%s1510_s0 + $0x18] sm:$0xff]  ;;  %v42_v28 = vld [vmem:[%s1510_s0 + $0x110] sm:$0xff]  ;;  %v225_v30 = vld [vmem:[%s1510_s0 + $0x6c8] sm:$0xff] }
   0x8   :  { %v290_v18 = vmax.f32 %v289_v12, %v132_v9  ;;  %v297_v23 = vmax.f32 %v296_v14, %v102_v13  ;;  %v304_v26 = vmax.f32 %v303_v20, %v72_v17  ;;  %v256_v31 = vld [vmem:[%s1510_s0 + $0x7c0] sm:$0xff]  ;;  %v134_v33 = vld [vmem:[%s1510_s0 + $0x3f0] sm:$0xff]  ;;  %v311_v34 = vmax.f32 %v11_v27, %v42_v28  ;;  %v195_v36 = vld [vmem:[%s1510_s0 + $0x5d8] sm:$0xff] }
   0x9   :  { %v165_v37 = vld [vmem:[%s1510_s0 + $0x4e8] sm:$0xff]  ;;  %v104_v39 = vld [vmem:[%s1510_s0 + $0x300] sm:$0xff]  ;;  %v43_v43 = vld [vmem:[%s1510_s0 + $0x118] sm:$0xff] }
   0xa   :  { %v291_v25 = vmax.f32 %v290_v18, %v163_v11  ;;  %v298_v32 = vmax.f32 %v297_v23, %v133_v19  ;;  %v305_v38 = vmax.f32 %v304_v26, %v103_v24  ;;  %v312_v41 = vmax.f32 %v311_v34, %v73_v29  ;;  %v12_v42 = vld [vmem:[%s1510_s0 + $0x20] sm:$0xff]  ;;  %v74_v44 = vld [vmem:[%s1510_s0 + $0x210] sm:$0xff]  ;;  %v257_v47 = vld [vmem:[%s1510_s0 + $0x7c8] sm:$0xff] }
   0xb   :  { %v226_v46 = vld [vmem:[%s1510_s0 + $0x6d0] sm:$0xff]  ;;  %v135_v49 = vld [vmem:[%s1510_s0 + $0x3f8] sm:$0xff]  ;;  %v319_v50 = vmax.f32 %v12_v42, %v43_v43  ;;  %v196_v52 = vld [vmem:[%s1510_s0 + $0x5e0] sm:$0xff] }
   0xc   :  { %v292_v35 = vmax.f32 %v291_v25, %v194_v21  ;;  %v299_v40 = vmax.f32 %v298_v32, %v164_v22  ;;  %v306_v48 = vmax.f32 %v305_v38, %v134_v33  ;;  %v166_v53 = vld [vmem:[%s1510_s0 + $0x4f0] sm:$0xff]  ;;  %v313_v54 = vmax.f32 %v312_v41, %v104_v39  ;;  %v105_v55 = vld [vmem:[%s1510_s0 + $0x308] sm:$0xff]  ;;  %v44_v60 = vld [vmem:[%s1510_s0 + $0x120] sm:$0xff] }
   0xd   :  { %v320_v58 = vmax.f32 %v319_v50, %v74_v44  ;;  %v13_v59 = vld [vmem:[%s1510_s0 + $0x28] sm:$0xff]  ;;  %v75_v61 = vld [vmem:[%s1510_s0 + $0x218] sm:$0xff]  ;;  %v258_v0 = vld [vmem:[%s1510_s0 + $0x7d0] sm:$0xff] }
   0xe   :  { %v293_v45 = vmax.f32 %v292_v35, %v225_v30  ;;  %v300_v51 = vmax.f32 %v299_v40, %v195_v36  ;;  %v307_v57 = vmax.f32 %v306_v48, %v165_v37  ;;  %v227_v63 = vld [vmem:[%s1510_s0 + $0x6d8] sm:$0xff]  ;;  %v314_v1 = vmax.f32 %v313_v54, %v135_v49  ;;  %v136_v2 = vld [vmem:[%s1510_s0 + $0x400] sm:$0xff]  ;;  %v197_v5 = vld [vmem:[%s1510_s0 + $0x5e8] sm:$0xff] }
   0xf   :  { %v327_v3 = vmax.f32 %v13_v59, %v44_v60  ;;  %v167_v6 = vld [vmem:[%s1510_s0 + $0x4f8] sm:$0xff]  ;;  %v321_v7 = vmax.f32 %v320_v58, %v105_v55  ;;  %v106_v8 = vld [vmem:[%s1510_s0 + $0x310] sm:$0xff]  ;;  %v45_v13 = vld [vmem:[%s1510_s0 + $0x128] sm:$0xff] }
  0x10   :  { %v294_v56 = vmax.f32 %v293_v45, %v256_v31  ;;  %v301_v62 = vmax.f32 %v300_v51, %v226_v46  ;;  %v308_v4 = vmax.f32 %v307_v57, %v196_v52  ;;  %v315_v10 = vmax.f32 %v314_v1, %v166_v53  ;;  %v14_v12 = vld [vmem:[%s1510_s0 + $0x30] sm:$0xff]  ;;  %v76_v14 = vld [vmem:[%s1510_s0 + $0x220] sm:$0xff]  ;;  %v259_v17 = vld [vmem:[%s1510_s0 + $0x7d8] sm:$0xff] }
  0x11   :  { %v328_v11 = vmax.f32 %v327_v3, %v75_v61  ;;  %v228_v16 = vld [vmem:[%s1510_s0 + $0x6e0] sm:$0xff]  ;;  %v322_v18 = vmax.f32 %v321_v7, %v136_v2  ;;  %v137_v19 = vld [vmem:[%s1510_s0 + $0x408] sm:$0xff]  ;;  %v335_v20 = vmax.f32 %v14_v12, %v45_v13  ;;  %v198_v22 = vld [vmem:[%s1510_s0 + $0x5f0] sm:$0xff] }
  0x12   :  { %535 = vst [vmem:[%s1511_s1] sm:$0xff] %v294_v56  ;;  %v302_v9 = vmax.f32 %v301_v62, %v257_v47  ;;  %v309_v15 = vmax.f32 %v308_v4, %v227_v63  ;;  %v316_v21 = vmax.f32 %v315_v10, %v197_v5  ;;  %v168_v23 = vld [vmem:[%s1510_s0 + $0x500] sm:$0xff]  ;;  %v107_v25 = vld [vmem:[%s1510_s0 + $0x318] sm:$0xff]  ;;  %v46_v30 = vld [vmem:[%s1510_s0 + $0x130] sm:$0xff] }
  0x13   :  { %v329_v24 = vmax.f32 %v328_v11, %v106_v8  ;;  %v323_v27 = vmax.f32 %v322_v18, %v167_v6  ;;  %v336_v28 = vmax.f32 %v335_v20, %v76_v14  ;;  %v15_v29 = vld [vmem:[%s1510_s0 + $0x38] sm:$0xff]  ;;  %v77_v31 = vld [vmem:[%s1510_s0 + $0x228] sm:$0xff]  ;;  %v260_v34 = vld [vmem:[%s1510_s0 + $0x7e0] sm:$0xff] }
  0x14   :  { %536 = vst [vmem:[%s1511_s1 + $0x8] sm:$0xff] %v302_v9  ;;  %v310_v26 = vmax.f32 %v309_v15, %v258_v0  ;;  %v317_v32 = vmax.f32 %v316_v21, %v228_v16  ;;  %v229_v33 = vld [vmem:[%s1510_s0 + $0x6e8] sm:$0xff]  ;;  %v138_v36 = vld [vmem:[%s1510_s0 + $0x410] sm:$0xff]  ;;  %v343_v37 = vmax.f32 %v15_v29, %v46_v30  ;;  %v199_v39 = vld [vmem:[%s1510_s0 + $0x5f8] sm:$0xff] }
  0x15   :  { %v330_v35 = vmax.f32 %v329_v24, %v137_v19  ;;  %v324_v38 = vmax.f32 %v323_v27, %v198_v22  ;;  %v169_v40 = vld [vmem:[%s1510_s0 + $0x508] sm:$0xff]  ;;  %v337_v41 = vmax.f32 %v336_v28, %v107_v25  ;;  %v108_v42 = vld [vmem:[%s1510_s0 + $0x320] sm:$0xff]  ;;  %v47_v47 = vld [vmem:[%s1510_s0 + $0x138] sm:$0xff] }
  0x16   :  { %537 = vst [vmem:[%s1511_s1 + $0x10] sm:$0xff] %v310_v26  ;;  %v318_v43 = vmax.f32 %v317_v32, %v259_v17  ;;  %v344_v45 = vmax.f32 %v343_v37, %v77_v31  ;;  %v16_v46 = vld [vmem:[%s1510_s0 + $0x40] sm:$0xff]  ;;  %v78_v48 = vld [vmem:[%s1510_s0 + $0x230] sm:$0xff]  ;;  %v261_v51 = vld [vmem:[%s1510_s0 + $0x7e8] sm:$0xff] }
  0x17   :  { %v331_v44 = vmax.f32 %v330_v35, %v168_v23  ;;  %v325_v49 = vmax.f32 %v324_v38, %v229_v33  ;;  %v230_v50 = vld [vmem:[%s1510_s0 + $0x6f0] sm:$0xff]  ;;  %v338_v52 = vmax.f32 %v337_v41, %v138_v36  ;;  %v139_v53 = vld [vmem:[%s1510_s0 + $0x418] sm:$0xff]  ;;  %v351_v54 = vmax.f32 %v16_v46, %v47_v47  ;;  %v200_v56 = vld [vmem:[%s1510_s0 + $0x600] sm:$0xff] }
  0x18   :  { %538 = vst [vmem:[%s1511_s1 + $0x18] sm:$0xff] %v318_v43  ;;  %v170_v57 = vld [vmem:[%s1510_s0 + $0x510] sm:$0xff]  ;;  %v345_v58 = vmax.f32 %v344_v45, %v108_v42  ;;  %v109_v59 = vld [vmem:[%s1510_s0 + $0x328] sm:$0xff]  ;;  %v48_v0 = vld [vmem:[%s1510_s0 + $0x140] sm:$0xff] }
  0x19   :  { %v332_v55 = vmax.f32 %v331_v44, %v199_v39  ;;  %v326_v60 = vmax.f32 %v325_v49, %v260_v34  ;;  %v339_v61 = vmax.f32 %v338_v52, %v169_v40  ;;  %v352_v62 = vmax.f32 %v351_v54, %v78_v48  ;;  %v17_v63 = vld [vmem:[%s1510_s0 + $0x48] sm:$0xff]  ;;  %v79_v1 = vld [vmem:[%s1510_s0 + $0x238] sm:$0xff]  ;;  %v262_v4 = vld [vmem:[%s1510_s0 + $0x7f0] sm:$0xff] }
  0x1a   :  { %v231_v3 = vld [vmem:[%s1510_s0 + $0x6f8] sm:$0xff]  ;;  %v346_v5 = vmax.f32 %v345_v58, %v139_v53  ;;  %v140_v6 = vld [vmem:[%s1510_s0 + $0x420] sm:$0xff]  ;;  %v359_v7 = vmax.f32 %v17_v63, %v48_v0  ;;  %v201_v9 = vld [vmem:[%s1510_s0 + $0x608] sm:$0xff] }
  0x1b   :  { %v333_v2 = vmax.f32 %v332_v55, %v230_v50  ;;  %539 = vst [vmem:[%s1511_s1 + $0x20] sm:$0xff] %v326_v60  ;;  %v340_v8 = vmax.f32 %v339_v61, %v200_v56  ;;  %v171_v10 = vld [vmem:[%s1510_s0 + $0x518] sm:$0xff]  ;;  %v353_v11 = vmax.f32 %v352_v62, %v109_v59  ;;  %v110_v12 = vld [vmem:[%s1510_s0 + $0x330] sm:$0xff]  ;;  %v49_v17 = vld [vmem:[%s1510_s0 + $0x148] sm:$0xff] }
  0x1c   :  { %v347_v14 = vmax.f32 %v346_v5, %v170_v57  ;;  %v360_v15 = vmax.f32 %v359_v7, %v79_v1  ;;  %v18_v16 = vld [vmem:[%s1510_s0 + $0x50] sm:$0xff]  ;;  %v80_v18 = vld [vmem:[%s1510_s0 + $0x240] sm:$0xff]  ;;  %v263_v21 = vld [vmem:[%s1510_s0 + $0x7f8] sm:$0xff] }
  0x1d   :  { %v334_v13 = vmax.f32 %v333_v2, %v261_v51  ;;  %v341_v19 = vmax.f32 %v340_v8, %v231_v3  ;;  %v232_v20 = vld [vmem:[%s1510_s0 + $0x700] sm:$0xff]  ;;  %v354_v22 = vmax.f32 %v353_v11, %v140_v6  ;;  %v141_v23 = vld [vmem:[%s1510_s0 + $0x428] sm:$0xff]  ;;  %v367_v24 = vmax.f32 %v18_v16, %v49_v17  ;;  %v202_v26 = vld [vmem:[%s1510_s0 + $0x610] sm:$0xff] }
  0x1e   :  { %v348_v25 = vmax.f32 %v347_v14, %v201_v9  ;;  %v172_v27 = vld [vmem:[%s1510_s0 + $0x520] sm:$0xff]  ;;  %v361_v28 = vmax.f32 %v360_v15, %v110_v12  ;;  %v111_v29 = vld [vmem:[%s1510_s0 + $0x338] sm:$0xff]  ;;  %v50_v34 = vld [vmem:[%s1510_s0 + $0x150] sm:$0xff] }
  0x1f   :  { %540 = vst [vmem:[%s1511_s1 + $0x28] sm:$0xff] %v334_v13  ;;  %v342_v30 = vmax.f32 %v341_v19, %v262_v4  ;;  %v355_v31 = vmax.f32 %v354_v22, %v171_v10  ;;  %v368_v32 = vmax.f32 %v367_v24, %v80_v18  ;;  %v19_v33 = vld [vmem:[%s1510_s0 + $0x58] sm:$0xff]  ;;  %v81_v35 = vld [vmem:[%s1510_s0 + $0x248] sm:$0xff]  ;;  %v264_v38 = vld [vmem:[%s1510_s0 + $0x800] sm:$0xff] }
  0x20   :  { %v349_v36 = vmax.f32 %v348_v25, %v232_v20  ;;  %v233_v37 = vld [vmem:[%s1510_s0 + $0x708] sm:$0xff]  ;;  %v362_v39 = vmax.f32 %v361_v28, %v141_v23  ;;  %v142_v40 = vld [vmem:[%s1510_s0 + $0x430] sm:$0xff]  ;;  %v375_v41 = vmax.f32 %v19_v33, %v50_v34  ;;  %v203_v43 = vld [vmem:[%s1510_s0 + $0x618] sm:$0xff] }
  0x21   :  { %541 = vst [vmem:[%s1511_s1 + $0x30] sm:$0xff] %v342_v30  ;;  %v356_v42 = vmax.f32 %v355_v31, %v202_v26  ;;  %v173_v44 = vld [vmem:[%s1510_s0 + $0x528] sm:$0xff]  ;;  %v369_v45 = vmax.f32 %v368_v32, %v111_v29  ;;  %v112_v46 = vld [vmem:[%s1510_s0 + $0x340] sm:$0xff]  ;;  %v51_v51 = vld [vmem:[%s1510_s0 + $0x158] sm:$0xff] }
  0x22   :  { %v350_v47 = vmax.f32 %v349_v36, %v263_v21  ;;  %v363_v48 = vmax.f32 %v362_v39, %v172_v27  ;;  %v376_v49 = vmax.f32 %v375_v41, %v81_v35  ;;  %v20_v50 = vld [vmem:[%s1510_s0 + $0x60] sm:$0xff]  ;;  %v82_v52 = vld [vmem:[%s1510_s0 + $0x250] sm:$0xff]  ;;  %v265_v55 = vld [vmem:[%s1510_s0 + $0x808] sm:$0xff] }
  0x23   :  { %v357_v53 = vmax.f32 %v356_v42, %v233_v37  ;;  %v234_v54 = vld [vmem:[%s1510_s0 + $0x710] sm:$0xff]  ;;  %v370_v56 = vmax.f32 %v369_v45, %v142_v40  ;;  %v143_v57 = vld [vmem:[%s1510_s0 + $0x438] sm:$0xff]  ;;  %v383_v58 = vmax.f32 %v20_v50, %v51_v51  ;;  %v204_v60 = vld [vmem:[%s1510_s0 + $0x620] sm:$0xff] }
  0x24   :  { %542 = vst [vmem:[%s1511_s1 + $0x38] sm:$0xff] %v350_v47  ;;  %v364_v59 = vmax.f32 %v363_v48, %v203_v43  ;;  %v174_v61 = vld [vmem:[%s1510_s0 + $0x530] sm:$0xff]  ;;  %v377_v62 = vmax.f32 %v376_v49, %v112_v46  ;;  %v113_v63 = vld [vmem:[%s1510_s0 + $0x348] sm:$0xff]  ;;  %v52_v4 = vld [vmem:[%s1510_s0 + $0x160] sm:$0xff] }
  0x25   :  { %v358_v0 = vmax.f32 %v357_v53, %v264_v38  ;;  %v371_v1 = vmax.f32 %v370_v56, %v173_v44  ;;  %v384_v2 = vmax.f32 %v383_v58, %v82_v52  ;;  %v21_v3 = vld [vmem:[%s1510_s0 + $0x68] sm:$0xff]  ;;  %v83_v5 = vld [vmem:[%s1510_s0 + $0x258] sm:$0xff]  ;;  %v266_v8 = vld [vmem:[%s1510_s0 + $0x810] sm:$0xff] }
  0x26   :  { %v365_v6 = vmax.f32 %v364_v59, %v234_v54  ;;  %v235_v7 = vld [vmem:[%s1510_s0 + $0x718] sm:$0xff]  ;;  %v378_v9 = vmax.f32 %v377_v62, %v143_v57  ;;  %v144_v10 = vld [vmem:[%s1510_s0 + $0x440] sm:$0xff]  ;;  %v391_v11 = vmax.f32 %v21_v3, %v52_v4  ;;  %v205_v13 = vld [vmem:[%s1510_s0 + $0x628] sm:$0xff] }
  0x27   :  { %543 = vst [vmem:[%s1511_s1 + $0x40] sm:$0xff] %v358_v0  ;;  %v372_v12 = vmax.f32 %v371_v1, %v204_v60  ;;  %v175_v14 = vld [vmem:[%s1510_s0 + $0x538] sm:$0xff]  ;;  %v385_v15 = vmax.f32 %v384_v2, %v113_v63  ;;  %v114_v16 = vld [vmem:[%s1510_s0 + $0x350] sm:$0xff]  ;;  %v53_v21 = vld [vmem:[%s1510_s0 + $0x168] sm:$0xff] }
  0x28   :  { %v366_v17 = vmax.f32 %v365_v6, %v265_v55  ;;  %v379_v18 = vmax.f32 %v378_v9, %v174_v61  ;;  %v392_v19 = vmax.f32 %v391_v11, %v83_v5  ;;  %v22_v20 = vld [vmem:[%s1510_s0 + $0x70] sm:$0xff]  ;;  %v84_v22 = vld [vmem:[%s1510_s0 + $0x260] sm:$0xff]  ;;  %v267_v25 = vld [vmem:[%s1510_s0 + $0x818] sm:$0xff] }
  0x29   :  { %v373_v23 = vmax.f32 %v372_v12, %v235_v7  ;;  %v236_v24 = vld [vmem:[%s1510_s0 + $0x720] sm:$0xff]  ;;  %v386_v26 = vmax.f32 %v385_v15, %v144_v10  ;;  %v145_v27 = vld [vmem:[%s1510_s0 + $0x448] sm:$0xff]  ;;  %v399_v28 = vmax.f32 %v22_v20, %v53_v21  ;;  %v206_v30 = vld [vmem:[%s1510_s0 + $0x630] sm:$0xff] }
  0x2a   :  { %544 = vst [vmem:[%s1511_s1 + $0x48] sm:$0xff] %v366_v17  ;;  %v380_v29 = vmax.f32 %v379_v18, %v205_v13  ;;  %v176_v31 = vld [vmem:[%s1510_s0 + $0x540] sm:$0xff]  ;;  %v393_v32 = vmax.f32 %v392_v19, %v114_v16  ;;  %v115_v33 = vld [vmem:[%s1510_s0 + $0x358] sm:$0xff]  ;;  %v54_v38 = vld [vmem:[%s1510_s0 + $0x170] sm:$0xff] }
  0x2b   :  { %v374_v34 = vmax.f32 %v373_v23, %v266_v8  ;;  %v387_v35 = vmax.f32 %v386_v26, %v175_v14  ;;  %v400_v36 = vmax.f32 %v399_v28, %v84_v22  ;;  %v23_v37 = vld [vmem:[%s1510_s0 + $0x78] sm:$0xff]  ;;  %v85_v39 = vld [vmem:[%s1510_s0 + $0x268] sm:$0xff]  ;;  %v268_v42 = vld [vmem:[%s1510_s0 + $0x820] sm:$0xff] }
  0x2c   :  { %v381_v40 = vmax.f32 %v380_v29, %v236_v24  ;;  %v237_v41 = vld [vmem:[%s1510_s0 + $0x728] sm:$0xff]  ;;  %v394_v43 = vmax.f32 %v393_v32, %v145_v27  ;;  %v146_v44 = vld [vmem:[%s1510_s0 + $0x450] sm:$0xff]  ;;  %v407_v45 = vmax.f32 %v23_v37, %v54_v38  ;;  %v207_v47 = vld [vmem:[%s1510_s0 + $0x638] sm:$0xff] }
  0x2d   :  { %545 = vst [vmem:[%s1511_s1 + $0x50] sm:$0xff] %v374_v34  ;;  %v388_v46 = vmax.f32 %v387_v35, %v206_v30  ;;  %v177_v48 = vld [vmem:[%s1510_s0 + $0x548] sm:$0xff]  ;;  %v401_v49 = vmax.f32 %v400_v36, %v115_v33  ;;  %v116_v50 = vld [vmem:[%s1510_s0 + $0x360] sm:$0xff]  ;;  %v55_v55 = vld [vmem:[%s1510_s0 + $0x178] sm:$0xff] }
  0x2e   :  { %v382_v51 = vmax.f32 %v381_v40, %v267_v25  ;;  %v395_v52 = vmax.f32 %v394_v43, %v176_v31  ;;  %v408_v53 = vmax.f32 %v407_v45, %v85_v39  ;;  %v24_v54 = vld [vmem:[%s1510_s0 + $0x80] sm:$0xff]  ;;  %v86_v56 = vld [vmem:[%s1510_s0 + $0x270] sm:$0xff]  ;;  %v269_v59 = vld [vmem:[%s1510_s0 + $0x828] sm:$0xff] }
  0x2f   :  { %v389_v57 = vmax.f32 %v388_v46, %v237_v41  ;;  %v238_v58 = vld [vmem:[%s1510_s0 + $0x730] sm:$0xff]  ;;  %v402_v60 = vmax.f32 %v401_v49, %v146_v44  ;;  %v147_v61 = vld [vmem:[%s1510_s0 + $0x458] sm:$0xff]  ;;  %v415_v62 = vmax.f32 %v24_v54, %v55_v55  ;;  %v208_v0 = vld [vmem:[%s1510_s0 + $0x640] sm:$0xff] }
  0x30   :  { %546 = vst [vmem:[%s1511_s1 + $0x58] sm:$0xff] %v382_v51  ;;  %v396_v63 = vmax.f32 %v395_v52, %v207_v47  ;;  %v178_v1 = vld [vmem:[%s1510_s0 + $0x550] sm:$0xff]  ;;  %v409_v2 = vmax.f32 %v408_v53, %v116_v50  ;;  %v117_v3 = vld [vmem:[%s1510_s0 + $0x368] sm:$0xff]  ;;  %v56_v8 = vld [vmem:[%s1510_s0 + $0x180] sm:$0xff] }
  0x31   :  { %v390_v4 = vmax.f32 %v389_v57, %v268_v42  ;;  %v403_v5 = vmax.f32 %v402_v60, %v177_v48  ;;  %v416_v6 = vmax.f32 %v415_v62, %v86_v56  ;;  %v25_v7 = vld [vmem:[%s1510_s0 + $0x88] sm:$0xff]  ;;  %v87_v9 = vld [vmem:[%s1510_s0 + $0x278] sm:$0xff]  ;;  %v270_v12 = vld [vmem:[%s1510_s0 + $0x830] sm:$0xff] }
  0x32   :  { %v397_v10 = vmax.f32 %v396_v63, %v238_v58  ;;  %v239_v11 = vld [vmem:[%s1510_s0 + $0x738] sm:$0xff]  ;;  %v410_v13 = vmax.f32 %v409_v2, %v147_v61  ;;  %v148_v14 = vld [vmem:[%s1510_s0 + $0x460] sm:$0xff]  ;;  %v423_v15 = vmax.f32 %v25_v7, %v56_v8  ;;  %v209_v17 = vld [vmem:[%s1510_s0 + $0x648] sm:$0xff] }
  0x33   :  { %547 = vst [vmem:[%s1511_s1 + $0x60] sm:$0xff] %v390_v4  ;;  %v404_v16 = vmax.f32 %v403_v5, %v208_v0  ;;  %v179_v18 = vld [vmem:[%s1510_s0 + $0x558] sm:$0xff]  ;;  %v417_v19 = vmax.f32 %v416_v6, %v117_v3  ;;  %v118_v20 = vld [vmem:[%s1510_s0 + $0x370] sm:$0xff]  ;;  %v57_v25 = vld [vmem:[%s1510_s0 + $0x188] sm:$0xff] }
  0x34   :  { %v398_v21 = vmax.f32 %v397_v10, %v269_v59  ;;  %v411_v22 = vmax.f32 %v410_v13, %v178_v1  ;;  %v424_v23 = vmax.f32 %v423_v15, %v87_v9  ;;  %v26_v24 = vld [vmem:[%s1510_s0 + $0x90] sm:$0xff]  ;;  %v88_v26 = vld [vmem:[%s1510_s0 + $0x280] sm:$0xff]  ;;  %v271_v29 = vld [vmem:[%s1510_s0 + $0x838] sm:$0xff] }
  0x35   :  { %v405_v27 = vmax.f32 %v404_v16, %v239_v11  ;;  %v240_v28 = vld [vmem:[%s1510_s0 + $0x740] sm:$0xff]  ;;  %v418_v30 = vmax.f32 %v417_v19, %v148_v14  ;;  %v149_v31 = vld [vmem:[%s1510_s0 + $0x468] sm:$0xff]  ;;  %v431_v32 = vmax.f32 %v26_v24, %v57_v25  ;;  %v210_v34 = vld [vmem:[%s1510_s0 + $0x650] sm:$0xff] }
  0x36   :  { %548 = vst [vmem:[%s1511_s1 + $0x68] sm:$0xff] %v398_v21  ;;  %v412_v33 = vmax.f32 %v411_v22, %v209_v17  ;;  %v180_v35 = vld [vmem:[%s1510_s0 + $0x560] sm:$0xff]  ;;  %v425_v36 = vmax.f32 %v424_v23, %v118_v20  ;;  %v119_v37 = vld [vmem:[%s1510_s0 + $0x378] sm:$0xff]  ;;  %v58_v42 = vld [vmem:[%s1510_s0 + $0x190] sm:$0xff] }
  0x37   :  { %v406_v38 = vmax.f32 %v405_v27, %v270_v12  ;;  %v419_v39 = vmax.f32 %v418_v30, %v179_v18  ;;  %v432_v40 = vmax.f32 %v431_v32, %v88_v26  ;;  %v27_v41 = vld [vmem:[%s1510_s0 + $0x98] sm:$0xff]  ;;  %v89_v43 = vld [vmem:[%s1510_s0 + $0x288] sm:$0xff]  ;;  %v272_v46 = vld [vmem:[%s1510_s0 + $0x840] sm:$0xff] }
  0x38   :  { %v413_v44 = vmax.f32 %v412_v33, %v240_v28  ;;  %v241_v45 = vld [vmem:[%s1510_s0 + $0x748] sm:$0xff]  ;;  %v426_v47 = vmax.f32 %v425_v36, %v149_v31  ;;  %v150_v48 = vld [vmem:[%s1510_s0 + $0x470] sm:$0xff]  ;;  %v439_v49 = vmax.f32 %v27_v41, %v58_v42  ;;  %v211_v51 = vld [vmem:[%s1510_s0 + $0x658] sm:$0xff] }
  0x39   :  { %549 = vst [vmem:[%s1511_s1 + $0x70] sm:$0xff] %v406_v38  ;;  %v420_v50 = vmax.f32 %v419_v39, %v210_v34  ;;  %v181_v52 = vld [vmem:[%s1510_s0 + $0x568] sm:$0xff]  ;;  %v433_v53 = vmax.f32 %v432_v40, %v119_v37  ;;  %v120_v54 = vld [vmem:[%s1510_s0 + $0x380] sm:$0xff]  ;;  %v59_v59 = vld [vmem:[%s1510_s0 + $0x198] sm:$0xff] }
  0x3a   :  { %v414_v55 = vmax.f32 %v413_v44, %v271_v29  ;;  %v427_v56 = vmax.f32 %v426_v47, %v180_v35  ;;  %v440_v57 = vmax.f32 %v439_v49, %v89_v43  ;;  %v28_v58 = vld [vmem:[%s1510_s0 + $0xa0] sm:$0xff]  ;;  %v90_v60 = vld [vmem:[%s1510_s0 + $0x290] sm:$0xff]  ;;  %v273_v63 = vld [vmem:[%s1510_s0 + $0x848] sm:$0xff] }
  0x3b   :  { %v421_v61 = vmax.f32 %v420_v50, %v241_v45  ;;  %v242_v62 = vld [vmem:[%s1510_s0 + $0x750] sm:$0xff]  ;;  %v434_v0 = vmax.f32 %v433_v53, %v150_v48  ;;  %v151_v1 = vld [vmem:[%s1510_s0 + $0x478] sm:$0xff]  ;;  %v447_v2 = vmax.f32 %v28_v58, %v59_v59  ;;  %v212_v4 = vld [vmem:[%s1510_s0 + $0x660] sm:$0xff] }
  0x3c   :  { %550 = vst [vmem:[%s1511_s1 + $0x78] sm:$0xff] %v414_v55  ;;  %v428_v3 = vmax.f32 %v427_v56, %v211_v51  ;;  %v182_v5 = vld [vmem:[%s1510_s0 + $0x570] sm:$0xff]  ;;  %v441_v6 = vmax.f32 %v440_v57, %v120_v54  ;;  %v121_v7 = vld [vmem:[%s1510_s0 + $0x388] sm:$0xff]  ;;  %v60_v12 = vld [vmem:[%s1510_s0 + $0x1a0] sm:$0xff] }
  0x3d   :  { %v422_v8 = vmax.f32 %v421_v61, %v272_v46  ;;  %v435_v9 = vmax.f32 %v434_v0, %v181_v52  ;;  %v448_v10 = vmax.f32 %v447_v2, %v90_v60  ;;  %v29_v11 = vld [vmem:[%s1510_s0 + $0xa8] sm:$0xff]  ;;  %v91_v13 = vld [vmem:[%s1510_s0 + $0x298] sm:$0xff]  ;;  %v274_v16 = vld [vmem:[%s1510_s0 + $0x850] sm:$0xff] }
  0x3e   :  { %v429_v14 = vmax.f32 %v428_v3, %v242_v62  ;;  %v243_v15 = vld [vmem:[%s1510_s0 + $0x758] sm:$0xff]  ;;  %v442_v17 = vmax.f32 %v441_v6, %v151_v1  ;;  %v152_v18 = vld [vmem:[%s1510_s0 + $0x480] sm:$0xff]  ;;  %v455_v19 = vmax.f32 %v29_v11, %v60_v12  ;;  %v213_v21 = vld [vmem:[%s1510_s0 + $0x668] sm:$0xff] }
  0x3f   :  { %551 = vst [vmem:[%s1511_s1 + $0x80] sm:$0xff] %v422_v8  ;;  %v436_v20 = vmax.f32 %v435_v9, %v212_v4  ;;  %v183_v22 = vld [vmem:[%s1510_s0 + $0x578] sm:$0xff]  ;;  %v449_v23 = vmax.f32 %v448_v10, %v121_v7  ;;  %v122_v24 = vld [vmem:[%s1510_s0 + $0x390] sm:$0xff]  ;;  %v61_v29 = vld [vmem:[%s1510_s0 + $0x1a8] sm:$0xff] }
  0x40   :  { %v430_v25 = vmax.f32 %v429_v14, %v273_v63  ;;  %v443_v26 = vmax.f32 %v442_v17, %v182_v5  ;;  %v456_v27 = vmax.f32 %v455_v19, %v91_v13  ;;  %v30_v28 = vld [vmem:[%s1510_s0 + $0xb0] sm:$0xff]  ;;  %v92_v30 = vld [vmem:[%s1510_s0 + $0x2a0] sm:$0xff]  ;;  %v275_v33 = vld [vmem:[%s1510_s0 + $0x858] sm:$0xff] }
  0x41   :  { %v437_v31 = vmax.f32 %v436_v20, %v243_v15  ;;  %v244_v32 = vld [vmem:[%s1510_s0 + $0x760] sm:$0xff]  ;;  %v450_v34 = vmax.f32 %v449_v23, %v152_v18  ;;  %v153_v35 = vld [vmem:[%s1510_s0 + $0x488] sm:$0xff]  ;;  %v463_v36 = vmax.f32 %v30_v28, %v61_v29  ;;  %v214_v38 = vld [vmem:[%s1510_s0 + $0x670] sm:$0xff] }
  0x42   :  { %552 = vst [vmem:[%s1511_s1 + $0x88] sm:$0xff] %v430_v25  ;;  %v444_v37 = vmax.f32 %v443_v26, %v213_v21  ;;  %v184_v39 = vld [vmem:[%s1510_s0 + $0x580] sm:$0xff]  ;;  %v457_v40 = vmax.f32 %v456_v27, %v122_v24  ;;  %v123_v41 = vld [vmem:[%s1510_s0 + $0x398] sm:$0xff]  ;;  %v62_v46 = vld [vmem:[%s1510_s0 + $0x1b0] sm:$0xff] }
  0x43   :  { %v438_v42 = vmax.f32 %v437_v31, %v274_v16  ;;  %v451_v43 = vmax.f32 %v450_v34, %v183_v22  ;;  %v464_v44 = vmax.f32 %v463_v36, %v92_v30  ;;  %v31_v45 = vld [vmem:[%s1510_s0 + $0xb8] sm:$0xff]  ;;  %v93_v47 = vld [vmem:[%s1510_s0 + $0x2a8] sm:$0xff]  ;;  %v276_v50 = vld [vmem:[%s1510_s0 + $0x860] sm:$0xff] }
  0x44   :  { %v445_v48 = vmax.f32 %v444_v37, %v244_v32  ;;  %v245_v49 = vld [vmem:[%s1510_s0 + $0x768] sm:$0xff]  ;;  %v458_v51 = vmax.f32 %v457_v40, %v153_v35  ;;  %v154_v52 = vld [vmem:[%s1510_s0 + $0x490] sm:$0xff]  ;;  %v471_v53 = vmax.f32 %v31_v45, %v62_v46  ;;  %v215_v55 = vld [vmem:[%s1510_s0 + $0x678] sm:$0xff] }
  0x45   :  { %553 = vst [vmem:[%s1511_s1 + $0x90] sm:$0xff] %v438_v42  ;;  %v452_v54 = vmax.f32 %v451_v43, %v214_v38  ;;  %v185_v56 = vld [vmem:[%s1510_s0 + $0x588] sm:$0xff]  ;;  %v465_v57 = vmax.f32 %v464_v44, %v123_v41  ;;  %v124_v58 = vld [vmem:[%s1510_s0 + $0x3a0] sm:$0xff]  ;;  %v63_v63 = vld [vmem:[%s1510_s0 + $0x1b8] sm:$0xff] }
  0x46   :  { %v446_v59 = vmax.f32 %v445_v48, %v275_v33  ;;  %v459_v60 = vmax.f32 %v458_v51, %v184_v39  ;;  %v472_v61 = vmax.f32 %v471_v53, %v93_v47  ;;  %v32_v62 = vld [vmem:[%s1510_s0 + $0xc0] sm:$0xff]  ;;  %v94_v0 = vld [vmem:[%s1510_s0 + $0x2b0] sm:$0xff]  ;;  %v277_v3 = vld [vmem:[%s1510_s0 + $0x868] sm:$0xff] }
  0x47   :  { %v453_v1 = vmax.f32 %v452_v54, %v245_v49  ;;  %v246_v2 = vld [vmem:[%s1510_s0 + $0x770] sm:$0xff]  ;;  %v466_v4 = vmax.f32 %v465_v57, %v154_v52  ;;  %v155_v5 = vld [vmem:[%s1510_s0 + $0x498] sm:$0xff]  ;;  %v479_v6 = vmax.f32 %v32_v62, %v63_v63  ;;  %v216_v8 = vld [vmem:[%s1510_s0 + $0x680] sm:$0xff] }
  0x48   :  { %554 = vst [vmem:[%s1511_s1 + $0x98] sm:$0xff] %v446_v59  ;;  %v460_v7 = vmax.f32 %v459_v60, %v215_v55  ;;  %v186_v9 = vld [vmem:[%s1510_s0 + $0x590] sm:$0xff]  ;;  %v473_v10 = vmax.f32 %v472_v61, %v124_v58  ;;  %v125_v11 = vld [vmem:[%s1510_s0 + $0x3a8] sm:$0xff]  ;;  %v64_v16 = vld [vmem:[%s1510_s0 + $0x1c0] sm:$0xff] }
  0x49   :  { %v454_v12 = vmax.f32 %v453_v1, %v276_v50  ;;  %v467_v13 = vmax.f32 %v466_v4, %v185_v56  ;;  %v480_v14 = vmax.f32 %v479_v6, %v94_v0  ;;  %v33_v15 = vld [vmem:[%s1510_s0 + $0xc8] sm:$0xff]  ;;  %v95_v17 = vld [vmem:[%s1510_s0 + $0x2b8] sm:$0xff]  ;;  %v278_v20 = vld [vmem:[%s1510_s0 + $0x870] sm:$0xff] }
  0x4a   :  { %v461_v18 = vmax.f32 %v460_v7, %v246_v2  ;;  %v247_v19 = vld [vmem:[%s1510_s0 + $0x778] sm:$0xff]  ;;  %v474_v21 = vmax.f32 %v473_v10, %v155_v5  ;;  %v156_v22 = vld [vmem:[%s1510_s0 + $0x4a0] sm:$0xff]  ;;  %v487_v23 = vmax.f32 %v33_v15, %v64_v16  ;;  %v217_v25 = vld [vmem:[%s1510_s0 + $0x688] sm:$0xff] }
  0x4b   :  { %555 = vst [vmem:[%s1511_s1 + $0xa0] sm:$0xff] %v454_v12  ;;  %v468_v24 = vmax.f32 %v467_v13, %v216_v8  ;;  %v187_v26 = vld [vmem:[%s1510_s0 + $0x598] sm:$0xff]  ;;  %v481_v27 = vmax.f32 %v480_v14, %v125_v11  ;;  %v126_v28 = vld [vmem:[%s1510_s0 + $0x3b0] sm:$0xff]  ;;  %v65_v33 = vld [vmem:[%s1510_s0 + $0x1c8] sm:$0xff] }
  0x4c   :  { %v462_v29 = vmax.f32 %v461_v18, %v277_v3  ;;  %v475_v30 = vmax.f32 %v474_v21, %v186_v9  ;;  %v488_v31 = vmax.f32 %v487_v23, %v95_v17  ;;  %v34_v32 = vld [vmem:[%s1510_s0 + $0xd0] sm:$0xff]  ;;  %v96_v34 = vld [vmem:[%s1510_s0 + $0x2c0] sm:$0xff]  ;;  %v279_v37 = vld [vmem:[%s1510_s0 + $0x878] sm:$0xff] }
  0x4d   :  { %v469_v35 = vmax.f32 %v468_v24, %v247_v19  ;;  %v248_v36 = vld [vmem:[%s1510_s0 + $0x780] sm:$0xff]  ;;  %v482_v38 = vmax.f32 %v481_v27, %v156_v22  ;;  %v157_v39 = vld [vmem:[%s1510_s0 + $0x4a8] sm:$0xff]  ;;  %v495_v40 = vmax.f32 %v34_v32, %v65_v33  ;;  %v218_v42 = vld [vmem:[%s1510_s0 + $0x690] sm:$0xff] }
  0x4e   :  { %556 = vst [vmem:[%s1511_s1 + $0xa8] sm:$0xff] %v462_v29  ;;  %v476_v41 = vmax.f32 %v475_v30, %v217_v25  ;;  %v188_v43 = vld [vmem:[%s1510_s0 + $0x5a0] sm:$0xff]  ;;  %v489_v44 = vmax.f32 %v488_v31, %v126_v28  ;;  %v127_v45 = vld [vmem:[%s1510_s0 + $0x3b8] sm:$0xff]  ;;  %v66_v50 = vld [vmem:[%s1510_s0 + $0x1d0] sm:$0xff] }
  0x4f   :  { %v470_v46 = vmax.f32 %v469_v35, %v278_v20  ;;  %v483_v47 = vmax.f32 %v482_v38, %v187_v26  ;;  %v496_v48 = vmax.f32 %v495_v40, %v96_v34  ;;  %v35_v49 = vld [vmem:[%s1510_s0 + $0xd8] sm:$0xff]  ;;  %v97_v51 = vld [vmem:[%s1510_s0 + $0x2c8] sm:$0xff]  ;;  %v280_v54 = vld [vmem:[%s1510_s0 + $0x880] sm:$0xff] }
  0x50   :  { %v477_v52 = vmax.f32 %v476_v41, %v248_v36  ;;  %v249_v53 = vld [vmem:[%s1510_s0 + $0x788] sm:$0xff]  ;;  %v490_v55 = vmax.f32 %v489_v44, %v157_v39  ;;  %v158_v56 = vld [vmem:[%s1510_s0 + $0x4b0] sm:$0xff]  ;;  %v503_v57 = vmax.f32 %v35_v49, %v66_v50  ;;  %v219_v59 = vld [vmem:[%s1510_s0 + $0x698] sm:$0xff] }
  0x51   :  { %557 = vst [vmem:[%s1511_s1 + $0xb0] sm:$0xff] %v470_v46  ;;  %v484_v58 = vmax.f32 %v483_v47, %v218_v42  ;;  %v189_v60 = vld [vmem:[%s1510_s0 + $0x5a8] sm:$0xff]  ;;  %v497_v61 = vmax.f32 %v496_v48, %v127_v45  ;;  %v128_v62 = vld [vmem:[%s1510_s0 + $0x3c0] sm:$0xff]  ;;  %v67_v3 = vld [vmem:[%s1510_s0 + $0x1d8] sm:$0xff] }
  0x52   :  { %v478_v63 = vmax.f32 %v477_v52, %v279_v37  ;;  %v491_v0 = vmax.f32 %v490_v55, %v188_v43  ;;  %v504_v1 = vmax.f32 %v503_v57, %v97_v51  ;;  %v36_v2 = vld [vmem:[%s1510_s0 + $0xe0] sm:$0xff]  ;;  %v98_v4 = vld [vmem:[%s1510_s0 + $0x2d0] sm:$0xff]  ;;  %v281_v7 = vld [vmem:[%s1510_s0 + $0x888] sm:$0xff] }
  0x53   :  { %v485_v5 = vmax.f32 %v484_v58, %v249_v53  ;;  %v250_v6 = vld [vmem:[%s1510_s0 + $0x790] sm:$0xff]  ;;  %v498_v8 = vmax.f32 %v497_v61, %v158_v56  ;;  %v159_v9 = vld [vmem:[%s1510_s0 + $0x4b8] sm:$0xff]  ;;  %v511_v10 = vmax.f32 %v36_v2, %v67_v3  ;;  %v220_v12 = vld [vmem:[%s1510_s0 + $0x6a0] sm:$0xff] }
  0x54   :  { %558 = vst [vmem:[%s1511_s1 + $0xb8] sm:$0xff] %v478_v63  ;;  %v492_v11 = vmax.f32 %v491_v0, %v219_v59  ;;  %v190_v13 = vld [vmem:[%s1510_s0 + $0x5b0] sm:$0xff]  ;;  %v505_v14 = vmax.f32 %v504_v1, %v128_v62  ;;  %v129_v15 = vld [vmem:[%s1510_s0 + $0x3c8] sm:$0xff]  ;;  %v68_v20 = vld [vmem:[%s1510_s0 + $0x1e0] sm:$0xff] }
  0x55   :  { %v486_v16 = vmax.f32 %v485_v5, %v280_v54  ;;  %v499_v17 = vmax.f32 %v498_v8, %v189_v60  ;;  %v512_v18 = vmax.f32 %v511_v10, %v98_v4  ;;  %v37_v19 = vld [vmem:[%s1510_s0 + $0xe8] sm:$0xff]  ;;  %v99_v21 = vld [vmem:[%s1510_s0 + $0x2d8] sm:$0xff]  ;;  %v282_v24 = vld [vmem:[%s1510_s0 + $0x890] sm:$0xff] }
  0x56   :  { %v493_v22 = vmax.f32 %v492_v11, %v250_v6  ;;  %v251_v23 = vld [vmem:[%s1510_s0 + $0x798] sm:$0xff]  ;;  %v506_v25 = vmax.f32 %v505_v14, %v159_v9  ;;  %v160_v26 = vld [vmem:[%s1510_s0 + $0x4c0] sm:$0xff]  ;;  %v519_v27 = vmax.f32 %v37_v19, %v68_v20  ;;  %v221_v29 = vld [vmem:[%s1510_s0 + $0x6a8] sm:$0xff] }
  0x57   :  { %559 = vst [vmem:[%s1511_s1 + $0xc0] sm:$0xff] %v486_v16  ;;  %v500_v28 = vmax.f32 %v499_v17, %v220_v12  ;;  %v191_v30 = vld [vmem:[%s1510_s0 + $0x5b8] sm:$0xff]  ;;  %v513_v31 = vmax.f32 %v512_v18, %v129_v15  ;;  %v130_v32 = vld [vmem:[%s1510_s0 + $0x3d0] sm:$0xff]  ;;  %v69_v37 = vld [vmem:[%s1510_s0 + $0x1e8] sm:$0xff] }
  0x58   :  { %v494_v33 = vmax.f32 %v493_v22, %v281_v7  ;;  %v507_v34 = vmax.f32 %v506_v25, %v190_v13  ;;  %v520_v35 = vmax.f32 %v519_v27, %v99_v21  ;;  %v38_v36 = vld [vmem:[%s1510_s0 + $0xf0] sm:$0xff]  ;;  %v100_v38 = vld [vmem:[%s1510_s0 + $0x2e0] sm:$0xff]  ;;  %v161_v42 = vld [vmem:[%s1510_s0 + $0x4c8] sm:$0xff] }
  0x59   :  { %v501_v39 = vmax.f32 %v500_v28, %v251_v23  ;;  %v252_v40 = vld [vmem:[%s1510_s0 + $0x7a0] sm:$0xff]  ;;  %v514_v41 = vmax.f32 %v513_v31, %v160_v26  ;;  %v527_v43 = vmax.f32 %v38_v36, %v69_v37  ;;  %v222_v45 = vld [vmem:[%s1510_s0 + $0x6b0] sm:$0xff]  ;;  %v131_v47 = vld [vmem:[%s1510_s0 + $0x3d8] sm:$0xff] }
  0x5a   :  { %560 = vst [vmem:[%s1511_s1 + $0xc8] sm:$0xff] %v494_v33  ;;  %v508_v44 = vmax.f32 %v507_v34, %v221_v29  ;;  %v521_v46 = vmax.f32 %v520_v35, %v130_v32  ;;  %v283_v49 = vld [vmem:[%s1510_s0 + $0x898] sm:$0xff]  ;;  %v192_v51 = vld [vmem:[%s1510_s0 + $0x5c0] sm:$0xff]  ;;  %v253_v54 = vld [vmem:[%s1510_s0 + $0x7a8] sm:$0xff] }
  0x5b   :  { %v502_v48 = vmax.f32 %v501_v39, %v282_v24  ;;  %v515_v50 = vmax.f32 %v514_v41, %v191_v30  ;;  %v528_v52 = vmax.f32 %v527_v43, %v100_v38  ;;  %v162_v56 = vld [vmem:[%s1510_s0 + $0x4d0] sm:$0xff]  ;;  %v223_v58 = vld [vmem:[%s1510_s0 + $0x6b8] sm:$0xff]  ;;  %v284_v61 = vld [vmem:[%s1510_s0 + $0x8a0] sm:$0xff] }
  0x5c   :  { %v509_v53 = vmax.f32 %v508_v44, %v252_v40  ;;  %v522_v55 = vmax.f32 %v521_v46, %v161_v42  ;;  %v193_v63 = vld [vmem:[%s1510_s0 + $0x5c8] sm:$0xff]  ;;  %v254_v1 = vld [vmem:[%s1510_s0 + $0x7b0] sm:$0xff]  ;;  %v224_v4 = vld [vmem:[%s1510_s0 + $0x6c0] sm:$0xff] }
  0x5d   :  { %561 = vst [vmem:[%s1511_s1 + $0xd0] sm:$0xff] %v502_v48  ;;  %v516_v57 = vmax.f32 %v515_v50, %v222_v45  ;;  %v529_v59 = vmax.f32 %v528_v52, %v131_v47  ;;  %v285_v6 = vld [vmem:[%s1510_s0 + $0x8a8] sm:$0xff]  ;;  %v255_v9 = vld [vmem:[%s1510_s0 + $0x7b8] sm:$0xff]  ;;  %v286_v12 = vld [vmem:[%s1510_s0 + $0x8b0] sm:$0xff] }
  0x5e   :  { %v510_v60 = vmax.f32 %v509_v53, %v283_v49  ;;  %v523_v62 = vmax.f32 %v522_v55, %v192_v51 }
  0x5f   :  { %v517_v0 = vmax.f32 %v516_v57, %v253_v54  ;;  %v530_v2 = vmax.f32 %v529_v59, %v162_v56 }
  0x60   :  { %562 = vst [vmem:[%s1511_s1 + $0xd8] sm:$0xff] %v510_v60  ;;  %v524_v3 = vmax.f32 %v523_v62, %v223_v58 }
  0x61   :  { %v518_v5 = vmax.f32 %v517_v0, %v284_v61  ;;  %v531_v7 = vmax.f32 %v530_v2, %v193_v63 }
  0x62   :  { %v525_v8 = vmax.f32 %v524_v3, %v254_v1 }
  0x63   :  { %563 = vst [vmem:[%s1511_s1 + $0xe0] sm:$0xff] %v518_v5  ;;  %v532_v10 = vmax.f32 %v531_v7, %v224_v4 }
  0x64   :  { %v526_v11 = vmax.f32 %v525_v8, %v285_v6 }
  0x65   :  { %v533_v13 = vmax.f32 %v532_v10, %v255_v9 }
  0x66   :  { %564 = vst [vmem:[%s1511_s1 + $0xe8] sm:$0xff] %v526_v11 }
  0x67   :  { %v534_v14 = vmax.f32 %v533_v13, %v286_v12 }
  0x69   :  { %565 = vst [vmem:[%s1511_s1 + $0xf0] sm:$0xff] %v534_v14 }

// kernel: lw_cbam_alexnet_forward.26
= control target key start
LH: loop header
LB: loop body
LE: loop exit
PB: predicated region body
PF: predicated region fallthrough
CT: control target
= control target key end

     0   :  { %s1060_s12 = smov 0   ;;  %s1062_s13 = smov 0   ;;  %s1170_s0 = inlined_call_operand.vmem [shape: bf16[256,128], index: 0, kind: input, shape index: {}]   ;;  %s1171_s1 = inlined_call_operand.vmem [shape: bf16[128,128], index: 1, kind: input, shape index: {}]   ;;  %s1172_s2 = inlined_call_operand.vmem [shape: f32[1,128], index: 2, kind: input, shape index: {}]   ;;  %s1173_s3 = inlined_call_operand.vmem [shape: f32[256,128], index: 3, kind: output, shape index: {}]  }
   0x1   :  { %s1064_s14 = smov 0  }
   0x2 LB: > { %s32_s15 = sadd.s32 1, %s1034_s13  ;;  %p824_p0 = scmp.ge.s32.totalorder %s1038_s14, 1  ;;  %s1038_s14 = sphi %s1064_s14, %s13_s14   ;;  %s1034_s13 = sphi %s1062_s13, %s1175_s13   ;;  %s1030_s12 = sphi %s1060_s12, %s1174_s12  }
   0x3   : > { %p34_p1 = scmp.ge.s32.totalorder %s32_s15, 2  ;;  %p188_p2 = scmp.lt.s32.totalorder %s1038_s14, 3 }
   0x5   : > { %s1177_s15 = smov (%p34_p1, %s32_s15), 0  ;;  %p189_p3 = pnand %p824_p0, %p188_p2 }
   0x6   : > { %s825_s18 = sshll.u32 (!%p189_p3), %s1030_s12, 4 }
   0x7   : > { %192 = sbr.rel (%p189_p3) target bundleno = 295 (0x127), region = 32  ;;  %p230_p4 = scmp.lt.s32.totalorder (!%p189_p3), %s825_s18, 31 }
   0xc   : > { %v936_v0 = vld [vmem:[%s1171_s1 + $0x38] sm:$0xff]   ;;  %v937_v1 = vld [vmem:[%s1171_s1 + $0x30] sm:$0xff]   ;;  %s1179_s18 = smov (!%p230_p4, %s825_s18), 31  ;;  %v938_v2 = vld [vmem:[%s1171_s1 + $0x28] sm:$0xff]  }
   0xd   : > { %864 = vmatprep.subr.bf16.mxu0 %v936_v0  ;;  %896 = vmatprep.subr.bf16.mxu1 %v936_v0  ;;  %s826_s23 = sshll.u32 %s1179_s18, 2  ;;  %v939_v3 = vld [vmem:[%s1171_s1 + $0x20] sm:$0xff]   ;;  %v940_v6 = vld [vmem:[%s1171_s1 + $0x18] sm:$0xff]   ;;  %v941_v7 = vld [vmem:[%s1171_s1 + $0x10] sm:$0xff]   ;;  %s828_s12 = sshll.u32 %s1179_s18, 3 }
   0xe   : > { %865 = vmatpush3.bf16.msra.mxu0 %v936_v0  ;;  %904 = vmatpush3.bf16.msra.mxu1 %v936_v0  ;;  %s1093_s26 = scalar_lea.vmem %s1170_s0, %s826_s23  ;;  %v942_v8 = vld [vmem:[%s1171_s1 + $0x8] sm:$0xff]   ;;  %v943_v9 = vld [vmem:[%s1171_s1] sm:$0xff]   ;;  %s1143_s19 = scalar_lea.vmem %s1173_s3, %s828_s12 }
   0xf   : > { %866 = vmatprep.subr.bf16.mxu0 %v937_v1  ;;  %897 = vmatprep.subr.bf16.mxu1 %v937_v1  ;;  %v944_v4 = vld [vmem:[%s1093_s26] sm:$0xff]   ;;  %v946_v10 = vld [vmem:[%s1093_s26 + $0x8] sm:$0xff]   ;;  %v948_v12 = vld [vmem:[%s1093_s26 + $0x10] sm:$0xff]  }
  0x10   : > { %v945_v5 = vld [vmem:[%s1093_s26 + $0x20] sm:$0xff]   ;;  %880 = vmatprep.mubr.bf16.mxu0 %v944_v4  ;;  %v947_v11 = vld [vmem:[%s1093_s26 + $0x28] sm:$0xff]   ;;  %v949_v13 = vld [vmem:[%s1093_s26 + $0x30] sm:$0xff]  }
  0x11   : > { %888 = vmatprep.mubr.bf16.mxu1 %v945_v5  ;;  %v950_v14 = vld [vmem:[%s1093_s26 + $0x18] sm:$0xff]   ;;  %v1121_v16 = vld [vmem:[%s1172_s2] ss:$0 sm:$0xff] }
  0x12   : > { %867 = vmatpush3.bf16.msra.mxu0 %v937_v1  ;;  %905 = vmatpush3.bf16.msra.mxu1 %v937_v1  ;;  %v951_v15 = vld [vmem:[%s1093_s26 + $0x38] sm:$0xff]  }
  0x13   : > { %868 = vmatprep.subr.bf16.mxu0 %v938_v2  ;;  %898 = vmatprep.subr.bf16.mxu1 %v938_v2 }
  0x16   : > { %869 = vmatpush3.bf16.msra.mxu0 %v938_v2  ;;  %906 = vmatpush3.bf16.msra.mxu1 %v938_v2 }
  0x17   : > { %870 = vmatprep.subr.bf16.mxu0 %v939_v3  ;;  %899 = vmatprep.subr.bf16.mxu1 %v939_v3 }
  0x1a   : > { %871 = vmatpush3.bf16.msra.mxu0 %v939_v3  ;;  %907 = vmatpush3.bf16.msra.mxu1 %v939_v3 }
  0x1b   : > { %872 = vmatprep.subr.bf16.mxu0 %v940_v6  ;;  %900 = vmatprep.subr.bf16.mxu1 %v940_v6 }
  0x1e   : > { %873 = vmatpush3.bf16.msra.mxu0 %v940_v6  ;;  %908 = vmatpush3.bf16.msra.mxu1 %v940_v6 }
  0x1f   : > { %874 = vmatprep.subr.bf16.mxu0 %v941_v7  ;;  %901 = vmatprep.subr.bf16.mxu1 %v941_v7 }
  0x22   : > { %875 = vmatpush3.bf16.msra.mxu0 %v941_v7  ;;  %909 = vmatpush3.bf16.msra.mxu1 %v941_v7 }
  0x23   : > { %876 = vmatprep.subr.bf16.mxu0 %v942_v8  ;;  %902 = vmatprep.subr.bf16.mxu1 %v942_v8 }
  0x26   : > { %877 = vmatpush3.bf16.msra.mxu0 %v942_v8  ;;  %910 = vmatpush3.bf16.msra.mxu1 %v942_v8 }
  0x27   : > { %878 = vmatprep.subr.bf16.mxu0 %v943_v9  ;;  %903 = vmatprep.subr.bf16.mxu1 %v943_v9 }
  0x2a   : > { %879 = vmatpush3.bf16.msra.mxu0 %v943_v9  ;;  %911 = vmatpush3.bf16.msra.mxu1 %v943_v9 }
  0x2d   : > { %881 = vmatmul.mubr.bf16.vlgmr.msra.gmra.mxu0 %v946_v10  ;;  %889 = vmatmul.mubr.bf16.vlgmr.msra.gmra.mxu1 %v947_v11 }
  0x2e   : > { %884 = vmatprep.mubr.bf16.mxu0 %v948_v12  ;;  %892 = vmatprep.mubr.bf16.mxu1 %v949_v13 }
  0x35   : > { %885 = vmatmul.mubr.bf16.gmra.mxu0 %v950_v14  ;;  %893 = vmatmul.mubr.bf16.gmra.mxu1 %v951_v15 }
  0xed   : > { %v882_v17 = vpop.f32.mrf.mxu0  ;;  %v890_v18 = vpop.f32.mrf.mxu1 }
  0xee   : > { %v581_v19 = vadd.f32 %v882_v17, %v1121_v16  ;;  %v589_v20 = vadd.f32 %v890_v18, %v1121_v16 }
  0xef   : > { %v458_v21 = vpop.f32.mrf.mxu0  ;;  %v490_v22 = vpop.f32.mrf.mxu1 }
  0xf0   : > { %v597_v23 = vsub.f32 0.0, %v581_v19  ;;  %v605_v24 = vsub.f32 0.0, %v589_v20  ;;  %v579_v25 = vadd.f32 %v1121_v16, %v458_v21  ;;  %v587_v26 = vadd.f32 %v1121_v16, %v490_v22 }
  0xf1   : > { %v883_v27 = vpop.f32.mrf.mxu0  ;;  %v891_v28 = vpop.f32.mrf.mxu1 }
  0xf2   : > { %v615_v29 = vmul.f32 1.442695, %v597_v23  ;;  %v631_v30 = vmul.f32 1.442695, %v605_v24  ;;  %v595_v31 = vsub.f32 0.0, %v579_v25  ;;  %v603_v32 = vsub.f32 0.0, %v587_v26 }
  0xf3   : > { %v582_v33 = vadd.f32 %v883_v27, %v1121_v16  ;;  %v590_v34 = vadd.f32 %v891_v28, %v1121_v16  ;;  %v461_v35 = vpop.f32.mrf.mxu0  ;;  %v493_v36 = vpop.f32.mrf.mxu1 }
  0xf4   : > { %952 = vpow2.f32 %v615_v29  ;;  %v611_v37 = vmul.f32 1.442695, %v595_v31  ;;  %v627_v38 = vmul.f32 1.442695, %v603_v32  ;;  %v580_v39 = vadd.f32 %v1121_v16, %v461_v35 }
  0xf5   : > { %954 = vpow2.f32 %v631_v30  ;;  %v598_v40 = vsub.f32 0.0, %v582_v33  ;;  %v606_v41 = vsub.f32 0.0, %v590_v34  ;;  %v588_v42 = vadd.f32 %v1121_v16, %v493_v36  ;;  %v886_v43 = vpop.f32.mrf.mxu0  ;;  %v894_v44 = vpop.f32.mrf.mxu1 }
  0xf6   : > { %956 = vpow2.f32 %v611_v37  ;;  %v596_v45 = vsub.f32 0.0, %v580_v39  ;;  %v585_v46 = vadd.f32 %v886_v43, %v1121_v16  ;;  %v593_v47 = vadd.f32 %v894_v44, %v1121_v16 }
  0xf7   : > { %958 = vpow2.f32 %v627_v38  ;;  %v617_v48 = vmul.f32 1.442695, %v598_v40  ;;  %v633_v49 = vmul.f32 1.442695, %v606_v41  ;;  %v604_v50 = vsub.f32 0.0, %v588_v42  ;;  %v474_v51 = vpop.f32.mrf.mxu0  ;;  %v506_v52 = vpop.f32.mrf.mxu1 }
  0xf8   : > { %v613_v53 = vmul.f32 1.442695, %v596_v45  ;;  %v601_v54 = vsub.f32 0.0, %v585_v46  ;;  %v609_v55 = vsub.f32 0.0, %v593_v47  ;;  %v583_v56 = vadd.f32 %v1121_v16, %v474_v51 }
  0xf9   : > { %960 = vpow2.f32 %v617_v48  ;;  %v629_v57 = vmul.f32 1.442695, %v604_v50  ;;  %v591_v58 = vadd.f32 %v1121_v16, %v506_v52  ;;  %v887_v59 = vpop.f32.mrf.mxu0  ;;  %v895_v60 = vpop.f32.mrf.mxu1 }
  0xfa   : > { %962 = vpow2.f32 %v633_v49  ;;  %v623_v61 = vmul.f32 1.442695, %v601_v54  ;;  %v639_v62 = vmul.f32 1.442695, %v609_v55  ;;  %v599_v63 = vsub.f32 0.0, %v583_v56 }
  0xfb   : > { %964 = vpow2.f32 %v613_v53  ;;  %v607_v0 = vsub.f32 0.0, %v591_v58  ;;  %v586_v1 = vadd.f32 %v887_v59, %v1121_v16  ;;  %v594_v2 = vadd.f32 %v895_v60, %v1121_v16  ;;  %v477_v3 = vpop.f32.mrf.mxu0  ;;  %v509_v4 = vpop.f32.mrf.mxu1 }
  0xfc   : > { %966 = vpow2.f32 %v629_v57  ;;  %v619_v5 = vmul.f32 1.442695, %v599_v63  ;;  %v584_v6 = vadd.f32 %v1121_v16, %v477_v3  ;;  %v592_v7 = vadd.f32 %v1121_v16, %v509_v4 }
  0xfd   : > { %968 = vpow2.f32 %v623_v61  ;;  %v635_v8 = vmul.f32 1.442695, %v607_v0  ;;  %v602_v9 = vsub.f32 0.0, %v586_v1  ;;  %v610_v10 = vsub.f32 0.0, %v594_v2 }
  0xfe   : > { %970 = vpow2.f32 %v639_v62  ;;  %v600_v11 = vsub.f32 0.0, %v584_v6  ;;  %v608_v15 = vsub.f32 0.0, %v592_v7 }
  0xff   : > { %972 = vpow2.f32 %v619_v5  ;;  %v625_v12 = vmul.f32 1.442695, %v602_v9  ;;  %v641_v13 = vmul.f32 1.442695, %v610_v10 }
 0x100   : > { %974 = vpow2.f32 %v635_v8  ;;  %v621_v14 = vmul.f32 1.442695, %v600_v11  ;;  %v637_v23 = vmul.f32 1.442695, %v608_v15 }
 0x101   : > { %v953_v17 = vpop.eup %952  ;;  %976 = vpow2.f32 %v625_v12 }
 0x102   : > { %v955_v18 = vpop.eup %954  ;;  %v645_v19 = vadd.f32 1.0, %v953_v17  ;;  %978 = vpow2.f32 %v641_v13 }
 0x103   : > { %v957_v20 = vpop.eup %956  ;;  %v653_v21 = vadd.f32 1.0, %v955_v18  ;;  %980 = vpow2.f32 %v621_v14 }
 0x104   : > { %v959_v16 = vpop.eup %958  ;;  %982 = vrcp.f32 %v645_v19  ;;  %v643_v22 = vadd.f32 1.0, %v957_v20 }
 0x105   : > { %984 = vrcp.f32 %v653_v21  ;;  %v651_v24 = vadd.f32 1.0, %v959_v16 }
 0x106   : > { %v961_v25 = vpop.eup %960  ;;  %986 = vrcp.f32 %v643_v22 }
 0x107   : > { %v963_v26 = vpop.eup %962  ;;  %988 = vrcp.f32 %v651_v24  ;;  %v646_v27 = vadd.f32 1.0, %v961_v25 }
 0x108   : > { %v965_v28 = vpop.eup %964  ;;  %v654_v29 = vadd.f32 1.0, %v963_v26  ;;  %990 = vpow2.f32 %v637_v23 }
 0x109   : > { %v967_v30 = vpop.eup %966  ;;  %992 = vrcp.f32 %v646_v27  ;;  %v644_v31 = vadd.f32 1.0, %v965_v28 }
 0x10a   : > { %v969_v32 = vpop.eup %968  ;;  %994 = vrcp.f32 %v654_v29  ;;  %v652_v33 = vadd.f32 1.0, %v967_v30 }
 0x10b   : > { %v971_v34 = vpop.eup %970  ;;  %996 = vrcp.f32 %v644_v31  ;;  %v649_v35 = vadd.f32 1.0, %v969_v32 }
 0x10c   : > { %v973_v36 = vpop.eup %972  ;;  %998 = vrcp.f32 %v652_v33  ;;  %v657_v37 = vadd.f32 1.0, %v971_v34 }
 0x10d   : > { %v975_v38 = vpop.eup %974  ;;  %1000 = vrcp.f32 %v649_v35  ;;  %v647_v39 = vadd.f32 1.0, %v973_v36 }
 0x10e   : > { %v977_v40 = vpop.eup %976  ;;  %1002 = vrcp.f32 %v657_v37  ;;  %v655_v41 = vadd.f32 1.0, %v975_v38 }
 0x10f   : > { %v979_v42 = vpop.eup %978  ;;  %1004 = vrcp.f32 %v647_v39  ;;  %v650_v43 = vadd.f32 1.0, %v977_v40 }
 0x110   : > { %v981_v44 = vpop.eup %980  ;;  %1006 = vrcp.f32 %v655_v41  ;;  %v658_v45 = vadd.f32 1.0, %v979_v42 }
 0x111   : > { %v983_v46 = vpop.eup %982  ;;  %1008 = vrcp.f32 %v650_v43  ;;  %v648_v47 = vadd.f32 1.0, %v981_v44 }
 0x112   : > { %v985_v48 = vpop.eup %984  ;;  %693 = vst [vmem:[%s1143_s19 + $0x10] sm:$0xff] %v983_v46  ;;  %1010 = vrcp.f32 %v658_v45 }
 0x113   : > { %v987_v49 = vpop.eup %986  ;;  %701 = vst [vmem:[%s1143_s19 + $0x50] sm:$0xff] %v985_v48  ;;  %1012 = vrcp.f32 %v648_v47 }
 0x114   : > { %v989_v50 = vpop.eup %988  ;;  %691 = vst [vmem:[%s1143_s19] sm:$0xff] %v987_v49 }
 0x115   : > { %v991_v51 = vpop.eup %990  ;;  %699 = vst [vmem:[%s1143_s19 + $0x40] sm:$0xff] %v989_v50 }
 0x116   : > { %v993_v52 = vpop.eup %992  ;;  %v656_v53 = vadd.f32 1.0, %v991_v51 }
 0x117   : > { %v995_v54 = vpop.eup %994  ;;  %694 = vst [vmem:[%s1143_s19 + $0x18] sm:$0xff] %v993_v52 }
 0x118   : > { %v997_v55 = vpop.eup %996  ;;  %702 = vst [vmem:[%s1143_s19 + $0x58] sm:$0xff] %v995_v54  ;;  %1014 = vrcp.f32 %v656_v53 }
 0x119   : > { %v999_v56 = vpop.eup %998  ;;  %692 = vst [vmem:[%s1143_s19 + $0x8] sm:$0xff] %v997_v55 }
 0x11a   : > { %v1001_v57 = vpop.eup %1000  ;;  %700 = vst [vmem:[%s1143_s19 + $0x48] sm:$0xff] %v999_v56 }
 0x11b   : > { %v1003_v58 = vpop.eup %1002  ;;  %697 = vst [vmem:[%s1143_s19 + $0x30] sm:$0xff] %v1001_v57 }
 0x11c   : > { %v1005_v59 = vpop.eup %1004  ;;  %705 = vst [vmem:[%s1143_s19 + $0x70] sm:$0xff] %v1003_v58 }
 0x11d   : > { %v1007_v60 = vpop.eup %1006  ;;  %695 = vst [vmem:[%s1143_s19 + $0x20] sm:$0xff] %v1005_v59 }
 0x11e   : > { %v1009_v61 = vpop.eup %1008  ;;  %703 = vst [vmem:[%s1143_s19 + $0x60] sm:$0xff] %v1007_v60 }
 0x11f   : > { %v1011_v62 = vpop.eup %1010  ;;  %698 = vst [vmem:[%s1143_s19 + $0x38] sm:$0xff] %v1009_v61 }
 0x120   : > { %v1013_v63 = vpop.eup %1012  ;;  %706 = vst [vmem:[%s1143_s19 + $0x78] sm:$0xff] %v1011_v62 }
 0x121   : > { %696 = vst [vmem:[%s1143_s19 + $0x28] sm:$0xff] %v1013_v63 }
 0x125   : > { %v1015_v0 = vpop.eup %1014 }
 0x126   : > { %704 = vst [vmem:[%s1143_s19 + $0x68] sm:$0xff] %v1015_v0 }
 0x127 PF: > { %s13_s14 = sadd.s32 1, %s1038_s14   ;;  %s1174_s12 = smov %s1034_s13 }
 0x128   : > { %p10_p5 = scmp.ge.s32.totalorder %s13_s14, 4   ;;  %s1175_s13 = smov %s1177_s15 }
 0x12a   :  { %12 = sbr.rel (!%p10_p5) target bundleno = 2 (0x2), region = 76 }

// kernel: lw_cbam_alexnet_forward.28
= control target key start
LH: loop header
LB: loop body
LE: loop exit
PB: predicated region body
PF: predicated region fallthrough
CT: control target
= control target key end

     0   :  { %s633_s15 = smov 0   ;;  %s868_s0 = inlined_call_operand.vmem [shape: f32[2,121,64], index: 0, kind: input, shape index: {}]   ;;  %s869_s1 = inlined_call_operand.vmem [shape: f32[64,64], index: 1, kind: input, shape index: {}]   ;;  %s870_s2 = inlined_call_operand.vmem [shape: f32[1,64], index: 2, kind: input, shape index: {}]   ;;  %s871_s3 = inlined_call_operand.vmem [shape: f32[1,64], index: 3, kind: input, shape index: {}]   ;;  %s872_s4 = inlined_call_operand.vmem [shape: f32[2,121,64], index: 4, kind: output, shape index: {}]  }
   0x1 LB: > { %s542_s16 = sadd.s32 4294967295, %s604_s15   ;;  %p546_p0 = scmp.ge.s32.totalorder %s604_s15, 1  ;;  %s604_s15 = sphi %s633_s15, %s14_s15  }
   0x2   : > { %p162_p1 = scmp.lt.s32.totalorder %s604_s15, 3 }
   0x4   : > { %p163_p2 = pnand %p546_p0, %p162_p1 }
   0x5   : > { %p188_p3 = scmp.lt.s32.totalorder (!%p163_p2), %s542_s16, 1 }
   0x6   : > { %166 = sbr.rel (%p163_p2) target bundleno = 301 (0x12d), region = 36 }
   0xb   : > { %v317_v0 = vld [vmem:[%s869_s1 + $0x38] sm:$0xff]  ;;  %v606_v1 = vmov 0.0   ;;  %v316_v2 = vld [vmem:[%s869_s1 + $0x30] sm:$0xff]  ;;  %vm607_vm0 = vmmov 0   ;;  %s874_s16 = smov (!%p188_p3, %s542_s16), 1  ;;  %v315_v3 = vld [vmem:[%s869_s1 + $0x28] sm:$0xff] }
   0xc   : > { %567 = vmatprep.subr.mxu0 %v606_v1  ;;  %583 = vmatprep.mubr.msk.f32.mxu0 %vm607_vm0, %v606_v1  ;;  %s556_s23 = sshll.u32 %s874_s16, 7  ;;  %vm214_vm1 = vcmask 523264   ;;  %v314_v4 = vld [vmem:[%s869_s1 + $0x20] sm:$0xff]  ;;  %v313_v8 = vld [vmem:[%s869_s1 + $0x18] sm:$0xff]  ;;  %v312_v14 = vld [vmem:[%s869_s1 + $0x10] sm:$0xff]  ;;  %vm244_vm2 = vcmask 516096  }
   0xd   : > { %568 = vmatpush3.msra.mxu0 %v317_v0  ;;  %s661_s28 = scalar_lea.vmem %s868_s0, %s556_s23  ;;  %v311_v18 = vld [vmem:[%s869_s1 + $0x8] sm:$0xff]  ;;  %v310_v25 = vld [vmem:[%s869_s1] sm:$0xff]  ;;  %vm306_vm3 = vcmask 1040384   ;;  %vm308_vm4 = vcmask 1041408   ;;  %s831_s19 = scalar_lea.vmem %s872_s4, %s556_s23 }
   0xe   : > { %569 = vmatprep.subr.mxu0 %v606_v1  ;;  %v664_v5 = vld [vmem:[%s661_s28] sm:$0xff]  ;;  %v667_v6 = vld [vmem:[%s661_s28 + $0x8] sm:$0xff]  ;;  %v670_v7 = vld [vmem:[%s661_s28 + $0x10] sm:$0xff] }
   0xf   : > { %570 = vmatpush3.msra.mxu0 %v316_v2  ;;  %v215_v9 = vsel %vm214_vm1, %v664_v5, 0.0  ;;  %v216_v10 = vsel %vm214_vm1, %v667_v6, 0.0  ;;  %v218_v11 = vsel %vm214_vm1, %v670_v7, 0.0  ;;  %v682_v12 = vld [vmem:[%s661_s28 + $0x18] sm:$0xff]  ;;  %v690_v16 = vld [vmem:[%s661_s28 + $0x20] sm:$0xff]  ;;  %v698_v20 = vld [vmem:[%s661_s28 + $0x28] sm:$0xff]  ;;  %v253_v22 = vmul.f32 %v664_v5, %v664_v5 }
  0x10   : > { %571 = vmatprep.subr.mxu0 %v606_v1  ;;  %v217_v13 = vadd.f32 %v216_v10, %v215_v9  ;;  %v220_v15 = vsel %vm214_vm1, %v682_v12, 0.0  ;;  %v222_v19 = vsel %vm214_vm1, %v690_v16, 0.0  ;;  %v254_v23 = vmul.f32 %v667_v6, %v667_v6  ;;  %v712_v27 = vld [vmem:[%s661_s28 + $0x30] sm:$0xff]  ;;  %v721_v32 = vld [vmem:[%s661_s28 + $0x38] sm:$0xff]  ;;  %v729_v39 = vld [vmem:[%s661_s28 + $0x40] sm:$0xff] }
  0x11   : > { %572 = vmatpush3.msra.mxu0 %v315_v3  ;;  %v255_v24 = vmul.f32 %v670_v7, %v670_v7  ;;  %v224_v26 = vsel %vm214_vm1, %v698_v20, 0.0  ;;  %v256_v29 = vmul.f32 %v682_v12, %v682_v12  ;;  %v226_v30 = vsel %vm214_vm1, %v712_v27, 0.0  ;;  %v737_v45 = vld [vmem:[%s661_s28 + $0x48] sm:$0xff]  ;;  %v745_v51 = vld [vmem:[%s661_s28 + $0x50] sm:$0xff]  ;;  %v753_v57 = vld [vmem:[%s661_s28 + $0x58] sm:$0xff] }
  0x12   : > { %573 = vmatprep.subr.mxu0 %v606_v1  ;;  %v219_v17 = vadd.f32 %v218_v11, %v217_v13  ;;  %v257_v31 = vmul.f32 %v690_v16, %v690_v16  ;;  %v269_v34 = vsel %vm214_vm1, %v253_v22, 0.0  ;;  %v270_v35 = vsel %vm214_vm1, %v254_v23, 0.0  ;;  %v761_v63 = vld [vmem:[%s661_s28 + $0x60] sm:$0xff]  ;;  %v785_v23 = vld [vmem:[%s661_s28 + $0x78] sm:$0x1] }
  0x13   : > { %574 = vmatpush3.msra.mxu0 %v314_v4  ;;  %v272_v36 = vsel %vm214_vm1, %v255_v24, 0.0  ;;  %v228_v37 = vsel %vm214_vm1, %v721_v32, 0.0  ;;  %v271_v38 = vadd.f32 %v270_v35, %v269_v34  ;;  %v258_v41 = vmul.f32 %v698_v20, %v698_v20 }
  0x14   : > { %575 = vmatprep.subr.mxu0 %v606_v1  ;;  %v221_v21 = vadd.f32 %v220_v15, %v219_v17  ;;  %v274_v42 = vsel %vm214_vm1, %v256_v29, 0.0  ;;  %v230_v43 = vsel %vm214_vm1, %v729_v39, 0.0  ;;  %v259_v47 = vmul.f32 %v712_v27, %v712_v27  ;;  %v777_v15 = vld [vmem:[%s661_s28 + $0x70] sm:$0xff] }
  0x15   : > { %576 = vmatpush3.msra.mxu0 %v313_v8  ;;  %v273_v44 = vadd.f32 %v272_v36, %v271_v38  ;;  %v276_v48 = vsel %vm214_vm1, %v257_v31, 0.0  ;;  %v232_v49 = vsel %vm214_vm1, %v737_v45, 0.0  ;;  %v260_v53 = vmul.f32 %v721_v32, %v721_v32  ;;  %v769_v8 = vld [vmem:[%s661_s28 + $0x68] sm:$0xff] }
  0x16   : > { %577 = vmatprep.subr.mxu0 %v606_v1  ;;  %v223_v28 = vadd.f32 %v222_v19, %v221_v21  ;;  %v278_v54 = vsel %vm214_vm1, %v258_v41, 0.0  ;;  %v234_v55 = vsel %vm214_vm1, %v745_v51, 0.0  ;;  %v261_v59 = vmul.f32 %v729_v39, %v729_v39 }
  0x17   : > { %578 = vmatpush3.msra.mxu0 %v312_v14  ;;  %v275_v50 = vadd.f32 %v274_v42, %v273_v44  ;;  %v280_v60 = vsel %vm214_vm1, %v259_v47, 0.0  ;;  %v236_v61 = vsel %vm214_vm1, %v753_v57, 0.0  ;;  %v282_v2 = vsel %vm214_vm1, %v260_v53, 0.0 }
  0x18   : > { %579 = vmatprep.subr.mxu0 %v606_v1  ;;  %v225_v33 = vadd.f32 %v224_v26, %v223_v28  ;;  %v238_v3 = vsel %vm214_vm1, %v761_v63, 0.0  ;;  %v263_v10 = vmul.f32 %v745_v51, %v745_v51  ;;  %v284_v11 = vsel %vm214_vm1, %v261_v59, 0.0 }
  0x19   : > { %580 = vmatpush3.msra.mxu0 %v311_v18  ;;  %v277_v56 = vadd.f32 %v276_v48, %v275_v50  ;;  %v240_v13 = vsel %vm214_vm1, %v769_v8, 0.0  ;;  %v264_v18 = vmul.f32 %v753_v57, %v753_v57  ;;  %v242_v21 = vsel %vm214_vm1, %v777_v15, 0.0 }
  0x1a   : > { %581 = vmatprep.subr.mxu0 %v606_v1  ;;  %v227_v40 = vadd.f32 %v226_v30, %v225_v33  ;;  %v262_v1 = vmul.f32 %v737_v45, %v737_v45  ;;  %v288_v26 = vsel %vm214_vm1, %v263_v10, 0.0  ;;  %v245_v28 = vsel %vm244_vm2, %v785_v23, 0.0 }
  0x1b   : > { %582 = vmatpush3.msra.mxu0 %v310_v25  ;;  %v279_v62 = vadd.f32 %v278_v54, %v277_v56  ;;  %v265_v25 = vmul.f32 %v761_v63, %v761_v63  ;;  %v266_v31 = vmul.f32 %v769_v8, %v769_v8  ;;  %v290_v33 = vsel %vm214_vm1, %v264_v18, 0.0 }
  0x1c   : > { %v229_v46 = vadd.f32 %v228_v37, %v227_v40  ;;  %v286_v19 = vsel %vm214_vm1, %v262_v1, 0.0  ;;  %v267_v36 = vmul.f32 %v777_v15, %v777_v15  ;;  %v268_v41 = vmul.f32 %v785_v23, %v785_v23 }
  0x1d   : > { %v281_v4 = vadd.f32 %v280_v60, %v279_v62  ;;  %v292_v37 = vsel %vm214_vm1, %v265_v25, 0.0  ;;  %v294_v42 = vsel %vm214_vm1, %v266_v31, 0.0 }
  0x1e   : > { %v231_v52 = vadd.f32 %v230_v43, %v229_v46  ;;  %v296_v46 = vsel %vm214_vm1, %v267_v36, 0.0  ;;  %v298_v48 = vsel %vm244_vm2, %v268_v41, 0.0 }
  0x1f   : > { %v283_v14 = vadd.f32 %v282_v2, %v281_v4 }
  0x20   : > { %v233_v58 = vadd.f32 %v232_v49, %v231_v52 }
  0x21   : > { %v285_v22 = vadd.f32 %v284_v11, %v283_v14  ;;  %v400_v14 = vlaneseq }
  0x22   : > { %v235_v0 = vadd.f32 %v234_v55, %v233_v58 }
  0x23   : > { %v287_v29 = vadd.f32 %v286_v19, %v285_v22  ;;  %v401_v18 = vshrl.u32 %v400_v14, 7  ;;  %v552_v22 = vld [vmem:[%s870_s2] ss:$0 sm:$0xff] }
  0x24   : > { %v237_v9 = vadd.f32 %v236_v61, %v235_v0 }
  0x25   : > { %v289_v34 = vadd.f32 %v288_v26, %v287_v29  ;;  %v402_v19 = vsub.s32 0, %v401_v18 }
  0x26   : > { %v239_v17 = vadd.f32 %v238_v3, %v237_v9 }
  0x27   : > { %v291_v38 = vadd.f32 %v290_v33, %v289_v34 }
  0x28   : > { %v241_v24 = vadd.f32 %v240_v13, %v239_v17 }
  0x29   : > { %v293_v43 = vadd.f32 %v292_v37, %v291_v38 }
  0x2a   : > { %v243_v30 = vadd.f32 %v242_v21, %v241_v24  ;;  %v430_v24 = vsub.s32 1, %v401_v18 }
  0x2b   : > { %v295_v47 = vadd.f32 %v294_v42, %v293_v43 }
  0x2c   : > { %v246_v35 = vadd.f32 %v245_v28, %v243_v30 }
  0x2d   : > { %v297_v50 = vadd.f32 %v296_v46, %v295_v47 }
  0x2e   : > { %v247_v40 = vrot.slane %v246_v35, 4 }
  0x2f   : > { %v299_v52 = vadd.f32 %v298_v48, %v297_v50 }
  0x30   : > { %v248_v44 = vadd.f32 %v247_v40, %v246_v35 }
  0x31   : > { %v300_v54 = vrot.slane %v299_v52, 4 }
  0x32   : > { %v249_v49 = vrot.slane %v248_v44, 2 }
  0x33   : > { %v301_v55 = vadd.f32 %v300_v54, %v299_v52 }
  0x34   : > { %v250_v53 = vadd.f32 %v249_v49, %v248_v44 }
  0x35   : > { %v302_v58 = vrot.slane %v301_v55, 2 }
  0x36   : > { %v251_v56 = vrot.slane %v250_v53, 1 }
  0x37   : > { %v303_v59 = vadd.f32 %v302_v58, %v301_v55 }
  0x38   : > { %v252_v60 = vadd.f32 %v251_v56, %v250_v53 }
  0x39   : > { %v304_v61 = vrot.slane %v303_v59, 1 }
  0x3b   : > { %v305_v62 = vadd.f32 %v304_v61, %v303_v59 }
  0x3d   : > { %v307_v0 = vsel %vm306_vm3, %v252_v60, %v305_v62 }
  0x3e   : > { %v309_v1 = vsel %vm308_vm4, %v307_v0, 0.0 }
  0x3f   : > { %584 = vmatmul.mubr.msk.f32.vlgmr.msra.gmra.mxu0 %vm214_vm1, %v309_v1 }
  0xff   : > { %v387_v2 = vpop.f32.mrf.mxu0 }
 0x100   : > { %v391_v3 = vmul.f32 0.0010330578, %v387_v2 }
 0x101   : > { %v585_v4 = vpop.f32.mrf.mxu0 }
 0x102   : > { %v392_v9 = vmul.f32 %v391_v3, %v391_v3  ;;  %v403_v21 = vrot.slane %v391_v3, %v402_v19 }
 0x104   : > { %v394_v10 = vrot.slane %v392_v9, 7  ;;  %v404_v26 = vsub.f32 %v664_v5, %v403_v21  ;;  %v405_v28 = vsub.f32 %v667_v6, %v403_v21  ;;  %v406_v29 = vsub.f32 %v670_v7, %v403_v21 }
 0x105   : > { %v407_v30 = vsub.f32 %v682_v12, %v403_v21  ;;  %v408_v31 = vsub.f32 %v690_v16, %v403_v21  ;;  %v409_v34 = vsub.f32 %v698_v20, %v403_v21  ;;  %v410_v35 = vsub.f32 %v712_v27, %v403_v21 }
 0x106   : > { %v396_v11 = vsub.f32 %v391_v3, %v394_v10  ;;  %v411_v36 = vsub.f32 %v721_v32, %v403_v21  ;;  %v412_v37 = vsub.f32 %v729_v39, %v403_v21  ;;  %v413_v38 = vsub.f32 %v737_v45, %v403_v21 }
 0x107   : > { %v414_v5 = vsub.f32 %v745_v51, %v403_v21  ;;  %v415_v6 = vsub.f32 %v753_v57, %v403_v21  ;;  %v416_v12 = vsub.f32 %v761_v63, %v403_v21  ;;  %v417_v16 = vsub.f32 %v769_v8, %v403_v21  ;;  %v553_v57 = vld [vmem:[%s871_s3] ss:$0 sm:$0xff] }
 0x108   : > { %v397_v13 = vmax.f32 %v396_v11, 0.0  ;;  %v418_v20 = vsub.f32 %v777_v15, %v403_v21  ;;  %v419_v27 = vsub.f32 %v785_v23, %v403_v21 }
 0x10a   : > { %v398_v17 = vadd.f32 1e-05, %v397_v13 }
 0x10c   : > { %596 = vrsqrt.f32 %v398_v17 }
 0x119   : > { %v597_v25 = vpop.eup %596 }
 0x11a   : > { %v427_v33 = vmul.f32 %v597_v25, %v552_v22 }
 0x11c   : > { %v431_v7 = vrot.slane %v427_v33, %v430_v24 }
 0x11e   : > { %v432_v40 = vmul.f32 %v431_v7, %v404_v26  ;;  %v433_v32 = vmul.f32 %v431_v7, %v405_v28  ;;  %v434_v41 = vmul.f32 %v431_v7, %v406_v29  ;;  %v435_v39 = vmul.f32 %v431_v7, %v407_v30 }
 0x11f   : > { %v436_v42 = vmul.f32 %v431_v7, %v408_v31  ;;  %v437_v45 = vmul.f32 %v431_v7, %v409_v34  ;;  %v438_v43 = vmul.f32 %v431_v7, %v410_v35  ;;  %v439_v51 = vmul.f32 %v431_v7, %v411_v36 }
 0x120   : > { %v440_v63 = vmul.f32 %v431_v7, %v412_v37  ;;  %v441_v44 = vmul.f32 %v431_v7, %v413_v38  ;;  %v442_v8 = vmul.f32 %v431_v7, %v414_v5  ;;  %v443_v46 = vmul.f32 %v431_v7, %v415_v6 }
 0x121   : > { %v444_v15 = vmul.f32 %v431_v7, %v416_v12  ;;  %v445_v23 = vmul.f32 %v431_v7, %v417_v16  ;;  %v446_v47 = vmul.f32 %v431_v7, %v418_v20  ;;  %v447_v48 = vmul.f32 %v431_v7, %v419_v27 }
 0x122   : > { %v455_v49 = vadd.f32 %v553_v57, %v432_v40  ;;  %v456_v50 = vadd.f32 %v553_v57, %v433_v32  ;;  %v457_v52 = vadd.f32 %v553_v57, %v434_v41  ;;  %v458_v53 = vadd.f32 %v553_v57, %v435_v39 }
 0x123   : > { %v459_v54 = vadd.f32 %v553_v57, %v436_v42  ;;  %v460_v55 = vadd.f32 %v553_v57, %v437_v45  ;;  %v461_v56 = vadd.f32 %v553_v57, %v438_v43  ;;  %v462_v58 = vadd.f32 %v553_v57, %v439_v51 }
 0x124   : > { %v463_v59 = vadd.f32 %v553_v57, %v440_v63  ;;  %v464_v60 = vadd.f32 %v553_v57, %v441_v44  ;;  %v465_v61 = vadd.f32 %v553_v57, %v442_v8  ;;  %v466_v62 = vadd.f32 %v553_v57, %v443_v46  ;;  %471 = vst.msk [vmem:[%s831_s19] sm:$0xff] %vm214_vm1, %v455_v49 }
 0x125   : > { %472 = vst.msk [vmem:[%s831_s19 + $0x8] sm:$0xff] %vm214_vm1, %v456_v50  ;;  %473 = vst.msk [vmem:[%s831_s19 + $0x10] sm:$0xff] %vm214_vm1, %v457_v52  ;;  %v467_v0 = vadd.f32 %v553_v57, %v444_v15  ;;  %v468_v1 = vadd.f32 %v553_v57, %v445_v23  ;;  %v469_v2 = vadd.f32 %v553_v57, %v446_v47 }
 0x126   : > { %474 = vst.msk [vmem:[%s831_s19 + $0x18] sm:$0xff] %vm214_vm1, %v458_v53  ;;  %v470_v3 = vadd.f32 %v553_v57, %v447_v48  ;;  %475 = vst.msk [vmem:[%s831_s19 + $0x20] sm:$0xff] %vm214_vm1, %v459_v54 }
 0x127   : > { %476 = vst.msk [vmem:[%s831_s19 + $0x28] sm:$0xff] %vm214_vm1, %v460_v55  ;;  %477 = vst.msk [vmem:[%s831_s19 + $0x30] sm:$0xff] %vm214_vm1, %v461_v56 }
 0x128   : > { %478 = vst.msk [vmem:[%s831_s19 + $0x38] sm:$0xff] %vm214_vm1, %v462_v58  ;;  %479 = vst.msk [vmem:[%s831_s19 + $0x40] sm:$0xff] %vm214_vm1, %v463_v59 }
 0x129   : > { %480 = vst.msk [vmem:[%s831_s19 + $0x48] sm:$0xff] %vm214_vm1, %v464_v60  ;;  %481 = vst.msk [vmem:[%s831_s19 + $0x50] sm:$0xff] %vm214_vm1, %v465_v61 }
 0x12a   : > { %482 = vst.msk [vmem:[%s831_s19 + $0x58] sm:$0xff] %vm214_vm1, %v466_v62  ;;  %483 = vst.msk [vmem:[%s831_s19 + $0x60] sm:$0xff] %vm214_vm1, %v467_v0 }
 0x12b   : > { %484 = vst.msk [vmem:[%s831_s19 + $0x68] sm:$0xff] %vm214_vm1, %v468_v1  ;;  %485 = vst.msk [vmem:[%s831_s19 + $0x70] sm:$0xff] %vm214_vm1, %v469_v2 }
 0x12c   : > { %486 = vst.msk [vmem:[%s831_s19 + $0x78] sm:$0x1] %vm244_vm2, %v470_v3 }
 0x12d PF: > { %s14_s15 = sadd.s32 1, %s604_s15  }
 0x12e   : > { %p11_p4 = scmp.ge.s32.totalorder %s14_s15, 4  }
 0x130   :  { %13 = sbr.rel (!%p11_p4) target bundleno = 1 (0x1), region = 66 }

// kernel: lw_cbam_alexnet_forward.27
= control target key start
LH: loop header
LB: loop body
LE: loop exit
PB: predicated region body
PF: predicated region fallthrough
CT: control target
= control target key end

     0   :  { %v297_v0 = vmov 0   ;;  %s592_s1 = inlined_call_operand.vmem [shape: f32[248,1], index: 1, kind: input, shape index: {}]   ;;  %s593_s0 = inlined_call_operand.vmem [shape: f32[248,128], index: 0, kind: input, shape index: {}]   ;;  %s594_s2 = inlined_call_operand.vmem [shape: f32[248,128], index: 2, kind: output, shape index: {}]  }
   0x1   :  { %296 = vset.pattern.permute.xlu1 %v297_v0  ;;  %295 = vset.pattern.permute.xlu0 %v297_v0  ;;  %v44_v1 = vld [vmem:[%s592_s1 + $0x10] sm:$0xff]  ;;  %v42_v2 = vld [vmem:[%s592_s1] sm:$0xff]  ;;  %v45_v3 = vld [vmem:[%s592_s1 + $0x18] sm:$0xff] }
   0x2   :  { %85 = vperm.xlu1 %296, %v44_v1   ;;  %75 = vperm.xlu0 %295, %v42_v2   ;;  %v43_v4 = vld [vmem:[%s592_s1 + $0x8] sm:$0xff]  ;;  %v46_v6 = vld [vmem:[%s592_s1 + $0x20] sm:$0xff]  ;;  %v49_v7 = vld [vmem:[%s592_s1 + $0x38] sm:$0xff] }
   0x3   :  { %v47_v5 = vld [vmem:[%s592_s1 + $0x28] sm:$0xff]  ;;  %v48_v8 = vld [vmem:[%s592_s1 + $0x30] sm:$0xff]  ;;  %v50_v10 = vld [vmem:[%s592_s1 + $0x40] sm:$0xff] }
   0x4   :  { %v51_v9 = vld [vmem:[%s592_s1 + $0x48] sm:$0xff]  ;;  %v53_v11 = vld [vmem:[%s592_s1 + $0x58] sm:$0xff]  ;;  %v52_v12 = vld [vmem:[%s592_s1 + $0x50] sm:$0xff] }
   0x5   :  { %v55_v13 = vld [vmem:[%s592_s1 + $0x68] sm:$0xff]  ;;  %v54_v14 = vld [vmem:[%s592_s1 + $0x60] sm:$0xff]  ;;  %v57_v15 = vld [vmem:[%s592_s1 + $0x78] sm:$0xff] }
   0x6   :  { %90 = vperm.xlu1 %296, %v45_v3   ;;  %80 = vperm.xlu0 %295, %v43_v4   ;;  %v56_v16 = vld [vmem:[%s592_s1 + $0x70] sm:$0xff]  ;;  %v59_v17 = vld [vmem:[%s592_s1 + $0x88] sm:$0xff]  ;;  %v58_v18 = vld [vmem:[%s592_s1 + $0x80] sm:$0xff] }
   0x7   :  { %v61_v19 = vld [vmem:[%s592_s1 + $0x98] sm:$0xff]  ;;  %v60_v20 = vld [vmem:[%s592_s1 + $0x90] sm:$0xff]  ;;  %v63_v21 = vld [vmem:[%s592_s1 + $0xa8] sm:$0xff] }
   0x8   :  { %v62_v22 = vld [vmem:[%s592_s1 + $0xa0] sm:$0xff]  ;;  %v65_v23 = vld [vmem:[%s592_s1 + $0xb8] sm:$0xff]  ;;  %v64_v24 = vld [vmem:[%s592_s1 + $0xb0] sm:$0xff] }
   0x9   :  { %v67_v25 = vld [vmem:[%s592_s1 + $0xc8] sm:$0xff]  ;;  %v66_v26 = vld [vmem:[%s592_s1 + $0xc0] sm:$0xff]  ;;  %v69_v27 = vld [vmem:[%s592_s1 + $0xd8] sm:$0xff] }
   0xa   :  { %100 = vperm.xlu1 %296, %v47_v5   ;;  %95 = vperm.xlu0 %295, %v46_v6   ;;  %v68_v28 = vld [vmem:[%s592_s1 + $0xd0] sm:$0xff]  ;;  %v71_v29 = vld [vmem:[%s592_s1 + $0xe8] sm:$0xff]  ;;  %v70_v30 = vld [vmem:[%s592_s1 + $0xe0] sm:$0xff] }
   0xb   :  { %v72_v31 = vld [vmem:[%s592_s1 + $0xf0] sm:$0xff]  ;;  %v11_v33 = vld [vmem:[%s593_s0] sm:$0xff]  ;;  %v14_v38 = vld [vmem:[%s593_s0 + $0x18] sm:$0xff] }
   0xc   :  { %v13_v32 = vld [vmem:[%s593_s0 + $0x10] sm:$0xff]  ;;  %v12_v39 = vld [vmem:[%s593_s0 + $0x8] sm:$0xff]  ;;  %v15_v45 = vld [vmem:[%s593_s0 + $0x20] sm:$0xff] }
   0xd   :  { %v16_v44 = vld [vmem:[%s593_s0 + $0x28] sm:$0xff]  ;;  %v18_v50 = vld [vmem:[%s593_s0 + $0x38] sm:$0xff]  ;;  %v17_v51 = vld [vmem:[%s593_s0 + $0x30] sm:$0xff] }
   0xe   :  { %110 = vperm.xlu1 %296, %v49_v7   ;;  %105 = vperm.xlu0 %295, %v48_v8   ;;  %v20_v56 = vld [vmem:[%s593_s0 + $0x48] sm:$0xff]  ;;  %v19_v57 = vld [vmem:[%s593_s0 + $0x40] sm:$0xff]  ;;  %v22_v62 = vld [vmem:[%s593_s0 + $0x58] sm:$0xff] }
   0xf   :  { %v21_v63 = vld [vmem:[%s593_s0 + $0x50] sm:$0xff]  ;;  %v24_v4 = vld [vmem:[%s593_s0 + $0x68] sm:$0xff]  ;;  %v23_v5 = vld [vmem:[%s593_s0 + $0x60] sm:$0xff] }
  0x12   :  { %120 = vperm.xlu1 %296, %v51_v9   ;;  %115 = vperm.xlu0 %295, %v50_v10   ;;  %v26_v10 = vld [vmem:[%s593_s0 + $0x78] sm:$0xff] }
  0x16   :  { %130 = vperm.xlu1 %296, %v53_v11   ;;  %125 = vperm.xlu0 %295, %v52_v12   ;;  %v25_v11 = vld [vmem:[%s593_s0 + $0x70] sm:$0xff] }
  0x1a   :  { %140 = vperm.xlu1 %296, %v55_v13   ;;  %135 = vperm.xlu0 %295, %v54_v14  }
  0x1e   :  { %150 = vperm.xlu1 %296, %v57_v15   ;;  %145 = vperm.xlu0 %295, %v56_v16   ;;  %v28_v16 = vld [vmem:[%s593_s0 + $0x88] sm:$0xff] }
  0x22   :  { %160 = vperm.xlu1 %296, %v59_v17   ;;  %155 = vperm.xlu0 %295, %v58_v18   ;;  %v27_v17 = vld [vmem:[%s593_s0 + $0x80] sm:$0xff] }
  0x26   :  { %170 = vperm.xlu1 %296, %v61_v19   ;;  %165 = vperm.xlu0 %295, %v60_v20  }
  0x2a   :  { %180 = vperm.xlu1 %296, %v63_v21   ;;  %175 = vperm.xlu0 %295, %v62_v22   ;;  %v30_v22 = vld [vmem:[%s593_s0 + $0x98] sm:$0xff] }
  0x2e   :  { %190 = vperm.xlu1 %296, %v65_v23   ;;  %185 = vperm.xlu0 %295, %v64_v24   ;;  %v29_v23 = vld [vmem:[%s593_s0 + $0x90] sm:$0xff] }
  0x32   :  { %200 = vperm.xlu1 %296, %v67_v25   ;;  %195 = vperm.xlu0 %295, %v66_v26  }
  0x36   :  { %210 = vperm.xlu1 %296, %v69_v27   ;;  %205 = vperm.xlu0 %295, %v68_v28   ;;  %v32_v28 = vld [vmem:[%s593_s0 + $0xa8] sm:$0xff] }
  0x3a   :  { %220 = vperm.xlu1 %296, %v71_v29   ;;  %215 = vperm.xlu0 %295, %v70_v30   ;;  %v31_v29 = vld [vmem:[%s593_s0 + $0xa0] sm:$0xff] }
  0x3e   :  { %225 = vperm.xlu0 %295, %v72_v31  }
  0x7d   :  { %v86_v34 = vpop.permute.xlu1 %85  ;;  %v76_v35 = vpop.permute.xlu0 %75 }
  0x7e   :  { %v230_v36 = vmul.f32 %v86_v34, %v13_v32  ;;  %v228_v37 = vmul.f32 %v76_v35, %v11_v33  ;;  %v34_v34 = vld [vmem:[%s593_s0 + $0xb8] sm:$0xff]  ;;  %v33_v35 = vld [vmem:[%s593_s0 + $0xb0] sm:$0xff] }
  0x80   :  { %261 = vst [vmem:[%s594_s2 + $0x10] sm:$0xff] %v230_v36  ;;  %259 = vst [vmem:[%s594_s2] sm:$0xff] %v228_v37 }
  0x81   :  { %v91_v40 = vpop.permute.xlu1 %90  ;;  %v81_v41 = vpop.permute.xlu0 %80 }
  0x82   :  { %v231_v42 = vmul.f32 %v91_v40, %v14_v38  ;;  %v229_v43 = vmul.f32 %v81_v41, %v12_v39  ;;  %v36_v40 = vld [vmem:[%s593_s0 + $0xc8] sm:$0xff]  ;;  %v35_v41 = vld [vmem:[%s593_s0 + $0xc0] sm:$0xff] }
  0x84   :  { %262 = vst [vmem:[%s594_s2 + $0x18] sm:$0xff] %v231_v42  ;;  %260 = vst [vmem:[%s594_s2 + $0x8] sm:$0xff] %v229_v43 }
  0x85   :  { %v101_v46 = vpop.permute.xlu1 %100  ;;  %v96_v47 = vpop.permute.xlu0 %95 }
  0x86   :  { %v233_v48 = vmul.f32 %v101_v46, %v16_v44  ;;  %v232_v49 = vmul.f32 %v96_v47, %v15_v45  ;;  %v38_v46 = vld [vmem:[%s593_s0 + $0xd8] sm:$0xff]  ;;  %v37_v47 = vld [vmem:[%s593_s0 + $0xd0] sm:$0xff] }
  0x88   :  { %264 = vst [vmem:[%s594_s2 + $0x28] sm:$0xff] %v233_v48  ;;  %263 = vst [vmem:[%s594_s2 + $0x20] sm:$0xff] %v232_v49 }
  0x89   :  { %v111_v52 = vpop.permute.xlu1 %110  ;;  %v106_v53 = vpop.permute.xlu0 %105 }
  0x8a   :  { %v235_v54 = vmul.f32 %v111_v52, %v18_v50  ;;  %v234_v55 = vmul.f32 %v106_v53, %v17_v51  ;;  %v40_v52 = vld [vmem:[%s593_s0 + $0xe8] sm:$0xff]  ;;  %v39_v53 = vld [vmem:[%s593_s0 + $0xe0] sm:$0xff] }
  0x8c   :  { %266 = vst [vmem:[%s594_s2 + $0x38] sm:$0xff] %v235_v54  ;;  %265 = vst [vmem:[%s594_s2 + $0x30] sm:$0xff] %v234_v55 }
  0x8d   :  { %v121_v58 = vpop.permute.xlu1 %120  ;;  %v116_v59 = vpop.permute.xlu0 %115 }
  0x8e   :  { %v237_v60 = vmul.f32 %v121_v58, %v20_v56  ;;  %v236_v61 = vmul.f32 %v116_v59, %v19_v57  ;;  %v41_v58 = vld [vmem:[%s593_s0 + $0xf0] sm:$0xff] }
  0x90   :  { %268 = vst [vmem:[%s594_s2 + $0x48] sm:$0xff] %v237_v60  ;;  %267 = vst [vmem:[%s594_s2 + $0x40] sm:$0xff] %v236_v61 }
  0x91   :  { %v131_v0 = vpop.permute.xlu1 %130  ;;  %v126_v1 = vpop.permute.xlu0 %125 }
  0x92   :  { %v239_v2 = vmul.f32 %v131_v0, %v22_v62  ;;  %v238_v3 = vmul.f32 %v126_v1, %v21_v63 }
  0x94   :  { %270 = vst [vmem:[%s594_s2 + $0x58] sm:$0xff] %v239_v2  ;;  %269 = vst [vmem:[%s594_s2 + $0x50] sm:$0xff] %v238_v3 }
  0x95   :  { %v141_v6 = vpop.permute.xlu1 %140  ;;  %v136_v7 = vpop.permute.xlu0 %135 }
  0x96   :  { %v241_v8 = vmul.f32 %v141_v6, %v24_v4  ;;  %v240_v9 = vmul.f32 %v136_v7, %v23_v5 }
  0x98   :  { %272 = vst [vmem:[%s594_s2 + $0x68] sm:$0xff] %v241_v8  ;;  %271 = vst [vmem:[%s594_s2 + $0x60] sm:$0xff] %v240_v9 }
  0x99   :  { %v151_v12 = vpop.permute.xlu1 %150  ;;  %v146_v13 = vpop.permute.xlu0 %145 }
  0x9a   :  { %v243_v14 = vmul.f32 %v151_v12, %v26_v10  ;;  %v242_v15 = vmul.f32 %v146_v13, %v25_v11 }
  0x9c   :  { %274 = vst [vmem:[%s594_s2 + $0x78] sm:$0xff] %v243_v14  ;;  %273 = vst [vmem:[%s594_s2 + $0x70] sm:$0xff] %v242_v15 }
  0x9d   :  { %v161_v18 = vpop.permute.xlu1 %160  ;;  %v156_v19 = vpop.permute.xlu0 %155 }
  0x9e   :  { %v245_v20 = vmul.f32 %v161_v18, %v28_v16  ;;  %v244_v21 = vmul.f32 %v156_v19, %v27_v17 }
  0xa0   :  { %276 = vst [vmem:[%s594_s2 + $0x88] sm:$0xff] %v245_v20  ;;  %275 = vst [vmem:[%s594_s2 + $0x80] sm:$0xff] %v244_v21 }
  0xa1   :  { %v171_v24 = vpop.permute.xlu1 %170  ;;  %v166_v25 = vpop.permute.xlu0 %165 }
  0xa2   :  { %v247_v26 = vmul.f32 %v171_v24, %v30_v22  ;;  %v246_v27 = vmul.f32 %v166_v25, %v29_v23 }
  0xa4   :  { %278 = vst [vmem:[%s594_s2 + $0x98] sm:$0xff] %v247_v26  ;;  %277 = vst [vmem:[%s594_s2 + $0x90] sm:$0xff] %v246_v27 }
  0xa5   :  { %v181_v30 = vpop.permute.xlu1 %180  ;;  %v176_v31 = vpop.permute.xlu0 %175 }
  0xa6   :  { %v249_v32 = vmul.f32 %v181_v30, %v32_v28  ;;  %v248_v33 = vmul.f32 %v176_v31, %v31_v29 }
  0xa8   :  { %280 = vst [vmem:[%s594_s2 + $0xa8] sm:$0xff] %v249_v32  ;;  %279 = vst [vmem:[%s594_s2 + $0xa0] sm:$0xff] %v248_v33 }
  0xa9   :  { %v191_v36 = vpop.permute.xlu1 %190  ;;  %v186_v37 = vpop.permute.xlu0 %185 }
  0xaa   :  { %v251_v38 = vmul.f32 %v191_v36, %v34_v34  ;;  %v250_v39 = vmul.f32 %v186_v37, %v33_v35 }
  0xac   :  { %282 = vst [vmem:[%s594_s2 + $0xb8] sm:$0xff] %v251_v38  ;;  %281 = vst [vmem:[%s594_s2 + $0xb0] sm:$0xff] %v250_v39 }
  0xad   :  { %v201_v42 = vpop.permute.xlu1 %200  ;;  %v196_v43 = vpop.permute.xlu0 %195 }
  0xae   :  { %v253_v44 = vmul.f32 %v201_v42, %v36_v40  ;;  %v252_v45 = vmul.f32 %v196_v43, %v35_v41 }
  0xb0   :  { %284 = vst [vmem:[%s594_s2 + $0xc8] sm:$0xff] %v253_v44  ;;  %283 = vst [vmem:[%s594_s2 + $0xc0] sm:$0xff] %v252_v45 }
  0xb1   :  { %v211_v48 = vpop.permute.xlu1 %210  ;;  %v206_v49 = vpop.permute.xlu0 %205 }
  0xb2   :  { %v255_v50 = vmul.f32 %v211_v48, %v38_v46  ;;  %v254_v51 = vmul.f32 %v206_v49, %v37_v47 }
  0xb4   :  { %286 = vst [vmem:[%s594_s2 + $0xd8] sm:$0xff] %v255_v50  ;;  %285 = vst [vmem:[%s594_s2 + $0xd0] sm:$0xff] %v254_v51 }
  0xb5   :  { %v221_v54 = vpop.permute.xlu1 %220  ;;  %v216_v55 = vpop.permute.xlu0 %215 }
  0xb6   :  { %v257_v56 = vmul.f32 %v221_v54, %v40_v52  ;;  %v256_v57 = vmul.f32 %v216_v55, %v39_v53 }
  0xb8   :  { %288 = vst [vmem:[%s594_s2 + $0xe8] sm:$0xff] %v257_v56  ;;  %287 = vst [vmem:[%s594_s2 + $0xe0] sm:$0xff] %v256_v57 }
  0xb9   :  { %v226_v59 = vpop.permute.xlu0 %225 }
  0xba   :  { %v258_v60 = vmul.f32 %v226_v59, %v41_v58 }
  0xbc   :  { %289 = vst [vmem:[%s594_s2 + $0xf0] sm:$0xff] %v258_v60 }

// kernel: lw_cbam_alexnet_forward.29
= control target key start
LH: loop header
LB: loop body
LE: loop exit
PB: predicated region body
PF: predicated region fallthrough
CT: control target
= control target key end

     0   :  { %s1283_s12 = smov 0   ;;  %s1285_s13 = smov 0   ;;  %s1504_s0 = inlined_call_operand.vmem [shape: bf16[256,1664], index: 0, kind: input, shape index: {}]   ;;  %s1505_s1 = inlined_call_operand.vmem [shape: bf16[1664,256], index: 1, kind: input, shape index: {}]   ;;  %s1506_s2 = inlined_call_operand.vmem [shape: f32[1,256], index: 2, kind: input, shape index: {}]   ;;  %s1507_s3 = inlined_call_operand.vmem [shape: f32[256,256], index: 3, kind: output, shape index: {}]  }
   0x1   :  { %s1287_s14 = smov 0   ;;  %s1289_s15 = smov 0  }
   0x2   :  { %s1291_s16 = smov 0   ;;  %s1293_s17 = smov 0  }
   0x3   :  { %s1295_s18 = smov 0  }
   0x4 LB: > { %s25_s19 = sadd.s32 1, %s1251_s16  ;;  %s32_s20 = sadd.s32 1, %s1255_s17  ;;  %s1259_s18 = sphi %s1295_s18, %s13_s18   ;;  %s1255_s17 = sphi %s1293_s17, %s1513_s17   ;;  %s1251_s16 = sphi %s1291_s16, %s1512_s16   ;;  %s1247_s15 = sphi %s1289_s15, %s1511_s15   ;;  %s1243_s14 = sphi %s1287_s14, %s1510_s14   ;;  %s1239_s13 = sphi %s1285_s13, %s1509_s13   ;;  %s1235_s12 = sphi %s1283_s12, %s1508_s12  }
   0x5   : > { %p26_p0 = scmp.ge.s32.totalorder %s25_s19, 13  ;;  %p48_p1 = scmp.ne.s32.totalorder %s1239_s13, %s1235_s12 }
   0x6   : > { %p49_p2 = scmp.eq.s32.totalorder %s1259_s18, 0  ;;  %s41_s24 = sadd.s32 1, %s1239_s13 }
   0x7   : > { %s1515_s19 = smov (%p26_p0, %s25_s19), 0  ;;  %s1517_s20 = smov (!%p26_p0, %s32_s20), %s1255_s17 }
   0x8   : > { %p50_p3 = por %p49_p2, %p48_p1  ;;  %p34_p4 = scmp.ge.s32.totalorder %s1517_s20, 2 }
   0x9   : > { %s37_s21 = ssub.s32 %s1251_s16, %s1515_s19  ;;  %p1055_p6 = scmp.ge.s32.totalorder %s1259_s18, 26 }
   0xa   : > { %s1519_s20 = smov (%p34_p4, %s1517_s20), 0 }
   0xb   : > { %s36_s22 = ssub.s32 %s1255_s17, %s1519_s20  ;;  %164 = sbr.rel (%p1055_p6) target bundleno = 33 (0x21), region = 20 }
   0xc   : > { %s38_s23 = sor.u32 %s37_s21, %s36_s22 }
   0xd   : > { %p39_p5 = scmp.eq.s32.totalorder %s38_s23, 0 }
   0xf   : > { %s1334_s25 = scalar_select %p39_p5, %s1239_s13, %s41_s24  }
  0x10   : > { %167 = sbr.rel (!%p50_p3) target bundleno = 33 (0x21), region = 24  ;;  %s169_s26 = sand.u32 (%p50_p3), 1, %s1239_s13  }
  0x11   : > { %s1114_s27 = smul.u32 (%p50_p3), 208, %s1255_s17  ;;  %s1056_s28 = sshll.u32 (%p50_p3), %s169_s26, 6 }
  0x12   : > { %s171_s7 = scalar_lea.vmem (%p50_p3), [#allocation3], %s1056_s28 }
  0x13   : > { %s174_s29 = sadd.s32 (%p50_p3), %s1251_s16, %s1114_s27 }
  0x14   : > { %s1059_s30 = sshll.u32 (%p50_p3), %s174_s29, 2 }
  0x15   : > { %s1343_s6 = scalar_lea.vmem %s1504_s0, %s1059_s30 }
  0x16   : > { %v193_v0 = vld [vmem:[%s1343_s6] sm:$0xf]  ;;  %v195_v1 = vld [vmem:[%s1343_s6 + $0x34] sm:$0xf]  ;;  %v197_v2 = vld [vmem:[%s1343_s6 + $0x68] sm:$0xf] }
  0x17   : > { %194 = vst [vmem:[%s171_s7] sm:$0xf] %v193_v0  ;;  %196 = vst [vmem:[%s171_s7 + $0x4] sm:$0xf] %v195_v1  ;;  %v199_v3 = vld [vmem:[%s1343_s6 + $0x9c] sm:$0xf] }
  0x18   : > { %198 = vst [vmem:[%s171_s7 + $0x8] sm:$0xf] %v197_v2  ;;  %v201_v4 = vld [vmem:[%s1343_s6 + $0xd0] sm:$0xf]  ;;  %v203_v5 = vld [vmem:[%s1343_s6 + $0x104] sm:$0xf] }
  0x19   : > { %200 = vst [vmem:[%s171_s7 + $0xc] sm:$0xf] %v199_v3  ;;  %202 = vst [vmem:[%s171_s7 + $0x10] sm:$0xf] %v201_v4  ;;  %v205_v6 = vld [vmem:[%s1343_s6 + $0x138] sm:$0xf] }
  0x1a   : > { %204 = vst [vmem:[%s171_s7 + $0x14] sm:$0xf] %v203_v5  ;;  %v207_v7 = vld [vmem:[%s1343_s6 + $0x16c] sm:$0xf]  ;;  %v209_v8 = vld [vmem:[%s1343_s6 + $0x1a0] sm:$0xf] }
  0x1b   : > { %206 = vst [vmem:[%s171_s7 + $0x18] sm:$0xf] %v205_v6  ;;  %208 = vst [vmem:[%s171_s7 + $0x1c] sm:$0xf] %v207_v7  ;;  %v211_v9 = vld [vmem:[%s1343_s6 + $0x1d4] sm:$0xf] }
  0x1c   : > { %210 = vst [vmem:[%s171_s7 + $0x20] sm:$0xf] %v209_v8  ;;  %v213_v10 = vld [vmem:[%s1343_s6 + $0x208] sm:$0xf]  ;;  %v215_v11 = vld [vmem:[%s1343_s6 + $0x23c] sm:$0xf] }
  0x1d   : > { %212 = vst [vmem:[%s171_s7 + $0x24] sm:$0xf] %v211_v9  ;;  %214 = vst [vmem:[%s171_s7 + $0x28] sm:$0xf] %v213_v10  ;;  %v217_v12 = vld [vmem:[%s1343_s6 + $0x270] sm:$0xf] }
  0x1e   : > { %216 = vst [vmem:[%s171_s7 + $0x2c] sm:$0xf] %v215_v11  ;;  %v219_v13 = vld [vmem:[%s1343_s6 + $0x2a4] sm:$0xf]  ;;  %v221_v14 = vld [vmem:[%s1343_s6 + $0x2d8] sm:$0xf] }
  0x1f   : > { %218 = vst [vmem:[%s171_s7 + $0x30] sm:$0xf] %v217_v12  ;;  %220 = vst [vmem:[%s171_s7 + $0x34] sm:$0xf] %v219_v13  ;;  %v223_v15 = vld [vmem:[%s1343_s6 + $0x30c] sm:$0xf] }
  0x20   : > { %222 = vst [vmem:[%s171_s7 + $0x38] sm:$0xf] %v221_v14  ;;  %224 = vst [vmem:[%s171_s7 + $0x3c] sm:$0xf] %v223_v15 }
  0x21 PF: > { %p1060_p7 = scmp.ge.s32.totalorder %s1259_s18, 1  ;;  %p294_p8 = scmp.lt.s32.totalorder %s1259_s18, 27 }
  0x23   : > { %p295_p9 = pnand %p1060_p7, %p294_p8 }
  0x24   : > { %s301_s8 = sand.u32 (!%p295_p9), 1, %s1235_s12   ;;  %s1062_s9 = sshll.u32 (!%p295_p9), %s1243_s14, 4 }
  0x25   : > { %298 = sbr.rel (%p295_p9) target bundleno = 356 (0x164), region = 69  ;;  %s1061_s10 = sshll.u32 (!%p295_p9), %s301_s8, 6 }
  0x26   : > { %p346_p10 = scmp.lt.s32.totalorder (!%p295_p9), %s1062_s9, 207  ;;  %s1065_s11 = sshll.u32 (!%p295_p9), %s1247_s15, 4 }
  0x27   : > { %p363_p11 = scmp.lt.s32.totalorder (!%p295_p9), %s1065_s11, 31  ;;  %s1376_s12 = scalar_lea.vmem (!%p295_p9), [#allocation3], %s1061_s10 }
  0x28   : > { %p1068_p12 = scmp.ne.s32.totalorder (!%p295_p9), %s1243_s14, 0 }
  0x2a   : > { %s1521_s9 = smov (!%p346_p10, %s1062_s9), 207  ;;  %s1523_s11 = smov (!%p363_p11, %s1065_s11), 31 }
  0x2b   : > { %s1096_s21 = sshll.u32 %s1521_s9, 3  ;;  %s1097_s26 = sshll.u32 %s1523_s11, 4 }
  0x2c   : > { %s1369_s24 = scalar_lea.vmem %s1505_s1, %s1096_s21  ;;  %s1374_s29 = scalar_lea.vmem %s1507_s3, %s1097_s26 }
  0x2d   : > { %377 = sbr.rel (%p1068_p12) target bundleno = 67 (0x43), region = 77 }
  0x32   : > { %v1261_v16 = vmov 0.0  }
  0x33   : > { %378 = vst [vmem:[#allocation2 + $0xb0] sm:$0xff] %v1261_v16  ;;  %379 = vst [vmem:[#allocation2] sm:$0xff] %v1261_v16 }
  0x34   : > { %380 = vst [vmem:[#allocation2 + $0xd8] sm:$0xff] %v1261_v16  ;;  %381 = vst [vmem:[#allocation2 + $0x18] sm:$0xff] %v1261_v16 }
  0x35   : > { %382 = vst [vmem:[#allocation2 + $0x50] sm:$0xff] %v1261_v16  ;;  %383 = vst [vmem:[#allocation2 + $0x68] sm:$0xff] %v1261_v16 }
  0x36   : > { %384 = vst [vmem:[#allocation2 + $0x30] sm:$0xff] %v1261_v16  ;;  %385 = vst [vmem:[#allocation2 + $0x48] sm:$0xff] %v1261_v16 }
  0x37   : > { %386 = vst [vmem:[#allocation2 + $0x80] sm:$0xff] %v1261_v16  ;;  %387 = vst [vmem:[#allocation2 + $0x88] sm:$0xff] %v1261_v16 }
  0x38   : > { %388 = vst [vmem:[#allocation2 + $0xe8] sm:$0xff] %v1261_v16  ;;  %389 = vst [vmem:[#allocation2 + $0xb8] sm:$0xff] %v1261_v16 }
  0x39   : > { %390 = vst [vmem:[#allocation2 + $0x60] sm:$0xff] %v1261_v16  ;;  %391 = vst [vmem:[#allocation2 + $0xf0] sm:$0xff] %v1261_v16 }
  0x3a   : > { %392 = vst [vmem:[#allocation2 + $0x8] sm:$0xff] %v1261_v16  ;;  %393 = vst [vmem:[#allocation2 + $0x78] sm:$0xff] %v1261_v16 }
  0x3b   : > { %394 = vst [vmem:[#allocation2 + $0x38] sm:$0xff] %v1261_v16  ;;  %395 = vst [vmem:[#allocation2 + $0x58] sm:$0xff] %v1261_v16 }
  0x3c   : > { %396 = vst [vmem:[#allocation2 + $0x40] sm:$0xff] %v1261_v16  ;;  %397 = vst [vmem:[#allocation2 + $0xc8] sm:$0xff] %v1261_v16 }
  0x3d   : > { %398 = vst [vmem:[#allocation2 + $0xe0] sm:$0xff] %v1261_v16  ;;  %399 = vst [vmem:[#allocation2 + $0x90] sm:$0xff] %v1261_v16 }
  0x3e   : > { %400 = vst [vmem:[#allocation2 + $0x70] sm:$0xff] %v1261_v16  ;;  %401 = vst [vmem:[#allocation2 + $0xc0] sm:$0xff] %v1261_v16 }
  0x3f   : > { %402 = vst [vmem:[#allocation2 + $0xa8] sm:$0xff] %v1261_v16  ;;  %403 = vst [vmem:[#allocation2 + $0xd0] sm:$0xff] %v1261_v16 }
  0x40   : > { %404 = vst [vmem:[#allocation2 + $0x10] sm:$0xff] %v1261_v16  ;;  %405 = vst [vmem:[#allocation2 + $0x28] sm:$0xff] %v1261_v16 }
  0x41   : > { %406 = vst [vmem:[#allocation2 + $0xa0] sm:$0xff] %v1261_v16  ;;  %407 = vst [vmem:[#allocation2 + $0xf8] sm:$0xff] %v1261_v16 }
  0x42   : > { %408 = vst [vmem:[#allocation2 + $0x20] sm:$0xff] %v1261_v16  ;;  %409 = vst [vmem:[#allocation2 + $0x98] sm:$0xff] %v1261_v16 }
  0x43 PF: > { %v1173_v17 = vld [vmem:[%s1369_s24 + $0x74] ss:$8 sps:$4 sm:$0xff]   ;;  %v1175_v18 = vld [vmem:[%s1369_s24 + $0x70] ss:$8 sps:$4 sm:$0xff]   ;;  %v1262_v19 = vmov 0   ;;  %v1197_v34 = vld [vmem:[%s1376_s12] sm:$0xff]  }
  0x44   : > { %634 = vmatprep.mubr.bf16.mxu0 %v1262_v19  ;;  %674 = vmatprep.mubr.bf16.mxu1 %v1262_v19  ;;  %v1176_v20 = vld [vmem:[%s1369_s24 + $0x64] ss:$8 sps:$4 sm:$0xff]   ;;  %v1178_v21 = vld [vmem:[%s1369_s24 + $0x60] ss:$8 sps:$4 sm:$0xff]   ;;  %v1179_v22 = vld [vmem:[%s1369_s24 + $0x54] ss:$8 sps:$4 sm:$0xff]  }
  0x45   : > { %602 = vmatprep.subr.bf16.mxu0 %v1173_v17  ;;  %1098 = vmatprep.subr.bf16.mxu1 %v1173_v17  ;;  %v1181_v23 = vld [vmem:[%s1369_s24 + $0x50] ss:$8 sps:$4 sm:$0xff]   ;;  %v1182_v24 = vld [vmem:[%s1369_s24 + $0x44] ss:$8 sps:$4 sm:$0xff]   ;;  %v1184_v25 = vld [vmem:[%s1369_s24 + $0x40] ss:$8 sps:$4 sm:$0xff]  }
  0x46   : > { %603 = vmatpush1.bf16.msra.mxu0 %v1175_v18  ;;  %1106 = vmatpush1.bf16.msra.mxu1 %v1175_v18  ;;  %v1185_v26 = vld [vmem:[%s1369_s24 + $0x34] ss:$8 sps:$4 sm:$0xff]   ;;  %v1187_v27 = vld [vmem:[%s1369_s24 + $0x30] ss:$8 sps:$4 sm:$0xff]   ;;  %v1188_v28 = vld [vmem:[%s1369_s24 + $0x24] ss:$8 sps:$4 sm:$0xff]  }
  0x47   : > { %604 = vmatprep.subr.bf16.mxu0 %v1176_v20  ;;  %1099 = vmatprep.subr.bf16.mxu1 %v1176_v20  ;;  %v1190_v29 = vld [vmem:[%s1369_s24 + $0x20] ss:$8 sps:$4 sm:$0xff]   ;;  %v1191_v30 = vld [vmem:[%s1369_s24 + $0x14] ss:$8 sps:$4 sm:$0xff]   ;;  %v1193_v31 = vld [vmem:[%s1369_s24 + $0x10] ss:$8 sps:$4 sm:$0xff]  }
  0x48   : > { %v1194_v32 = vld [vmem:[%s1369_s24 + $0x4] ss:$8 sps:$4 sm:$0xff]   ;;  %v1196_v33 = vld [vmem:[%s1369_s24] ss:$8 sps:$4 sm:$0xff]   ;;  %v1201_v38 = vld [vmem:[%s1376_s12 + $0x10] sm:$0xff]   ;;  %p1093_p13 = scmp.ne.s32.totalorder %s1243_s14, 12 }
  0x49   : > { %v1198_v35 = vld [vmem:[%s1376_s12 + $0x20] sm:$0xff]   ;;  %v1199_v36 = vld [vmem:[%s1376_s12 + $0x8] sm:$0xff]   ;;  %v1202_v39 = vld [vmem:[%s1376_s12 + $0x30] sm:$0xff]  }
  0x4a   : > { %605 = vmatpush1.bf16.msra.mxu0 %v1178_v21  ;;  %1107 = vmatpush1.bf16.msra.mxu1 %v1178_v21  ;;  %v1200_v37 = vld [vmem:[%s1376_s12 + $0x28] sm:$0xff]   ;;  %v1203_v40 = vld [vmem:[%s1376_s12 + $0x18] sm:$0xff]   ;;  %v410_v42 = vld [vmem:[#allocation2 + $0xb0] sm:$0xff] }
  0x4b   : > { %606 = vmatprep.subr.bf16.mxu0 %v1179_v22  ;;  %1100 = vmatprep.subr.bf16.mxu1 %v1179_v22  ;;  %v1204_v41 = vld [vmem:[%s1376_s12 + $0x38] sm:$0xff]   ;;  %v411_v46 = vld [vmem:[#allocation2] sm:$0xff]  ;;  %v429_v59 = vld [vmem:[#allocation2 + $0xc8] sm:$0xff] }
  0x4c   : > { %v426_v43 = vld [vmem:[#allocation2 + $0x38] sm:$0xff]  ;;  %v428_v53 = vld [vmem:[#allocation2 + $0x40] sm:$0xff]  ;;  %v414_v0 = vld [vmem:[#allocation2 + $0x50] sm:$0xff] }
  0x4d   : > { %v427_v47 = vld [vmem:[#allocation2 + $0x58] sm:$0xff]  ;;  %v430_v1 = vld [vmem:[#allocation2 + $0xe0] sm:$0xff]  ;;  %v415_v6 = vld [vmem:[#allocation2 + $0x68] sm:$0xff] }
  0x4e   : > { %607 = vmatpush1.bf16.msra.mxu0 %v1181_v23  ;;  %1108 = vmatpush1.bf16.msra.mxu1 %v1181_v23  ;;  %v412_v52 = vld [vmem:[#allocation2 + $0xd8] sm:$0xff]  ;;  %v431_v7 = vld [vmem:[#allocation2 + $0x90] sm:$0xff]  ;;  %v417_v18 = vld [vmem:[#allocation2 + $0x48] sm:$0xff] }
  0x4f   : > { %608 = vmatprep.subr.bf16.mxu0 %v1182_v24  ;;  %1101 = vmatprep.subr.bf16.mxu1 %v1182_v24  ;;  %v413_v58 = vld [vmem:[#allocation2 + $0x18] sm:$0xff]  ;;  %v416_v12 = vld [vmem:[#allocation2 + $0x30] sm:$0xff]  ;;  %v418_v24 = vld [vmem:[#allocation2 + $0x80] sm:$0xff] }
  0x50   : > { %v432_v13 = vld [vmem:[#allocation2 + $0x70] sm:$0xff] }
  0x52   : > { %609 = vmatpush1.bf16.msra.mxu0 %v1184_v25  ;;  %1109 = vmatpush1.bf16.msra.mxu1 %v1184_v25  ;;  %v434_v25 = vld [vmem:[#allocation2 + $0xa8] sm:$0xff] }
  0x53   : > { %610 = vmatprep.subr.bf16.mxu0 %v1185_v26  ;;  %1102 = vmatprep.subr.bf16.mxu1 %v1185_v26 }
  0x56   : > { %611 = vmatpush1.bf16.msra.mxu0 %v1187_v27  ;;  %1110 = vmatpush1.bf16.msra.mxu1 %v1187_v27 }
  0x57   : > { %612 = vmatprep.subr.bf16.mxu0 %v1188_v28  ;;  %1103 = vmatprep.subr.bf16.mxu1 %v1188_v28 }
  0x5a   : > { %613 = vmatpush1.bf16.msra.mxu0 %v1190_v29  ;;  %1111 = vmatpush1.bf16.msra.mxu1 %v1190_v29 }
  0x5b   : > { %614 = vmatprep.subr.bf16.mxu0 %v1191_v30  ;;  %1104 = vmatprep.subr.bf16.mxu1 %v1191_v30  ;;  %v419_v30 = vld [vmem:[#allocation2 + $0x88] sm:$0xff] }
  0x5e   : > { %615 = vmatpush1.bf16.msra.mxu0 %v1193_v31  ;;  %1112 = vmatpush1.bf16.msra.mxu1 %v1193_v31  ;;  %v435_v31 = vld [vmem:[#allocation2 + $0xd0] sm:$0xff] }
  0x5f   : > { %616 = vmatprep.subr.bf16.mxu0 %v1194_v32  ;;  %1105 = vmatprep.subr.bf16.mxu1 %v1194_v32 }
  0x62   : > { %617 = vmatpush1.bf16.msra.mxu0 %v1196_v33  ;;  %1113 = vmatpush1.bf16.msra.mxu1 %v1196_v33 }
  0x65   : > { %635 = vmatmul.mubr.bf16.vlgmr.msra.gmra.mxu0 %v1197_v34  ;;  %675 = vmatmul.mubr.bf16.vlgmr.msra.gmra.mxu1 %v1198_v35 }
  0x66   : > { %644 = vmatprep.mubr.bf16.mxu0 %v1262_v19  ;;  %684 = vmatprep.mubr.bf16.mxu1 %v1262_v19 }
  0x6d   : > { %645 = vmatmul.mubr.bf16.gmra.mxu0 %v1199_v36  ;;  %685 = vmatmul.mubr.bf16.gmra.mxu1 %v1200_v37  ;;  %v420_v36 = vld [vmem:[#allocation2 + $0xe8] sm:$0xff]  ;;  %v436_v37 = vld [vmem:[#allocation2 + $0x10] sm:$0xff] }
  0x6e   : > { %654 = vmatprep.mubr.bf16.mxu0 %v1262_v19  ;;  %694 = vmatprep.mubr.bf16.mxu1 %v1262_v19 }
  0x75   : > { %655 = vmatmul.mubr.bf16.gmra.mxu0 %v1201_v38  ;;  %695 = vmatmul.mubr.bf16.gmra.mxu1 %v1202_v39 }
  0x76   : > { %664 = vmatprep.mubr.bf16.mxu0 %v1262_v19  ;;  %704 = vmatprep.mubr.bf16.mxu1 %v1262_v19  ;;  %v433_v19 = vld [vmem:[#allocation2 + $0xc0] sm:$0xff] }
  0x7d   : > { %665 = vmatmul.mubr.bf16.gmra.mxu0 %v1203_v40  ;;  %705 = vmatmul.mubr.bf16.gmra.mxu1 %v1204_v41 }
 0x125   : > { %v636_v44 = vpop.f32.mrf.mxu0  ;;  %v676_v45 = vpop.f32.mrf.mxu1 }
 0x126   : > { %v715_v48 = vadd.f32 %v636_v44, %v410_v42  ;;  %v731_v49 = vadd.f32 %v676_v45, %v426_v43  ;;  %v421_v42 = vld [vmem:[#allocation2 + $0xb8] sm:$0xff]  ;;  %v437_v43 = vld [vmem:[#allocation2 + $0x28] sm:$0xff] }
 0x127   : > { %v638_v50 = vpop.f32.mrf.mxu0  ;;  %v678_v51 = vpop.f32.mrf.mxu1 }
 0x128   : > { %747 = vst [vmem:[#allocation2 + $0xb0] sm:$0xff] %v715_v48  ;;  %763 = vst [vmem:[#allocation2 + $0x38] sm:$0xff] %v731_v49  ;;  %v716_v54 = vadd.f32 %v638_v50, %v411_v46  ;;  %v732_v55 = vadd.f32 %v678_v51, %v427_v47  ;;  %v422_v48 = vld [vmem:[#allocation2 + $0x60] sm:$0xff] }
 0x129   : > { %v640_v56 = vpop.f32.mrf.mxu0  ;;  %v680_v57 = vpop.f32.mrf.mxu1  ;;  %v438_v49 = vld [vmem:[#allocation2 + $0xa0] sm:$0xff] }
 0x12a   : > { %748 = vst [vmem:[#allocation2] sm:$0xff] %v716_v54  ;;  %764 = vst [vmem:[#allocation2 + $0x58] sm:$0xff] %v732_v55  ;;  %v717_v60 = vadd.f32 %v640_v56, %v412_v52  ;;  %v733_v61 = vadd.f32 %v680_v57, %v428_v53  ;;  %v423_v54 = vld [vmem:[#allocation2 + $0xf0] sm:$0xff]  ;;  %v439_v55 = vld [vmem:[#allocation2 + $0xf8] sm:$0xff] }
 0x12b   : > { %v642_v62 = vpop.f32.mrf.mxu0  ;;  %v682_v63 = vpop.f32.mrf.mxu1 }
 0x12c   : > { %749 = vst [vmem:[#allocation2 + $0xd8] sm:$0xff] %v717_v60  ;;  %765 = vst [vmem:[#allocation2 + $0x40] sm:$0xff] %v733_v61  ;;  %v718_v2 = vadd.f32 %v642_v62, %v413_v58  ;;  %v734_v3 = vadd.f32 %v682_v63, %v429_v59  ;;  %v424_v60 = vld [vmem:[#allocation2 + $0x8] sm:$0xff]  ;;  %v440_v61 = vld [vmem:[#allocation2 + $0x20] sm:$0xff] }
 0x12d   : > { %v646_v4 = vpop.f32.mrf.mxu0  ;;  %v686_v5 = vpop.f32.mrf.mxu1 }
 0x12e   : > { %750 = vst [vmem:[#allocation2 + $0x18] sm:$0xff] %v718_v2  ;;  %766 = vst [vmem:[#allocation2 + $0xc8] sm:$0xff] %v734_v3  ;;  %v719_v8 = vadd.f32 %v646_v4, %v414_v0  ;;  %v735_v9 = vadd.f32 %v686_v5, %v430_v1  ;;  %v425_v2 = vld [vmem:[#allocation2 + $0x78] sm:$0xff] }
 0x12f   : > { %v648_v10 = vpop.f32.mrf.mxu0  ;;  %v688_v11 = vpop.f32.mrf.mxu1  ;;  %v441_v3 = vld [vmem:[#allocation2 + $0x98] sm:$0xff] }
 0x130   : > { %751 = vst [vmem:[#allocation2 + $0x50] sm:$0xff] %v719_v8  ;;  %767 = vst [vmem:[#allocation2 + $0xe0] sm:$0xff] %v735_v9  ;;  %v720_v14 = vadd.f32 %v648_v10, %v415_v6  ;;  %v736_v15 = vadd.f32 %v688_v11, %v431_v7 }
 0x131   : > { %v650_v16 = vpop.f32.mrf.mxu0  ;;  %v690_v17 = vpop.f32.mrf.mxu1 }
 0x132   : > { %752 = vst [vmem:[#allocation2 + $0x68] sm:$0xff] %v720_v14  ;;  %768 = vst [vmem:[#allocation2 + $0x90] sm:$0xff] %v736_v15  ;;  %v721_v20 = vadd.f32 %v650_v16, %v416_v12  ;;  %v737_v21 = vadd.f32 %v690_v17, %v432_v13 }
 0x133   : > { %v652_v22 = vpop.f32.mrf.mxu0  ;;  %v692_v23 = vpop.f32.mrf.mxu1 }
 0x134   : > { %753 = vst [vmem:[#allocation2 + $0x30] sm:$0xff] %v721_v20  ;;  %769 = vst [vmem:[#allocation2 + $0x70] sm:$0xff] %v737_v21  ;;  %v722_v26 = vadd.f32 %v652_v22, %v417_v18  ;;  %v738_v27 = vadd.f32 %v692_v23, %v433_v19 }
 0x135   : > { %v656_v28 = vpop.f32.mrf.mxu0  ;;  %v696_v29 = vpop.f32.mrf.mxu1 }
 0x136   : > { %754 = vst [vmem:[#allocation2 + $0x48] sm:$0xff] %v722_v26  ;;  %770 = vst [vmem:[#allocation2 + $0xc0] sm:$0xff] %v738_v27  ;;  %v723_v32 = vadd.f32 %v656_v28, %v418_v24  ;;  %v739_v33 = vadd.f32 %v696_v29, %v434_v25 }
 0x137   : > { %v658_v34 = vpop.f32.mrf.mxu0  ;;  %v698_v35 = vpop.f32.mrf.mxu1 }
 0x138   : > { %755 = vst [vmem:[#allocation2 + $0x80] sm:$0xff] %v723_v32  ;;  %771 = vst [vmem:[#allocation2 + $0xa8] sm:$0xff] %v739_v33  ;;  %v724_v38 = vadd.f32 %v658_v34, %v419_v30  ;;  %v740_v39 = vadd.f32 %v698_v35, %v435_v31 }
 0x139   : > { %v660_v40 = vpop.f32.mrf.mxu0  ;;  %v700_v41 = vpop.f32.mrf.mxu1 }
 0x13a   : > { %756 = vst [vmem:[#allocation2 + $0x88] sm:$0xff] %v724_v38  ;;  %772 = vst [vmem:[#allocation2 + $0xd0] sm:$0xff] %v740_v39  ;;  %v725_v44 = vadd.f32 %v660_v40, %v420_v36  ;;  %v741_v45 = vadd.f32 %v700_v41, %v436_v37 }
 0x13b   : > { %v662_v46 = vpop.f32.mrf.mxu0  ;;  %v702_v47 = vpop.f32.mrf.mxu1 }
 0x13c   : > { %757 = vst [vmem:[#allocation2 + $0xe8] sm:$0xff] %v725_v44  ;;  %773 = vst [vmem:[#allocation2 + $0x10] sm:$0xff] %v741_v45  ;;  %v726_v50 = vadd.f32 %v662_v46, %v421_v42  ;;  %v742_v51 = vadd.f32 %v702_v47, %v437_v43 }
 0x13d   : > { %v666_v52 = vpop.f32.mrf.mxu0  ;;  %v706_v53 = vpop.f32.mrf.mxu1 }
 0x13e   : > { %758 = vst [vmem:[#allocation2 + $0xb8] sm:$0xff] %v726_v50  ;;  %774 = vst [vmem:[#allocation2 + $0x28] sm:$0xff] %v742_v51  ;;  %v727_v56 = vadd.f32 %v666_v52, %v422_v48  ;;  %v743_v57 = vadd.f32 %v706_v53, %v438_v49 }
 0x13f   : > { %v668_v58 = vpop.f32.mrf.mxu0  ;;  %v708_v59 = vpop.f32.mrf.mxu1 }
 0x140   : > { %759 = vst [vmem:[#allocation2 + $0x60] sm:$0xff] %v727_v56  ;;  %775 = vst [vmem:[#allocation2 + $0xa0] sm:$0xff] %v743_v57  ;;  %v728_v62 = vadd.f32 %v668_v58, %v423_v54  ;;  %v744_v63 = vadd.f32 %v708_v59, %v439_v55 }
 0x141   : > { %v670_v0 = vpop.f32.mrf.mxu0  ;;  %v710_v1 = vpop.f32.mrf.mxu1 }
 0x142   : > { %760 = vst [vmem:[#allocation2 + $0xf0] sm:$0xff] %v728_v62  ;;  %776 = vst [vmem:[#allocation2 + $0xf8] sm:$0xff] %v744_v63  ;;  %v729_v4 = vadd.f32 %v670_v0, %v424_v60  ;;  %v745_v5 = vadd.f32 %v710_v1, %v440_v61  ;;  %782 = sbr.rel (%p1093_p13) target bundleno = 356 (0x164), region = 81 }
 0x143   : > { %v672_v6 = vpop.f32.mrf.mxu0  ;;  %v712_v7 = vpop.f32.mrf.mxu1 }
 0x144   : > { %761 = vst [vmem:[#allocation2 + $0x8] sm:$0xff] %v729_v4  ;;  %777 = vst [vmem:[#allocation2 + $0x20] sm:$0xff] %v745_v5  ;;  %v730_v8 = vadd.f32 %v672_v6, %v425_v2  ;;  %v746_v9 = vadd.f32 %v712_v7, %v441_v3 }
 0x146   : > { %762 = vst [vmem:[#allocation2 + $0x78] sm:$0xff] %v730_v8  ;;  %778 = vst [vmem:[#allocation2 + $0x98] sm:$0xff] %v746_v9 }
 0x147   : > { %v817_v10 = vlaneseq  ;;  %v815_v12 = vld [vmem:[%s1506_s2] sm:$0x3]  ;;  %v783_v13 = vld [vmem:[#allocation2 + $0xb0] sm:$0xff]  ;;  %v785_v17 = vld [vmem:[#allocation2 + $0xd8] sm:$0xff] }
 0x148   : > { %v784_v15 = vld [vmem:[#allocation2] sm:$0xff]  ;;  %v786_v18 = vld [vmem:[#allocation2 + $0x18] sm:$0xff]  ;;  %v787_v19 = vld [vmem:[#allocation2 + $0x50] sm:$0xff] }
 0x149   : > { %v818_v11 = vshrl.u32 %v817_v10, 7  ;;  %v788_v22 = vld [vmem:[#allocation2 + $0x68] sm:$0xff]  ;;  %v789_v23 = vld [vmem:[#allocation2 + $0x30] sm:$0xff]  ;;  %v791_v29 = vld [vmem:[#allocation2 + $0x80] sm:$0xff] }
 0x14a   : > { %v790_v24 = vld [vmem:[#allocation2 + $0x48] sm:$0xff]  ;;  %v794_v36 = vld [vmem:[#allocation2 + $0xb8] sm:$0xff]  ;;  %v795_v37 = vld [vmem:[#allocation2 + $0x60] sm:$0xff] }
 0x14b   : > { %v819_v14 = vsub.s32 0, %v818_v11  ;;  %v823_v16 = vsub.s32 1, %v818_v11  ;;  %v792_v30 = vld [vmem:[#allocation2 + $0x88] sm:$0xff]  ;;  %v796_v38 = vld [vmem:[#allocation2 + $0xf0] sm:$0xff]  ;;  %v799_v53 = vld [vmem:[#allocation2 + $0x38] sm:$0xff] }
 0x14c   : > { %v793_v31 = vld [vmem:[#allocation2 + $0xe8] sm:$0xff]  ;;  %v800_v54 = vld [vmem:[#allocation2 + $0x58] sm:$0xff]  ;;  %v801_v55 = vld [vmem:[#allocation2 + $0x40] sm:$0xff] }
 0x14d   : > { %v1415_v20 = vrot.slane %v815_v12, %v819_v14  ;;  %v1417_v21 = vrot.slane %v815_v12, %v823_v16  ;;  %v797_v43 = vld [vmem:[#allocation2 + $0x8] sm:$0xff]  ;;  %v798_v44 = vld [vmem:[#allocation2 + $0x78] sm:$0xff]  ;;  %v803_v61 = vld [vmem:[#allocation2 + $0xe0] sm:$0xff] }
 0x14e   : > { %v802_v60 = vld [vmem:[#allocation2 + $0xc8] sm:$0xff]  ;;  %v804_v62 = vld [vmem:[#allocation2 + $0x90] sm:$0xff]  ;;  %v806_v4 = vld [vmem:[#allocation2 + $0xc0] sm:$0xff] }
 0x14f   : > { %v827_v25 = vadd.f32 %v1415_v20, %v783_v13  ;;  %v828_v26 = vadd.f32 %v1417_v21, %v784_v15  ;;  %v829_v27 = vadd.f32 %v1415_v20, %v785_v17  ;;  %v830_v28 = vadd.f32 %v1417_v21, %v786_v18  ;;  %v805_v3 = vld [vmem:[#allocation2 + $0x70] sm:$0xff]  ;;  %v807_v13 = vld [vmem:[#allocation2 + $0xa8] sm:$0xff] }
 0x150   : > { %v831_v32 = vadd.f32 %v1415_v20, %v787_v19  ;;  %v832_v33 = vadd.f32 %v1417_v21, %v788_v22  ;;  %v833_v34 = vadd.f32 %v1415_v20, %v789_v23  ;;  %v834_v35 = vadd.f32 %v1417_v21, %v790_v24  ;;  %v808_v14 = vld [vmem:[#allocation2 + $0xd0] sm:$0xff]  ;;  %v810_v22 = vld [vmem:[#allocation2 + $0x28] sm:$0xff]  ;;  %v811_v23 = vld [vmem:[#allocation2 + $0xa0] sm:$0xff] }
 0x151   : > { %v859_v39 = vmax.f32 %v827_v25, 0.0  ;;  %v860_v40 = vmax.f32 %v828_v26, 0.0  ;;  %v861_v41 = vmax.f32 %v829_v27, 0.0  ;;  %v862_v42 = vmax.f32 %v830_v28, 0.0  ;;  %v809_v15 = vld [vmem:[#allocation2 + $0x10] sm:$0xff]  ;;  %v812_v24 = vld [vmem:[#allocation2 + $0xf8] sm:$0xff] }
 0x152   : > { %v863_v45 = vmax.f32 %v831_v32, 0.0  ;;  %v864_v46 = vmax.f32 %v832_v33, 0.0  ;;  %v865_v47 = vmax.f32 %v833_v34, 0.0  ;;  %v866_v48 = vmax.f32 %v834_v35, 0.0 }
 0x153   : > { %891 = vst [vmem:[%s1374_s29] sm:$0xff] %v859_v39  ;;  %892 = vst [vmem:[%s1374_s29 + $0x8] sm:$0xff] %v860_v40  ;;  %v835_v49 = vadd.f32 %v1415_v20, %v791_v29  ;;  %v836_v50 = vadd.f32 %v1417_v21, %v792_v30  ;;  %v837_v51 = vadd.f32 %v1415_v20, %v793_v31  ;;  %v813_v29 = vld [vmem:[#allocation2 + $0x20] sm:$0xff]  ;;  %v814_v30 = vld [vmem:[#allocation2 + $0x98] sm:$0xff] }
 0x154   : > { %893 = vst [vmem:[%s1374_s29 + $0x10] sm:$0xff] %v861_v41  ;;  %894 = vst [vmem:[%s1374_s29 + $0x18] sm:$0xff] %v862_v42  ;;  %v838_v52 = vadd.f32 %v1417_v21, %v794_v36  ;;  %v839_v56 = vadd.f32 %v1415_v20, %v795_v37  ;;  %v840_v57 = vadd.f32 %v1417_v21, %v796_v38 }
 0x155   : > { %895 = vst [vmem:[%s1374_s29 + $0x20] sm:$0xff] %v863_v45  ;;  %896 = vst [vmem:[%s1374_s29 + $0x28] sm:$0xff] %v864_v46  ;;  %v841_v58 = vadd.f32 %v1415_v20, %v797_v43  ;;  %v842_v59 = vadd.f32 %v1417_v21, %v798_v44  ;;  %v867_v63 = vmax.f32 %v835_v49, 0.0  ;;  %v868_v0 = vmax.f32 %v836_v50, 0.0 }
 0x156   : > { %897 = vst [vmem:[%s1374_s29 + $0x30] sm:$0xff] %v865_v47  ;;  %898 = vst [vmem:[%s1374_s29 + $0x38] sm:$0xff] %v866_v48  ;;  %v869_v1 = vmax.f32 %v837_v51, 0.0  ;;  %v870_v2 = vmax.f32 %v838_v52, 0.0  ;;  %v871_v5 = vmax.f32 %v839_v56, 0.0  ;;  %v872_v6 = vmax.f32 %v840_v57, 0.0 }
 0x157   : > { %v873_v7 = vmax.f32 %v841_v58, 0.0  ;;  %v874_v8 = vmax.f32 %v842_v59, 0.0  ;;  %899 = vst [vmem:[%s1374_s29 + $0x40] sm:$0xff] %v867_v63  ;;  %900 = vst [vmem:[%s1374_s29 + $0x48] sm:$0xff] %v868_v0  ;;  %v843_v9 = vadd.f32 %v1415_v20, %v799_v53  ;;  %v844_v10 = vadd.f32 %v1417_v21, %v800_v54 }
 0x158   : > { %901 = vst [vmem:[%s1374_s29 + $0x50] sm:$0xff] %v869_v1  ;;  %902 = vst [vmem:[%s1374_s29 + $0x58] sm:$0xff] %v870_v2  ;;  %v845_v11 = vadd.f32 %v1415_v20, %v801_v55  ;;  %v846_v12 = vadd.f32 %v1417_v21, %v802_v60  ;;  %v847_v16 = vadd.f32 %v1415_v20, %v803_v61 }
 0x159   : > { %903 = vst [vmem:[%s1374_s29 + $0x60] sm:$0xff] %v871_v5  ;;  %904 = vst [vmem:[%s1374_s29 + $0x68] sm:$0xff] %v872_v6  ;;  %v848_v17 = vadd.f32 %v1417_v21, %v804_v62  ;;  %v849_v18 = vadd.f32 %v1415_v20, %v805_v3  ;;  %v850_v19 = vadd.f32 %v1417_v21, %v806_v4  ;;  %v875_v25 = vmax.f32 %v843_v9, 0.0 }
 0x15a   : > { %905 = vst [vmem:[%s1374_s29 + $0x70] sm:$0xff] %v873_v7  ;;  %906 = vst [vmem:[%s1374_s29 + $0x78] sm:$0xff] %v874_v8  ;;  %v876_v26 = vmax.f32 %v844_v10, 0.0  ;;  %v877_v27 = vmax.f32 %v845_v11, 0.0  ;;  %v878_v28 = vmax.f32 %v846_v12, 0.0  ;;  %v879_v31 = vmax.f32 %v847_v16, 0.0 }
 0x15b   : > { %v880_v32 = vmax.f32 %v848_v17, 0.0  ;;  %v881_v33 = vmax.f32 %v849_v18, 0.0  ;;  %v882_v34 = vmax.f32 %v850_v19, 0.0  ;;  %907 = vst [vmem:[%s1374_s29 + $0x80] sm:$0xff] %v875_v25  ;;  %v851_v35 = vadd.f32 %v1415_v20, %v807_v13 }
 0x15c   : > { %908 = vst [vmem:[%s1374_s29 + $0x88] sm:$0xff] %v876_v26  ;;  %909 = vst [vmem:[%s1374_s29 + $0x90] sm:$0xff] %v877_v27  ;;  %v852_v36 = vadd.f32 %v1417_v21, %v808_v14  ;;  %v853_v37 = vadd.f32 %v1415_v20, %v809_v15  ;;  %v854_v38 = vadd.f32 %v1417_v21, %v810_v22 }
 0x15d   : > { %910 = vst [vmem:[%s1374_s29 + $0x98] sm:$0xff] %v878_v28  ;;  %911 = vst [vmem:[%s1374_s29 + $0xa0] sm:$0xff] %v879_v31  ;;  %v855_v39 = vadd.f32 %v1415_v20, %v811_v23  ;;  %v856_v40 = vadd.f32 %v1417_v21, %v812_v24  ;;  %v857_v41 = vadd.f32 %v1415_v20, %v813_v29  ;;  %v883_v43 = vmax.f32 %v851_v35, 0.0 }
 0x15e   : > { %912 = vst [vmem:[%s1374_s29 + $0xa8] sm:$0xff] %v880_v32  ;;  %913 = vst [vmem:[%s1374_s29 + $0xb0] sm:$0xff] %v881_v33  ;;  %v858_v42 = vadd.f32 %v1417_v21, %v814_v30  ;;  %v884_v44 = vmax.f32 %v852_v36, 0.0  ;;  %v885_v45 = vmax.f32 %v853_v37, 0.0  ;;  %v886_v46 = vmax.f32 %v854_v38, 0.0 }
 0x15f   : > { %914 = vst [vmem:[%s1374_s29 + $0xb8] sm:$0xff] %v882_v34  ;;  %v887_v47 = vmax.f32 %v855_v39, 0.0  ;;  %v888_v48 = vmax.f32 %v856_v40, 0.0  ;;  %v889_v49 = vmax.f32 %v857_v41, 0.0  ;;  %915 = vst [vmem:[%s1374_s29 + $0xc0] sm:$0xff] %v883_v43 }
 0x160   : > { %v890_v50 = vmax.f32 %v858_v42, 0.0  ;;  %916 = vst [vmem:[%s1374_s29 + $0xc8] sm:$0xff] %v884_v44  ;;  %917 = vst [vmem:[%s1374_s29 + $0xd0] sm:$0xff] %v885_v45 }
 0x161   : > { %918 = vst [vmem:[%s1374_s29 + $0xd8] sm:$0xff] %v886_v46  ;;  %919 = vst [vmem:[%s1374_s29 + $0xe0] sm:$0xff] %v887_v47 }
 0x162   : > { %920 = vst [vmem:[%s1374_s29 + $0xe8] sm:$0xff] %v888_v48  ;;  %921 = vst [vmem:[%s1374_s29 + $0xf0] sm:$0xff] %v889_v49 }
 0x163   : > { %922 = vst [vmem:[%s1374_s29 + $0xf8] sm:$0xff] %v890_v50 }
 0x164 PF: > { %s13_s18 = sadd.s32 1, %s1259_s18   ;;  %s1508_s12 = smov %s1239_s13 }
 0x165   : > { %p10_p0 = scmp.ge.s32.totalorder %s13_s18, 28   ;;  %s1509_s13 = smov %s1334_s25 }
 0x166   : > { %s1510_s14 = smov %s1251_s16  ;;  %s1511_s15 = smov %s1255_s17 }
 0x167   : > { %s1512_s16 = smov %s1515_s19  ;;  %s1513_s17 = smov %s1519_s20 }
 0x168   :  { %12 = sbr.rel (!%p10_p0) target bundleno = 4 (0x4), region = 122 }

// kernel: lw_cbam_alexnet_forward.30
= control target key start
LH: loop header
LB: loop body
LE: loop exit
PB: predicated region body
PF: predicated region fallthrough
CT: control target
= control target key end

     0   :  { %s694_s0 = inlined_call_operand.vmem [shape: f32[9,56,256], index: 0, kind: input, shape index: {}]   ;;  %s695_s1 = inlined_call_operand.vmem [shape: f32[56,256], index: 1, kind: output, shape index: {}]  }
   0x1   :  { %v8_v0 = vld [vmem:[%s694_s0] sm:$0xff]  ;;  %v22_v1 = vld [vmem:[%s694_s0 + $0x70] sm:$0xff]  ;;  %v9_v6 = vld [vmem:[%s694_s0 + $0x8] sm:$0xff] }
   0x2   :  { %v36_v2 = vld [vmem:[%s694_s0 + $0xe0] sm:$0xff]  ;;  %v134_v3 = vmax.f32 %v8_v0, %v22_v1  ;;  %v50_v4 = vld [vmem:[%s694_s0 + $0x150] sm:$0xff]  ;;  %v23_v7 = vld [vmem:[%s694_s0 + $0x78] sm:$0xff] }
   0x3   :  { %v37_v8 = vld [vmem:[%s694_s0 + $0xe8] sm:$0xff]  ;;  %v64_v9 = vld [vmem:[%s694_s0 + $0x1c0] sm:$0xff]  ;;  %v142_v10 = vmax.f32 %v9_v6, %v23_v7  ;;  %v78_v11 = vld [vmem:[%s694_s0 + $0x230] sm:$0xff] }
   0x4   :  { %v135_v5 = vmax.f32 %v134_v3, %v36_v2  ;;  %v51_v13 = vld [vmem:[%s694_s0 + $0x158] sm:$0xff]  ;;  %v10_v15 = vld [vmem:[%s694_s0 + $0x10] sm:$0xff]  ;;  %v24_v16 = vld [vmem:[%s694_s0 + $0x80] sm:$0xff] }
   0x5   :  { %v143_v14 = vmax.f32 %v142_v10, %v37_v8  ;;  %v38_v17 = vld [vmem:[%s694_s0 + $0xf0] sm:$0xff]  ;;  %v65_v19 = vld [vmem:[%s694_s0 + $0x1c8] sm:$0xff]  ;;  %v150_v20 = vmax.f32 %v10_v15, %v24_v16  ;;  %v92_v21 = vld [vmem:[%s694_s0 + $0x2a0] sm:$0xff] }
   0x6   :  { %v136_v12 = vmax.f32 %v135_v5, %v50_v4  ;;  %v79_v22 = vld [vmem:[%s694_s0 + $0x238] sm:$0xff]  ;;  %v52_v24 = vld [vmem:[%s694_s0 + $0x160] sm:$0xff]  ;;  %v25_v28 = vld [vmem:[%s694_s0 + $0x88] sm:$0xff] }
   0x7   :  { %v144_v23 = vmax.f32 %v143_v14, %v51_v13  ;;  %v151_v26 = vmax.f32 %v150_v20, %v38_v17  ;;  %v11_v27 = vld [vmem:[%s694_s0 + $0x18] sm:$0xff]  ;;  %v106_v30 = vld [vmem:[%s694_s0 + $0x310] sm:$0xff]  ;;  %v120_v31 = vld [vmem:[%s694_s0 + $0x380] sm:$0xff] }
   0x8   :  { %v137_v18 = vmax.f32 %v136_v12, %v64_v9  ;;  %v39_v29 = vld [vmem:[%s694_s0 + $0xf8] sm:$0xff]  ;;  %v66_v33 = vld [vmem:[%s694_s0 + $0x1d0] sm:$0xff]  ;;  %v158_v34 = vmax.f32 %v11_v27, %v25_v28  ;;  %v93_v36 = vld [vmem:[%s694_s0 + $0x2a8] sm:$0xff] }
   0x9   :  { %v145_v32 = vmax.f32 %v144_v23, %v65_v19  ;;  %v80_v37 = vld [vmem:[%s694_s0 + $0x240] sm:$0xff]  ;;  %v152_v38 = vmax.f32 %v151_v26, %v52_v24  ;;  %v53_v39 = vld [vmem:[%s694_s0 + $0x168] sm:$0xff]  ;;  %v26_v43 = vld [vmem:[%s694_s0 + $0x90] sm:$0xff] }
   0xa   :  { %v138_v25 = vmax.f32 %v137_v18, %v78_v11  ;;  %v159_v41 = vmax.f32 %v158_v34, %v39_v29  ;;  %v12_v42 = vld [vmem:[%s694_s0 + $0x20] sm:$0xff]  ;;  %v107_v46 = vld [vmem:[%s694_s0 + $0x318] sm:$0xff]  ;;  %v121_v47 = vld [vmem:[%s694_s0 + $0x388] sm:$0xff] }
   0xb   :  { %v146_v40 = vmax.f32 %v145_v32, %v79_v22  ;;  %v40_v44 = vld [vmem:[%s694_s0 + $0x100] sm:$0xff]  ;;  %v153_v48 = vmax.f32 %v152_v38, %v66_v33  ;;  %v67_v49 = vld [vmem:[%s694_s0 + $0x1d8] sm:$0xff]  ;;  %v166_v50 = vmax.f32 %v12_v42, %v26_v43  ;;  %v94_v52 = vld [vmem:[%s694_s0 + $0x2b0] sm:$0xff] }
   0xc   :  { %v139_v35 = vmax.f32 %v138_v25, %v92_v21  ;;  %v81_v53 = vld [vmem:[%s694_s0 + $0x248] sm:$0xff]  ;;  %v160_v54 = vmax.f32 %v159_v41, %v53_v39  ;;  %v54_v55 = vld [vmem:[%s694_s0 + $0x170] sm:$0xff]  ;;  %v27_v60 = vld [vmem:[%s694_s0 + $0x98] sm:$0xff] }
   0xd   :  { %v147_v51 = vmax.f32 %v146_v40, %v93_v36  ;;  %v154_v57 = vmax.f32 %v153_v48, %v80_v37  ;;  %v167_v58 = vmax.f32 %v166_v50, %v40_v44  ;;  %v13_v59 = vld [vmem:[%s694_s0 + $0x28] sm:$0xff]  ;;  %v108_v63 = vld [vmem:[%s694_s0 + $0x320] sm:$0xff]  ;;  %v122_v0 = vld [vmem:[%s694_s0 + $0x390] sm:$0xff] }
   0xe   :  { %v140_v45 = vmax.f32 %v139_v35, %v106_v30  ;;  %v41_v61 = vld [vmem:[%s694_s0 + $0x108] sm:$0xff]  ;;  %v161_v1 = vmax.f32 %v160_v54, %v67_v49  ;;  %v68_v2 = vld [vmem:[%s694_s0 + $0x1e0] sm:$0xff]  ;;  %v174_v3 = vmax.f32 %v13_v59, %v27_v60  ;;  %v95_v5 = vld [vmem:[%s694_s0 + $0x2b8] sm:$0xff] }
   0xf   :  { %v148_v62 = vmax.f32 %v147_v51, %v107_v46  ;;  %v155_v4 = vmax.f32 %v154_v57, %v94_v52  ;;  %v82_v6 = vld [vmem:[%s694_s0 + $0x250] sm:$0xff]  ;;  %v168_v7 = vmax.f32 %v167_v58, %v54_v55  ;;  %v55_v8 = vld [vmem:[%s694_s0 + $0x178] sm:$0xff]  ;;  %v28_v13 = vld [vmem:[%s694_s0 + $0xa0] sm:$0xff] }
  0x10   :  { %v141_v56 = vmax.f32 %v140_v45, %v120_v31  ;;  %v162_v10 = vmax.f32 %v161_v1, %v81_v53  ;;  %v175_v11 = vmax.f32 %v174_v3, %v41_v61  ;;  %v14_v12 = vld [vmem:[%s694_s0 + $0x30] sm:$0xff]  ;;  %v109_v16 = vld [vmem:[%s694_s0 + $0x328] sm:$0xff]  ;;  %v123_v17 = vld [vmem:[%s694_s0 + $0x398] sm:$0xff] }
  0x11   :  { %v149_v9 = vmax.f32 %v148_v62, %v121_v47  ;;  %v42_v14 = vld [vmem:[%s694_s0 + $0x110] sm:$0xff]  ;;  %v156_v15 = vmax.f32 %v155_v4, %v108_v63  ;;  %v169_v18 = vmax.f32 %v168_v7, %v68_v2  ;;  %v69_v19 = vld [vmem:[%s694_s0 + $0x1e8] sm:$0xff]  ;;  %v182_v20 = vmax.f32 %v14_v12, %v28_v13  ;;  %v96_v22 = vld [vmem:[%s694_s0 + $0x2c0] sm:$0xff] }
  0x12   :  { %246 = vst [vmem:[%s695_s1] sm:$0xff] %v141_v56  ;;  %v163_v21 = vmax.f32 %v162_v10, %v95_v5  ;;  %v83_v23 = vld [vmem:[%s694_s0 + $0x258] sm:$0xff]  ;;  %v176_v24 = vmax.f32 %v175_v11, %v55_v8  ;;  %v56_v25 = vld [vmem:[%s694_s0 + $0x180] sm:$0xff]  ;;  %v29_v30 = vld [vmem:[%s694_s0 + $0xa8] sm:$0xff] }
  0x13   :  { %247 = vst [vmem:[%s695_s1 + $0x8] sm:$0xff] %v149_v9  ;;  %v157_v26 = vmax.f32 %v156_v15, %v122_v0  ;;  %v170_v27 = vmax.f32 %v169_v18, %v82_v6  ;;  %v183_v28 = vmax.f32 %v182_v20, %v42_v14  ;;  %v15_v29 = vld [vmem:[%s694_s0 + $0x38] sm:$0xff]  ;;  %v110_v33 = vld [vmem:[%s694_s0 + $0x330] sm:$0xff]  ;;  %v124_v34 = vld [vmem:[%s694_s0 + $0x3a0] sm:$0xff] }
  0x14   :  { %v43_v31 = vld [vmem:[%s694_s0 + $0x118] sm:$0xff]  ;;  %v164_v32 = vmax.f32 %v163_v21, %v109_v16  ;;  %v177_v35 = vmax.f32 %v176_v24, %v69_v19  ;;  %v70_v36 = vld [vmem:[%s694_s0 + $0x1f0] sm:$0xff]  ;;  %v190_v37 = vmax.f32 %v15_v29, %v29_v30  ;;  %v97_v39 = vld [vmem:[%s694_s0 + $0x2c8] sm:$0xff] }
  0x15   :  { %248 = vst [vmem:[%s695_s1 + $0x10] sm:$0xff] %v157_v26  ;;  %v171_v38 = vmax.f32 %v170_v27, %v96_v22  ;;  %v84_v40 = vld [vmem:[%s694_s0 + $0x260] sm:$0xff]  ;;  %v184_v41 = vmax.f32 %v183_v28, %v56_v25  ;;  %v57_v42 = vld [vmem:[%s694_s0 + $0x188] sm:$0xff]  ;;  %v30_v47 = vld [vmem:[%s694_s0 + $0xb0] sm:$0xff] }
  0x16   :  { %v165_v43 = vmax.f32 %v164_v32, %v123_v17  ;;  %v178_v44 = vmax.f32 %v177_v35, %v83_v23  ;;  %v191_v45 = vmax.f32 %v190_v37, %v43_v31  ;;  %v16_v46 = vld [vmem:[%s694_s0 + $0x40] sm:$0xff]  ;;  %v111_v50 = vld [vmem:[%s694_s0 + $0x338] sm:$0xff]  ;;  %v125_v51 = vld [vmem:[%s694_s0 + $0x3a8] sm:$0xff] }
  0x17   :  { %v44_v48 = vld [vmem:[%s694_s0 + $0x120] sm:$0xff]  ;;  %v172_v49 = vmax.f32 %v171_v38, %v110_v33  ;;  %v185_v52 = vmax.f32 %v184_v41, %v70_v36  ;;  %v71_v53 = vld [vmem:[%s694_s0 + $0x1f8] sm:$0xff]  ;;  %v198_v54 = vmax.f32 %v16_v46, %v30_v47  ;;  %v98_v56 = vld [vmem:[%s694_s0 + $0x2d0] sm:$0xff] }
  0x18   :  { %249 = vst [vmem:[%s695_s1 + $0x18] sm:$0xff] %v165_v43  ;;  %v179_v55 = vmax.f32 %v178_v44, %v97_v39  ;;  %v85_v57 = vld [vmem:[%s694_s0 + $0x268] sm:$0xff]  ;;  %v192_v58 = vmax.f32 %v191_v45, %v57_v42  ;;  %v58_v59 = vld [vmem:[%s694_s0 + $0x190] sm:$0xff]  ;;  %v31_v0 = vld [vmem:[%s694_s0 + $0xb8] sm:$0xff] }
  0x19   :  { %v173_v60 = vmax.f32 %v172_v49, %v124_v34  ;;  %v186_v61 = vmax.f32 %v185_v52, %v84_v40  ;;  %v199_v62 = vmax.f32 %v198_v54, %v44_v48  ;;  %v17_v63 = vld [vmem:[%s694_s0 + $0x48] sm:$0xff]  ;;  %v112_v3 = vld [vmem:[%s694_s0 + $0x340] sm:$0xff]  ;;  %v126_v4 = vld [vmem:[%s694_s0 + $0x3b0] sm:$0xff] }
  0x1a   :  { %v45_v1 = vld [vmem:[%s694_s0 + $0x128] sm:$0xff]  ;;  %v180_v2 = vmax.f32 %v179_v55, %v111_v50  ;;  %v193_v5 = vmax.f32 %v192_v58, %v71_v53  ;;  %v72_v6 = vld [vmem:[%s694_s0 + $0x200] sm:$0xff]  ;;  %v206_v7 = vmax.f32 %v17_v63, %v31_v0  ;;  %v99_v9 = vld [vmem:[%s694_s0 + $0x2d8] sm:$0xff] }
  0x1b   :  { %250 = vst [vmem:[%s695_s1 + $0x20] sm:$0xff] %v173_v60  ;;  %v187_v8 = vmax.f32 %v186_v61, %v98_v56  ;;  %v86_v10 = vld [vmem:[%s694_s0 + $0x270] sm:$0xff]  ;;  %v200_v11 = vmax.f32 %v199_v62, %v58_v59  ;;  %v59_v12 = vld [vmem:[%s694_s0 + $0x198] sm:$0xff]  ;;  %v32_v17 = vld [vmem:[%s694_s0 + $0xc0] sm:$0xff] }
  0x1c   :  { %v181_v13 = vmax.f32 %v180_v2, %v125_v51  ;;  %v194_v14 = vmax.f32 %v193_v5, %v85_v57  ;;  %v207_v15 = vmax.f32 %v206_v7, %v45_v1  ;;  %v18_v16 = vld [vmem:[%s694_s0 + $0x50] sm:$0xff]  ;;  %v113_v20 = vld [vmem:[%s694_s0 + $0x348] sm:$0xff]  ;;  %v127_v21 = vld [vmem:[%s694_s0 + $0x3b8] sm:$0xff] }
  0x1d   :  { %v46_v18 = vld [vmem:[%s694_s0 + $0x130] sm:$0xff]  ;;  %v188_v19 = vmax.f32 %v187_v8, %v112_v3  ;;  %v201_v22 = vmax.f32 %v200_v11, %v72_v6  ;;  %v73_v23 = vld [vmem:[%s694_s0 + $0x208] sm:$0xff]  ;;  %v214_v24 = vmax.f32 %v18_v16, %v32_v17  ;;  %v100_v26 = vld [vmem:[%s694_s0 + $0x2e0] sm:$0xff] }
  0x1e   :  { %251 = vst [vmem:[%s695_s1 + $0x28] sm:$0xff] %v181_v13  ;;  %v195_v25 = vmax.f32 %v194_v14, %v99_v9  ;;  %v87_v27 = vld [vmem:[%s694_s0 + $0x278] sm:$0xff]  ;;  %v208_v28 = vmax.f32 %v207_v15, %v59_v12  ;;  %v60_v29 = vld [vmem:[%s694_s0 + $0x1a0] sm:$0xff]  ;;  %v33_v34 = vld [vmem:[%s694_s0 + $0xc8] sm:$0xff] }
  0x1f   :  { %v189_v30 = vmax.f32 %v188_v19, %v126_v4  ;;  %v202_v31 = vmax.f32 %v201_v22, %v86_v10  ;;  %v215_v32 = vmax.f32 %v214_v24, %v46_v18  ;;  %v19_v33 = vld [vmem:[%s694_s0 + $0x58] sm:$0xff]  ;;  %v114_v37 = vld [vmem:[%s694_s0 + $0x350] sm:$0xff]  ;;  %v128_v38 = vld [vmem:[%s694_s0 + $0x3c0] sm:$0xff] }
  0x20   :  { %v47_v35 = vld [vmem:[%s694_s0 + $0x138] sm:$0xff]  ;;  %v196_v36 = vmax.f32 %v195_v25, %v113_v20  ;;  %v209_v39 = vmax.f32 %v208_v28, %v73_v23  ;;  %v74_v40 = vld [vmem:[%s694_s0 + $0x210] sm:$0xff]  ;;  %v222_v41 = vmax.f32 %v19_v33, %v33_v34  ;;  %v101_v43 = vld [vmem:[%s694_s0 + $0x2e8] sm:$0xff] }
  0x21   :  { %252 = vst [vmem:[%s695_s1 + $0x30] sm:$0xff] %v189_v30  ;;  %v203_v42 = vmax.f32 %v202_v31, %v100_v26  ;;  %v88_v44 = vld [vmem:[%s694_s0 + $0x280] sm:$0xff]  ;;  %v216_v45 = vmax.f32 %v215_v32, %v60_v29  ;;  %v61_v46 = vld [vmem:[%s694_s0 + $0x1a8] sm:$0xff]  ;;  %v34_v51 = vld [vmem:[%s694_s0 + $0xd0] sm:$0xff] }
  0x22   :  { %v197_v47 = vmax.f32 %v196_v36, %v127_v21  ;;  %v210_v48 = vmax.f32 %v209_v39, %v87_v27  ;;  %v223_v49 = vmax.f32 %v222_v41, %v47_v35  ;;  %v20_v50 = vld [vmem:[%s694_s0 + $0x60] sm:$0xff]  ;;  %v115_v54 = vld [vmem:[%s694_s0 + $0x358] sm:$0xff]  ;;  %v129_v55 = vld [vmem:[%s694_s0 + $0x3c8] sm:$0xff] }
  0x23   :  { %v48_v52 = vld [vmem:[%s694_s0 + $0x140] sm:$0xff]  ;;  %v204_v53 = vmax.f32 %v203_v42, %v114_v37  ;;  %v217_v56 = vmax.f32 %v216_v45, %v74_v40  ;;  %v75_v57 = vld [vmem:[%s694_s0 + $0x218] sm:$0xff]  ;;  %v230_v58 = vmax.f32 %v20_v50, %v34_v51  ;;  %v102_v60 = vld [vmem:[%s694_s0 + $0x2f0] sm:$0xff] }
  0x24   :  { %253 = vst [vmem:[%s695_s1 + $0x38] sm:$0xff] %v197_v47  ;;  %v211_v59 = vmax.f32 %v210_v48, %v101_v43  ;;  %v89_v61 = vld [vmem:[%s694_s0 + $0x288] sm:$0xff]  ;;  %v224_v62 = vmax.f32 %v223_v49, %v61_v46  ;;  %v62_v63 = vld [vmem:[%s694_s0 + $0x1b0] sm:$0xff]  ;;  %v35_v4 = vld [vmem:[%s694_s0 + $0xd8] sm:$0xff] }
  0x25   :  { %v205_v0 = vmax.f32 %v204_v53, %v128_v38  ;;  %v218_v1 = vmax.f32 %v217_v56, %v88_v44  ;;  %v231_v2 = vmax.f32 %v230_v58, %v48_v52  ;;  %v21_v3 = vld [vmem:[%s694_s0 + $0x68] sm:$0xff]  ;;  %v116_v7 = vld [vmem:[%s694_s0 + $0x360] sm:$0xff]  ;;  %v103_v12 = vld [vmem:[%s694_s0 + $0x2f8] sm:$0xff] }
  0x26   :  { %v49_v5 = vld [vmem:[%s694_s0 + $0x148] sm:$0xff]  ;;  %v212_v6 = vmax.f32 %v211_v59, %v115_v54  ;;  %v225_v8 = vmax.f32 %v224_v62, %v75_v57  ;;  %v76_v9 = vld [vmem:[%s694_s0 + $0x220] sm:$0xff]  ;;  %v238_v10 = vmax.f32 %v21_v3, %v35_v4  ;;  %v63_v14 = vld [vmem:[%s694_s0 + $0x1b8] sm:$0xff] }
  0x27   :  { %254 = vst [vmem:[%s695_s1 + $0x40] sm:$0xff] %v205_v0  ;;  %v219_v11 = vmax.f32 %v218_v1, %v102_v60  ;;  %v232_v13 = vmax.f32 %v231_v2, %v62_v63  ;;  %v130_v16 = vld [vmem:[%s694_s0 + $0x3d0] sm:$0xff]  ;;  %v117_v21 = vld [vmem:[%s694_s0 + $0x368] sm:$0xff]  ;;  %v104_v25 = vld [vmem:[%s694_s0 + $0x300] sm:$0xff] }
  0x28   :  { %v213_v15 = vmax.f32 %v212_v6, %v129_v55  ;;  %v226_v17 = vmax.f32 %v225_v8, %v89_v61  ;;  %v90_v18 = vld [vmem:[%s694_s0 + $0x290] sm:$0xff]  ;;  %v239_v19 = vmax.f32 %v238_v10, %v49_v5  ;;  %v77_v23 = vld [vmem:[%s694_s0 + $0x228] sm:$0xff]  ;;  %v131_v28 = vld [vmem:[%s694_s0 + $0x3d8] sm:$0xff] }
  0x29   :  { %v220_v20 = vmax.f32 %v219_v11, %v116_v7  ;;  %v233_v22 = vmax.f32 %v232_v13, %v76_v9  ;;  %v91_v30 = vld [vmem:[%s694_s0 + $0x298] sm:$0xff]  ;;  %v118_v32 = vld [vmem:[%s694_s0 + $0x370] sm:$0xff]  ;;  %v105_v35 = vld [vmem:[%s694_s0 + $0x308] sm:$0xff] }
  0x2a   :  { %255 = vst [vmem:[%s695_s1 + $0x48] sm:$0xff] %v213_v15  ;;  %v227_v24 = vmax.f32 %v226_v17, %v103_v12  ;;  %v240_v26 = vmax.f32 %v239_v19, %v63_v14  ;;  %v132_v37 = vld [vmem:[%s694_s0 + $0x3e0] sm:$0xff]  ;;  %v119_v40 = vld [vmem:[%s694_s0 + $0x378] sm:$0xff]  ;;  %v133_v43 = vld [vmem:[%s694_s0 + $0x3e8] sm:$0xff] }
  0x2b   :  { %v221_v27 = vmax.f32 %v220_v20, %v130_v16  ;;  %v234_v29 = vmax.f32 %v233_v22, %v90_v18 }
  0x2c   :  { %v228_v31 = vmax.f32 %v227_v24, %v117_v21  ;;  %v241_v33 = vmax.f32 %v240_v26, %v77_v23 }
  0x2d   :  { %256 = vst [vmem:[%s695_s1 + $0x50] sm:$0xff] %v221_v27  ;;  %v235_v34 = vmax.f32 %v234_v29, %v104_v25 }
  0x2e   :  { %v229_v36 = vmax.f32 %v228_v31, %v131_v28  ;;  %v242_v38 = vmax.f32 %v241_v33, %v91_v30 }
  0x2f   :  { %v236_v39 = vmax.f32 %v235_v34, %v118_v32 }
  0x30   :  { %257 = vst [vmem:[%s695_s1 + $0x58] sm:$0xff] %v229_v36  ;;  %v243_v41 = vmax.f32 %v242_v38, %v105_v35 }
  0x31   :  { %v237_v42 = vmax.f32 %v236_v39, %v132_v37 }
  0x32   :  { %v244_v44 = vmax.f32 %v243_v41, %v119_v40 }
  0x33   :  { %258 = vst [vmem:[%s695_s1 + $0x60] sm:$0xff] %v237_v42 }
  0x34   :  { %v245_v45 = vmax.f32 %v244_v44, %v133_v43 }
  0x36   :  { %259 = vst [vmem:[%s695_s1 + $0x68] sm:$0xff] %v245_v45 }

// kernel: lw_cbam_alexnet_forward.31
= control target key start
LH: loop header
LB: loop body
LE: loop exit
PB: predicated region body
PF: predicated region fallthrough
CT: control target
= control target key end

     0   :  { %s596_s12 = smov 0   ;;  %s872_s0 = inlined_call_operand.vmem [shape: f32[2,25,192], index: 0, kind: input, shape index: {}]   ;;  %s873_s1 = inlined_call_operand.vmem [shape: f32[192,128], index: 1, kind: input, shape index: {}]   ;;  %s874_s2 = inlined_call_operand.vmem [shape: f32[128,192], index: 2, kind: input, shape index: {}]   ;;  %s875_s3 = inlined_call_operand.vmem [shape: f32[2,25,192], index: 3, kind: output, shape index: {}]  }
   0x1 LB: > { %s535_s13 = sadd.s32 4294967295, %s573_s12   ;;  %p539_p0 = scmp.ge.s32.totalorder %s573_s12, 1  ;;  %s573_s12 = sphi %s596_s12, %s13_s12  }
   0x2   : > { %p137_p1 = scmp.lt.s32.totalorder %s573_s12, 3 }
   0x4   : > { %p138_p2 = pnand %p539_p0, %p137_p1 }
   0x5   : > { %p161_p3 = scmp.lt.s32.totalorder (!%p138_p2), %s535_s13, 1 }
   0x6   : > { %141 = sbr.rel (%p138_p2) target bundleno = 496 (0x1f0), region = 32 }
   0xb   : > { %v250_v0 = vld [vmem:[%s873_s1 + $0x78] sm:$0xff]  ;;  %v575_v1 = vmov 0.0   ;;  %v249_v2 = vld [vmem:[%s873_s1 + $0x70] sm:$0xff]  ;;  %s877_s13 = smov (!%p161_p3, %s535_s13), 1  ;;  %v248_v3 = vld [vmem:[%s873_s1 + $0x68] sm:$0xff]  ;;  %vm190_vm0 = vcmask 523264  }
   0xc   : > { %262 = vmatprep.subr.mxu0 %v575_v1  ;;  %429 = vmatprep.mubr.f32.mxu1 %v575_v1  ;;  %s548_s20 = sshll.u32 %s877_s13, 6  ;;  %v247_v4 = vld [vmem:[%s873_s1 + $0x60] sm:$0xff]  ;;  %v246_v5 = vld [vmem:[%s873_s1 + $0x58] sm:$0xff]  ;;  %v245_v6 = vld [vmem:[%s873_s1 + $0x50] sm:$0xff]  ;;  %vm181_vm1 = vcmask 1040384   ;;  %vm196_vm2 = vcmask 516096  }
   0xd   : > { %263 = vmatpush1.msra.mxu0 %v250_v0  ;;  %s165_s25 = scalar_lea.vmem %s872_s0, %s548_s20  ;;  %v244_v20 = vld [vmem:[%s873_s1 + $0x48] sm:$0xff]  ;;  %v364_v25 = vld [vmem:[%s874_s2 + $0xf8] sm:$0xff]  ;;  %v363_v26 = vld [vmem:[%s874_s2 + $0xf0] sm:$0xff]  ;;  %vm232_vm3 = vcmask 1041408   ;;  %s170_s9 = scalar_lea.vmem %s875_s3, %s548_s20 }
   0xe   : > { %264 = vmatprep.subr.mxu0 %v575_v1  ;;  %v635_v7 = vld [vmem:[%s165_s25] sm:$0xff]  ;;  %v637_v8 = vld [vmem:[%s165_s25 + $0x8] sm:$0xff]  ;;  %v639_v9 = vld [vmem:[%s165_s25 + $0x10] sm:$0xff]  ;;  %365 = vmatprep.subr.mxu1 %v364_v25 }
   0xf   : > { %265 = vmatpush1.msra.mxu0 %v249_v2  ;;  %v642_v10 = vld [vmem:[%s165_s25 + $0x18] sm:$0xff]  ;;  %v644_v11 = vld [vmem:[%s165_s25 + $0x20] sm:$0xff]  ;;  %v646_v12 = vld [vmem:[%s165_s25 + $0x28] sm:$0xff]  ;;  %v179_v13 = vadd.f32 %v639_v9, %v635_v7  ;;  %v191_v14 = vsel %vm190_vm0, %v637_v8, 0.0  ;;  %v217_v15 = vsel %vm190_vm0, %v637_v8, -inf  ;;  %366 = vmatpush1.msra.mxu1 %v363_v26 }
  0x10   : > { %266 = vmatprep.subr.mxu0 %v575_v1  ;;  %v654_v16 = vld [vmem:[%s165_s25 + $0x30] sm:$0x1]  ;;  %v656_v17 = vld [vmem:[%s165_s25 + $0x38] sm:$0x1]  ;;  %v192_v18 = vsel %vm190_vm0, %v642_v10, 0.0  ;;  %v194_v19 = vsel %vm190_vm0, %v646_v12, 0.0  ;;  %v207_v34 = vmax.f32 %v635_v7, %v644_v11 }
  0x11   : > { %267 = vmatpush1.msra.mxu0 %v248_v3  ;;  %v180_v21 = vadd.f32 %v179_v13, %v644_v11  ;;  %v182_v22 = vsel %vm181_vm1, %v654_v16, 0.0  ;;  %v193_v23 = vadd.f32 %v192_v18, %v191_v14  ;;  %v197_v24 = vsel %vm196_vm2, %v656_v17, 0.0  ;;  %v362_v31 = vld [vmem:[%s874_s2 + $0xe8] sm:$0xff]  ;;  %v243_v32 = vld [vmem:[%s873_s1 + $0x40] sm:$0xff]  ;;  %v360_v40 = vld [vmem:[%s874_s2 + $0xd8] sm:$0xff] }
  0x12   : > { %268 = vmatprep.subr.mxu0 %v575_v1  ;;  %v208_v27 = vsel %vm181_vm1, %v654_v16, -inf  ;;  %v218_v28 = vsel %vm190_vm0, %v642_v10, -inf  ;;  %v219_v29 = vsel %vm190_vm0, %v646_v12, -inf  ;;  %v221_v30 = vsel %vm196_vm2, %v656_v17, -inf  ;;  %v361_v36 = vld [vmem:[%s874_s2 + $0xe0] sm:$0xff]  ;;  %v242_v41 = vld [vmem:[%s873_s1 + $0x38] sm:$0xff]  ;;  %367 = vmatprep.subr.mxu1 %v362_v31 }
  0x13   : > { %269 = vmatpush1.msra.mxu0 %v247_v4  ;;  %v195_v33 = vadd.f32 %v194_v19, %v193_v23  ;;  %v220_v35 = vmax.f32 %v217_v15, %v219_v29  ;;  %v183_v37 = vadd.f32 %v182_v22, %v180_v21  ;;  %v209_v38 = vmax.f32 %v639_v9, %v208_v27  ;;  %v359_v43 = vld [vmem:[%s874_s2 + $0xd0] sm:$0xff]  ;;  %v358_v45 = vld [vmem:[%s874_s2 + $0xc8] sm:$0xff]  ;;  %v357_v48 = vld [vmem:[%s874_s2 + $0xc0] sm:$0xff] }
  0x14   : > { %270 = vmatprep.subr.mxu0 %v575_v1  ;;  %v222_v39 = vmax.f32 %v218_v28, %v221_v30  ;;  %368 = vmatpush1.msra.mxu1 %v361_v36  ;;  %v241_v46 = vld [vmem:[%s873_s1 + $0x30] sm:$0xff]  ;;  %v356_v52 = vld [vmem:[%s874_s2 + $0xb8] sm:$0xff]  ;;  %v240_v53 = vld [vmem:[%s873_s1 + $0x28] sm:$0xff] }
  0x15   : > { %271 = vmatpush1.msra.mxu0 %v246_v5  ;;  %v198_v42 = vadd.f32 %v197_v24, %v195_v33  ;;  %369 = vmatprep.subr.mxu1 %v360_v40  ;;  %v184_v49 = vrot.slane %v183_v37, 4  ;;  %v210_v50 = vmax.f32 %v207_v34, %v209_v38  ;;  %v355_v55 = vld [vmem:[%s874_s2 + $0xb0] sm:$0xff]  ;;  %v354_v57 = vld [vmem:[%s874_s2 + $0xa8] sm:$0xff]  ;;  %v239_v58 = vld [vmem:[%s873_s1 + $0x20] sm:$0xff] }
  0x16   : > { %272 = vmatprep.subr.mxu0 %v575_v1  ;;  %v223_v44 = vmax.f32 %v220_v35, %v222_v39  ;;  %370 = vmatpush1.msra.mxu1 %v359_v43  ;;  %v353_v60 = vld [vmem:[%s874_s2 + $0xa0] sm:$0xff]  ;;  %v352_v0 = vld [vmem:[%s874_s2 + $0x98] sm:$0xff]  ;;  %v351_v4 = vld [vmem:[%s874_s2 + $0x90] sm:$0xff] }
  0x17   : > { %273 = vmatpush1.msra.mxu0 %v245_v6  ;;  %v199_v47 = vrot.slane %v198_v42, 4  ;;  %371 = vmatprep.subr.mxu1 %v358_v45  ;;  %v185_v62 = vadd.f32 %v184_v49, %v183_v37  ;;  %v211_v63 = vrot.slane %v210_v50, 4  ;;  %v238_v2 = vld [vmem:[%s873_s1 + $0x18] sm:$0xff]  ;;  %v350_v6 = vld [vmem:[%s874_s2 + $0x88] sm:$0xff]  ;;  %v237_v13 = vld [vmem:[%s873_s1 + $0x10] sm:$0xff] }
  0x18   : > { %274 = vmatprep.subr.mxu0 %v575_v1  ;;  %v224_v51 = vrot.slane %v223_v44, 4  ;;  %372 = vmatpush1.msra.mxu1 %v357_v48  ;;  %v349_v15 = vld [vmem:[%s874_s2 + $0x80] sm:$0xff]  ;;  %v348_v21 = vld [vmem:[%s874_s2 + $0x78] sm:$0xff]  ;;  %v236_v22 = vld [vmem:[%s873_s1 + $0x8] sm:$0xff] }
  0x19   : > { %275 = vmatpush1.msra.mxu0 %v244_v20  ;;  %v200_v54 = vadd.f32 %v199_v47, %v198_v42  ;;  %373 = vmatprep.subr.mxu1 %v356_v52  ;;  %v186_v19 = vrot.slane %v185_v62, 2  ;;  %v212_v20 = vmax.f32 %v210_v50, %v211_v63  ;;  %v347_v24 = vld [vmem:[%s874_s2 + $0x70] sm:$0xff]  ;;  %v346_v26 = vld [vmem:[%s874_s2 + $0x68] sm:$0xff]  ;;  %v235_v27 = vld [vmem:[%s873_s1] sm:$0xff] }
  0x1a   : > { %276 = vmatprep.subr.mxu0 %v575_v1  ;;  %v225_v56 = vmax.f32 %v223_v44, %v224_v51  ;;  %374 = vmatpush1.msra.mxu1 %v355_v55  ;;  %v345_v29 = vld [vmem:[%s874_s2 + $0x60] sm:$0xff]  ;;  %v344_v34 = vld [vmem:[%s874_s2 + $0x58] sm:$0xff]  ;;  %v343_v36 = vld [vmem:[%s874_s2 + $0x50] sm:$0xff] }
  0x1b   : > { %277 = vmatpush1.msra.mxu0 %v243_v32  ;;  %v201_v59 = vrot.slane %v200_v54, 2  ;;  %375 = vmatprep.subr.mxu1 %v354_v57  ;;  %v187_v30 = vadd.f32 %v186_v19, %v185_v62  ;;  %v213_v31 = vrot.slane %v212_v20, 2  ;;  %v258_v32 = vld [vmem:[%s873_s1 + $0xb8] sm:$0xff]  ;;  %v257_v37 = vld [vmem:[%s873_s1 + $0xb0] sm:$0xff]  ;;  %v342_v38 = vld [vmem:[%s874_s2 + $0x48] sm:$0xff] }
  0x1c   : > { %278 = vmatprep.subr.mxu0 %v575_v1  ;;  %v226_v61 = vrot.slane %v225_v56, 2  ;;  %376 = vmatpush1.msra.mxu1 %v353_v60  ;;  %v256_v42 = vld [vmem:[%s873_s1 + $0xa8] sm:$0xff]  ;;  %v340_v43 = vld [vmem:[%s874_s2 + $0x38] sm:$0xff]  ;;  %v339_v44 = vld [vmem:[%s874_s2 + $0x30] sm:$0xff] }
  0x1d   : > { %279 = vmatpush1.msra.mxu0 %v242_v41  ;;  %v202_v3 = vadd.f32 %v201_v59, %v200_v54  ;;  %377 = vmatprep.subr.mxu1 %v352_v0  ;;  %v188_v39 = vrot.slane %v187_v30, 1  ;;  %v214_v40 = vmax.f32 %v212_v20, %v213_v31  ;;  %v341_v41 = vld [vmem:[%s874_s2 + $0x40] sm:$0xff]  ;;  %v254_v50 = vld [vmem:[%s873_s1 + $0x98] sm:$0xff]  ;;  %v253_v52 = vld [vmem:[%s873_s1 + $0x90] sm:$0xff] }
  0x1e   : > { %280 = vmatprep.subr.mxu0 %v575_v1  ;;  %v227_v5 = vmax.f32 %v225_v56, %v226_v61  ;;  %378 = vmatpush1.msra.mxu1 %v351_v4  ;;  %v255_v45 = vld [vmem:[%s873_s1 + $0xa0] sm:$0xff]  ;;  %v336_v51 = vld [vmem:[%s874_s2 + $0x18] sm:$0xff]  ;;  %v252_v55 = vld [vmem:[%s873_s1 + $0x88] sm:$0xff] }
  0x1f   : > { %281 = vmatpush1.msra.mxu0 %v241_v46  ;;  %v203_v14 = vrot.slane %v202_v3, 1  ;;  %379 = vmatprep.subr.mxu1 %v350_v6  ;;  %v338_v46 = vld [vmem:[%s874_s2 + $0x28] sm:$0xff]  ;;  %v189_v47 = vadd.f32 %v188_v39, %v187_v30  ;;  %v215_v48 = vrot.slane %v214_v40, 1  ;;  %v337_v49 = vld [vmem:[%s874_s2 + $0x20] sm:$0xff] }
  0x20   : > { %282 = vmatprep.subr.mxu0 %v575_v1  ;;  %v228_v18 = vrot.slane %v227_v5, 1  ;;  %380 = vmatpush1.msra.mxu1 %v349_v15  ;;  %v251_v56 = vld [vmem:[%s873_s1 + $0x80] sm:$0xff]  ;;  %v334_v59 = vld [vmem:[%s874_s2 + $0x8] sm:$0xff] }
  0x21   : > { %283 = vmatpush1.msra.mxu0 %v240_v53  ;;  %v204_v23 = vadd.f32 %v203_v14, %v202_v3  ;;  %381 = vmatprep.subr.mxu1 %v348_v21  ;;  %v205_v53 = vmul.f32 0.04, %v189_v47  ;;  %v216_v54 = vmax.f32 %v214_v40, %v215_v48  ;;  %v333_v60 = vld [vmem:[%s874_s2] sm:$0xff] }
  0x22   : > { %284 = vmatprep.subr.mxu0 %v575_v1  ;;  %v229_v25 = vmax.f32 %v227_v5, %v228_v18  ;;  %382 = vmatpush1.msra.mxu1 %v347_v24 }
  0x23   : > { %285 = vmatpush1.msra.mxu0 %v239_v58  ;;  %v206_v28 = vmul.f32 0.04, %v204_v23  ;;  %383 = vmatprep.subr.mxu1 %v346_v26  ;;  %v230_v57 = vsel %vm181_vm1, %v205_v53, %v216_v54  ;;  %v335_v58 = vld [vmem:[%s874_s2 + $0x10] sm:$0xff] }
  0x24   : > { %286 = vmatprep.subr.mxu0 %v575_v1  ;;  %384 = vmatpush1.msra.mxu1 %v345_v29 }
  0x25   : > { %287 = vmatpush1.msra.mxu0 %v238_v2  ;;  %v231_v33 = vsel %vm181_vm1, %v206_v28, %v229_v25  ;;  %385 = vmatprep.subr.mxu1 %v344_v34 }
  0x26   : > { %288 = vmatprep.subr.mxu0 %v575_v1  ;;  %v234_v35 = vsel %vm232_vm3, %v231_v33, 0.0  ;;  %386 = vmatpush1.msra.mxu1 %v343_v36 }
  0x27   : > { %289 = vmatpush1.msra.mxu0 %v237_v13  ;;  %544 = vmatprep.mubr.msk.f32.mxu0 %vm190_vm0, %v234_v35 }
  0x28   : > { %290 = vmatprep.subr.mxu0 %v575_v1  ;;  %387 = vmatprep.subr.mxu1 %v342_v38 }
  0x29   : > { %291 = vmatpush1.msra.mxu0 %v236_v22  ;;  %388 = vmatpush1.msra.mxu1 %v341_v41  ;;  %v456_v22 = vlaneseq }
  0x2a   : > { %292 = vmatprep.subr.mxu0 %v575_v1  ;;  %389 = vmatprep.subr.mxu1 %v340_v43 }
  0x2b   : > { %293 = vmatpush1.msra.mxu0 %v235_v27  ;;  %390 = vmatpush1.msra.mxu1 %v339_v44  ;;  %v457_v23 = vshrl.u32 %v456_v22, 7 }
  0x2c   : > { %310 = vmatprep.subr.mxu0 %v575_v1  ;;  %391 = vmatprep.subr.mxu1 %v338_v46 }
  0x2d   : > { %311 = vmatpush2.msra.mxu0 %v258_v32  ;;  %392 = vmatpush1.msra.mxu1 %v337_v49  ;;  %v458_v24 = vsub.s32 0, %v457_v23 }
  0x2e   : > { %312 = vmatprep.subr.mxu0 %v575_v1  ;;  %393 = vmatprep.subr.mxu1 %v336_v51 }
  0x2f   : > { %313 = vmatpush2.msra.mxu0 %v257_v37  ;;  %394 = vmatpush1.msra.mxu1 %v335_v58 }
  0x30   : > { %314 = vmatprep.subr.mxu0 %v575_v1  ;;  %395 = vmatprep.subr.mxu1 %v334_v59 }
  0x31   : > { %315 = vmatpush2.msra.mxu0 %v256_v42  ;;  %396 = vmatpush1.msra.mxu1 %v333_v60 }
  0x32   : > { %316 = vmatprep.subr.mxu0 %v575_v1 }
  0x33   : > { %317 = vmatpush2.msra.mxu0 %v255_v45 }
  0x34   : > { %318 = vmatprep.subr.mxu0 %v575_v1 }
  0x35   : > { %319 = vmatpush2.msra.mxu0 %v254_v50 }
  0x36   : > { %320 = vmatprep.subr.mxu0 %v575_v1 }
  0x37   : > { %321 = vmatpush2.msra.mxu0 %v253_v52 }
  0x38   : > { %322 = vmatprep.subr.mxu0 %v575_v1 }
  0x39   : > { %323 = vmatpush2.msra.mxu0 %v252_v55 }
  0x3a   : > { %324 = vmatprep.subr.mxu0 %v575_v1 }
  0x3b   : > { %325 = vmatpush2.msra.mxu0 %v251_v56 }
  0x3c   : > { %545 = vmatmul.mubr.msk.f32.vlgmr.msra.gmra.mxu0 %vm232_vm3, %v230_v57 }
  0xfc   : > { %v328_v61 = vpop.f32.mrf.mxu0 }
  0xfd   : > { %v332_v1 = vmax.f32 %v328_v61, 0.0 }
  0xfe   : > { %v330_v62 = vpop.f32.mrf.mxu0 }
  0xff   : > { %430 = vmatmul.mubr.f32.vlgmr.msra.gmra.mxu1 %v332_v1 }
 0x1bf   : > { %v431_v63 = vpop.f32.mrf.mxu1 }
 0x1c0   : > { %v438_v0 = vrot.slane %v431_v63, 1 }
 0x1c1   : > { %v433_v2 = vpop.f32.mrf.mxu1 }
 0x1c2   : > { %v442_v3 = vadd.f32 %v438_v0, %v431_v63  ;;  %v439_v4 = vrot.slane %v433_v2, 1 }
 0x1c4   : > { %v444_v5 = vsub.f32 0.0, %v442_v3  ;;  %v443_v6 = vadd.f32 %v439_v4, %v433_v2 }
 0x1c6   : > { %v446_v13 = vmul.f32 1.442695, %v444_v5  ;;  %v445_v14 = vsub.f32 0.0, %v443_v6 }
 0x1c8   : > { %559 = vpow2.f32 %v446_v13  ;;  %v448_v15 = vmul.f32 1.442695, %v445_v14 }
 0x1ca   : > { %561 = vpow2.f32 %v448_v15 }
 0x1d5   : > { %v560_v18 = vpop.eup %559 }
 0x1d6   : > { %v450_v19 = vadd.f32 1.0, %v560_v18 }
 0x1d7   : > { %v562_v20 = vpop.eup %561 }
 0x1d8   : > { %563 = vrcp.f32 %v450_v19  ;;  %v451_v21 = vadd.f32 1.0, %v562_v20 }
 0x1da   : > { %565 = vrcp.f32 %v451_v21 }
 0x1e5   : > { %v564_v25 = vpop.eup %563 }
 0x1e6   : > { %v459_v26 = vrot.slane %v564_v25, %v458_v24 }
 0x1e7   : > { %v566_v27 = vpop.eup %565 }
 0x1e8   : > { %v464_v28 = vmul.f32 %v459_v26, %v635_v7  ;;  %v466_v29 = vmul.f32 %v459_v26, %v639_v9  ;;  %v468_v30 = vmul.f32 %v459_v26, %v644_v11  ;;  %v470_v31 = vmul.f32 %v459_v26, %v654_v16 }
 0x1e9   : > { %v463_v32 = vrot.slane %v566_v27, %v458_v24 }
 0x1ea   : > { %472 = vst [vmem:[%s170_s9] sm:$0xff] %v464_v28  ;;  %474 = vst [vmem:[%s170_s9 + $0x10] sm:$0xff] %v466_v29 }
 0x1eb   : > { %476 = vst [vmem:[%s170_s9 + $0x20] sm:$0xff] %v468_v30  ;;  %478 = vst [vmem:[%s170_s9 + $0x30] sm:$0x1] %v470_v31  ;;  %v465_v33 = vmul.f32 %v463_v32, %v637_v8  ;;  %v467_v34 = vmul.f32 %v463_v32, %v642_v10  ;;  %v469_v35 = vmul.f32 %v463_v32, %v646_v12 }
 0x1ec   : > { %v471_v36 = vmul.f32 %v463_v32, %v656_v17 }
 0x1ed   : > { %473 = vst.msk [vmem:[%s170_s9 + $0x8] sm:$0xff] %vm190_vm0, %v465_v33  ;;  %475 = vst.msk [vmem:[%s170_s9 + $0x18] sm:$0xff] %vm190_vm0, %v467_v34 }
 0x1ee   : > { %477 = vst.msk [vmem:[%s170_s9 + $0x28] sm:$0xff] %vm190_vm0, %v469_v35 }
 0x1ef   : > { %479 = vst.msk [vmem:[%s170_s9 + $0x38] sm:$0x1] %vm196_vm2, %v471_v36 }
 0x1f0 PF: > { %s13_s12 = sadd.s32 1, %s573_s12  }
 0x1f1   : > { %p10_p4 = scmp.ge.s32.totalorder %s13_s12, 4  }
 0x1f3   :  { %12 = sbr.rel (!%p10_p4) target bundleno = 1 (0x1), region = 62 }

// kernel: lw_cbam_alexnet_forward.33
= control target key start
LH: loop header
LB: loop body
LE: loop exit
PB: predicated region body
PF: predicated region fallthrough
CT: control target
= control target key end

     0   :  { %v102_v0 = vmov 0   ;;  %s223_s1 = inlined_call_operand.vmem [shape: f32[56,1], index: 1, kind: input, shape index: {}]   ;;  %s224_s0 = inlined_call_operand.vmem [shape: f32[56,256], index: 0, kind: input, shape index: {}]   ;;  %s225_s2 = inlined_call_operand.vmem [shape: f32[56,256], index: 2, kind: output, shape index: {}]  }
   0x1   :  { %101 = vset.pattern.permute.xlu1 %v102_v0  ;;  %100 = vset.pattern.permute.xlu0 %v102_v0  ;;  %v27_v1 = vld [vmem:[%s223_s1 + $0x10] sm:$0xff]  ;;  %v25_v2 = vld [vmem:[%s223_s1] sm:$0xff]  ;;  %v28_v3 = vld [vmem:[%s223_s1 + $0x18] sm:$0xff] }
   0x2   :  { %44 = vperm.xlu1 %101, %v27_v1   ;;  %34 = vperm.xlu0 %100, %v25_v2   ;;  %v26_v4 = vld [vmem:[%s223_s1 + $0x8] sm:$0xff]  ;;  %v29_v6 = vld [vmem:[%s223_s1 + $0x20] sm:$0xff]  ;;  %v31_v7 = vld [vmem:[%s223_s1 + $0x30] sm:$0xff] }
   0x3   :  { %v30_v5 = vld [vmem:[%s223_s1 + $0x28] sm:$0xff]  ;;  %v15_v8 = vld [vmem:[%s224_s0 + $0x20] sm:$0xff]  ;;  %v17_v18 = vld [vmem:[%s224_s0 + $0x30] sm:$0xff] }
   0x4   :  { %v16_v9 = vld [vmem:[%s224_s0 + $0x28] sm:$0xff]  ;;  %v11_v10 = vld [vmem:[%s224_s0] sm:$0xff]  ;;  %v18_v19 = vld [vmem:[%s224_s0 + $0x38] sm:$0xff] }
   0x5   :  { %v12_v11 = vld [vmem:[%s224_s0 + $0x8] sm:$0xff]  ;;  %v13_v20 = vld [vmem:[%s224_s0 + $0x10] sm:$0xff]  ;;  %v14_v21 = vld [vmem:[%s224_s0 + $0x18] sm:$0xff] }
   0x6   :  { %49 = vperm.xlu1 %101, %v28_v3   ;;  %39 = vperm.xlu0 %100, %v26_v4   ;;  %v21_v28 = vld [vmem:[%s224_s0 + $0x50] sm:$0xff]  ;;  %v22_v29 = vld [vmem:[%s224_s0 + $0x58] sm:$0xff]  ;;  %v19_v30 = vld [vmem:[%s224_s0 + $0x40] sm:$0xff] }
   0x7   :  { %v20_v31 = vld [vmem:[%s224_s0 + $0x48] sm:$0xff]  ;;  %v23_v38 = vld [vmem:[%s224_s0 + $0x60] sm:$0xff] }
   0x8   :  { %v24_v39 = vld [vmem:[%s224_s0 + $0x68] sm:$0xff] }
   0xa   :  { %59 = vperm.xlu1 %101, %v30_v5   ;;  %54 = vperm.xlu0 %100, %v29_v6  }
   0xe   :  { %64 = vperm.xlu0 %100, %v31_v7  }
  0x7d   :  { %v45_v12 = vpop.permute.xlu1 %44  ;;  %v35_v13 = vpop.permute.xlu0 %34 }
  0x7e   :  { %v71_v14 = vmul.f32 %v45_v12, %v15_v8  ;;  %v72_v15 = vmul.f32 %v45_v12, %v16_v9  ;;  %v67_v16 = vmul.f32 %v35_v13, %v11_v10  ;;  %v68_v17 = vmul.f32 %v35_v13, %v12_v11 }
  0x80   :  { %85 = vst [vmem:[%s225_s2 + $0x20] sm:$0xff] %v71_v14  ;;  %86 = vst [vmem:[%s225_s2 + $0x28] sm:$0xff] %v72_v15 }
  0x81   :  { %81 = vst [vmem:[%s225_s2] sm:$0xff] %v67_v16  ;;  %82 = vst [vmem:[%s225_s2 + $0x8] sm:$0xff] %v68_v17  ;;  %v50_v22 = vpop.permute.xlu1 %49  ;;  %v40_v23 = vpop.permute.xlu0 %39 }
  0x82   :  { %v73_v24 = vmul.f32 %v50_v22, %v17_v18  ;;  %v74_v25 = vmul.f32 %v50_v22, %v18_v19  ;;  %v69_v26 = vmul.f32 %v40_v23, %v13_v20  ;;  %v70_v27 = vmul.f32 %v40_v23, %v14_v21 }
  0x84   :  { %87 = vst [vmem:[%s225_s2 + $0x30] sm:$0xff] %v73_v24  ;;  %88 = vst [vmem:[%s225_s2 + $0x38] sm:$0xff] %v74_v25 }
  0x85   :  { %83 = vst [vmem:[%s225_s2 + $0x10] sm:$0xff] %v69_v26  ;;  %84 = vst [vmem:[%s225_s2 + $0x18] sm:$0xff] %v70_v27  ;;  %v60_v32 = vpop.permute.xlu1 %59  ;;  %v55_v33 = vpop.permute.xlu0 %54 }
  0x86   :  { %v77_v34 = vmul.f32 %v60_v32, %v21_v28  ;;  %v78_v35 = vmul.f32 %v60_v32, %v22_v29  ;;  %v75_v36 = vmul.f32 %v55_v33, %v19_v30  ;;  %v76_v37 = vmul.f32 %v55_v33, %v20_v31 }
  0x88   :  { %91 = vst [vmem:[%s225_s2 + $0x50] sm:$0xff] %v77_v34  ;;  %92 = vst [vmem:[%s225_s2 + $0x58] sm:$0xff] %v78_v35 }
  0x89   :  { %89 = vst [vmem:[%s225_s2 + $0x40] sm:$0xff] %v75_v36  ;;  %90 = vst [vmem:[%s225_s2 + $0x48] sm:$0xff] %v76_v37  ;;  %v65_v40 = vpop.permute.xlu0 %64 }
  0x8a   :  { %v79_v41 = vmul.f32 %v65_v40, %v23_v38  ;;  %v80_v42 = vmul.f32 %v65_v40, %v24_v39 }
  0x8c   :  { %93 = vst [vmem:[%s225_s2 + $0x60] sm:$0xff] %v79_v41  ;;  %94 = vst [vmem:[%s225_s2 + $0x68] sm:$0xff] %v80_v42 }

// kernel: lw_cbam_alexnet_forward.32
= control target key start
LH: loop header
LB: loop body
LE: loop exit
PB: predicated region body
PF: predicated region fallthrough
CT: control target
= control target key end

     0   :  { %s466_s1 = inlined_call_operand.vmem [shape: bf16[128,128], index: 1, kind: input, shape index: {}]   ;;  %s467_s0 = inlined_call_operand.vmem [shape: bf16[56,128], index: 0, kind: input, shape index: {}]   ;;  %s468_s2 = inlined_call_operand.vmem [shape: f32[1,128], index: 2, kind: input, shape index: {}]   ;;  %s469_s3 = inlined_call_operand.vmem [shape: f32[56,128], index: 3, kind: output, shape index: {}]  }
   0x1   :  { %v346_v0 = vld [vmem:[%s466_s1 + $0x38] sm:$0xff]   ;;  %v347_v1 = vld [vmem:[%s466_s1 + $0x30] sm:$0xff]   ;;  %v348_v2 = vld [vmem:[%s466_s1 + $0x28] sm:$0xff]  }
   0x2   :  { %306 = vmatprep.subr.bf16.mxu0 %v346_v0  ;;  %330 = vmatprep.subr.bf16.mxu1 %v346_v0  ;;  %v349_v3 = vld [vmem:[%s466_s1 + $0x20] sm:$0xff]   ;;  %v355_v5 = vld [vmem:[%s467_s0 + $0x10] sm:$0xff]   ;;  %v350_v6 = vld [vmem:[%s466_s1 + $0x18] sm:$0xff]  }
   0x3   :  { %307 = vmatpush3.bf16.msra.mxu0 %v346_v0  ;;  %338 = vmatpush3.bf16.msra.mxu1 %v346_v0  ;;  %v354_v4 = vld [vmem:[%s467_s0] sm:$0xff]   ;;  %v351_v7 = vld [vmem:[%s466_s1 + $0x10] sm:$0xff]   ;;  %v352_v8 = vld [vmem:[%s466_s1 + $0x8] sm:$0xff]  }
   0x4   :  { %308 = vmatprep.subr.bf16.mxu0 %v347_v1  ;;  %331 = vmatprep.subr.bf16.mxu1 %v347_v1  ;;  %v353_v9 = vld [vmem:[%s466_s1] sm:$0xff]   ;;  %v356_v10 = vld [vmem:[%s467_s0 + $0x8] sm:$0xff]   ;;  %v357_v11 = vld [vmem:[%s467_s0 + $0x18] ss:$0 sps:$4 sm:$0xff]  }
   0x5   :  { %322 = vmatprep.mubr.bf16.mxu0 %v354_v4  ;;  %326 = vmatprep.mubr.bf16.mxu1 %v355_v5  ;;  %v293_v12 = vld [vmem:[%s468_s2] ss:$0 sm:$0xff] }
   0x7   :  { %309 = vmatpush3.bf16.msra.mxu0 %v347_v1  ;;  %339 = vmatpush3.bf16.msra.mxu1 %v347_v1 }
   0x8   :  { %310 = vmatprep.subr.bf16.mxu0 %v348_v2  ;;  %332 = vmatprep.subr.bf16.mxu1 %v348_v2 }
   0xb   :  { %311 = vmatpush3.bf16.msra.mxu0 %v348_v2  ;;  %340 = vmatpush3.bf16.msra.mxu1 %v348_v2 }
   0xc   :  { %312 = vmatprep.subr.bf16.mxu0 %v349_v3  ;;  %333 = vmatprep.subr.bf16.mxu1 %v349_v3 }
   0xf   :  { %313 = vmatpush3.bf16.msra.mxu0 %v349_v3  ;;  %341 = vmatpush3.bf16.msra.mxu1 %v349_v3 }
  0x10   :  { %314 = vmatprep.subr.bf16.mxu0 %v350_v6  ;;  %334 = vmatprep.subr.bf16.mxu1 %v350_v6 }
  0x13   :  { %315 = vmatpush3.bf16.msra.mxu0 %v350_v6  ;;  %342 = vmatpush3.bf16.msra.mxu1 %v350_v6 }
  0x14   :  { %316 = vmatprep.subr.bf16.mxu0 %v351_v7  ;;  %335 = vmatprep.subr.bf16.mxu1 %v351_v7 }
  0x17   :  { %317 = vmatpush3.bf16.msra.mxu0 %v351_v7  ;;  %343 = vmatpush3.bf16.msra.mxu1 %v351_v7 }
  0x18   :  { %318 = vmatprep.subr.bf16.mxu0 %v352_v8  ;;  %336 = vmatprep.subr.bf16.mxu1 %v352_v8 }
  0x1b   :  { %319 = vmatpush3.bf16.msra.mxu0 %v352_v8  ;;  %344 = vmatpush3.bf16.msra.mxu1 %v352_v8 }
  0x1c   :  { %320 = vmatprep.subr.bf16.mxu0 %v353_v9  ;;  %337 = vmatprep.subr.bf16.mxu1 %v353_v9 }
  0x1f   :  { %321 = vmatpush3.bf16.msra.mxu0 %v353_v9  ;;  %345 = vmatpush3.bf16.msra.mxu1 %v353_v9 }
  0x22   :  { %323 = vmatmul.mubr.bf16.vlgmr.msra.gmra.mxu0 %v356_v10  ;;  %327 = vmatmul.mubr.bf16.vlgmr.msra.gmra.mxu1 %v357_v11 }
  0xe2   :  { %v324_v13 = vpop.f32.mrf.mxu0  ;;  %v328_v14 = vpop.f32.mrf.mxu1 }
  0xe3   :  { %v223_v15 = vadd.f32 %v324_v13, %v293_v12  ;;  %v227_v16 = vadd.f32 %v328_v14, %v293_v12 }
  0xe4   :  { %v160_v17 = vpop.f32.mrf.mxu0  ;;  %v176_v18 = vpop.f32.mrf.mxu1 }
  0xe5   :  { %v230_v19 = vsub.f32 0.0, %v223_v15  ;;  %v234_v20 = vsub.f32 0.0, %v227_v16  ;;  %v221_v21 = vadd.f32 %v293_v12, %v160_v17  ;;  %v225_v22 = vadd.f32 %v293_v12, %v176_v18 }
  0xe6   :  { %v325_v23 = vpop.f32.mrf.mxu0  ;;  %v329_v24 = vpop.f32.mrf.mxu1 }
  0xe7   :  { %v239_v25 = vmul.f32 1.442695, %v230_v19  ;;  %v247_v26 = vmul.f32 1.442695, %v234_v20  ;;  %v228_v27 = vsub.f32 0.0, %v221_v21  ;;  %v232_v28 = vsub.f32 0.0, %v225_v22 }
  0xe8   :  { %v224_v29 = vadd.f32 %v325_v23, %v293_v12  ;;  %v163_v30 = vpop.f32.mrf.mxu0  ;;  %v179_v31 = vpop.f32.mrf.mxu1 }
  0xe9   :  { %358 = vpow2.f32 %v239_v25  ;;  %v235_v32 = vmul.f32 1.442695, %v228_v27  ;;  %v243_v33 = vmul.f32 1.442695, %v232_v28  ;;  %v222_v34 = vadd.f32 %v293_v12, %v163_v30 }
  0xea   :  { %360 = vpow2.f32 %v247_v26  ;;  %v231_v35 = vsub.f32 0.0, %v224_v29  ;;  %v226_v36 = vadd.f32 %v293_v12, %v179_v31 }
  0xeb   :  { %362 = vpow2.f32 %v235_v32  ;;  %v229_v37 = vsub.f32 0.0, %v222_v34 }
  0xec   :  { %364 = vpow2.f32 %v243_v33  ;;  %v241_v38 = vmul.f32 1.442695, %v231_v35  ;;  %v233_v39 = vsub.f32 0.0, %v226_v36 }
  0xed   :  { %v237_v40 = vmul.f32 1.442695, %v229_v37 }
  0xee   :  { %366 = vpow2.f32 %v241_v38  ;;  %v245_v41 = vmul.f32 1.442695, %v233_v39 }
  0xef   :  { %368 = vpow2.f32 %v237_v40 }
  0xf0   :  { %370 = vpow2.f32 %v245_v41 }
  0xf6   :  { %v359_v42 = vpop.eup %358 }
  0xf7   :  { %v361_v43 = vpop.eup %360  ;;  %v251_v44 = vadd.f32 1.0, %v359_v42 }
  0xf8   :  { %v363_v45 = vpop.eup %362  ;;  %v255_v46 = vadd.f32 1.0, %v361_v43 }
  0xf9   :  { %v365_v47 = vpop.eup %364  ;;  %372 = vrcp.f32 %v251_v44  ;;  %v249_v48 = vadd.f32 1.0, %v363_v45 }
  0xfa   :  { %374 = vrcp.f32 %v255_v46  ;;  %v253_v49 = vadd.f32 1.0, %v365_v47 }
  0xfb   :  { %v367_v50 = vpop.eup %366  ;;  %376 = vrcp.f32 %v249_v48 }
  0xfc   :  { %v369_v51 = vpop.eup %368  ;;  %378 = vrcp.f32 %v253_v49  ;;  %v252_v52 = vadd.f32 1.0, %v367_v50 }
  0xfd   :  { %v371_v53 = vpop.eup %370  ;;  %v250_v54 = vadd.f32 1.0, %v369_v51 }
  0xfe   :  { %380 = vrcp.f32 %v252_v52  ;;  %v254_v55 = vadd.f32 1.0, %v371_v53 }
  0xff   :  { %382 = vrcp.f32 %v250_v54 }
 0x100   :  { %384 = vrcp.f32 %v254_v55 }
 0x106   :  { %v373_v56 = vpop.eup %372 }
 0x107   :  { %v375_v57 = vpop.eup %374  ;;  %272 = vst [vmem:[%s469_s3 + $0x10] sm:$0xff] %v373_v56 }
 0x108   :  { %v377_v58 = vpop.eup %376  ;;  %276 = vst [vmem:[%s469_s3 + $0x30] sm:$0xff] %v375_v57 }
 0x109   :  { %v379_v59 = vpop.eup %378  ;;  %270 = vst [vmem:[%s469_s3] sm:$0xff] %v377_v58 }
 0x10a   :  { %274 = vst [vmem:[%s469_s3 + $0x20] sm:$0xff] %v379_v59 }
 0x10b   :  { %v381_v60 = vpop.eup %380 }
 0x10c   :  { %v383_v61 = vpop.eup %382  ;;  %273 = vst [vmem:[%s469_s3 + $0x18] sm:$0xff] %v381_v60 }
 0x10d   :  { %v385_v62 = vpop.eup %384  ;;  %271 = vst [vmem:[%s469_s3 + $0x8] sm:$0xff] %v383_v61 }
 0x10e   :  { %275 = vst [vmem:[%s469_s3 + $0x28] sm:$0xff] %v385_v62 }

// kernel: lw_cbam_alexnet_forward.34
= control target key start
LH: loop header
LB: loop body
LE: loop exit
PB: predicated region body
PF: predicated region fallthrough
CT: control target
= control target key end

     0   :  { %s597_s15 = smov 0   ;;  %s838_s0 = inlined_call_operand.vmem [shape: f32[2,25,192], index: 0, kind: input, shape index: {}]   ;;  %s839_s1 = inlined_call_operand.vmem [shape: f32[192,192], index: 1, kind: input, shape index: {}]   ;;  %s840_s2 = inlined_call_operand.vmem [shape: f32[1,192], index: 2, kind: input, shape index: {}]   ;;  %s841_s3 = inlined_call_operand.vmem [shape: f32[1,192], index: 3, kind: input, shape index: {}]   ;;  %s842_s4 = inlined_call_operand.vmem [shape: f32[2,25,192], index: 4, kind: output, shape index: {}]  }
   0x1 LB: > { %s537_s16 = sadd.s32 4294967295, %s570_s15   ;;  %p541_p0 = scmp.ge.s32.totalorder %s570_s15, 1  ;;  %s570_s15 = sphi %s597_s15, %s14_s15  }
   0x2   : > { %p162_p1 = scmp.lt.s32.totalorder %s570_s15, 3 }
   0x4   : > { %p163_p2 = pnand %p541_p0, %p162_p1 }
   0x5   : > { %p188_p3 = scmp.lt.s32.totalorder (!%p163_p2), %s537_s16, 1 }
   0x6   : > { %166 = sbr.rel (%p163_p2) target bundleno = 293 (0x125), region = 36 }
   0xb   : > { %v299_v0 = vld [vmem:[%s839_s1 + $0xf8] sm:$0xff]  ;;  %v298_v1 = vld [vmem:[%s839_s1 + $0xf0] sm:$0xff]  ;;  %v297_v2 = vld [vmem:[%s839_s1 + $0xe8] sm:$0xff]  ;;  %s844_s16 = smov (!%p188_p3, %s537_s16), 1  ;;  %vm217_vm0 = vcmask 523264   ;;  %vm208_vm1 = vcmask 1040384  }
   0xc   : > { %319 = vmatprep.subr.mxu0 %v299_v0  ;;  %v296_v3 = vld [vmem:[%s839_s1 + $0xe0] sm:$0xff]  ;;  %v295_v4 = vld [vmem:[%s839_s1 + $0xd8] sm:$0xff]  ;;  %v294_v5 = vld [vmem:[%s839_s1 + $0xd0] sm:$0xff]  ;;  %s550_s19 = sshll.u32 %s844_s16, 6  ;;  %vm223_vm2 = vcmask 516096   ;;  %vm265_vm3 = vcmask 1041408  }
   0xd   : > { %320 = vmatpush1.msra.mxu0 %v298_v1  ;;  %v293_v6 = vld [vmem:[%s839_s1 + $0xc8] sm:$0xff]  ;;  %v292_v7 = vld [vmem:[%s839_s1 + $0xc0] sm:$0xff]  ;;  %v291_v8 = vld [vmem:[%s839_s1 + $0xb8] sm:$0xff]  ;;  %s192_s28 = scalar_lea.vmem %s838_s0, %s550_s19  ;;  %s197_s30 = scalar_lea.vmem %s842_s4, %s550_s19 }
   0xe   : > { %321 = vmatprep.subr.mxu0 %v297_v2  ;;  %v290_v9 = vld [vmem:[%s839_s1 + $0xb0] sm:$0xff]  ;;  %v289_v10 = vld [vmem:[%s839_s1 + $0xa8] sm:$0xff]  ;;  %v288_v11 = vld [vmem:[%s839_s1 + $0xa0] sm:$0xff] }
   0xf   : > { %322 = vmatpush1.msra.mxu0 %v296_v3  ;;  %v287_v12 = vld [vmem:[%s839_s1 + $0x98] sm:$0xff]  ;;  %v286_v13 = vld [vmem:[%s839_s1 + $0x90] sm:$0xff]  ;;  %v285_v14 = vld [vmem:[%s839_s1 + $0x88] sm:$0xff] }
  0x10   : > { %323 = vmatprep.subr.mxu0 %v295_v4  ;;  %v284_v15 = vld [vmem:[%s839_s1 + $0x80] sm:$0xff]  ;;  %v283_v16 = vld [vmem:[%s839_s1 + $0x78] sm:$0xff]  ;;  %v282_v17 = vld [vmem:[%s839_s1 + $0x70] sm:$0xff] }
  0x11   : > { %324 = vmatpush1.msra.mxu0 %v294_v5  ;;  %v281_v18 = vld [vmem:[%s839_s1 + $0x68] sm:$0xff]  ;;  %v280_v19 = vld [vmem:[%s839_s1 + $0x60] sm:$0xff]  ;;  %v279_v20 = vld [vmem:[%s839_s1 + $0x58] sm:$0xff] }
  0x12   : > { %325 = vmatprep.subr.mxu0 %v293_v6  ;;  %v676_v21 = vld [vmem:[%s192_s28] sm:$0xff]  ;;  %v678_v22 = vld [vmem:[%s192_s28 + $0x8] sm:$0xff]  ;;  %v680_v23 = vld [vmem:[%s192_s28 + $0x10] sm:$0xff] }
  0x13   : > { %326 = vmatpush1.msra.mxu0 %v292_v7  ;;  %v682_v24 = vld [vmem:[%s192_s28 + $0x18] sm:$0xff]  ;;  %v684_v25 = vld [vmem:[%s192_s28 + $0x20] sm:$0xff]  ;;  %v686_v26 = vld [vmem:[%s192_s28 + $0x28] sm:$0xff]  ;;  %v206_v27 = vadd.f32 %v680_v23, %v676_v21  ;;  %v218_v28 = vsel %vm217_vm0, %v678_v22, 0.0  ;;  %v232_v29 = vmul.f32 %v676_v21, %v676_v21  ;;  %v233_v30 = vmul.f32 %v678_v22, %v678_v22 }
  0x14   : > { %327 = vmatprep.subr.mxu0 %v291_v8  ;;  %v696_v31 = vld [vmem:[%s192_s28 + $0x30] sm:$0x1]  ;;  %v698_v32 = vld [vmem:[%s192_s28 + $0x38] sm:$0x1]  ;;  %v219_v33 = vsel %vm217_vm0, %v682_v24, 0.0  ;;  %v221_v34 = vsel %vm217_vm0, %v686_v26, 0.0  ;;  %v234_v35 = vmul.f32 %v680_v23, %v680_v23  ;;  %v235_v36 = vmul.f32 %v682_v24, %v682_v24 }
  0x15   : > { %328 = vmatpush1.msra.mxu0 %v290_v9  ;;  %v278_v37 = vld [vmem:[%s839_s1 + $0x50] sm:$0xff]  ;;  %v207_v38 = vadd.f32 %v206_v27, %v684_v25  ;;  %v209_v39 = vsel %vm208_vm1, %v696_v31, 0.0  ;;  %v220_v40 = vadd.f32 %v219_v33, %v218_v28  ;;  %v224_v41 = vsel %vm223_vm2, %v698_v32, 0.0  ;;  %v277_v42 = vld [vmem:[%s839_s1 + $0x48] sm:$0xff]  ;;  %v276_v47 = vld [vmem:[%s839_s1 + $0x40] sm:$0xff] }
  0x16   : > { %329 = vmatprep.subr.mxu0 %v289_v10  ;;  %v236_v43 = vmul.f32 %v684_v25, %v684_v25  ;;  %v237_v44 = vmul.f32 %v686_v26, %v686_v26  ;;  %v238_v45 = vmul.f32 %v696_v31, %v696_v31  ;;  %v239_v46 = vmul.f32 %v698_v32, %v698_v32  ;;  %v275_v52 = vld [vmem:[%s839_s1 + $0x38] sm:$0xff]  ;;  %v274_v56 = vld [vmem:[%s839_s1 + $0x30] sm:$0xff]  ;;  %v273_v61 = vld [vmem:[%s839_s1 + $0x28] sm:$0xff] }
  0x17   : > { %330 = vmatpush1.msra.mxu0 %v288_v11  ;;  %v210_v48 = vadd.f32 %v209_v39, %v207_v38  ;;  %v222_v49 = vadd.f32 %v221_v34, %v220_v40  ;;  %v240_v50 = vadd.f32 %v234_v35, %v232_v29  ;;  %v250_v51 = vsel %vm217_vm0, %v233_v30, 0.0  ;;  %v272_v63 = vld [vmem:[%s839_s1 + $0x20] sm:$0xff]  ;;  %v271_v3 = vld [vmem:[%s839_s1 + $0x18] sm:$0xff]  ;;  %v270_v5 = vld [vmem:[%s839_s1 + $0x10] sm:$0xff] }
  0x18   : > { %331 = vmatprep.subr.mxu0 %v287_v12  ;;  %v242_v53 = vsel %vm208_vm1, %v238_v45, 0.0  ;;  %v251_v54 = vsel %vm217_vm0, %v235_v36, 0.0  ;;  %v253_v55 = vsel %vm217_vm0, %v237_v44, 0.0  ;;  %v255_v62 = vsel %vm223_vm2, %v239_v46, 0.0  ;;  %v269_v9 = vld [vmem:[%s839_s1 + $0x8] sm:$0xff]  ;;  %v268_v10 = vld [vmem:[%s839_s1] sm:$0xff] }
  0x19   : > { %332 = vmatpush1.msra.mxu0 %v286_v13  ;;  %v211_v57 = vrot.slane %v210_v48, 4  ;;  %v225_v58 = vadd.f32 %v224_v41, %v222_v49  ;;  %v241_v59 = vadd.f32 %v240_v50, %v236_v43  ;;  %v252_v60 = vadd.f32 %v251_v54, %v250_v51  ;;  %v312_v27 = vld [vmem:[%s839_s1 + $0x160] sm:$0xff]  ;;  %v311_v30 = vld [vmem:[%s839_s1 + $0x158] sm:$0xff]  ;;  %v310_v35 = vld [vmem:[%s839_s1 + $0x150] sm:$0xff] }
  0x1a   : > { %333 = vmatprep.subr.mxu0 %v285_v14  ;;  %v315_v14 = vld [vmem:[%s839_s1 + $0x178] sm:$0xff]  ;;  %v308_v38 = vld [vmem:[%s839_s1 + $0x140] sm:$0xff]  ;;  %v306_v44 = vld [vmem:[%s839_s1 + $0x130] sm:$0xff] }
  0x1b   : > { %334 = vmatpush1.msra.mxu0 %v284_v15  ;;  %v226_v0 = vrot.slane %v225_v58, 4  ;;  %v243_v1 = vadd.f32 %v242_v53, %v241_v59  ;;  %v254_v2 = vadd.f32 %v253_v55, %v252_v60  ;;  %v212_v4 = vadd.f32 %v211_v57, %v210_v48  ;;  %v307_v41 = vld [vmem:[%s839_s1 + $0x138] sm:$0xff]  ;;  %v305_v46 = vld [vmem:[%s839_s1 + $0x128] sm:$0xff]  ;;  %v302_v53 = vld [vmem:[%s839_s1 + $0x110] sm:$0xff] }
  0x1c   : > { %335 = vmatprep.subr.mxu0 %v283_v16  ;;  %v314_v16 = vld [vmem:[%s839_s1 + $0x170] sm:$0xff]  ;;  %v303_v49 = vld [vmem:[%s839_s1 + $0x118] sm:$0xff]  ;;  %v301_v54 = vld [vmem:[%s839_s1 + $0x108] sm:$0xff] }
  0x1d   : > { %336 = vmatpush1.msra.mxu0 %v282_v17  ;;  %v227_v6 = vadd.f32 %v226_v0, %v225_v58  ;;  %v244_v7 = vrot.slane %v243_v1, 4  ;;  %v256_v8 = vadd.f32 %v255_v62, %v254_v2  ;;  %v213_v15 = vrot.slane %v212_v4, 2  ;;  %v300_v55 = vld [vmem:[%s839_s1 + $0x100] sm:$0xff] }
  0x1e   : > { %337 = vmatprep.subr.mxu0 %v281_v18 }
  0x1f   : > { %338 = vmatpush1.msra.mxu0 %v280_v19  ;;  %v228_v11 = vrot.slane %v227_v6, 2  ;;  %v257_v12 = vrot.slane %v256_v8, 4  ;;  %v245_v13 = vadd.f32 %v244_v7, %v243_v1  ;;  %v214_v33 = vadd.f32 %v213_v15, %v212_v4 }
  0x20   : > { %339 = vmatprep.subr.mxu0 %v279_v20  ;;  %v313_v20 = vld [vmem:[%s839_s1 + $0x168] sm:$0xff] }
  0x21   : > { %340 = vmatpush1.msra.mxu0 %v278_v37  ;;  %v229_v17 = vadd.f32 %v228_v11, %v227_v6  ;;  %v258_v18 = vadd.f32 %v257_v12, %v256_v8  ;;  %v246_v19 = vrot.slane %v245_v13, 2  ;;  %v309_v37 = vld [vmem:[%s839_s1 + $0x148] sm:$0xff] }
  0x22   : > { %341 = vmatprep.subr.mxu0 %v277_v42  ;;  %v215_v42 = vrot.slane %v214_v33, 1 }
  0x23   : > { %342 = vmatpush1.msra.mxu0 %v276_v47  ;;  %v230_v28 = vrot.slane %v229_v17, 1  ;;  %v259_v29 = vrot.slane %v258_v18, 2  ;;  %v247_v34 = vadd.f32 %v246_v19, %v245_v13  ;;  %v304_v47 = vld [vmem:[%s839_s1 + $0x120] sm:$0xff] }
  0x24   : > { %343 = vmatprep.subr.mxu0 %v275_v52  ;;  %v216_v51 = vadd.f32 %v215_v42, %v214_v33 }
  0x25   : > { %344 = vmatpush1.msra.mxu0 %v274_v56  ;;  %v260_v36 = vadd.f32 %v259_v29, %v258_v18  ;;  %v231_v39 = vadd.f32 %v230_v28, %v229_v17  ;;  %v248_v43 = vrot.slane %v247_v34, 1 }
  0x26   : > { %345 = vmatprep.subr.mxu0 %v273_v61 }
  0x27   : > { %346 = vmatpush1.msra.mxu0 %v272_v63  ;;  %v261_v40 = vrot.slane %v260_v36, 1  ;;  %v249_v52 = vadd.f32 %v248_v43, %v247_v34 }
  0x28   : > { %347 = vmatprep.subr.mxu0 %v271_v3 }
  0x29   : > { %348 = vmatpush1.msra.mxu0 %v270_v5  ;;  %v262_v45 = vadd.f32 %v261_v40, %v260_v36  ;;  %v263_v56 = vsel %vm208_vm1, %v216_v51, %v249_v52  ;;  %v408_v5 = vlaneseq }
  0x2a   : > { %349 = vmatprep.subr.mxu0 %v269_v9 }
  0x2b   : > { %350 = vmatpush1.msra.mxu0 %v268_v10  ;;  %v264_v48 = vsel %vm208_vm1, %v231_v39, %v262_v45  ;;  %v409_v8 = vshrl.u32 %v408_v5, 7  ;;  %v424_v10 = vld [vmem:[%s840_s2] sm:$0x3] }
  0x2c   : > { %367 = vmatprep.subr.mxu0 %v315_v14  ;;  %v267_v50 = vsel %vm265_vm3, %v264_v48, 0.0  ;;  %v454_v14 = vld [vmem:[%s841_s3] sm:$0x3] }
  0x2d   : > { %368 = vmatpush2.msra.mxu0 %v314_v16  ;;  %546 = vmatprep.mubr.msk.f32.mxu0 %vm217_vm0, %v267_v50  ;;  %v410_v9 = vsub.s32 0, %v409_v8  ;;  %v432_v11 = vsub.s32 1, %v409_v8 }
  0x2e   : > { %369 = vmatprep.subr.mxu0 %v313_v20 }
  0x2f   : > { %370 = vmatpush2.msra.mxu0 %v312_v27  ;;  %v429_v12 = vrot.slane %v424_v10, %v410_v9  ;;  %v433_v17 = vrot.slane %v424_v10, %v432_v11  ;;  %v459_v20 = vrot.slane %v454_v14, %v410_v9  ;;  %v463_v34 = vrot.slane %v454_v14, %v432_v11 }
  0x30   : > { %371 = vmatprep.subr.mxu0 %v311_v30 }
  0x31   : > { %372 = vmatpush2.msra.mxu0 %v310_v35 }
  0x32   : > { %373 = vmatprep.subr.mxu0 %v309_v37 }
  0x33   : > { %374 = vmatpush2.msra.mxu0 %v308_v38 }
  0x34   : > { %375 = vmatprep.subr.mxu0 %v307_v41 }
  0x35   : > { %376 = vmatpush2.msra.mxu0 %v306_v44 }
  0x36   : > { %377 = vmatprep.subr.mxu0 %v305_v46 }
  0x37   : > { %378 = vmatpush2.msra.mxu0 %v304_v47 }
  0x38   : > { %379 = vmatprep.subr.mxu0 %v303_v49 }
  0x39   : > { %380 = vmatpush2.msra.mxu0 %v302_v53 }
  0x3a   : > { %381 = vmatprep.subr.mxu0 %v301_v54 }
  0x3b   : > { %382 = vmatpush2.msra.mxu0 %v300_v55 }
  0x3c   : > { %547 = vmatmul.mubr.msk.f32.vlgmr.msra.gmra.mxu0 %vm265_vm3, %v263_v56 }
  0xfc   : > { %v385_v57 = vpop.f32.mrf.mxu0 }
  0xfd   : > { %v390_v58 = vmul.f32 0.005, %v385_v57 }
  0xfe   : > { %v387_v59 = vpop.f32.mrf.mxu0 }
  0xff   : > { %v392_v60 = vmul.f32 %v390_v58, %v390_v58  ;;  %v391_v61 = vmul.f32 0.005, %v387_v59  ;;  %v411_v13 = vrot.slane %v390_v58, %v410_v9 }
 0x101   : > { %v396_v62 = vrot.slane %v392_v60, 7  ;;  %v393_v63 = vmul.f32 %v391_v61, %v391_v61  ;;  %v415_v16 = vrot.slane %v391_v61, %v410_v9  ;;  %v416_v19 = vsub.f32 %v676_v21, %v411_v13 }
 0x102   : > { %v418_v28 = vsub.f32 %v680_v23, %v411_v13  ;;  %v420_v29 = vsub.f32 %v684_v25, %v411_v13  ;;  %v422_v30 = vsub.f32 %v696_v31, %v411_v13 }
 0x103   : > { %v400_v0 = vsub.f32 %v390_v58, %v396_v62  ;;  %v397_v1 = vrot.slane %v393_v63, 7  ;;  %v417_v35 = vsub.f32 %v678_v22, %v415_v16  ;;  %v419_v21 = vsub.f32 %v682_v24, %v415_v16 }
 0x104   : > { %v421_v23 = vsub.f32 %v686_v26, %v415_v16  ;;  %v423_v25 = vsub.f32 %v698_v32, %v415_v16 }
 0x105   : > { %v402_v2 = vmax.f32 %v400_v0, 0.0  ;;  %v401_v3 = vsub.f32 %v391_v61, %v397_v1 }
 0x107   : > { %v404_v4 = vadd.f32 1e-05, %v402_v2  ;;  %v403_v6 = vmax.f32 %v401_v3, 0.0 }
 0x109   : > { %560 = vrsqrt.f32 %v404_v4  ;;  %v405_v7 = vadd.f32 1e-05, %v403_v6 }
 0x10b   : > { %562 = vrsqrt.f32 %v405_v7 }
 0x116   : > { %v561_v15 = vpop.eup %560 }
 0x117   : > { %v436_v18 = vmul.f32 %v561_v15, %v429_v12 }
 0x118   : > { %v563_v27 = vpop.eup %562 }
 0x119   : > { %v441_v33 = vrot.slane %v436_v18, %v432_v11  ;;  %v437_v36 = vmul.f32 %v563_v27, %v433_v17 }
 0x11b   : > { %v446_v37 = vmul.f32 %v441_v33, %v416_v19  ;;  %v448_v38 = vmul.f32 %v441_v33, %v418_v28  ;;  %v450_v39 = vmul.f32 %v441_v33, %v420_v29  ;;  %v452_v40 = vmul.f32 %v441_v33, %v422_v30 }
 0x11c   : > { %v445_v31 = vrot.slane %v437_v36, %v432_v11 }
 0x11d   : > { %v466_v41 = vadd.f32 %v459_v20, %v446_v37  ;;  %v468_v42 = vadd.f32 %v459_v20, %v448_v38  ;;  %v470_v22 = vadd.f32 %v459_v20, %v450_v39  ;;  %v472_v43 = vadd.f32 %v459_v20, %v452_v40 }
 0x11e   : > { %v447_v44 = vmul.f32 %v445_v31, %v417_v35  ;;  %v449_v45 = vmul.f32 %v445_v31, %v419_v21  ;;  %v451_v46 = vmul.f32 %v445_v31, %v421_v23  ;;  %v453_v47 = vmul.f32 %v445_v31, %v423_v25 }
 0x11f   : > { %474 = vst [vmem:[%s197_s30] sm:$0xff] %v466_v41  ;;  %476 = vst [vmem:[%s197_s30 + $0x10] sm:$0xff] %v468_v42 }
 0x120   : > { %478 = vst [vmem:[%s197_s30 + $0x20] sm:$0xff] %v470_v22  ;;  %480 = vst [vmem:[%s197_s30 + $0x30] sm:$0x1] %v472_v43  ;;  %v467_v48 = vadd.f32 %v463_v34, %v447_v44  ;;  %v469_v49 = vadd.f32 %v463_v34, %v449_v45  ;;  %v471_v24 = vadd.f32 %v463_v34, %v451_v46 }
 0x121   : > { %v473_v50 = vadd.f32 %v463_v34, %v453_v47 }
 0x122   : > { %475 = vst.msk [vmem:[%s197_s30 + $0x8] sm:$0xff] %vm217_vm0, %v467_v48  ;;  %477 = vst.msk [vmem:[%s197_s30 + $0x18] sm:$0xff] %vm217_vm0, %v469_v49 }
 0x123   : > { %479 = vst.msk [vmem:[%s197_s30 + $0x28] sm:$0xff] %vm217_vm0, %v471_v24 }
 0x124   : > { %481 = vst.msk [vmem:[%s197_s30 + $0x38] sm:$0x1] %vm223_vm2, %v473_v50 }
 0x125 PF: > { %s14_s15 = sadd.s32 1, %s570_s15  }
 0x126   : > { %p11_p4 = scmp.ge.s32.totalorder %s14_s15, 4  }
 0x128   :  { %13 = sbr.rel (!%p11_p4) target bundleno = 1 (0x1), region = 66 }

// kernel: lw_cbam_alexnet_forward.35
= control target key start
LH: loop header
LB: loop body
LE: loop exit
PB: predicated region body
PF: predicated region fallthrough
CT: control target
= control target key end

     0   :  { %s1731_s0 = inlined_call_operand.vmem [shape: bf16[56,1792], index: 0, kind: input, shape index: {}]   ;;  %s1732_s1 = inlined_call_operand.vmem [shape: bf16[1792,512], index: 1, kind: input, shape index: {}]   ;;  %s1733_s2 = inlined_call_operand.vmem [shape: f32[1,512], index: 2, kind: input, shape index: {}]   ;;  %s1734_s3 = inlined_call_operand.vmem [shape: f32[56,512], index: 3, kind: output, shape index: {}]  }
   0x1   :  { %1736 = sst [smem:[#allocation7_spill]] %s1731_s0 }
   0x2   :  { %1737 = sst [smem:[#allocation8_spill]] %s1732_s1 }
   0x3   :  { %s1418_s12 = smov 0   ;;  %s1420_s13 = smov 0  }
   0x4   :  { %s1422_s14 = smov 0   ;;  %s1424_s15 = smov 0  }
   0x5   :  { %s1426_s16 = smov 0   ;;  %s1428_s17 = smov 0  }
   0x6   :  { %s1430_s18 = smov 0   ;;  %s1432_s19 = smov 0  }
   0x7   :  { %s1434_s20 = smov 0   ;;  %s1436_s21 = smov 0  }
   0x8   :  { %s1438_s22 = smov 0  }
   0x9 LB: > { %s1063_s23 = sadd.s32 4294967295, %s1395_s22   ;;  %s25_s24 = sadd.s32 1, %s1387_s20  ;;  %s1395_s22 = sphi %s1438_s22, %s13_s22   ;;  %s1391_s21 = sphi %s1436_s21, %s1754_s21   ;;  %s1387_s20 = sphi %s1434_s20, %s1753_s20   ;;  %s1383_s19 = sphi %s1432_s19, %s1752_s19   ;;  %s1379_s18 = sphi %s1430_s18, %s1751_s18   ;;  %s1375_s17 = sphi %s1428_s17, %s1750_s17   ;;  %s1371_s16 = sphi %s1426_s16, %s1749_s16   ;;  %s1367_s15 = sphi %s1424_s15, %s1748_s15   ;;  %s1363_s14 = sphi %s1422_s14, %s1747_s14   ;;  %s1359_s13 = sphi %s1420_s13, %s1746_s13   ;;  %s1355_s12 = sphi %s1418_s12, %s1745_s12  }
   0xa   : > { %p26_p0 = scmp.ge.s32.totalorder %s25_s24, 7  ;;  %s28_s25 = sadd.s32 1, %s1391_s21 }
   0xb   : > { %s41_s26 = sadd.s32 1, %s1375_s17  ;;  %p48_p1 = scmp.ne.s32.totalorder %s1375_s17, %s1371_s16 }
   0xc   : > { %s1756_s24 = smov (%p26_p0, %s25_s24), 0  ;;  %s1758_s25 = smov (!%p26_p0, %s28_s25), %s1391_s21 }
   0xd   : > { %s37_s27 = ssub.s32 %s1387_s20, %s1756_s24  ;;  %p49_p2 = scmp.eq.s32.totalorder %s1395_s22, 0 }
   0xe   : > { %p30_p3 = scmp.ge.s32.totalorder %s1758_s25, 2  ;;  %p39_p4 = scmp.eq.s32.totalorder %s37_s27, 0 }
   0xf   : > { %p1485_p5 = por %p49_p2, %p48_p1  ;;  %s69_s29 = sadd.s32 1, %s1367_s15 }
  0x10   : > { %s1760_s25 = smov (%p30_p3, %s1758_s25), 0  ;;  %p76_p6 = scmp.ne.s32.totalorder %s1367_s15, %s1363_s14 }
  0x11   : > { %1739 = sst [smem:[#allocation6_spill]] %s1760_s25  ;;  %s65_s4 = ssub.s32 %s1391_s21, %s1760_s25 }
  0x12   : > { %s1493_s30 = scalar_select %p39_p4, %s1375_s17, %s41_s26  }
  0x13   : > { %s66_s5 = sor.u32 %s65_s4, %s37_s27  ;;  %p121_p7 = scmp.eq.s32.totalorder %s65_s4, 0 }
  0x14   : > { %p67_p8 = scmp.eq.s32.totalorder %s66_s5, 0  ;;  %p1499_p9 = por %p76_p6, %p49_p2 }
  0x15   : > { %s123_s7 = sadd.s32 1, %s1359_s13  ;;  %p133_p10 = scmp.ne.s32.totalorder %s1359_s13, %s1355_s12 }
  0x16   : > { %s1507_s8 = scalar_select %p67_p8, %s1367_s15, %s69_s29  }
  0x17   : > { %s1510_s9 = scalar_select %p121_p7, %s1359_s13, %s123_s7  }
  0x18   : > { %p134_p11 = scmp.eq.s32.totalorder %s1063_s23, 13  ;;  %p1066_p13 = scmp.ge.s32.totalorder %s1395_s22, 14 }
  0x1a   : > { %p1512_p12 = por %p134_p11, %p133_p10  ;;  %156 = sbr.rel (%p1066_p13) target bundleno = 71 (0x47), region = 16 }
  0x1f   : > { %159 = sbr.rel (!%p1485_p5) target bundleno = 45 (0x2d), region = 20  ;;  %s161_s11 = sand.u32 (%p1485_p5), 1, %s1375_s17  }
  0x20   : > { %s1123_s26 = sshll.u32 (%p1485_p5), %s1387_s20, 3  ;;  %s1158_s27 = smul.u32 (%p1485_p5), 56, %s161_s11 }
  0x21   : > { %s1742_s0 = sld [smem:[#allocation7_spill]] (%p1485_p5) }
  0x22   : > { %s163_s23 = scalar_lea.vmem (%p1485_p5), [#allocation3], %s1158_s27 }
  0x27   : > { %s169_s5 = scalar_lea.vmem %s1742_s0, %s1123_s26 }
  0x28   : > { %v210_v0 = vld [vmem:[%s169_s5] sm:$0xff]  ;;  %v212_v1 = vld [vmem:[%s169_s5 + $0x38] sm:$0xff]  ;;  %v214_v2 = vld [vmem:[%s169_s5 + $0x70] sm:$0xff] }
  0x29   : > { %v216_v3 = vld [vmem:[%s169_s5 + $0xa8] sm:$0xff]  ;;  %v218_v4 = vld [vmem:[%s169_s5 + $0xe0] sm:$0xff]  ;;  %v220_v5 = vld [vmem:[%s169_s5 + $0x118] sm:$0xff]  ;;  %211 = vst [vmem:[%s163_s23] sm:$0xff] %v210_v0 }
  0x2a   : > { %213 = vst [vmem:[%s163_s23 + $0x8] sm:$0xff] %v212_v1  ;;  %215 = vst [vmem:[%s163_s23 + $0x10] sm:$0xff] %v214_v2  ;;  %v222_v6 = vld [vmem:[%s169_s5 + $0x150] sm:$0xff] }
  0x2b   : > { %217 = vst [vmem:[%s163_s23 + $0x18] sm:$0xff] %v216_v3  ;;  %219 = vst [vmem:[%s163_s23 + $0x20] sm:$0xff] %v218_v4 }
  0x2c   : > { %221 = vst [vmem:[%s163_s23 + $0x28] sm:$0xff] %v220_v5  ;;  %223 = vst [vmem:[%s163_s23 + $0x30] sm:$0xff] %v222_v6 }
  0x2d PF: > { %229 = sbr.rel (!%p1499_p9) target bundleno = 71 (0x47), region = 58  ;;  %s231_s28 = sand.u32 (%p1499_p9), 1, %s1367_s15  }
  0x2e   : > { %s1071_s7 = sshll.u32 (%p1499_p9), %s1391_s21, 1  ;;  %s1069_s11 = sshll.u32 (%p1499_p9), %s231_s28, 8 }
  0x2f   : > { %s1124_s26 = sshll.u32 (%p1499_p9), %s1387_s20, 7  ;;  %s1743_s1 = sld [smem:[#allocation8_spill]] (%p1499_p9) }
  0x30   : > { %s237_s27 = sadd.s32 (%p1499_p9), %s1124_s26, %s1071_s7  ;;  %s1537_s6 = scalar_lea.vmem (%p1499_p9), [#allocation4], %s1069_s11 }
  0x31   : > { %s1073_s29 = sshll.u32 (%p1499_p9), %s237_s27, 2 }
  0x35   : > { %s1532_s25 = scalar_lea.vmem %s1743_s1, %s1073_s29 }
  0x36   : > { %v330_v7 = vld [vmem:[%s1532_s25] sm:$0xff]  ;;  %v332_v8 = vld [vmem:[%s1532_s25 + $0x10] sm:$0xff] }
  0x37   : > { %v334_v9 = vld [vmem:[%s1532_s25 + $0x20] sm:$0xff]  ;;  %331 = vst [vmem:[%s1537_s6] sm:$0xff] %v330_v7  ;;  %333 = vst [vmem:[%s1537_s6 + $0x8] sm:$0xff] %v332_v8  ;;  %v336_v10 = vld [vmem:[%s1532_s25 + $0x30] sm:$0xff] }
  0x38   : > { %335 = vst [vmem:[%s1537_s6 + $0x10] sm:$0xff] %v334_v9  ;;  %v338_v11 = vld [vmem:[%s1532_s25 + $0x40] sm:$0xff]  ;;  %v340_v12 = vld [vmem:[%s1532_s25 + $0x50] sm:$0xff]  ;;  %337 = vst [vmem:[%s1537_s6 + $0x18] sm:$0xff] %v336_v10 }
  0x39   : > { %339 = vst [vmem:[%s1537_s6 + $0x20] sm:$0xff] %v338_v11  ;;  %341 = vst [vmem:[%s1537_s6 + $0x28] sm:$0xff] %v340_v12  ;;  %v342_v13 = vld [vmem:[%s1532_s25 + $0x60] sm:$0xff]  ;;  %v344_v14 = vld [vmem:[%s1532_s25 + $0x70] sm:$0xff] }
  0x3a   : > { %v346_v15 = vld [vmem:[%s1532_s25 + $0x80] sm:$0xff]  ;;  %343 = vst [vmem:[%s1537_s6 + $0x30] sm:$0xff] %v342_v13  ;;  %345 = vst [vmem:[%s1537_s6 + $0x38] sm:$0xff] %v344_v14  ;;  %v348_v16 = vld [vmem:[%s1532_s25 + $0x90] sm:$0xff] }
  0x3b   : > { %347 = vst [vmem:[%s1537_s6 + $0x40] sm:$0xff] %v346_v15  ;;  %v350_v17 = vld [vmem:[%s1532_s25 + $0xa0] sm:$0xff]  ;;  %v352_v18 = vld [vmem:[%s1532_s25 + $0xb0] sm:$0xff]  ;;  %349 = vst [vmem:[%s1537_s6 + $0x48] sm:$0xff] %v348_v16 }
  0x3c   : > { %351 = vst [vmem:[%s1537_s6 + $0x50] sm:$0xff] %v350_v17  ;;  %353 = vst [vmem:[%s1537_s6 + $0x58] sm:$0xff] %v352_v18  ;;  %v354_v19 = vld [vmem:[%s1532_s25 + $0xc0] sm:$0xff]  ;;  %v356_v20 = vld [vmem:[%s1532_s25 + $0xd0] sm:$0xff] }
  0x3d   : > { %v358_v21 = vld [vmem:[%s1532_s25 + $0xe0] sm:$0xff]  ;;  %355 = vst [vmem:[%s1537_s6 + $0x60] sm:$0xff] %v354_v19  ;;  %357 = vst [vmem:[%s1537_s6 + $0x68] sm:$0xff] %v356_v20  ;;  %v360_v22 = vld [vmem:[%s1532_s25 + $0xf0] sm:$0xff] }
  0x3e   : > { %359 = vst [vmem:[%s1537_s6 + $0x70] sm:$0xff] %v358_v21  ;;  %v362_v23 = vld [vmem:[%s1532_s25 + $0x100] sm:$0xff]  ;;  %v364_v24 = vld [vmem:[%s1532_s25 + $0x110] sm:$0xff]  ;;  %361 = vst [vmem:[%s1537_s6 + $0x78] sm:$0xff] %v360_v22 }
  0x3f   : > { %363 = vst [vmem:[%s1537_s6 + $0x80] sm:$0xff] %v362_v23  ;;  %365 = vst [vmem:[%s1537_s6 + $0x88] sm:$0xff] %v364_v24  ;;  %v366_v25 = vld [vmem:[%s1532_s25 + $0x120] sm:$0xff]  ;;  %v368_v26 = vld [vmem:[%s1532_s25 + $0x130] sm:$0xff] }
  0x40   : > { %v370_v27 = vld [vmem:[%s1532_s25 + $0x140] sm:$0xff]  ;;  %367 = vst [vmem:[%s1537_s6 + $0x90] sm:$0xff] %v366_v25  ;;  %369 = vst [vmem:[%s1537_s6 + $0x98] sm:$0xff] %v368_v26  ;;  %v372_v28 = vld [vmem:[%s1532_s25 + $0x150] sm:$0xff] }
  0x41   : > { %371 = vst [vmem:[%s1537_s6 + $0xa0] sm:$0xff] %v370_v27  ;;  %v374_v29 = vld [vmem:[%s1532_s25 + $0x160] sm:$0xff]  ;;  %v376_v30 = vld [vmem:[%s1532_s25 + $0x170] sm:$0xff]  ;;  %373 = vst [vmem:[%s1537_s6 + $0xa8] sm:$0xff] %v372_v28 }
  0x42   : > { %375 = vst [vmem:[%s1537_s6 + $0xb0] sm:$0xff] %v374_v29  ;;  %377 = vst [vmem:[%s1537_s6 + $0xb8] sm:$0xff] %v376_v30  ;;  %v378_v31 = vld [vmem:[%s1532_s25 + $0x180] sm:$0xff]  ;;  %v380_v32 = vld [vmem:[%s1532_s25 + $0x190] sm:$0xff] }
  0x43   : > { %v382_v33 = vld [vmem:[%s1532_s25 + $0x1a0] sm:$0xff]  ;;  %379 = vst [vmem:[%s1537_s6 + $0xc0] sm:$0xff] %v378_v31  ;;  %381 = vst [vmem:[%s1537_s6 + $0xc8] sm:$0xff] %v380_v32  ;;  %v384_v34 = vld [vmem:[%s1532_s25 + $0x1b0] sm:$0xff] }
  0x44   : > { %383 = vst [vmem:[%s1537_s6 + $0xd0] sm:$0xff] %v382_v33  ;;  %v386_v35 = vld [vmem:[%s1532_s25 + $0x1c0] sm:$0xff]  ;;  %v388_v36 = vld [vmem:[%s1532_s25 + $0x1d0] sm:$0xff]  ;;  %385 = vst [vmem:[%s1537_s6 + $0xd8] sm:$0xff] %v384_v34 }
  0x45   : > { %387 = vst [vmem:[%s1537_s6 + $0xe0] sm:$0xff] %v386_v35  ;;  %389 = vst [vmem:[%s1537_s6 + $0xe8] sm:$0xff] %v388_v36  ;;  %v390_v37 = vld [vmem:[%s1532_s25 + $0x1e0] sm:$0xff]  ;;  %v392_v38 = vld [vmem:[%s1532_s25 + $0x1f0] sm:$0xff] }
  0x46   : > { %391 = vst [vmem:[%s1537_s6 + $0xf0] sm:$0xff] %v390_v37  ;;  %393 = vst [vmem:[%s1537_s6 + $0xf8] sm:$0xff] %v392_v38 }
  0x47 PF: > { %p1074_p0 = scmp.ge.s32.totalorder %s1395_s22, 1  ;;  %p406_p1 = scmp.lt.s32.totalorder %s1395_s22, 15 }
  0x49   : > { %p407_p2 = pnand %p1074_p0, %p406_p1 }
  0x4a   : > { %s413_s0 = sand.u32 (!%p407_p2), 1, %s1371_s16   ;;  %s420_s5 = sand.u32 (!%p407_p2), 1, %s1363_s14  }
  0x4b   : > { %410 = sbr.rel (%p407_p2) target bundleno = 398 (0x18e), region = 100  ;;  %s1075_s28 = sshll.u32 (!%p407_p2), %s420_s5, 8 }
  0x4c   : > { %s1159_s23 = smul.u32 (!%p407_p2), 56, %s413_s0  ;;  %s447_s7 = sand.u32 (!%p407_p2), 1, %s1355_s12  }
  0x4d   : > { %s1160_s25 = smul.u32 (!%p407_p2), 112, %s447_s7  ;;  %s1076_s11 = sshll.u32 (!%p407_p2), %s1383_s19, 1 }
  0x4e   : > { %p455_p3 = scmp.lt.s32.totalorder (!%p407_p2), %s1076_s11, 3  ;;  %s1612_s4 = scalar_lea.vmem (!%p407_p2), [#allocation3], %s1159_s23 }
  0x4f   : > { %s1614_s6 = scalar_lea.vmem (!%p407_p2), [#allocation4], %s1075_s28  ;;  %s1616_s1 = scalar_lea.vmem (!%p407_p2), [#allocation5], %s1160_s25 }
  0x50   : > { %s1762_s11 = smov (!%p455_p3, %s1076_s11), 3  ;;  %p1077_p4 = scmp.ne.s32.totalorder %s1379_s18, 0 }
  0x51   : > { %s457_s29 = scalar_lea.vmem %s1733_s2, %s1762_s11 }
  0x52   : > { %464 = sbr.rel (%p1077_p4) target bundleno = 95 (0x5f), region = 112 }
  0x57   : > { %v1397_v39 = vmov 0.0  }
  0x58   : > { %465 = vst [vmem:[#allocation2 + $0x30] sm:$0xff] %v1397_v39  ;;  %466 = vst [vmem:[#allocation2] sm:$0xff] %v1397_v39 }
  0x59   : > { %467 = vst [vmem:[#allocation2 + $0x58] sm:$0xff] %v1397_v39  ;;  %468 = vst [vmem:[#allocation2 + $0x18] sm:$0xff] %v1397_v39 }
  0x5a   : > { %469 = vst [vmem:[#allocation2 + $0x50] sm:$0xff] %v1397_v39  ;;  %470 = vst [vmem:[#allocation2 + $0x68] sm:$0xff] %v1397_v39 }
  0x5b   : > { %471 = vst [vmem:[#allocation2 + $0x8] sm:$0xff] %v1397_v39  ;;  %472 = vst [vmem:[#allocation2 + $0x48] sm:$0xff] %v1397_v39 }
  0x5c   : > { %473 = vst [vmem:[#allocation2 + $0x40] sm:$0xff] %v1397_v39  ;;  %474 = vst [vmem:[#allocation2 + $0x20] sm:$0xff] %v1397_v39 }
  0x5d   : > { %475 = vst [vmem:[#allocation2 + $0x10] sm:$0xff] %v1397_v39  ;;  %476 = vst [vmem:[#allocation2 + $0x38] sm:$0xff] %v1397_v39 }
  0x5e   : > { %477 = vst [vmem:[#allocation2 + $0x60] sm:$0xff] %v1397_v39  ;;  %478 = vst [vmem:[#allocation2 + $0x28] sm:$0xff] %v1397_v39 }
  0x5f PF: > { %v1250_v40 = vld [vmem:[%s1614_s6 + $0x74] ss:$8 sps:$4 sm:$0xff]   ;;  %v1252_v41 = vld [vmem:[%s1614_s6 + $0x70] ss:$8 sps:$4 sm:$0xff]   ;;  %v1253_v42 = vld [vmem:[%s1614_s6 + $0x64] ss:$8 sps:$4 sm:$0xff]  }
  0x60   : > { %729 = vmatprep.subr.bf16.mxu0 %v1250_v40  ;;  %1126 = vmatprep.subr.bf16.mxu1 %v1250_v40  ;;  %v1255_v43 = vld [vmem:[%s1614_s6 + $0x60] ss:$8 sps:$4 sm:$0xff]   ;;  %v1256_v44 = vld [vmem:[%s1614_s6 + $0x54] ss:$8 sps:$4 sm:$0xff]   ;;  %v1258_v45 = vld [vmem:[%s1614_s6 + $0x50] ss:$8 sps:$4 sm:$0xff]  }
  0x61   : > { %730 = vmatpush1.bf16.msra.mxu0 %v1252_v41  ;;  %1142 = vmatpush1.bf16.msra.mxu1 %v1252_v41  ;;  %v1259_v46 = vld [vmem:[%s1614_s6 + $0x44] ss:$8 sps:$4 sm:$0xff]   ;;  %v1261_v47 = vld [vmem:[%s1614_s6 + $0x40] ss:$8 sps:$4 sm:$0xff]   ;;  %v1262_v48 = vld [vmem:[%s1614_s6 + $0x34] ss:$8 sps:$4 sm:$0xff]  }
  0x62   : > { %731 = vmatprep.subr.bf16.mxu0 %v1253_v42  ;;  %1127 = vmatprep.subr.bf16.mxu1 %v1253_v42  ;;  %v1264_v49 = vld [vmem:[%s1614_s6 + $0x30] ss:$8 sps:$4 sm:$0xff]   ;;  %v1265_v50 = vld [vmem:[%s1614_s6 + $0x24] ss:$8 sps:$4 sm:$0xff]   ;;  %v1267_v51 = vld [vmem:[%s1614_s6 + $0x20] ss:$8 sps:$4 sm:$0xff]  }
  0x63   : > { %v1268_v52 = vld [vmem:[%s1614_s6 + $0x14] ss:$8 sps:$4 sm:$0xff]   ;;  %v1270_v54 = vld [vmem:[%s1614_s6 + $0x10] ss:$8 sps:$4 sm:$0xff]   ;;  %v1271_v56 = vld [vmem:[%s1614_s6 + $0x4] ss:$8 sps:$4 sm:$0xff]  }
  0x64   : > { %v1300_v53 = vld [vmem:[%s1612_s4 + $0x4] ss:$8 sps:$4 sm:$0xff]   ;;  %v1273_v57 = vld [vmem:[%s1614_s6] ss:$8 sps:$4 sm:$0xff]   ;;  %v1276_v59 = vld [vmem:[%s1614_s6 + $0xf0] ss:$8 sps:$4 sm:$0xff]  }
  0x65   : > { %732 = vmatpush1.bf16.msra.mxu0 %v1255_v43  ;;  %1143 = vmatpush1.bf16.msra.mxu1 %v1255_v43  ;;  %v1303_v55 = vld [vmem:[%s1612_s4 + $0x24] ss:$8 sps:$4 sm:$0xff]   ;;  %v1279_v61 = vld [vmem:[%s1614_s6 + $0xe0] ss:$8 sps:$4 sm:$0xff]   ;;  %v1282_v63 = vld [vmem:[%s1614_s6 + $0xd0] ss:$8 sps:$4 sm:$0xff]  }
  0x66   : > { %733 = vmatprep.subr.bf16.mxu0 %v1256_v44  ;;  %1128 = vmatprep.subr.bf16.mxu1 %v1256_v44  ;;  %v1274_v58 = vld [vmem:[%s1614_s6 + $0xf4] ss:$8 sps:$4 sm:$0xff]   ;;  %v1277_v60 = vld [vmem:[%s1614_s6 + $0xe4] ss:$8 sps:$4 sm:$0xff]   ;;  %v1285_v1 = vld [vmem:[%s1614_s6 + $0xc0] ss:$8 sps:$4 sm:$0xff]  }
  0x67   : > { %761 = vmatprep.mubr.bf16.mxu0 %v1300_v53  ;;  %781 = vmatprep.mubr.bf16.mxu1 %v1303_v55  ;;  %v1280_v62 = vld [vmem:[%s1614_s6 + $0xd4] ss:$8 sps:$4 sm:$0xff]   ;;  %v1283_v0 = vld [vmem:[%s1614_s6 + $0xc4] ss:$8 sps:$4 sm:$0xff]   ;;  %v1288_v3 = vld [vmem:[%s1614_s6 + $0xb0] ss:$8 sps:$4 sm:$0xff]  }
  0x68   : > { %v1286_v2 = vld [vmem:[%s1614_s6 + $0xb4] ss:$8 sps:$4 sm:$0xff]   ;;  %v1289_v4 = vld [vmem:[%s1614_s6 + $0xa4] ss:$8 sps:$4 sm:$0xff]   ;;  %v1291_v5 = vld [vmem:[%s1614_s6 + $0xa0] ss:$8 sps:$4 sm:$0xff]  }
  0x69   : > { %734 = vmatpush1.bf16.msra.mxu0 %v1258_v45  ;;  %1144 = vmatpush1.bf16.msra.mxu1 %v1258_v45  ;;  %v1292_v6 = vld [vmem:[%s1614_s6 + $0x94] ss:$8 sps:$4 sm:$0xff]   ;;  %v1294_v7 = vld [vmem:[%s1614_s6 + $0x90] ss:$8 sps:$4 sm:$0xff]   ;;  %v1295_v8 = vld [vmem:[%s1614_s6 + $0x84] ss:$8 sps:$4 sm:$0xff]  }
  0x6a   : > { %735 = vmatprep.subr.bf16.mxu0 %v1259_v46  ;;  %1129 = vmatprep.subr.bf16.mxu1 %v1259_v46  ;;  %v1297_v9 = vld [vmem:[%s1614_s6 + $0x80] ss:$8 sps:$4 sm:$0xff]   ;;  %v1304_v13 = vld [vmem:[%s1612_s4 + $0x14] ss:$8 sps:$4 sm:$0xff]   ;;  %v479_v17 = vld [vmem:[#allocation2 + $0x30] sm:$0xff]  ;;  %p1118_p5 = scmp.ne.s32.totalorder %s1379_s18, 6 }
  0x6b   : > { %v499_v10 = vld [vmem:[%s1612_s4 + $0x30] sm:$0xff]  ;;  %v1298_v11 = vld [vmem:[%s1612_s4] ss:$8 sps:$4 sm:$0xff]  }
  0x6c   : > { %v1301_v12 = vld [vmem:[%s1612_s4 + $0x20] ss:$8 sps:$4 sm:$0xff]   ;;  %v1085_v14 = vcombine.high %v499_v10, %v499_v10  ;;  %v1307_v15 = vld [vmem:[%s1612_s4 + $0x10] ss:$8 sps:$4 sm:$0xff]   ;;  %v1084_v16 = vcombine.low %v499_v10, %v499_v10 }
  0x6d   : > { %736 = vmatpush1.bf16.msra.mxu0 %v1261_v47  ;;  %1145 = vmatpush1.bf16.msra.mxu1 %v1261_v47  ;;  %v487_v18 = vld [vmem:[#allocation2 + $0x40] sm:$0xff]  ;;  %v481_v27 = vld [vmem:[#allocation2 + $0x58] sm:$0xff]  ;;  %v489_v28 = vld [vmem:[#allocation2 + $0x10] sm:$0xff] }
  0x6e   : > { %737 = vmatprep.subr.bf16.mxu0 %v1262_v48  ;;  %1130 = vmatprep.subr.bf16.mxu1 %v1262_v48  ;;  %v480_v21 = vld [vmem:[#allocation2] sm:$0xff]  ;;  %v482_v33 = vld [vmem:[#allocation2 + $0x18] sm:$0xff]  ;;  %v483_v39 = vld [vmem:[#allocation2 + $0x50] sm:$0xff] }
  0x6f   : > { %v488_v22 = vld [vmem:[#allocation2 + $0x20] sm:$0xff]  ;;  %v490_v34 = vld [vmem:[#allocation2 + $0x38] sm:$0xff]  ;;  %v484_v45 = vld [vmem:[#allocation2 + $0x68] sm:$0xff] }
  0x70   : > { %v491_v40 = vld [vmem:[#allocation2 + $0x60] sm:$0xff]  ;;  %v492_v46 = vld [vmem:[#allocation2 + $0x28] sm:$0xff] }
  0x71   : > { %738 = vmatpush1.bf16.msra.mxu0 %v1264_v49  ;;  %1146 = vmatpush1.bf16.msra.mxu1 %v1264_v49 }
  0x72   : > { %739 = vmatprep.subr.bf16.mxu0 %v1265_v50  ;;  %1131 = vmatprep.subr.bf16.mxu1 %v1265_v50 }
  0x75   : > { %740 = vmatpush1.bf16.msra.mxu0 %v1267_v51  ;;  %1147 = vmatpush1.bf16.msra.mxu1 %v1267_v51  ;;  %v485_v51 = vld [vmem:[#allocation2 + $0x8] sm:$0xff] }
  0x76   : > { %741 = vmatprep.subr.bf16.mxu0 %v1268_v52  ;;  %1132 = vmatprep.subr.bf16.mxu1 %v1268_v52 }
  0x79   : > { %742 = vmatpush1.bf16.msra.mxu0 %v1270_v54  ;;  %1148 = vmatpush1.bf16.msra.mxu1 %v1270_v54 }
  0x7a   : > { %743 = vmatprep.subr.bf16.mxu0 %v1271_v56  ;;  %1133 = vmatprep.subr.bf16.mxu1 %v1271_v56  ;;  %v486_v56 = vld [vmem:[#allocation2 + $0x48] sm:$0xff] }
  0x7d   : > { %744 = vmatpush1.bf16.msra.mxu0 %v1273_v57  ;;  %1149 = vmatpush1.bf16.msra.mxu1 %v1273_v57 }
  0x7e   : > { %745 = vmatprep.subr.bf16.mxu0 %v1274_v58  ;;  %1134 = vmatprep.subr.bf16.mxu1 %v1274_v58 }
  0x81   : > { %746 = vmatpush2.bf16.msra.mxu0 %v1276_v59  ;;  %1150 = vmatpush2.bf16.msra.mxu1 %v1276_v59 }
  0x82   : > { %747 = vmatprep.subr.bf16.mxu0 %v1277_v60  ;;  %1135 = vmatprep.subr.bf16.mxu1 %v1277_v60 }
  0x85   : > { %748 = vmatpush2.bf16.msra.mxu0 %v1279_v61  ;;  %1151 = vmatpush2.bf16.msra.mxu1 %v1279_v61 }
  0x86   : > { %749 = vmatprep.subr.bf16.mxu0 %v1280_v62  ;;  %1136 = vmatprep.subr.bf16.mxu1 %v1280_v62 }
  0x89   : > { %750 = vmatpush2.bf16.msra.mxu0 %v1282_v63  ;;  %1152 = vmatpush2.bf16.msra.mxu1 %v1282_v63 }
  0x8a   : > { %751 = vmatprep.subr.bf16.mxu0 %v1283_v0  ;;  %1137 = vmatprep.subr.bf16.mxu1 %v1283_v0 }
  0x8d   : > { %752 = vmatpush2.bf16.msra.mxu0 %v1285_v1  ;;  %1153 = vmatpush2.bf16.msra.mxu1 %v1285_v1 }
  0x8e   : > { %753 = vmatprep.subr.bf16.mxu0 %v1286_v2  ;;  %1138 = vmatprep.subr.bf16.mxu1 %v1286_v2 }
  0x91   : > { %754 = vmatpush2.bf16.msra.mxu0 %v1288_v3  ;;  %1154 = vmatpush2.bf16.msra.mxu1 %v1288_v3 }
  0x92   : > { %755 = vmatprep.subr.bf16.mxu0 %v1289_v4  ;;  %1139 = vmatprep.subr.bf16.mxu1 %v1289_v4 }
  0x95   : > { %756 = vmatpush2.bf16.msra.mxu0 %v1291_v5  ;;  %1155 = vmatpush2.bf16.msra.mxu1 %v1291_v5 }
  0x96   : > { %757 = vmatprep.subr.bf16.mxu0 %v1292_v6  ;;  %1140 = vmatprep.subr.bf16.mxu1 %v1292_v6 }
  0x99   : > { %758 = vmatpush2.bf16.msra.mxu0 %v1294_v7  ;;  %1156 = vmatpush2.bf16.msra.mxu1 %v1294_v7 }
  0x9a   : > { %759 = vmatprep.subr.bf16.mxu0 %v1295_v8  ;;  %1141 = vmatprep.subr.bf16.mxu1 %v1295_v8 }
  0x9d   : > { %760 = vmatpush2.bf16.msra.mxu0 %v1297_v9  ;;  %1157 = vmatpush2.bf16.msra.mxu1 %v1297_v9 }
  0xa0   : > { %762 = vmatmul.mubr.bf16.vlgmr.msra.gmra.mxu0 %v1298_v11  ;;  %782 = vmatmul.mubr.bf16.vlgmr.msra.gmra.mxu1 %v1301_v12 }
  0xa1   : > { %771 = vmatprep.mubr.bf16.mxu0 %v1304_v13  ;;  %791 = vmatprep.mubr.bf16.mxu1 %v1085_v14 }
  0xa8   : > { %772 = vmatmul.mubr.bf16.gmra.mxu0 %v1307_v15  ;;  %792 = vmatmul.mubr.bf16.gmra.mxu1 %v1084_v16 }
 0x160   : > { %v763_v19 = vpop.f32.mrf.mxu0  ;;  %v783_v20 = vpop.f32.mrf.mxu1 }
 0x161   : > { %v800_v23 = vadd.f32 %v763_v19, %v479_v17  ;;  %v808_v24 = vadd.f32 %v783_v20, %v487_v18 }
 0x162   : > { %v765_v25 = vpop.f32.mrf.mxu0  ;;  %v785_v26 = vpop.f32.mrf.mxu1 }
 0x163   : > { %814 = vst [vmem:[#allocation2 + $0x30] sm:$0xff] %v800_v23  ;;  %822 = vst [vmem:[#allocation2 + $0x40] sm:$0xff] %v808_v24  ;;  %v801_v29 = vadd.f32 %v765_v25, %v480_v21  ;;  %v809_v30 = vadd.f32 %v785_v26, %v488_v22 }
 0x164   : > { %v767_v31 = vpop.f32.mrf.mxu0  ;;  %v787_v32 = vpop.f32.mrf.mxu1 }
 0x165   : > { %815 = vst [vmem:[#allocation2] sm:$0xff] %v801_v29  ;;  %823 = vst [vmem:[#allocation2 + $0x20] sm:$0xff] %v809_v30  ;;  %v802_v35 = vadd.f32 %v767_v31, %v481_v27  ;;  %v810_v36 = vadd.f32 %v787_v32, %v489_v28 }
 0x166   : > { %v769_v37 = vpop.f32.mrf.mxu0  ;;  %v789_v38 = vpop.f32.mrf.mxu1 }
 0x167   : > { %816 = vst [vmem:[#allocation2 + $0x58] sm:$0xff] %v802_v35  ;;  %824 = vst [vmem:[#allocation2 + $0x10] sm:$0xff] %v810_v36  ;;  %v803_v41 = vadd.f32 %v769_v37, %v482_v33  ;;  %v811_v42 = vadd.f32 %v789_v38, %v490_v34 }
 0x168   : > { %v773_v43 = vpop.f32.mrf.mxu0  ;;  %v793_v44 = vpop.f32.mrf.mxu1 }
 0x169   : > { %817 = vst [vmem:[#allocation2 + $0x18] sm:$0xff] %v803_v41  ;;  %825 = vst [vmem:[#allocation2 + $0x38] sm:$0xff] %v811_v42  ;;  %v804_v47 = vadd.f32 %v773_v43, %v483_v39  ;;  %v812_v48 = vadd.f32 %v793_v44, %v491_v40 }
 0x16a   : > { %v775_v49 = vpop.f32.mrf.mxu0  ;;  %v795_v50 = vpop.f32.mrf.mxu1 }
 0x16b   : > { %818 = vst [vmem:[#allocation2 + $0x50] sm:$0xff] %v804_v47  ;;  %826 = vst [vmem:[#allocation2 + $0x60] sm:$0xff] %v812_v48  ;;  %v805_v52 = vadd.f32 %v775_v49, %v484_v45  ;;  %v813_v53 = vadd.f32 %v795_v50, %v492_v46 }
 0x16c   : > { %v777_v54 = vpop.f32.mrf.mxu0  ;;  %v797_v55 = vpop.f32.mrf.mxu1 }
 0x16d   : > { %819 = vst [vmem:[#allocation2 + $0x68] sm:$0xff] %v805_v52  ;;  %827 = vst [vmem:[#allocation2 + $0x28] sm:$0xff] %v813_v53  ;;  %v806_v57 = vadd.f32 %v777_v54, %v485_v51  ;;  %831 = sbr.rel (%p1118_p5) target bundleno = 389 (0x185), region = 116 }
 0x16e   : > { %v779_v58 = vpop.f32.mrf.mxu0  ;;  %v798_v59 = vpop.f32.mrf.mxu1 }
 0x16f   : > { %820 = vst [vmem:[#allocation2 + $0x8] sm:$0xff] %v806_v57  ;;  %v807_v60 = vadd.f32 %v779_v58, %v486_v56 }
 0x171   : > { %821 = vst [vmem:[#allocation2 + $0x48] sm:$0xff] %v807_v60 }
 0x172   : > { %v848_v61 = vlaneseq  ;;  %v846_v63 = vld [vmem:[%s457_s29] sm:$0x3]  ;;  %v832_v0 = vld [vmem:[#allocation2 + $0x30] sm:$0xff]  ;;  %v834_v4 = vld [vmem:[#allocation2 + $0x58] sm:$0xff] }
 0x173   : > { %v833_v2 = vld [vmem:[#allocation2] sm:$0xff]  ;;  %v835_v5 = vld [vmem:[#allocation2 + $0x18] sm:$0xff]  ;;  %v836_v6 = vld [vmem:[#allocation2 + $0x50] sm:$0xff] }
 0x174   : > { %v849_v62 = vshrl.u32 %v848_v61, 7  ;;  %v837_v9 = vld [vmem:[#allocation2 + $0x68] sm:$0xff]  ;;  %v840_v16 = vld [vmem:[#allocation2 + $0x40] sm:$0xff]  ;;  %v842_v22 = vld [vmem:[#allocation2 + $0x10] sm:$0xff] }
 0x175   : > { %v841_v21 = vld [vmem:[#allocation2 + $0x20] sm:$0xff]  ;;  %v843_v23 = vld [vmem:[#allocation2 + $0x38] sm:$0xff]  ;;  %v845_v29 = vld [vmem:[#allocation2 + $0x28] sm:$0xff] }
 0x176   : > { %v850_v1 = vsub.s32 0, %v849_v62  ;;  %v854_v3 = vsub.s32 1, %v849_v62  ;;  %v838_v10 = vld [vmem:[#allocation2 + $0x8] sm:$0xff]  ;;  %v844_v28 = vld [vmem:[#allocation2 + $0x60] sm:$0xff] }
 0x178   : > { %v851_v7 = vrot.slane %v846_v63, %v850_v1  ;;  %v855_v8 = vrot.slane %v846_v63, %v854_v3  ;;  %v839_v11 = vld [vmem:[#allocation2 + $0x48] sm:$0xff] }
 0x17a   : > { %v858_v12 = vadd.f32 %v851_v7, %v832_v0  ;;  %v859_v13 = vadd.f32 %v855_v8, %v833_v2  ;;  %v860_v14 = vadd.f32 %v851_v7, %v834_v4  ;;  %v861_v15 = vadd.f32 %v855_v8, %v835_v5 }
 0x17b   : > { %v862_v17 = vadd.f32 %v851_v7, %v836_v6  ;;  %v863_v18 = vadd.f32 %v855_v8, %v837_v9  ;;  %v864_v19 = vadd.f32 %v851_v7, %v838_v10  ;;  %v865_v20 = vadd.f32 %v855_v8, %v839_v11 }
 0x17c   : > { %v872_v24 = vmax.f32 %v858_v12, 0.0  ;;  %v873_v25 = vmax.f32 %v859_v13, 0.0  ;;  %v874_v26 = vmax.f32 %v860_v14, 0.0  ;;  %v875_v27 = vmax.f32 %v861_v15, 0.0 }
 0x17d   : > { %v876_v30 = vmax.f32 %v862_v17, 0.0  ;;  %v877_v31 = vmax.f32 %v863_v18, 0.0  ;;  %v878_v32 = vmax.f32 %v864_v19, 0.0  ;;  %v879_v33 = vmax.f32 %v865_v20, 0.0 }
 0x17e   : > { %886 = vst [vmem:[%s1616_s1] sm:$0xff] %v872_v24  ;;  %887 = vst [vmem:[%s1616_s1 + $0x8] sm:$0xff] %v873_v25  ;;  %v866_v34 = vadd.f32 %v851_v7, %v840_v16  ;;  %v867_v35 = vadd.f32 %v855_v8, %v841_v21  ;;  %v868_v36 = vadd.f32 %v851_v7, %v842_v22 }
 0x17f   : > { %888 = vst [vmem:[%s1616_s1 + $0x10] sm:$0xff] %v874_v26  ;;  %889 = vst [vmem:[%s1616_s1 + $0x18] sm:$0xff] %v875_v27  ;;  %v869_v37 = vadd.f32 %v855_v8, %v843_v23  ;;  %v870_v38 = vadd.f32 %v851_v7, %v844_v28  ;;  %v871_v39 = vadd.f32 %v855_v8, %v845_v29 }
 0x180   : > { %890 = vst [vmem:[%s1616_s1 + $0x20] sm:$0xff] %v876_v30  ;;  %891 = vst [vmem:[%s1616_s1 + $0x28] sm:$0xff] %v877_v31  ;;  %v880_v40 = vmax.f32 %v866_v34, 0.0  ;;  %v881_v41 = vmax.f32 %v867_v35, 0.0  ;;  %v882_v42 = vmax.f32 %v868_v36, 0.0 }
 0x181   : > { %892 = vst [vmem:[%s1616_s1 + $0x30] sm:$0xff] %v878_v32  ;;  %893 = vst [vmem:[%s1616_s1 + $0x38] sm:$0xff] %v879_v33  ;;  %v883_v43 = vmax.f32 %v869_v37, 0.0  ;;  %v884_v44 = vmax.f32 %v870_v38, 0.0  ;;  %v885_v45 = vmax.f32 %v871_v39, 0.0 }
 0x182   : > { %894 = vst [vmem:[%s1616_s1 + $0x40] sm:$0xff] %v880_v40  ;;  %895 = vst [vmem:[%s1616_s1 + $0x48] sm:$0xff] %v881_v41 }
 0x183   : > { %896 = vst [vmem:[%s1616_s1 + $0x50] sm:$0xff] %v882_v42  ;;  %897 = vst [vmem:[%s1616_s1 + $0x58] sm:$0xff] %v883_v43 }
 0x184   : > { %898 = vst [vmem:[%s1616_s1 + $0x60] sm:$0xff] %v884_v44  ;;  %899 = vst [vmem:[%s1616_s1 + $0x68] sm:$0xff] %v885_v45 }
 0x185 PF: > { %906 = sbr.rel (!%p1512_p12) target bundleno = 398 (0x18e), region = 120  ;;  %s1125_s16 = sshll.u32 (%p1512_p12), %s1383_s19, 4  ;;  %v925_v46 = vld [vmem:[%s1616_s1] sm:$0xff] (%p1512_p12)  ;;  %v927_v47 = vld [vmem:[%s1616_s1 + $0x8] sm:$0xff] (%p1512_p12) }
 0x186   : > { %v929_v48 = vld [vmem:[%s1616_s1 + $0x10] sm:$0xff] (%p1512_p12)  ;;  %s912_s5 = scalar_lea.vmem (%p1512_p12), %s1734_s3, %s1125_s16  ;;  %v931_v49 = vld [vmem:[%s1616_s1 + $0x18] sm:$0xff] (%p1512_p12) }
 0x187   : > { %v933_v50 = vld [vmem:[%s1616_s1 + $0x20] sm:$0xff] (%p1512_p12)  ;;  %v935_v51 = vld [vmem:[%s1616_s1 + $0x28] sm:$0xff] (%p1512_p12)  ;;  %926 = vst [vmem:[%s912_s5] sm:$0xff] (%p1512_p12), %v925_v46  ;;  %928 = vst [vmem:[%s912_s5 + $0x8] sm:$0xff] (%p1512_p12), %v927_v47 }
 0x188   : > { %930 = vst [vmem:[%s912_s5 + $0x20] sm:$0xff] (%p1512_p12), %v929_v48  ;;  %932 = vst [vmem:[%s912_s5 + $0x28] sm:$0xff] (%p1512_p12), %v931_v49  ;;  %v937_v52 = vld [vmem:[%s1616_s1 + $0x30] sm:$0xff] (%p1512_p12)  ;;  %v939_v53 = vld [vmem:[%s1616_s1 + $0x38] sm:$0xff] (%p1512_p12) }
 0x189   : > { %934 = vst [vmem:[%s912_s5 + $0x40] sm:$0xff] (%p1512_p12), %v933_v50  ;;  %936 = vst [vmem:[%s912_s5 + $0x48] sm:$0xff] (%p1512_p12), %v935_v51  ;;  %v941_v54 = vld [vmem:[%s1616_s1 + $0x40] sm:$0xff] (%p1512_p12)  ;;  %v943_v55 = vld [vmem:[%s1616_s1 + $0x48] sm:$0xff] (%p1512_p12) }
 0x18a   : > { %938 = vst [vmem:[%s912_s5 + $0x60] sm:$0xff] %v937_v52  ;;  %940 = vst [vmem:[%s912_s5 + $0x68] sm:$0xff] %v939_v53  ;;  %v945_v56 = vld [vmem:[%s1616_s1 + $0x50] sm:$0xff]  ;;  %v947_v57 = vld [vmem:[%s1616_s1 + $0x58] sm:$0xff] }
 0x18b   : > { %942 = vst [vmem:[%s912_s5 + $0x80] sm:$0xff] %v941_v54  ;;  %944 = vst [vmem:[%s912_s5 + $0x88] sm:$0xff] %v943_v55  ;;  %v949_v58 = vld [vmem:[%s1616_s1 + $0x60] sm:$0xff]  ;;  %v951_v59 = vld [vmem:[%s1616_s1 + $0x68] sm:$0xff] }
 0x18c   : > { %946 = vst [vmem:[%s912_s5 + $0xa0] sm:$0xff] %v945_v56  ;;  %948 = vst [vmem:[%s912_s5 + $0xa8] sm:$0xff] %v947_v57 }
 0x18d   : > { %950 = vst [vmem:[%s912_s5 + $0xc0] sm:$0xff] %v949_v58  ;;  %952 = vst [vmem:[%s912_s5 + $0xc8] sm:$0xff] %v951_v59 }
 0x18e PF: > { %s13_s22 = sadd.s32 1, %s1395_s22   ;;  %s1744_s10 = sld [smem:[#allocation6_spill]] }
 0x18f   : > { %p10_p6 = scmp.ge.s32.totalorder %s13_s22, 16   ;;  %s1745_s12 = smov %s1359_s13 }
 0x190   : > { %s1746_s13 = smov %s1510_s9  ;;  %s1747_s14 = smov %s1367_s15 }
 0x191   : > { %s1748_s15 = smov %s1507_s8  ;;  %s1749_s16 = smov %s1375_s17 }
 0x192   : > { %s1750_s17 = smov %s1493_s30  ;;  %s1751_s18 = smov %s1387_s20 }
 0x193   : > { %s1752_s19 = smov %s1391_s21  ;;  %s1753_s20 = smov %s1756_s24 }
 0x194   : > { %s1754_s21 = smov %s1744_s10  ;;  %12 = sbr.rel (!%p10_p6) target bundleno = 9 (0x9), region = 185 }

// kernel: lw_cbam_alexnet_forward.36
= control target key start
LH: loop header
LB: loop body
LE: loop exit
PB: predicated region body
PF: predicated region fallthrough
CT: control target
= control target key end

     0   :  { %s1373_s12 = smov 0   ;;  %s1375_s13 = smov 0   ;;  %s1552_s0 = inlined_call_operand.vmem [shape: bf16[56,3456], index: 0, kind: input, shape index: {}]   ;;  %s1553_s1 = inlined_call_operand.vmem [shape: bf16[3456,256], index: 1, kind: input, shape index: {}]   ;;  %s1554_s2 = inlined_call_operand.vmem [shape: f32[1,256], index: 2, kind: input, shape index: {}]   ;;  %s1555_s3 = inlined_call_operand.vmem [shape: f32[56,256], index: 3, kind: output, shape index: {}]  }
   0x1   :  { %s1377_s14 = smov 0   ;;  %s1379_s15 = smov 0  }
   0x2   :  { %s1381_s16 = smov 0  }
   0x3 LB: > { %s25_s17 = sadd.s32 1, %s1345_s15  ;;  %p48_p1 = scmp.ne.s32.totalorder %s1337_s13, %s1333_s12  ;;  %s1349_s16 = sphi %s1381_s16, %s13_s16   ;;  %s1345_s15 = sphi %s1379_s15, %s1559_s15   ;;  %s1341_s14 = sphi %s1377_s14, %s1558_s14   ;;  %s1337_s13 = sphi %s1375_s13, %s1557_s13   ;;  %s1333_s12 = sphi %s1373_s12, %s1556_s12  }
   0x4   : > { %p26_p0 = scmp.ge.s32.totalorder %s25_s17, 9  ;;  %p49_p2 = scmp.eq.s32.totalorder %s1349_s16, 0 }
   0x5   : > { %s41_s19 = sadd.s32 1, %s1337_s13  ;;  %p1093_p5 = scmp.ge.s32.totalorder %s1349_s16, 9 }
   0x6   : > { %s1561_s17 = smov (%p26_p0, %s25_s17), 0  ;;  %p50_p3 = por %p49_p2, %p48_p1 }
   0x7   : > { %s37_s18 = ssub.s32 %s1345_s15, %s1561_s17  ;;  %164 = sbr.rel (%p1093_p5) target bundleno = 25 (0x19), region = 20 }
   0x8   : > { %p39_p4 = scmp.eq.s32.totalorder %s37_s18, 0 }
   0xa   : > { %s1408_s20 = scalar_select %p39_p4, %s1337_s13, %s41_s19  }
   0xc   : > { %167 = sbr.rel (!%p50_p3) target bundleno = 25 (0x19), region = 24  ;;  %s169_s21 = sand.u32 (%p50_p3), 1, %s1337_s13  }
   0xd   : > { %s1178_s22 = smul.u32 (%p50_p3), 12, %s1345_s15 }
   0xe   : > { %s1180_s23 = smul.u32 (%p50_p3), 84, %s169_s21 }
   0xf   : > { %s177_s26 = scalar_lea.vmem (%p50_p3), %s1552_s0, %s1178_s22 }
  0x10   : > { %v192_v0 = vld [vmem:[%s177_s26] sm:$0xff] (%p50_p3)  ;;  %v194_v1 = vld [vmem:[%s177_s26 + $0x6c] sm:$0xff] (%p50_p3)  ;;  %v196_v2 = vld [vmem:[%s177_s26 + $0xd8] sm:$0xff] (%p50_p3)  ;;  %s171_s27 = scalar_lea.vmem (%p50_p3), [#allocation3], %s1180_s23 }
  0x11   : > { %193 = vst [vmem:[%s171_s27] sm:$0xff] %v192_v0  ;;  %195 = vst [vmem:[%s171_s27 + $0xc] sm:$0xff] %v194_v1  ;;  %v198_v3 = vld [vmem:[%s177_s26 + $0x144] sm:$0xff]  ;;  %v200_v4 = vld [vmem:[%s177_s26 + $0x1b0] sm:$0xff] }
  0x12   : > { %197 = vst [vmem:[%s171_s27 + $0x18] sm:$0xff] %v196_v2  ;;  %v202_v5 = vld [vmem:[%s177_s26 + $0x21c] sm:$0xff]  ;;  %199 = vst [vmem:[%s171_s27 + $0x24] sm:$0xff] %v198_v3  ;;  %v204_v6 = vld [vmem:[%s177_s26 + $0x288] sm:$0xff] }
  0x13   : > { %201 = vst [vmem:[%s171_s27 + $0x30] sm:$0xff] %v200_v4  ;;  %203 = vst [vmem:[%s171_s27 + $0x3c] sm:$0xff] %v202_v5  ;;  %v1095_v7 = vld [vmem:[%s177_s26 + $0x8] sm:$0xf]  ;;  %v1097_v8 = vld [vmem:[%s177_s26 + $0x74] sm:$0xf] }
  0x14   : > { %205 = vst [vmem:[%s171_s27 + $0x48] sm:$0xff] %v204_v6  ;;  %1096 = vst [vmem:[%s171_s27 + $0x8] sm:$0xf] %v1095_v7  ;;  %v1099_v9 = vld [vmem:[%s177_s26 + $0xe0] sm:$0xf] }
  0x15   : > { %1098 = vst [vmem:[%s171_s27 + $0x14] sm:$0xf] %v1097_v8  ;;  %v1101_v10 = vld [vmem:[%s177_s26 + $0x14c] sm:$0xf]  ;;  %v1103_v11 = vld [vmem:[%s177_s26 + $0x1b8] sm:$0xf] }
  0x16   : > { %1100 = vst [vmem:[%s171_s27 + $0x20] sm:$0xf] %v1099_v9  ;;  %1102 = vst [vmem:[%s171_s27 + $0x2c] sm:$0xf] %v1101_v10  ;;  %v1105_v12 = vld [vmem:[%s177_s26 + $0x224] sm:$0xf] }
  0x17   : > { %1104 = vst [vmem:[%s171_s27 + $0x38] sm:$0xf] %v1103_v11  ;;  %v1107_v13 = vld [vmem:[%s177_s26 + $0x290] sm:$0xf]  ;;  %1106 = vst [vmem:[%s171_s27 + $0x44] sm:$0xf] %v1105_v12 }
  0x18   : > { %1108 = vst [vmem:[%s171_s27 + $0x50] sm:$0xf] %v1107_v13 }
  0x19 PF: > { %p1109_p6 = scmp.ge.s32.totalorder %s1349_s16, 1  ;;  %p247_p7 = scmp.lt.s32.totalorder %s1349_s16, 10 }
  0x1b   : > { %p248_p8 = pnand %p1109_p6, %p247_p7 }
  0x1c   : > { %s254_s28 = sand.u32 (!%p248_p8), 1, %s1333_s12   ;;  %s298_s29 = smul.u32 (!%p248_p8), 48, %s1341_s14 }
  0x1d   : > { %251 = sbr.rel (%p248_p8) target bundleno = 355 (0x163), region = 54  ;;  %p1112_p10 = scmp.ne.s32.totalorder (!%p248_p8), %s1341_s14, 0 }
  0x1e   : > { %s1181_s30 = smul.u32 (!%p248_p8), 84, %s254_s28  ;;  %p300_p9 = scmp.lt.s32.totalorder (!%p248_p8), %s298_s29, 431 }
  0x20   : > { %s1425_s8 = scalar_lea.vmem (!%p248_p8), [#allocation3], %s1181_s30 }
  0x22   : > { %s1563_s29 = smov (!%p300_p9, %s298_s29), 431  ;;  %331 = sbr.rel (%p1112_p10) target bundleno = 47 (0x2f), region = 62 }
  0x23   : > { %s1179_s4 = sshll.u32 %s1563_s29, 3 }
  0x24   : > { %s1423_s7 = scalar_lea.vmem %s1553_s1, %s1179_s4 }
  0x27   : > { %v1351_v14 = vmov 0.0  }
  0x28   : > { %332 = vst [vmem:[#allocation2 + $0x30] sm:$0xff] %v1351_v14  ;;  %333 = vst [vmem:[#allocation2] sm:$0xff] %v1351_v14 }
  0x29   : > { %334 = vst [vmem:[#allocation2 + $0x58] sm:$0xff] %v1351_v14  ;;  %335 = vst [vmem:[#allocation2 + $0x18] sm:$0xff] %v1351_v14 }
  0x2a   : > { %336 = vst [vmem:[#allocation2 + $0x50] sm:$0xff] %v1351_v14  ;;  %337 = vst [vmem:[#allocation2 + $0x68] sm:$0xff] %v1351_v14 }
  0x2b   : > { %338 = vst [vmem:[#allocation2 + $0x8] sm:$0xff] %v1351_v14  ;;  %339 = vst [vmem:[#allocation2 + $0x48] sm:$0xff] %v1351_v14 }
  0x2c   : > { %340 = vst [vmem:[#allocation2 + $0x40] sm:$0xff] %v1351_v14  ;;  %341 = vst [vmem:[#allocation2 + $0x20] sm:$0xff] %v1351_v14 }
  0x2d   : > { %342 = vst [vmem:[#allocation2 + $0x10] sm:$0xff] %v1351_v14  ;;  %343 = vst [vmem:[#allocation2 + $0x38] sm:$0xff] %v1351_v14 }
  0x2e   : > { %344 = vst [vmem:[#allocation2 + $0x60] sm:$0xff] %v1351_v14  ;;  %345 = vst [vmem:[#allocation2 + $0x28] sm:$0xff] %v1351_v14 }
  0x2f PF: > { %v1224_v15 = vld [vmem:[%s1423_s7 + $0x74] ss:$8 sps:$4 sm:$0xff]   ;;  %v1226_v16 = vld [vmem:[%s1423_s7 + $0x70] ss:$8 sps:$4 sm:$0xff]   ;;  %v1352_v17 = vmov 0   ;;  %p1173_p11 = scmp.ne.s32.totalorder %s1341_s14, 8 }
  0x30   : > { %824 = vmatprep.mubr.bf16.mxu1 %v1352_v17  ;;  %721 = vmatprep.subr.bf16.mxu0 %v1224_v15  ;;  %v1227_v18 = vld [vmem:[%s1423_s7 + $0x64] ss:$8 sps:$4 sm:$0xff]   ;;  %v1229_v19 = vld [vmem:[%s1423_s7 + $0x60] ss:$8 sps:$4 sm:$0xff]   ;;  %v1230_v20 = vld [vmem:[%s1423_s7 + $0x54] ss:$8 sps:$4 sm:$0xff]  }
  0x31   : > { %722 = vmatpush1.bf16.msra.mxu0 %v1226_v16  ;;  %v1232_v21 = vld [vmem:[%s1423_s7 + $0x50] ss:$8 sps:$4 sm:$0xff]   ;;  %v1233_v22 = vld [vmem:[%s1423_s7 + $0x44] ss:$8 sps:$4 sm:$0xff]   ;;  %v1245_v23 = vld [vmem:[%s1423_s7 + $0x174] ss:$8 sps:$4 sm:$0xff]  }
  0x32   : > { %723 = vmatprep.subr.bf16.mxu0 %v1227_v18  ;;  %v1247_v24 = vld [vmem:[%s1423_s7 + $0x170] ss:$8 sps:$4 sm:$0xff]   ;;  %v1235_v25 = vld [vmem:[%s1423_s7 + $0x40] ss:$8 sps:$4 sm:$0xff]   ;;  %v1236_v26 = vld [vmem:[%s1423_s7 + $0x34] ss:$8 sps:$4 sm:$0xff]   ;;  %792 = vmatprep.subr.bf16.mxu1 %v1245_v23 }
  0x33   : > { %v1251_v27 = vld [vmem:[%s1423_s7 + $0x164] ss:$8 sps:$4 sm:$0xff]   ;;  %793 = vmatpush1.bf16.msra.mxu1 %v1247_v24  ;;  %v1253_v28 = vld [vmem:[%s1423_s7 + $0x160] ss:$8 sps:$4 sm:$0xff]   ;;  %v1238_v29 = vld [vmem:[%s1423_s7 + $0x30] ss:$8 sps:$4 sm:$0xff]  }
  0x34   : > { %794 = vmatprep.subr.bf16.mxu1 %v1251_v27  ;;  %v1257_v30 = vld [vmem:[%s1423_s7 + $0x154] ss:$8 sps:$4 sm:$0xff]   ;;  %v1239_v31 = vld [vmem:[%s1423_s7 + $0x24] ss:$8 sps:$4 sm:$0xff]   ;;  %v1259_v32 = vld [vmem:[%s1423_s7 + $0x150] ss:$8 sps:$4 sm:$0xff]  }
  0x35   : > { %724 = vmatpush1.bf16.msra.mxu0 %v1229_v19  ;;  %v1263_v33 = vld [vmem:[%s1423_s7 + $0x144] ss:$8 sps:$4 sm:$0xff]   ;;  %v1241_v34 = vld [vmem:[%s1423_s7 + $0x20] ss:$8 sps:$4 sm:$0xff]   ;;  %v1242_v35 = vld [vmem:[%s1423_s7 + $0x14] ss:$8 sps:$4 sm:$0xff]  }
  0x36   : > { %725 = vmatprep.subr.bf16.mxu0 %v1230_v20  ;;  %v1265_v36 = vld [vmem:[%s1423_s7 + $0x140] ss:$8 sps:$4 sm:$0xff]   ;;  %v1269_v37 = vld [vmem:[%s1423_s7 + $0x134] ss:$8 sps:$4 sm:$0xff]   ;;  %v1244_v38 = vld [vmem:[%s1423_s7 + $0x10] ss:$8 sps:$4 sm:$0xff]  }
  0x37   : > { %795 = vmatpush1.bf16.msra.mxu1 %v1253_v28  ;;  %v1248_v39 = vld [vmem:[%s1423_s7 + $0x4] ss:$8 sps:$4 sm:$0xff]   ;;  %v1271_v40 = vld [vmem:[%s1423_s7 + $0x130] ss:$8 sps:$4 sm:$0xff]   ;;  %v1250_v42 = vld [vmem:[%s1423_s7] ss:$8 sps:$4 sm:$0xff]  }
  0x38   : > { %796 = vmatprep.subr.bf16.mxu1 %v1257_v30  ;;  %v1275_v41 = vld [vmem:[%s1423_s7 + $0x124] ss:$8 sps:$4 sm:$0xff]   ;;  %v1254_v43 = vld [vmem:[%s1423_s7 + $0xf4] ss:$8 sps:$4 sm:$0xff]   ;;  %v1277_v44 = vld [vmem:[%s1423_s7 + $0x120] ss:$8 sps:$4 sm:$0xff]  }
  0x39   : > { %726 = vmatpush1.bf16.msra.mxu0 %v1232_v21  ;;  %v1281_v45 = vld [vmem:[%s1423_s7 + $0x114] ss:$8 sps:$4 sm:$0xff]   ;;  %v1256_v46 = vld [vmem:[%s1423_s7 + $0xf0] ss:$8 sps:$4 sm:$0xff]   ;;  %v1260_v47 = vld [vmem:[%s1423_s7 + $0xe4] ss:$8 sps:$4 sm:$0xff]  }
  0x3a   : > { %727 = vmatprep.subr.bf16.mxu0 %v1233_v22  ;;  %v1283_v48 = vld [vmem:[%s1423_s7 + $0x110] ss:$8 sps:$4 sm:$0xff]   ;;  %v1287_v49 = vld [vmem:[%s1423_s7 + $0x104] ss:$8 sps:$4 sm:$0xff]   ;;  %v1299_v50 = vld [vmem:[%s1425_s8 + $0x4] ss:$12 sps:$4 sm:$0xff]  }
  0x3b   : > { %797 = vmatpush1.bf16.msra.mxu1 %v1259_v32  ;;  %v1262_v51 = vld [vmem:[%s1423_s7 + $0xe0] ss:$8 sps:$4 sm:$0xff]   ;;  %v1266_v52 = vld [vmem:[%s1423_s7 + $0xd4] ss:$8 sps:$4 sm:$0xff]   ;;  %753 = vmatprep.mubr.bf16.mxu0 %v1299_v50  ;;  %v1268_v54 = vld [vmem:[%s1423_s7 + $0xd0] ss:$8 sps:$4 sm:$0xff]  }
  0x3c   : > { %798 = vmatprep.subr.bf16.mxu1 %v1263_v33  ;;  %v1289_v53 = vld [vmem:[%s1423_s7 + $0x100] ss:$8 sps:$4 sm:$0xff]   ;;  %v1272_v55 = vld [vmem:[%s1423_s7 + $0xc4] ss:$8 sps:$4 sm:$0xff]   ;;  %v1278_v58 = vld [vmem:[%s1423_s7 + $0xb4] ss:$8 sps:$4 sm:$0xff]  }
  0x3d   : > { %728 = vmatpush1.bf16.msra.mxu0 %v1235_v25  ;;  %v1293_v56 = vld [vmem:[%s1425_s8 + $0x8] ss:$12 sps:$4 sm:$0xff]   ;;  %v1274_v57 = vld [vmem:[%s1423_s7 + $0xc0] ss:$8 sps:$4 sm:$0xff]   ;;  %v1300_v61 = vld [vmem:[%s1425_s8 + $0x20] ss:$12 sps:$4 sm:$0xff]  }
  0x3e   : > { %729 = vmatprep.subr.bf16.mxu0 %v1236_v26  ;;  %v1280_v59 = vld [vmem:[%s1423_s7 + $0xb0] ss:$8 sps:$4 sm:$0xff]   ;;  %v1284_v60 = vld [vmem:[%s1423_s7 + $0xa4] ss:$8 sps:$4 sm:$0xff]   ;;  %v1286_v62 = vld [vmem:[%s1423_s7 + $0xa0] ss:$8 sps:$4 sm:$0xff]  }
  0x3f   : > { %799 = vmatpush1.bf16.msra.mxu1 %v1265_v36  ;;  %v1290_v63 = vld [vmem:[%s1423_s7 + $0x94] ss:$8 sps:$4 sm:$0xff]   ;;  %v1292_v0 = vld [vmem:[%s1423_s7 + $0x90] ss:$8 sps:$4 sm:$0xff]   ;;  %v1294_v1 = vld [vmem:[%s1423_s7 + $0x84] ss:$8 sps:$4 sm:$0xff]  }
  0x40   : > { %800 = vmatprep.subr.bf16.mxu1 %v1269_v37  ;;  %v1304_v2 = vld [vmem:[%s1425_s8 + $0x38] ss:$12 sps:$4 sm:$0xff]   ;;  %v1297_v4 = vld [vmem:[%s1425_s8] ss:$12 sps:$4 sm:$0xff]   ;;  %v1301_v5 = vld [vmem:[%s1425_s8 + $0x1c] ss:$12 sps:$4 sm:$0xff]  }
  0x41   : > { %730 = vmatpush1.bf16.msra.mxu0 %v1238_v29  ;;  %v1296_v3 = vld [vmem:[%s1423_s7 + $0x80] ss:$8 sps:$4 sm:$0xff]   ;;  %v1305_v8 = vld [vmem:[%s1425_s8 + $0x34] ss:$12 sps:$4 sm:$0xff]   ;;  %v372_v9 = vld [vmem:[%s1425_s8 + $0x48] sm:$0xff] }
  0x42   : > { %731 = vmatprep.subr.bf16.mxu0 %v1239_v31  ;;  %v1308_v6 = vld [vmem:[%s1425_s8 + $0x50] ss:$0 sps:$4 sm:$0xff]   ;;  %v1303_v7 = vld [vmem:[%s1425_s8 + $0x18] ss:$12 sps:$4 sm:$0xff]   ;;  %v1123_v11 = vcombine.high %v372_v9, %v372_v9  ;;  %v1122_v12 = vcombine.low %v372_v9, %v372_v9 }
  0x43   : > { %801 = vmatpush1.bf16.msra.mxu1 %v1271_v40  ;;  %v1307_v10 = vld [vmem:[%s1425_s8 + $0x30] ss:$12 sps:$4 sm:$0xff]   ;;  %v348_v33 = vld [vmem:[#allocation2 + $0x58] sm:$0xff] }
  0x44   : > { %802 = vmatprep.subr.bf16.mxu1 %v1275_v41  ;;  %v346_v24 = vld [vmem:[#allocation2 + $0x30] sm:$0xff]  ;;  %v347_v28 = vld [vmem:[#allocation2] sm:$0xff] }
  0x45   : > { %732 = vmatpush1.bf16.msra.mxu0 %v1241_v34 }
  0x46   : > { %733 = vmatprep.subr.bf16.mxu0 %v1242_v35 }
  0x47   : > { %803 = vmatpush1.bf16.msra.mxu1 %v1277_v44 }
  0x48   : > { %804 = vmatprep.subr.bf16.mxu1 %v1281_v45 }
  0x49   : > { %734 = vmatpush1.bf16.msra.mxu0 %v1244_v38  ;;  %v349_v38 = vld [vmem:[#allocation2 + $0x18] sm:$0xff] }
  0x4a   : > { %735 = vmatprep.subr.bf16.mxu0 %v1248_v39 }
  0x4b   : > { %805 = vmatpush1.bf16.msra.mxu1 %v1283_v48  ;;  %v351_v48 = vld [vmem:[#allocation2 + $0x68] sm:$0xff] }
  0x4c   : > { %806 = vmatprep.subr.bf16.mxu1 %v1287_v49 }
  0x4d   : > { %736 = vmatpush1.bf16.msra.mxu0 %v1250_v42 }
  0x4e   : > { %737 = vmatprep.subr.bf16.mxu0 %v1254_v43  ;;  %v350_v43 = vld [vmem:[#allocation2 + $0x50] sm:$0xff] }
  0x4f   : > { %807 = vmatpush1.bf16.msra.mxu1 %v1289_v53 }
  0x51   : > { %738 = vmatpush2.bf16.msra.mxu0 %v1256_v46 }
  0x52   : > { %739 = vmatprep.subr.bf16.mxu0 %v1260_v47  ;;  %825 = vmatmul.mubr.bf16.vlgmr.msra.gmra.mxu1 %v1293_v56  ;;  %v353_v56 = vld [vmem:[#allocation2 + $0x48] sm:$0xff] }
  0x53   : > { %834 = vmatprep.mubr.bf16.mxu1 %v1352_v17 }
  0x55   : > { %740 = vmatpush2.bf16.msra.mxu0 %v1262_v51 }
  0x56   : > { %741 = vmatprep.subr.bf16.mxu0 %v1266_v52  ;;  %v352_v52 = vld [vmem:[#allocation2 + $0x8] sm:$0xff] }
  0x59   : > { %742 = vmatpush2.bf16.msra.mxu0 %v1268_v54 }
  0x5a   : > { %743 = vmatprep.subr.bf16.mxu0 %v1272_v55  ;;  %835 = vmatmul.mubr.bf16.gmra.mxu1 %v1300_v61 }
  0x5b   : > { %844 = vmatprep.mubr.bf16.mxu1 %v1352_v17 }
  0x5d   : > { %744 = vmatpush2.bf16.msra.mxu0 %v1274_v57 }
  0x5e   : > { %745 = vmatprep.subr.bf16.mxu0 %v1278_v58 }
  0x61   : > { %746 = vmatpush2.bf16.msra.mxu0 %v1280_v59 }
  0x62   : > { %747 = vmatprep.subr.bf16.mxu0 %v1284_v60  ;;  %845 = vmatmul.mubr.bf16.gmra.mxu1 %v1304_v2  ;;  %v354_v60 = vld [vmem:[#allocation2 + $0x40] sm:$0xff] }
  0x63   : > { %854 = vmatprep.mubr.bf16.mxu1 %v1352_v17 }
  0x65   : > { %748 = vmatpush2.bf16.msra.mxu0 %v1286_v62 }
  0x66   : > { %749 = vmatprep.subr.bf16.mxu0 %v1290_v63 }
  0x69   : > { %750 = vmatpush2.bf16.msra.mxu0 %v1292_v0  ;;  %v355_v0 = vld [vmem:[#allocation2 + $0x20] sm:$0xff] }
  0x6a   : > { %751 = vmatprep.subr.bf16.mxu0 %v1294_v1  ;;  %855 = vmatmul.mubr.bf16.gmra.mxu1 %v1308_v6 }
  0x6d   : > { %752 = vmatpush2.bf16.msra.mxu0 %v1296_v3 }
  0x70   : > { %754 = vmatmul.mubr.bf16.vlgmr.msra.gmra.mxu0 %v1297_v4  ;;  %v356_v4 = vld [vmem:[#allocation2 + $0x10] sm:$0xff] }
  0x71   : > { %763 = vmatprep.mubr.bf16.mxu0 %v1301_v5 }
  0x78   : > { %764 = vmatmul.mubr.bf16.gmra.mxu0 %v1303_v7 }
  0x79   : > { %773 = vmatprep.mubr.bf16.mxu0 %v1305_v8  ;;  %v357_v8 = vld [vmem:[#allocation2 + $0x38] sm:$0xff] }
  0x80   : > { %774 = vmatmul.mubr.bf16.gmra.mxu0 %v1307_v10 }
  0x81   : > { %783 = vmatprep.mubr.bf16.mxu0 %v1123_v11 }
  0x88   : > { %784 = vmatmul.mubr.bf16.gmra.mxu0 %v1122_v12  ;;  %v358_v12 = vld [vmem:[#allocation2 + $0x60] sm:$0xff] }
 0x112   : > { %v826_v13 = vpop.f32.mrf.mxu1 }
 0x114   : > { %v828_v14 = vpop.f32.mrf.mxu1 }
 0x116   : > { %v830_v15 = vpop.f32.mrf.mxu1 }
 0x118   : > { %v832_v16 = vpop.f32.mrf.mxu1 }
 0x11a   : > { %v836_v17 = vpop.f32.mrf.mxu1 }
 0x11c   : > { %v838_v18 = vpop.f32.mrf.mxu1 }
 0x11e   : > { %v840_v19 = vpop.f32.mrf.mxu1 }
 0x120   : > { %v842_v20 = vpop.f32.mrf.mxu1 }
 0x122   : > { %v846_v21 = vpop.f32.mrf.mxu1 }
 0x124   : > { %v848_v22 = vpop.f32.mrf.mxu1 }
 0x126   : > { %v850_v23 = vpop.f32.mrf.mxu1 }
 0x128   : > { %v852_v26 = vpop.f32.mrf.mxu1 }
 0x12a   : > { %v856_v30 = vpop.f32.mrf.mxu1 }
 0x12c   : > { %v858_v35 = vpop.f32.mrf.mxu1 }
 0x12e   : > { %v860_v40 = vpop.f32.mrf.mxu1 }
 0x130   : > { %v755_v25 = vpop.f32.mrf.mxu0  ;;  %v861_v45 = vpop.f32.mrf.mxu1 }
 0x131   : > { %v827_v27 = vadd.f32 %v826_v13, %v755_v25 }
 0x132   : > { %v757_v29 = vpop.f32.mrf.mxu0 }
 0x133   : > { %v863_v31 = vadd.f32 %v827_v27, %v346_v24  ;;  %v829_v32 = vadd.f32 %v828_v14, %v757_v29 }
 0x134   : > { %v759_v34 = vpop.f32.mrf.mxu0 }
 0x135   : > { %877 = vst [vmem:[#allocation2 + $0x30] sm:$0xff] %v863_v31  ;;  %v864_v36 = vadd.f32 %v829_v32, %v347_v28  ;;  %v831_v37 = vadd.f32 %v830_v15, %v759_v34 }
 0x136   : > { %v761_v39 = vpop.f32.mrf.mxu0 }
 0x137   : > { %878 = vst [vmem:[#allocation2] sm:$0xff] %v864_v36  ;;  %v865_v41 = vadd.f32 %v831_v37, %v348_v33  ;;  %v833_v42 = vadd.f32 %v832_v16, %v761_v39  ;;  %v359_v16 = vld [vmem:[#allocation2 + $0x28] sm:$0xff] }
 0x138   : > { %v765_v44 = vpop.f32.mrf.mxu0 }
 0x139   : > { %879 = vst [vmem:[#allocation2 + $0x58] sm:$0xff] %v865_v41  ;;  %v866_v46 = vadd.f32 %v833_v42, %v349_v38  ;;  %v837_v47 = vadd.f32 %v836_v17, %v765_v44 }
 0x13a   : > { %v767_v49 = vpop.f32.mrf.mxu0 }
 0x13b   : > { %880 = vst [vmem:[#allocation2 + $0x18] sm:$0xff] %v866_v46  ;;  %v867_v50 = vadd.f32 %v837_v47, %v350_v43  ;;  %v839_v51 = vadd.f32 %v838_v18, %v767_v49 }
 0x13c   : > { %v769_v53 = vpop.f32.mrf.mxu0 }
 0x13d   : > { %881 = vst [vmem:[#allocation2 + $0x50] sm:$0xff] %v867_v50  ;;  %v868_v54 = vadd.f32 %v839_v51, %v351_v48  ;;  %v841_v55 = vadd.f32 %v840_v19, %v769_v53 }
 0x13e   : > { %v771_v57 = vpop.f32.mrf.mxu0 }
 0x13f   : > { %882 = vst [vmem:[#allocation2 + $0x68] sm:$0xff] %v868_v54  ;;  %v869_v58 = vadd.f32 %v841_v55, %v352_v52  ;;  %v843_v59 = vadd.f32 %v842_v20, %v771_v57 }
 0x140   : > { %v775_v61 = vpop.f32.mrf.mxu0 }
 0x141   : > { %883 = vst [vmem:[#allocation2 + $0x8] sm:$0xff] %v869_v58  ;;  %v870_v62 = vadd.f32 %v843_v59, %v353_v56  ;;  %v847_v63 = vadd.f32 %v846_v21, %v775_v61 }
 0x142   : > { %v777_v1 = vpop.f32.mrf.mxu0 }
 0x143   : > { %884 = vst [vmem:[#allocation2 + $0x48] sm:$0xff] %v870_v62  ;;  %v871_v2 = vadd.f32 %v847_v63, %v354_v60  ;;  %v849_v3 = vadd.f32 %v848_v22, %v777_v1 }
 0x144   : > { %v779_v5 = vpop.f32.mrf.mxu0 }
 0x145   : > { %885 = vst [vmem:[#allocation2 + $0x40] sm:$0xff] %v871_v2  ;;  %v872_v6 = vadd.f32 %v849_v3, %v355_v0  ;;  %v851_v7 = vadd.f32 %v850_v23, %v779_v5 }
 0x146   : > { %v781_v9 = vpop.f32.mrf.mxu0 }
 0x147   : > { %886 = vst [vmem:[#allocation2 + $0x20] sm:$0xff] %v872_v6  ;;  %v873_v10 = vadd.f32 %v851_v7, %v356_v4  ;;  %v853_v11 = vadd.f32 %v852_v26, %v781_v9 }
 0x148   : > { %v785_v13 = vpop.f32.mrf.mxu0 }
 0x149   : > { %887 = vst [vmem:[#allocation2 + $0x10] sm:$0xff] %v873_v10  ;;  %v874_v14 = vadd.f32 %v853_v11, %v357_v8  ;;  %v857_v15 = vadd.f32 %v856_v30, %v785_v13 }
 0x14a   : > { %v787_v17 = vpop.f32.mrf.mxu0 }
 0x14b   : > { %888 = vst [vmem:[#allocation2 + $0x38] sm:$0xff] %v874_v14  ;;  %v875_v18 = vadd.f32 %v857_v15, %v358_v12  ;;  %v859_v19 = vadd.f32 %v858_v35, %v787_v17  ;;  %894 = sbr.rel (%p1173_p11) target bundleno = 355 (0x163), region = 66 }
 0x14c   : > { %v789_v20 = vpop.f32.mrf.mxu0 }
 0x14d   : > { %889 = vst [vmem:[#allocation2 + $0x60] sm:$0xff] %v875_v18  ;;  %v876_v21 = vadd.f32 %v859_v19, %v359_v16 }
 0x14e   : > { %v790_v22 = vpop.f32.mrf.mxu0 }
 0x14f   : > { %890 = vst [vmem:[#allocation2 + $0x28] sm:$0xff] %v876_v21 }
 0x150   : > { %v911_v23 = vlaneseq  ;;  %v909_v25 = vld [vmem:[%s1554_s2] sm:$0x3]  ;;  %v895_v26 = vld [vmem:[#allocation2 + $0x30] sm:$0xff]  ;;  %v897_v30 = vld [vmem:[#allocation2 + $0x58] sm:$0xff] }
 0x151   : > { %v896_v28 = vld [vmem:[#allocation2] sm:$0xff]  ;;  %v898_v31 = vld [vmem:[#allocation2 + $0x18] sm:$0xff]  ;;  %v899_v32 = vld [vmem:[#allocation2 + $0x50] sm:$0xff] }
 0x152   : > { %v912_v24 = vshrl.u32 %v911_v23, 7  ;;  %v900_v35 = vld [vmem:[#allocation2 + $0x68] sm:$0xff]  ;;  %v903_v42 = vld [vmem:[#allocation2 + $0x40] sm:$0xff]  ;;  %v905_v48 = vld [vmem:[#allocation2 + $0x10] sm:$0xff] }
 0x153   : > { %v901_v36 = vld [vmem:[#allocation2 + $0x8] sm:$0xff]  ;;  %v904_v47 = vld [vmem:[#allocation2 + $0x20] sm:$0xff]  ;;  %v906_v49 = vld [vmem:[#allocation2 + $0x38] sm:$0xff] }
 0x154   : > { %v913_v27 = vsub.s32 0, %v912_v24  ;;  %v917_v29 = vsub.s32 1, %v912_v24  ;;  %v902_v37 = vld [vmem:[#allocation2 + $0x48] sm:$0xff]  ;;  %v907_v54 = vld [vmem:[#allocation2 + $0x60] sm:$0xff] }
 0x156   : > { %v914_v33 = vrot.slane %v909_v25, %v913_v27  ;;  %v918_v34 = vrot.slane %v909_v25, %v917_v29  ;;  %v908_v55 = vld [vmem:[#allocation2 + $0x28] sm:$0xff] }
 0x158   : > { %v921_v38 = vadd.f32 %v914_v33, %v895_v26  ;;  %v922_v39 = vadd.f32 %v918_v34, %v896_v28  ;;  %v923_v40 = vadd.f32 %v914_v33, %v897_v30  ;;  %v924_v41 = vadd.f32 %v918_v34, %v898_v31 }
 0x159   : > { %v925_v43 = vadd.f32 %v914_v33, %v899_v32  ;;  %v926_v44 = vadd.f32 %v918_v34, %v900_v35  ;;  %v927_v45 = vadd.f32 %v914_v33, %v901_v36  ;;  %v928_v46 = vadd.f32 %v918_v34, %v902_v37 }
 0x15a   : > { %v935_v50 = vmax.f32 %v921_v38, 0.0  ;;  %v936_v51 = vmax.f32 %v922_v39, 0.0  ;;  %v937_v52 = vmax.f32 %v923_v40, 0.0  ;;  %v938_v53 = vmax.f32 %v924_v41, 0.0 }
 0x15b   : > { %v939_v56 = vmax.f32 %v925_v43, 0.0  ;;  %v940_v57 = vmax.f32 %v926_v44, 0.0  ;;  %v941_v58 = vmax.f32 %v927_v45, 0.0  ;;  %v942_v59 = vmax.f32 %v928_v46, 0.0 }
 0x15c   : > { %949 = vst [vmem:[%s1555_s3] sm:$0xff] %v935_v50  ;;  %950 = vst [vmem:[%s1555_s3 + $0x8] sm:$0xff] %v936_v51  ;;  %v929_v60 = vadd.f32 %v914_v33, %v903_v42  ;;  %v930_v61 = vadd.f32 %v918_v34, %v904_v47  ;;  %v931_v62 = vadd.f32 %v914_v33, %v905_v48 }
 0x15d   : > { %951 = vst [vmem:[%s1555_s3 + $0x10] sm:$0xff] %v937_v52  ;;  %952 = vst [vmem:[%s1555_s3 + $0x18] sm:$0xff] %v938_v53  ;;  %v932_v63 = vadd.f32 %v918_v34, %v906_v49  ;;  %v933_v0 = vadd.f32 %v914_v33, %v907_v54  ;;  %v934_v1 = vadd.f32 %v918_v34, %v908_v55 }
 0x15e   : > { %953 = vst [vmem:[%s1555_s3 + $0x20] sm:$0xff] %v939_v56  ;;  %954 = vst [vmem:[%s1555_s3 + $0x28] sm:$0xff] %v940_v57  ;;  %v943_v2 = vmax.f32 %v929_v60, 0.0  ;;  %v944_v3 = vmax.f32 %v930_v61, 0.0  ;;  %v945_v4 = vmax.f32 %v931_v62, 0.0 }
 0x15f   : > { %955 = vst [vmem:[%s1555_s3 + $0x30] sm:$0xff] %v941_v58  ;;  %956 = vst [vmem:[%s1555_s3 + $0x38] sm:$0xff] %v942_v59  ;;  %v946_v5 = vmax.f32 %v932_v63, 0.0  ;;  %v947_v6 = vmax.f32 %v933_v0, 0.0  ;;  %v948_v7 = vmax.f32 %v934_v1, 0.0 }
 0x160   : > { %957 = vst [vmem:[%s1555_s3 + $0x40] sm:$0xff] %v943_v2  ;;  %958 = vst [vmem:[%s1555_s3 + $0x48] sm:$0xff] %v944_v3 }
 0x161   : > { %959 = vst [vmem:[%s1555_s3 + $0x50] sm:$0xff] %v945_v4  ;;  %960 = vst [vmem:[%s1555_s3 + $0x58] sm:$0xff] %v946_v5 }
 0x162   : > { %961 = vst [vmem:[%s1555_s3 + $0x60] sm:$0xff] %v947_v6  ;;  %962 = vst [vmem:[%s1555_s3 + $0x68] sm:$0xff] %v948_v7 }
 0x163 PF: > { %s13_s16 = sadd.s32 1, %s1349_s16   ;;  %s1556_s12 = smov %s1337_s13 }
 0x164   : > { %p10_p12 = scmp.ge.s32.totalorder %s13_s16, 11   ;;  %s1557_s13 = smov %s1408_s20 }
 0x165   : > { %s1558_s14 = smov %s1345_s15  ;;  %s1559_s15 = smov %s1561_s17 }
 0x166   :  { %12 = sbr.rel (!%p10_p12) target bundleno = 3 (0x3), region = 113 }

// kernel: lw_cbam_alexnet_forward.38
= control target key start
LH: loop header
LB: loop body
LE: loop exit
PB: predicated region body
PF: predicated region fallthrough
CT: control target
= control target key end

     0   :  { %s118_s0 = inlined_call_operand.vmem [shape: f32[9,8,256], index: 0, kind: input, shape index: {}]   ;;  %s119_s1 = inlined_call_operand.vmem [shape: f32[8,256], index: 1, kind: output, shape index: {}]  }
   0x1   :  { %v8_v0 = vld [vmem:[%s118_s0] sm:$0xff]  ;;  %v10_v1 = vld [vmem:[%s118_s0 + $0x10] sm:$0xff]  ;;  %v9_v12 = vld [vmem:[%s118_s0 + $0x8] sm:$0xff] }
   0x2   :  { %v12_v2 = vld [vmem:[%s118_s0 + $0x20] sm:$0xff]  ;;  %v14_v3 = vld [vmem:[%s118_s0 + $0x30] sm:$0xff]  ;;  %v11_v13 = vld [vmem:[%s118_s0 + $0x18] sm:$0xff] }
   0x3   :  { %v16_v4 = vld [vmem:[%s118_s0 + $0x40] sm:$0xff]  ;;  %v18_v5 = vld [vmem:[%s118_s0 + $0x50] sm:$0xff]  ;;  %v26_v6 = vmax.f32 %v8_v0, %v12_v2  ;;  %v27_v10 = vmax.f32 %v10_v1, %v14_v3  ;;  %v13_v14 = vld [vmem:[%s118_s0 + $0x28] sm:$0xff] }
   0x4   :  { %v20_v7 = vld [vmem:[%s118_s0 + $0x60] sm:$0xff]  ;;  %v22_v8 = vld [vmem:[%s118_s0 + $0x70] sm:$0xff]  ;;  %v15_v16 = vld [vmem:[%s118_s0 + $0x38] sm:$0xff]  ;;  %v34_v19 = vmax.f32 %v9_v12, %v13_v14 }
   0x5   :  { %v24_v9 = vld [vmem:[%s118_s0 + $0x80] sm:$0xff]  ;;  %v28_v11 = vmax.f32 %v26_v6, %v16_v4  ;;  %v29_v15 = vmax.f32 %v27_v10, %v18_v5  ;;  %v17_v17 = vld [vmem:[%s118_s0 + $0x48] sm:$0xff]  ;;  %v19_v18 = vld [vmem:[%s118_s0 + $0x58] sm:$0xff]  ;;  %v35_v22 = vmax.f32 %v11_v13, %v15_v16 }
   0x6   :  { %v21_v21 = vld [vmem:[%s118_s0 + $0x68] sm:$0xff]  ;;  %v23_v24 = vld [vmem:[%s118_s0 + $0x78] sm:$0xff]  ;;  %v36_v25 = vmax.f32 %v34_v19, %v17_v17 }
   0x7   :  { %v30_v20 = vmax.f32 %v28_v11, %v20_v7  ;;  %v31_v23 = vmax.f32 %v29_v15, %v22_v8  ;;  %v25_v27 = vld [vmem:[%s118_s0 + $0x88] sm:$0xff]  ;;  %v37_v28 = vmax.f32 %v35_v22, %v19_v18 }
   0x8   :  { %v38_v29 = vmax.f32 %v36_v25, %v21_v21 }
   0x9   :  { %v32_v26 = vmax.f32 %v30_v20, %v24_v9  ;;  %v39_v31 = vmax.f32 %v37_v28, %v23_v24 }
   0xa   :  { %v40_v32 = vmax.f32 %v38_v29, %v25_v27 }
   0xb   :  { %v33_v30 = vmax.f32 %v32_v26, %v31_v23 }
   0xc   :  { %v41_v33 = vmax.f32 %v40_v32, %v39_v31 }
   0xd   :  { %42 = vst [vmem:[%s119_s1] sm:$0xff] %v33_v30 }
   0xe   :  { %43 = vst [vmem:[%s119_s1 + $0x8] sm:$0xff] %v41_v33 }

// kernel: lw_cbam_alexnet_forward.37
= control target key start
LH: loop header
LB: loop body
LE: loop exit
PB: predicated region body
PF: predicated region fallthrough
CT: control target
= control target key end

     0   :  { %s1373_s12 = smov 0   ;;  %s1375_s13 = smov 0   ;;  %s1552_s0 = inlined_call_operand.vmem [shape: bf16[56,2304], index: 0, kind: input, shape index: {}]   ;;  %s1553_s1 = inlined_call_operand.vmem [shape: bf16[2304,256], index: 1, kind: input, shape index: {}]   ;;  %s1554_s2 = inlined_call_operand.vmem [shape: f32[1,256], index: 2, kind: input, shape index: {}]   ;;  %s1555_s3 = inlined_call_operand.vmem [shape: f32[56,256], index: 3, kind: output, shape index: {}]  }
   0x1   :  { %s1377_s14 = smov 0   ;;  %s1379_s15 = smov 0  }
   0x2   :  { %s1381_s16 = smov 0  }
   0x3 LB: > { %s25_s17 = sadd.s32 1, %s1345_s15  ;;  %p48_p1 = scmp.ne.s32.totalorder %s1337_s13, %s1333_s12  ;;  %s1349_s16 = sphi %s1381_s16, %s13_s16   ;;  %s1345_s15 = sphi %s1379_s15, %s1559_s15   ;;  %s1341_s14 = sphi %s1377_s14, %s1558_s14   ;;  %s1337_s13 = sphi %s1375_s13, %s1557_s13   ;;  %s1333_s12 = sphi %s1373_s12, %s1556_s12  }
   0x4   : > { %p26_p0 = scmp.ge.s32.totalorder %s25_s17, 6  ;;  %p49_p2 = scmp.eq.s32.totalorder %s1349_s16, 0 }
   0x5   : > { %s41_s19 = sadd.s32 1, %s1337_s13  ;;  %p1093_p5 = scmp.ge.s32.totalorder %s1349_s16, 6 }
   0x6   : > { %s1561_s17 = smov (%p26_p0, %s25_s17), 0  ;;  %p50_p3 = por %p49_p2, %p48_p1 }
   0x7   : > { %s37_s18 = ssub.s32 %s1345_s15, %s1561_s17  ;;  %164 = sbr.rel (%p1093_p5) target bundleno = 25 (0x19), region = 20 }
   0x8   : > { %p39_p4 = scmp.eq.s32.totalorder %s37_s18, 0 }
   0xa   : > { %s1408_s20 = scalar_select %p39_p4, %s1337_s13, %s41_s19  }
   0xc   : > { %167 = sbr.rel (!%p50_p3) target bundleno = 25 (0x19), region = 24  ;;  %s169_s21 = sand.u32 (%p50_p3), 1, %s1337_s13  }
   0xd   : > { %s1178_s22 = smul.u32 (%p50_p3), 12, %s1345_s15 }
   0xe   : > { %s1180_s23 = smul.u32 (%p50_p3), 84, %s169_s21 }
   0xf   : > { %s177_s26 = scalar_lea.vmem (%p50_p3), %s1552_s0, %s1178_s22 }
  0x10   : > { %v192_v0 = vld [vmem:[%s177_s26] sm:$0xff] (%p50_p3)  ;;  %v194_v1 = vld [vmem:[%s177_s26 + $0x48] sm:$0xff] (%p50_p3)  ;;  %v196_v2 = vld [vmem:[%s177_s26 + $0x90] sm:$0xff] (%p50_p3)  ;;  %s171_s27 = scalar_lea.vmem (%p50_p3), [#allocation3], %s1180_s23 }
  0x11   : > { %193 = vst [vmem:[%s171_s27] sm:$0xff] %v192_v0  ;;  %195 = vst [vmem:[%s171_s27 + $0xc] sm:$0xff] %v194_v1  ;;  %v198_v3 = vld [vmem:[%s177_s26 + $0xd8] sm:$0xff]  ;;  %v200_v4 = vld [vmem:[%s177_s26 + $0x120] sm:$0xff] }
  0x12   : > { %197 = vst [vmem:[%s171_s27 + $0x18] sm:$0xff] %v196_v2  ;;  %v202_v5 = vld [vmem:[%s177_s26 + $0x168] sm:$0xff]  ;;  %199 = vst [vmem:[%s171_s27 + $0x24] sm:$0xff] %v198_v3  ;;  %v204_v6 = vld [vmem:[%s177_s26 + $0x1b0] sm:$0xff] }
  0x13   : > { %201 = vst [vmem:[%s171_s27 + $0x30] sm:$0xff] %v200_v4  ;;  %203 = vst [vmem:[%s171_s27 + $0x3c] sm:$0xff] %v202_v5  ;;  %v1095_v7 = vld [vmem:[%s177_s26 + $0x8] sm:$0xf]  ;;  %v1097_v8 = vld [vmem:[%s177_s26 + $0x50] sm:$0xf] }
  0x14   : > { %205 = vst [vmem:[%s171_s27 + $0x48] sm:$0xff] %v204_v6  ;;  %1096 = vst [vmem:[%s171_s27 + $0x8] sm:$0xf] %v1095_v7  ;;  %v1099_v9 = vld [vmem:[%s177_s26 + $0x98] sm:$0xf] }
  0x15   : > { %1098 = vst [vmem:[%s171_s27 + $0x14] sm:$0xf] %v1097_v8  ;;  %v1101_v10 = vld [vmem:[%s177_s26 + $0xe0] sm:$0xf]  ;;  %v1103_v11 = vld [vmem:[%s177_s26 + $0x128] sm:$0xf] }
  0x16   : > { %1100 = vst [vmem:[%s171_s27 + $0x20] sm:$0xf] %v1099_v9  ;;  %1102 = vst [vmem:[%s171_s27 + $0x2c] sm:$0xf] %v1101_v10  ;;  %v1105_v12 = vld [vmem:[%s177_s26 + $0x170] sm:$0xf] }
  0x17   : > { %1104 = vst [vmem:[%s171_s27 + $0x38] sm:$0xf] %v1103_v11  ;;  %v1107_v13 = vld [vmem:[%s177_s26 + $0x1b8] sm:$0xf]  ;;  %1106 = vst [vmem:[%s171_s27 + $0x44] sm:$0xf] %v1105_v12 }
  0x18   : > { %1108 = vst [vmem:[%s171_s27 + $0x50] sm:$0xf] %v1107_v13 }
  0x19 PF: > { %p1109_p6 = scmp.ge.s32.totalorder %s1349_s16, 1  ;;  %p247_p7 = scmp.lt.s32.totalorder %s1349_s16, 7 }
  0x1b   : > { %p248_p8 = pnand %p1109_p6, %p247_p7 }
  0x1c   : > { %s254_s28 = sand.u32 (!%p248_p8), 1, %s1333_s12   ;;  %s298_s29 = smul.u32 (!%p248_p8), 48, %s1341_s14 }
  0x1d   : > { %251 = sbr.rel (%p248_p8) target bundleno = 355 (0x163), region = 54  ;;  %p1112_p10 = scmp.ne.s32.totalorder (!%p248_p8), %s1341_s14, 0 }
  0x1e   : > { %s1181_s30 = smul.u32 (!%p248_p8), 84, %s254_s28  ;;  %p300_p9 = scmp.lt.s32.totalorder (!%p248_p8), %s298_s29, 287 }
  0x20   : > { %s1425_s8 = scalar_lea.vmem (!%p248_p8), [#allocation3], %s1181_s30 }
  0x22   : > { %s1563_s29 = smov (!%p300_p9, %s298_s29), 287  ;;  %331 = sbr.rel (%p1112_p10) target bundleno = 47 (0x2f), region = 62 }
  0x23   : > { %s1179_s4 = sshll.u32 %s1563_s29, 3 }
  0x24   : > { %s1423_s7 = scalar_lea.vmem %s1553_s1, %s1179_s4 }
  0x27   : > { %v1351_v14 = vmov 0.0  }
  0x28   : > { %332 = vst [vmem:[#allocation2 + $0x30] sm:$0xff] %v1351_v14  ;;  %333 = vst [vmem:[#allocation2] sm:$0xff] %v1351_v14 }
  0x29   : > { %334 = vst [vmem:[#allocation2 + $0x58] sm:$0xff] %v1351_v14  ;;  %335 = vst [vmem:[#allocation2 + $0x18] sm:$0xff] %v1351_v14 }
  0x2a   : > { %336 = vst [vmem:[#allocation2 + $0x50] sm:$0xff] %v1351_v14  ;;  %337 = vst [vmem:[#allocation2 + $0x68] sm:$0xff] %v1351_v14 }
  0x2b   : > { %338 = vst [vmem:[#allocation2 + $0x8] sm:$0xff] %v1351_v14  ;;  %339 = vst [vmem:[#allocation2 + $0x48] sm:$0xff] %v1351_v14 }
  0x2c   : > { %340 = vst [vmem:[#allocation2 + $0x40] sm:$0xff] %v1351_v14  ;;  %341 = vst [vmem:[#allocation2 + $0x20] sm:$0xff] %v1351_v14 }
  0x2d   : > { %342 = vst [vmem:[#allocation2 + $0x10] sm:$0xff] %v1351_v14  ;;  %343 = vst [vmem:[#allocation2 + $0x38] sm:$0xff] %v1351_v14 }
  0x2e   : > { %344 = vst [vmem:[#allocation2 + $0x60] sm:$0xff] %v1351_v14  ;;  %345 = vst [vmem:[#allocation2 + $0x28] sm:$0xff] %v1351_v14 }
  0x2f PF: > { %v1224_v15 = vld [vmem:[%s1423_s7 + $0x74] ss:$8 sps:$4 sm:$0xff]   ;;  %v1226_v16 = vld [vmem:[%s1423_s7 + $0x70] ss:$8 sps:$4 sm:$0xff]   ;;  %v1352_v17 = vmov 0   ;;  %p1173_p11 = scmp.ne.s32.totalorder %s1341_s14, 5 }
  0x30   : > { %824 = vmatprep.mubr.bf16.mxu1 %v1352_v17  ;;  %721 = vmatprep.subr.bf16.mxu0 %v1224_v15  ;;  %v1227_v18 = vld [vmem:[%s1423_s7 + $0x64] ss:$8 sps:$4 sm:$0xff]   ;;  %v1229_v19 = vld [vmem:[%s1423_s7 + $0x60] ss:$8 sps:$4 sm:$0xff]   ;;  %v1230_v20 = vld [vmem:[%s1423_s7 + $0x54] ss:$8 sps:$4 sm:$0xff]  }
  0x31   : > { %722 = vmatpush1.bf16.msra.mxu0 %v1226_v16  ;;  %v1232_v21 = vld [vmem:[%s1423_s7 + $0x50] ss:$8 sps:$4 sm:$0xff]   ;;  %v1233_v22 = vld [vmem:[%s1423_s7 + $0x44] ss:$8 sps:$4 sm:$0xff]   ;;  %v1245_v23 = vld [vmem:[%s1423_s7 + $0x174] ss:$8 sps:$4 sm:$0xff]  }
  0x32   : > { %723 = vmatprep.subr.bf16.mxu0 %v1227_v18  ;;  %v1247_v24 = vld [vmem:[%s1423_s7 + $0x170] ss:$8 sps:$4 sm:$0xff]   ;;  %v1235_v25 = vld [vmem:[%s1423_s7 + $0x40] ss:$8 sps:$4 sm:$0xff]   ;;  %v1236_v26 = vld [vmem:[%s1423_s7 + $0x34] ss:$8 sps:$4 sm:$0xff]   ;;  %792 = vmatprep.subr.bf16.mxu1 %v1245_v23 }
  0x33   : > { %v1251_v27 = vld [vmem:[%s1423_s7 + $0x164] ss:$8 sps:$4 sm:$0xff]   ;;  %793 = vmatpush1.bf16.msra.mxu1 %v1247_v24  ;;  %v1253_v28 = vld [vmem:[%s1423_s7 + $0x160] ss:$8 sps:$4 sm:$0xff]   ;;  %v1238_v29 = vld [vmem:[%s1423_s7 + $0x30] ss:$8 sps:$4 sm:$0xff]  }
  0x34   : > { %794 = vmatprep.subr.bf16.mxu1 %v1251_v27  ;;  %v1257_v30 = vld [vmem:[%s1423_s7 + $0x154] ss:$8 sps:$4 sm:$0xff]   ;;  %v1239_v31 = vld [vmem:[%s1423_s7 + $0x24] ss:$8 sps:$4 sm:$0xff]   ;;  %v1259_v32 = vld [vmem:[%s1423_s7 + $0x150] ss:$8 sps:$4 sm:$0xff]  }
  0x35   : > { %724 = vmatpush1.bf16.msra.mxu0 %v1229_v19  ;;  %v1263_v33 = vld [vmem:[%s1423_s7 + $0x144] ss:$8 sps:$4 sm:$0xff]   ;;  %v1241_v34 = vld [vmem:[%s1423_s7 + $0x20] ss:$8 sps:$4 sm:$0xff]   ;;  %v1242_v35 = vld [vmem:[%s1423_s7 + $0x14] ss:$8 sps:$4 sm:$0xff]  }
  0x36   : > { %725 = vmatprep.subr.bf16.mxu0 %v1230_v20  ;;  %v1265_v36 = vld [vmem:[%s1423_s7 + $0x140] ss:$8 sps:$4 sm:$0xff]   ;;  %v1269_v37 = vld [vmem:[%s1423_s7 + $0x134] ss:$8 sps:$4 sm:$0xff]   ;;  %v1244_v38 = vld [vmem:[%s1423_s7 + $0x10] ss:$8 sps:$4 sm:$0xff]  }
  0x37   : > { %795 = vmatpush1.bf16.msra.mxu1 %v1253_v28  ;;  %v1248_v39 = vld [vmem:[%s1423_s7 + $0x4] ss:$8 sps:$4 sm:$0xff]   ;;  %v1271_v40 = vld [vmem:[%s1423_s7 + $0x130] ss:$8 sps:$4 sm:$0xff]   ;;  %v1250_v42 = vld [vmem:[%s1423_s7] ss:$8 sps:$4 sm:$0xff]  }
  0x38   : > { %796 = vmatprep.subr.bf16.mxu1 %v1257_v30  ;;  %v1275_v41 = vld [vmem:[%s1423_s7 + $0x124] ss:$8 sps:$4 sm:$0xff]   ;;  %v1254_v43 = vld [vmem:[%s1423_s7 + $0xf4] ss:$8 sps:$4 sm:$0xff]   ;;  %v1277_v44 = vld [vmem:[%s1423_s7 + $0x120] ss:$8 sps:$4 sm:$0xff]  }
  0x39   : > { %726 = vmatpush1.bf16.msra.mxu0 %v1232_v21  ;;  %v1281_v45 = vld [vmem:[%s1423_s7 + $0x114] ss:$8 sps:$4 sm:$0xff]   ;;  %v1256_v46 = vld [vmem:[%s1423_s7 + $0xf0] ss:$8 sps:$4 sm:$0xff]   ;;  %v1260_v47 = vld [vmem:[%s1423_s7 + $0xe4] ss:$8 sps:$4 sm:$0xff]  }
  0x3a   : > { %727 = vmatprep.subr.bf16.mxu0 %v1233_v22  ;;  %v1283_v48 = vld [vmem:[%s1423_s7 + $0x110] ss:$8 sps:$4 sm:$0xff]   ;;  %v1287_v49 = vld [vmem:[%s1423_s7 + $0x104] ss:$8 sps:$4 sm:$0xff]   ;;  %v1299_v50 = vld [vmem:[%s1425_s8 + $0x4] ss:$12 sps:$4 sm:$0xff]  }
  0x3b   : > { %797 = vmatpush1.bf16.msra.mxu1 %v1259_v32  ;;  %v1262_v51 = vld [vmem:[%s1423_s7 + $0xe0] ss:$8 sps:$4 sm:$0xff]   ;;  %v1266_v52 = vld [vmem:[%s1423_s7 + $0xd4] ss:$8 sps:$4 sm:$0xff]   ;;  %753 = vmatprep.mubr.bf16.mxu0 %v1299_v50  ;;  %v1268_v54 = vld [vmem:[%s1423_s7 + $0xd0] ss:$8 sps:$4 sm:$0xff]  }
  0x3c   : > { %798 = vmatprep.subr.bf16.mxu1 %v1263_v33  ;;  %v1289_v53 = vld [vmem:[%s1423_s7 + $0x100] ss:$8 sps:$4 sm:$0xff]   ;;  %v1272_v55 = vld [vmem:[%s1423_s7 + $0xc4] ss:$8 sps:$4 sm:$0xff]   ;;  %v1278_v58 = vld [vmem:[%s1423_s7 + $0xb4] ss:$8 sps:$4 sm:$0xff]  }
  0x3d   : > { %728 = vmatpush1.bf16.msra.mxu0 %v1235_v25  ;;  %v1293_v56 = vld [vmem:[%s1425_s8 + $0x8] ss:$12 sps:$4 sm:$0xff]   ;;  %v1274_v57 = vld [vmem:[%s1423_s7 + $0xc0] ss:$8 sps:$4 sm:$0xff]   ;;  %v1300_v61 = vld [vmem:[%s1425_s8 + $0x20] ss:$12 sps:$4 sm:$0xff]  }
  0x3e   : > { %729 = vmatprep.subr.bf16.mxu0 %v1236_v26  ;;  %v1280_v59 = vld [vmem:[%s1423_s7 + $0xb0] ss:$8 sps:$4 sm:$0xff]   ;;  %v1284_v60 = vld [vmem:[%s1423_s7 + $0xa4] ss:$8 sps:$4 sm:$0xff]   ;;  %v1286_v62 = vld [vmem:[%s1423_s7 + $0xa0] ss:$8 sps:$4 sm:$0xff]  }
  0x3f   : > { %799 = vmatpush1.bf16.msra.mxu1 %v1265_v36  ;;  %v1290_v63 = vld [vmem:[%s1423_s7 + $0x94] ss:$8 sps:$4 sm:$0xff]   ;;  %v1292_v0 = vld [vmem:[%s1423_s7 + $0x90] ss:$8 sps:$4 sm:$0xff]   ;;  %v1294_v1 = vld [vmem:[%s1423_s7 + $0x84] ss:$8 sps:$4 sm:$0xff]  }
  0x40   : > { %800 = vmatprep.subr.bf16.mxu1 %v1269_v37  ;;  %v1304_v2 = vld [vmem:[%s1425_s8 + $0x38] ss:$12 sps:$4 sm:$0xff]   ;;  %v1297_v4 = vld [vmem:[%s1425_s8] ss:$12 sps:$4 sm:$0xff]   ;;  %v1301_v5 = vld [vmem:[%s1425_s8 + $0x1c] ss:$12 sps:$4 sm:$0xff]  }
  0x41   : > { %730 = vmatpush1.bf16.msra.mxu0 %v1238_v29  ;;  %v1296_v3 = vld [vmem:[%s1423_s7 + $0x80] ss:$8 sps:$4 sm:$0xff]   ;;  %v1305_v8 = vld [vmem:[%s1425_s8 + $0x34] ss:$12 sps:$4 sm:$0xff]   ;;  %v372_v9 = vld [vmem:[%s1425_s8 + $0x48] sm:$0xff] }
  0x42   : > { %731 = vmatprep.subr.bf16.mxu0 %v1239_v31  ;;  %v1308_v6 = vld [vmem:[%s1425_s8 + $0x50] ss:$0 sps:$4 sm:$0xff]   ;;  %v1303_v7 = vld [vmem:[%s1425_s8 + $0x18] ss:$12 sps:$4 sm:$0xff]   ;;  %v1123_v11 = vcombine.high %v372_v9, %v372_v9  ;;  %v1122_v12 = vcombine.low %v372_v9, %v372_v9 }
  0x43   : > { %801 = vmatpush1.bf16.msra.mxu1 %v1271_v40  ;;  %v1307_v10 = vld [vmem:[%s1425_s8 + $0x30] ss:$12 sps:$4 sm:$0xff]   ;;  %v348_v33 = vld [vmem:[#allocation2 + $0x58] sm:$0xff] }
  0x44   : > { %802 = vmatprep.subr.bf16.mxu1 %v1275_v41  ;;  %v346_v24 = vld [vmem:[#allocation2 + $0x30] sm:$0xff]  ;;  %v347_v28 = vld [vmem:[#allocation2] sm:$0xff] }
  0x45   : > { %732 = vmatpush1.bf16.msra.mxu0 %v1241_v34 }
  0x46   : > { %733 = vmatprep.subr.bf16.mxu0 %v1242_v35 }
  0x47   : > { %803 = vmatpush1.bf16.msra.mxu1 %v1277_v44 }
  0x48   : > { %804 = vmatprep.subr.bf16.mxu1 %v1281_v45 }
  0x49   : > { %734 = vmatpush1.bf16.msra.mxu0 %v1244_v38  ;;  %v349_v38 = vld [vmem:[#allocation2 + $0x18] sm:$0xff] }
  0x4a   : > { %735 = vmatprep.subr.bf16.mxu0 %v1248_v39 }
  0x4b   : > { %805 = vmatpush1.bf16.msra.mxu1 %v1283_v48  ;;  %v351_v48 = vld [vmem:[#allocation2 + $0x68] sm:$0xff] }
  0x4c   : > { %806 = vmatprep.subr.bf16.mxu1 %v1287_v49 }
  0x4d   : > { %736 = vmatpush1.bf16.msra.mxu0 %v1250_v42 }
  0x4e   : > { %737 = vmatprep.subr.bf16.mxu0 %v1254_v43  ;;  %v350_v43 = vld [vmem:[#allocation2 + $0x50] sm:$0xff] }
  0x4f   : > { %807 = vmatpush1.bf16.msra.mxu1 %v1289_v53 }
  0x51   : > { %738 = vmatpush2.bf16.msra.mxu0 %v1256_v46 }
  0x52   : > { %739 = vmatprep.subr.bf16.mxu0 %v1260_v47  ;;  %825 = vmatmul.mubr.bf16.vlgmr.msra.gmra.mxu1 %v1293_v56  ;;  %v353_v56 = vld [vmem:[#allocation2 + $0x48] sm:$0xff] }
  0x53   : > { %834 = vmatprep.mubr.bf16.mxu1 %v1352_v17 }
  0x55   : > { %740 = vmatpush2.bf16.msra.mxu0 %v1262_v51 }
  0x56   : > { %741 = vmatprep.subr.bf16.mxu0 %v1266_v52  ;;  %v352_v52 = vld [vmem:[#allocation2 + $0x8] sm:$0xff] }
  0x59   : > { %742 = vmatpush2.bf16.msra.mxu0 %v1268_v54 }
  0x5a   : > { %743 = vmatprep.subr.bf16.mxu0 %v1272_v55  ;;  %835 = vmatmul.mubr.bf16.gmra.mxu1 %v1300_v61 }
  0x5b   : > { %844 = vmatprep.mubr.bf16.mxu1 %v1352_v17 }
  0x5d   : > { %744 = vmatpush2.bf16.msra.mxu0 %v1274_v57 }
  0x5e   : > { %745 = vmatprep.subr.bf16.mxu0 %v1278_v58 }
  0x61   : > { %746 = vmatpush2.bf16.msra.mxu0 %v1280_v59 }
  0x62   : > { %747 = vmatprep.subr.bf16.mxu0 %v1284_v60  ;;  %845 = vmatmul.mubr.bf16.gmra.mxu1 %v1304_v2  ;;  %v354_v60 = vld [vmem:[#allocation2 + $0x40] sm:$0xff] }
  0x63   : > { %854 = vmatprep.mubr.bf16.mxu1 %v1352_v17 }
  0x65   : > { %748 = vmatpush2.bf16.msra.mxu0 %v1286_v62 }
  0x66   : > { %749 = vmatprep.subr.bf16.mxu0 %v1290_v63 }
  0x69   : > { %750 = vmatpush2.bf16.msra.mxu0 %v1292_v0  ;;  %v355_v0 = vld [vmem:[#allocation2 + $0x20] sm:$0xff] }
  0x6a   : > { %751 = vmatprep.subr.bf16.mxu0 %v1294_v1  ;;  %855 = vmatmul.mubr.bf16.gmra.mxu1 %v1308_v6 }
  0x6d   : > { %752 = vmatpush2.bf16.msra.mxu0 %v1296_v3 }
  0x70   : > { %754 = vmatmul.mubr.bf16.vlgmr.msra.gmra.mxu0 %v1297_v4  ;;  %v356_v4 = vld [vmem:[#allocation2 + $0x10] sm:$0xff] }
  0x71   : > { %763 = vmatprep.mubr.bf16.mxu0 %v1301_v5 }
  0x78   : > { %764 = vmatmul.mubr.bf16.gmra.mxu0 %v1303_v7 }
  0x79   : > { %773 = vmatprep.mubr.bf16.mxu0 %v1305_v8  ;;  %v357_v8 = vld [vmem:[#allocation2 + $0x38] sm:$0xff] }
  0x80   : > { %774 = vmatmul.mubr.bf16.gmra.mxu0 %v1307_v10 }
  0x81   : > { %783 = vmatprep.mubr.bf16.mxu0 %v1123_v11 }
  0x88   : > { %784 = vmatmul.mubr.bf16.gmra.mxu0 %v1122_v12  ;;  %v358_v12 = vld [vmem:[#allocation2 + $0x60] sm:$0xff] }
 0x112   : > { %v826_v13 = vpop.f32.mrf.mxu1 }
 0x114   : > { %v828_v14 = vpop.f32.mrf.mxu1 }
 0x116   : > { %v830_v15 = vpop.f32.mrf.mxu1 }
 0x118   : > { %v832_v16 = vpop.f32.mrf.mxu1 }
 0x11a   : > { %v836_v17 = vpop.f32.mrf.mxu1 }
 0x11c   : > { %v838_v18 = vpop.f32.mrf.mxu1 }
 0x11e   : > { %v840_v19 = vpop.f32.mrf.mxu1 }
 0x120   : > { %v842_v20 = vpop.f32.mrf.mxu1 }
 0x122   : > { %v846_v21 = vpop.f32.mrf.mxu1 }
 0x124   : > { %v848_v22 = vpop.f32.mrf.mxu1 }
 0x126   : > { %v850_v23 = vpop.f32.mrf.mxu1 }
 0x128   : > { %v852_v26 = vpop.f32.mrf.mxu1 }
 0x12a   : > { %v856_v30 = vpop.f32.mrf.mxu1 }
 0x12c   : > { %v858_v35 = vpop.f32.mrf.mxu1 }
 0x12e   : > { %v860_v40 = vpop.f32.mrf.mxu1 }
 0x130   : > { %v755_v25 = vpop.f32.mrf.mxu0  ;;  %v861_v45 = vpop.f32.mrf.mxu1 }
 0x131   : > { %v827_v27 = vadd.f32 %v826_v13, %v755_v25 }
 0x132   : > { %v757_v29 = vpop.f32.mrf.mxu0 }
 0x133   : > { %v863_v31 = vadd.f32 %v827_v27, %v346_v24  ;;  %v829_v32 = vadd.f32 %v828_v14, %v757_v29 }
 0x134   : > { %v759_v34 = vpop.f32.mrf.mxu0 }
 0x135   : > { %877 = vst [vmem:[#allocation2 + $0x30] sm:$0xff] %v863_v31  ;;  %v864_v36 = vadd.f32 %v829_v32, %v347_v28  ;;  %v831_v37 = vadd.f32 %v830_v15, %v759_v34 }
 0x136   : > { %v761_v39 = vpop.f32.mrf.mxu0 }
 0x137   : > { %878 = vst [vmem:[#allocation2] sm:$0xff] %v864_v36  ;;  %v865_v41 = vadd.f32 %v831_v37, %v348_v33  ;;  %v833_v42 = vadd.f32 %v832_v16, %v761_v39  ;;  %v359_v16 = vld [vmem:[#allocation2 + $0x28] sm:$0xff] }
 0x138   : > { %v765_v44 = vpop.f32.mrf.mxu0 }
 0x139   : > { %879 = vst [vmem:[#allocation2 + $0x58] sm:$0xff] %v865_v41  ;;  %v866_v46 = vadd.f32 %v833_v42, %v349_v38  ;;  %v837_v47 = vadd.f32 %v836_v17, %v765_v44 }
 0x13a   : > { %v767_v49 = vpop.f32.mrf.mxu0 }
 0x13b   : > { %880 = vst [vmem:[#allocation2 + $0x18] sm:$0xff] %v866_v46  ;;  %v867_v50 = vadd.f32 %v837_v47, %v350_v43  ;;  %v839_v51 = vadd.f32 %v838_v18, %v767_v49 }
 0x13c   : > { %v769_v53 = vpop.f32.mrf.mxu0 }
 0x13d   : > { %881 = vst [vmem:[#allocation2 + $0x50] sm:$0xff] %v867_v50  ;;  %v868_v54 = vadd.f32 %v839_v51, %v351_v48  ;;  %v841_v55 = vadd.f32 %v840_v19, %v769_v53 }
 0x13e   : > { %v771_v57 = vpop.f32.mrf.mxu0 }
 0x13f   : > { %882 = vst [vmem:[#allocation2 + $0x68] sm:$0xff] %v868_v54  ;;  %v869_v58 = vadd.f32 %v841_v55, %v352_v52  ;;  %v843_v59 = vadd.f32 %v842_v20, %v771_v57 }
 0x140   : > { %v775_v61 = vpop.f32.mrf.mxu0 }
 0x141   : > { %883 = vst [vmem:[#allocation2 + $0x8] sm:$0xff] %v869_v58  ;;  %v870_v62 = vadd.f32 %v843_v59, %v353_v56  ;;  %v847_v63 = vadd.f32 %v846_v21, %v775_v61 }
 0x142   : > { %v777_v1 = vpop.f32.mrf.mxu0 }
 0x143   : > { %884 = vst [vmem:[#allocation2 + $0x48] sm:$0xff] %v870_v62  ;;  %v871_v2 = vadd.f32 %v847_v63, %v354_v60  ;;  %v849_v3 = vadd.f32 %v848_v22, %v777_v1 }
 0x144   : > { %v779_v5 = vpop.f32.mrf.mxu0 }
 0x145   : > { %885 = vst [vmem:[#allocation2 + $0x40] sm:$0xff] %v871_v2  ;;  %v872_v6 = vadd.f32 %v849_v3, %v355_v0  ;;  %v851_v7 = vadd.f32 %v850_v23, %v779_v5 }
 0x146   : > { %v781_v9 = vpop.f32.mrf.mxu0 }
 0x147   : > { %886 = vst [vmem:[#allocation2 + $0x20] sm:$0xff] %v872_v6  ;;  %v873_v10 = vadd.f32 %v851_v7, %v356_v4  ;;  %v853_v11 = vadd.f32 %v852_v26, %v781_v9 }
 0x148   : > { %v785_v13 = vpop.f32.mrf.mxu0 }
 0x149   : > { %887 = vst [vmem:[#allocation2 + $0x10] sm:$0xff] %v873_v10  ;;  %v874_v14 = vadd.f32 %v853_v11, %v357_v8  ;;  %v857_v15 = vadd.f32 %v856_v30, %v785_v13 }
 0x14a   : > { %v787_v17 = vpop.f32.mrf.mxu0 }
 0x14b   : > { %888 = vst [vmem:[#allocation2 + $0x38] sm:$0xff] %v874_v14  ;;  %v875_v18 = vadd.f32 %v857_v15, %v358_v12  ;;  %v859_v19 = vadd.f32 %v858_v35, %v787_v17  ;;  %894 = sbr.rel (%p1173_p11) target bundleno = 355 (0x163), region = 66 }
 0x14c   : > { %v789_v20 = vpop.f32.mrf.mxu0 }
 0x14d   : > { %889 = vst [vmem:[#allocation2 + $0x60] sm:$0xff] %v875_v18  ;;  %v876_v21 = vadd.f32 %v859_v19, %v359_v16 }
 0x14e   : > { %v790_v22 = vpop.f32.mrf.mxu0 }
 0x14f   : > { %890 = vst [vmem:[#allocation2 + $0x28] sm:$0xff] %v876_v21 }
 0x150   : > { %v911_v23 = vlaneseq  ;;  %v909_v25 = vld [vmem:[%s1554_s2] sm:$0x3]  ;;  %v895_v26 = vld [vmem:[#allocation2 + $0x30] sm:$0xff]  ;;  %v897_v30 = vld [vmem:[#allocation2 + $0x58] sm:$0xff] }
 0x151   : > { %v896_v28 = vld [vmem:[#allocation2] sm:$0xff]  ;;  %v898_v31 = vld [vmem:[#allocation2 + $0x18] sm:$0xff]  ;;  %v899_v32 = vld [vmem:[#allocation2 + $0x50] sm:$0xff] }
 0x152   : > { %v912_v24 = vshrl.u32 %v911_v23, 7  ;;  %v900_v35 = vld [vmem:[#allocation2 + $0x68] sm:$0xff]  ;;  %v903_v42 = vld [vmem:[#allocation2 + $0x40] sm:$0xff]  ;;  %v905_v48 = vld [vmem:[#allocation2 + $0x10] sm:$0xff] }
 0x153   : > { %v901_v36 = vld [vmem:[#allocation2 + $0x8] sm:$0xff]  ;;  %v904_v47 = vld [vmem:[#allocation2 + $0x20] sm:$0xff]  ;;  %v906_v49 = vld [vmem:[#allocation2 + $0x38] sm:$0xff] }
 0x154   : > { %v913_v27 = vsub.s32 0, %v912_v24  ;;  %v917_v29 = vsub.s32 1, %v912_v24  ;;  %v902_v37 = vld [vmem:[#allocation2 + $0x48] sm:$0xff]  ;;  %v907_v54 = vld [vmem:[#allocation2 + $0x60] sm:$0xff] }
 0x156   : > { %v914_v33 = vrot.slane %v909_v25, %v913_v27  ;;  %v918_v34 = vrot.slane %v909_v25, %v917_v29  ;;  %v908_v55 = vld [vmem:[#allocation2 + $0x28] sm:$0xff] }
 0x158   : > { %v921_v38 = vadd.f32 %v914_v33, %v895_v26  ;;  %v922_v39 = vadd.f32 %v918_v34, %v896_v28  ;;  %v923_v40 = vadd.f32 %v914_v33, %v897_v30  ;;  %v924_v41 = vadd.f32 %v918_v34, %v898_v31 }
 0x159   : > { %v925_v43 = vadd.f32 %v914_v33, %v899_v32  ;;  %v926_v44 = vadd.f32 %v918_v34, %v900_v35  ;;  %v927_v45 = vadd.f32 %v914_v33, %v901_v36  ;;  %v928_v46 = vadd.f32 %v918_v34, %v902_v37 }
 0x15a   : > { %v935_v50 = vmax.f32 %v921_v38, 0.0  ;;  %v936_v51 = vmax.f32 %v922_v39, 0.0  ;;  %v937_v52 = vmax.f32 %v923_v40, 0.0  ;;  %v938_v53 = vmax.f32 %v924_v41, 0.0 }
 0x15b   : > { %v939_v56 = vmax.f32 %v925_v43, 0.0  ;;  %v940_v57 = vmax.f32 %v926_v44, 0.0  ;;  %v941_v58 = vmax.f32 %v927_v45, 0.0  ;;  %v942_v59 = vmax.f32 %v928_v46, 0.0 }
 0x15c   : > { %949 = vst [vmem:[%s1555_s3] sm:$0xff] %v935_v50  ;;  %950 = vst [vmem:[%s1555_s3 + $0x8] sm:$0xff] %v936_v51  ;;  %v929_v60 = vadd.f32 %v914_v33, %v903_v42  ;;  %v930_v61 = vadd.f32 %v918_v34, %v904_v47  ;;  %v931_v62 = vadd.f32 %v914_v33, %v905_v48 }
 0x15d   : > { %951 = vst [vmem:[%s1555_s3 + $0x10] sm:$0xff] %v937_v52  ;;  %952 = vst [vmem:[%s1555_s3 + $0x18] sm:$0xff] %v938_v53  ;;  %v932_v63 = vadd.f32 %v918_v34, %v906_v49  ;;  %v933_v0 = vadd.f32 %v914_v33, %v907_v54  ;;  %v934_v1 = vadd.f32 %v918_v34, %v908_v55 }
 0x15e   : > { %953 = vst [vmem:[%s1555_s3 + $0x20] sm:$0xff] %v939_v56  ;;  %954 = vst [vmem:[%s1555_s3 + $0x28] sm:$0xff] %v940_v57  ;;  %v943_v2 = vmax.f32 %v929_v60, 0.0  ;;  %v944_v3 = vmax.f32 %v930_v61, 0.0  ;;  %v945_v4 = vmax.f32 %v931_v62, 0.0 }
 0x15f   : > { %955 = vst [vmem:[%s1555_s3 + $0x30] sm:$0xff] %v941_v58  ;;  %956 = vst [vmem:[%s1555_s3 + $0x38] sm:$0xff] %v942_v59  ;;  %v946_v5 = vmax.f32 %v932_v63, 0.0  ;;  %v947_v6 = vmax.f32 %v933_v0, 0.0  ;;  %v948_v7 = vmax.f32 %v934_v1, 0.0 }
 0x160   : > { %957 = vst [vmem:[%s1555_s3 + $0x40] sm:$0xff] %v943_v2  ;;  %958 = vst [vmem:[%s1555_s3 + $0x48] sm:$0xff] %v944_v3 }
 0x161   : > { %959 = vst [vmem:[%s1555_s3 + $0x50] sm:$0xff] %v945_v4  ;;  %960 = vst [vmem:[%s1555_s3 + $0x58] sm:$0xff] %v946_v5 }
 0x162   : > { %961 = vst [vmem:[%s1555_s3 + $0x60] sm:$0xff] %v947_v6  ;;  %962 = vst [vmem:[%s1555_s3 + $0x68] sm:$0xff] %v948_v7 }
 0x163 PF: > { %s13_s16 = sadd.s32 1, %s1349_s16   ;;  %s1556_s12 = smov %s1337_s13 }
 0x164   : > { %p10_p12 = scmp.ge.s32.totalorder %s13_s16, 8   ;;  %s1557_s13 = smov %s1408_s20 }
 0x165   : > { %s1558_s14 = smov %s1345_s15  ;;  %s1559_s15 = smov %s1561_s17 }
 0x166   :  { %12 = sbr.rel (!%p10_p12) target bundleno = 3 (0x3), region = 113 }

// kernel: lw_cbam_alexnet_forward.39
= control target key start
LH: loop header
LB: loop body
LE: loop exit
PB: predicated region body
PF: predicated region fallthrough
CT: control target
= control target key end

     0   :  { %s604_s12 = smov 0   ;;  %s835_s0 = inlined_call_operand.vmem [shape: f32[2,4,256], index: 0, kind: input, shape index: {}]   ;;  %s836_s1 = inlined_call_operand.vmem [shape: f32[256,128], index: 1, kind: input, shape index: {}]   ;;  %s837_s2 = inlined_call_operand.vmem [shape: f32[128,256], index: 2, kind: input, shape index: {}]   ;;  %s838_s3 = inlined_call_operand.vmem [shape: f32[2,4,256], index: 3, kind: output, shape index: {}]  }
   0x1 LB: > { %s507_s13 = sadd.s32 4294967295, %s581_s12   ;;  %p511_p0 = scmp.ge.s32.totalorder %s581_s12, 1  ;;  %s581_s12 = sphi %s604_s12, %s13_s12  }
   0x2   : > { %p137_p1 = scmp.lt.s32.totalorder %s581_s12, 3 }
   0x4   : > { %p138_p2 = pnand %p511_p0, %p137_p1 }
   0x5   : > { %p161_p3 = scmp.lt.s32.totalorder (!%p138_p2), %s507_s13, 1 }
   0x6   : > { %141 = sbr.rel (%p138_p2) target bundleno = 483 (0x1e3), region = 32 }
   0xb   : > { %v243_v0 = vld [vmem:[%s836_s1 + $0xf8] sm:$0xff]  ;;  %v242_v2 = vld [vmem:[%s836_s1 + $0xf0] sm:$0xff]  ;;  %v241_v4 = vld [vmem:[%s836_s1 + $0xe8] sm:$0xff]  ;;  %s840_s13 = smov (!%p161_p3, %s507_s13), 1  ;;  %vm175_vm0 = vcmask 1043456   ;;  %vm206_vm1 = vcmask 1040384  }
   0xc   : > { %v227_v1 = vld [vmem:[%s836_s1 + $0x78] sm:$0xff]  ;;  %522 = vmatprep.subr.mxu0 %v243_v0  ;;  %v226_v3 = vld [vmem:[%s836_s1 + $0x70] sm:$0xff]  ;;  %v225_v5 = vld [vmem:[%s836_s1 + $0x68] sm:$0xff]  ;;  %s520_s28 = sshll.u32 %s840_s13, 3  ;;  %vm209_vm2 = vcmask 1041408  }
   0xd   : > { %523 = vmatpush3.msra.mxu0 %v227_v1  ;;  %v240_v6 = vld [vmem:[%s836_s1 + $0xe0] sm:$0xff]  ;;  %v239_v8 = vld [vmem:[%s836_s1 + $0xd8] sm:$0xff]  ;;  %s165_s10 = scalar_lea.vmem %s835_s0, %s520_s28  ;;  %v238_v10 = vld [vmem:[%s836_s1 + $0xd0] sm:$0xff]  ;;  %s170_s27 = scalar_lea.vmem %s838_s3, %s520_s28 }
   0xe   : > { %524 = vmatprep.subr.mxu0 %v242_v2  ;;  %v224_v7 = vld [vmem:[%s836_s1 + $0x60] sm:$0xff]  ;;  %v223_v9 = vld [vmem:[%s836_s1 + $0x58] sm:$0xff]  ;;  %v222_v11 = vld [vmem:[%s836_s1 + $0x50] sm:$0xff] }
   0xf   : > { %525 = vmatpush3.msra.mxu0 %v226_v3  ;;  %v237_v12 = vld [vmem:[%s836_s1 + $0xc8] sm:$0xff]  ;;  %v662_v14 = vld [vmem:[%s165_s10] sm:$0xff]  ;;  %v346_v18 = vld [vmem:[%s837_s2 + $0xf8] sm:$0xff] }
  0x10   : > { %526 = vmatprep.subr.mxu0 %v241_v4  ;;  %v221_v13 = vld [vmem:[%s836_s1 + $0x48] sm:$0xff]  ;;  %v173_v15 = vcombine.high %v662_v14, %v662_v14  ;;  %v176_v16 = vsel %vm175_vm0, %v662_v14, 0.0  ;;  %v192_v17 = vsel %vm175_vm0, %v662_v14, -inf  ;;  %v345_v19 = vld [vmem:[%s837_s2 + $0xf0] sm:$0xff]  ;;  %v236_v21 = vld [vmem:[%s836_s1 + $0xc0] sm:$0xff]  ;;  %347 = vmatprep.subr.mxu1 %v346_v18 }
  0x11   : > { %527 = vmatpush3.msra.mxu0 %v225_v5  ;;  %v344_v20 = vld [vmem:[%s837_s2 + $0xe8] sm:$0xff]  ;;  %v177_v22 = vrot.slane %v176_v16, 4  ;;  %v193_v23 = vrot.slane %v192_v17, 4  ;;  %v343_v24 = vld [vmem:[%s837_s2 + $0xe0] sm:$0xff]  ;;  %348 = vmatpush1.msra.mxu1 %v345_v19  ;;  %v342_v28 = vld [vmem:[%s837_s2 + $0xd8] sm:$0xff] }
  0x12   : > { %528 = vmatprep.subr.mxu0 %v240_v6  ;;  %v220_v25 = vld [vmem:[%s836_s1 + $0x40] sm:$0xff]  ;;  %v183_v26 = vsel %vm175_vm0, %v173_v15, 0.0  ;;  %v199_v27 = vsel %vm175_vm0, %v173_v15, -inf  ;;  %v235_v29 = vld [vmem:[%s836_s1 + $0xb8] sm:$0xff]  ;;  %349 = vmatprep.subr.mxu1 %v344_v20  ;;  %v341_v34 = vld [vmem:[%s837_s2 + $0xd0] sm:$0xff] }
  0x13   : > { %529 = vmatpush3.msra.mxu0 %v224_v7  ;;  %v184_v30 = vrot.slane %v183_v26, 4  ;;  %v200_v31 = vrot.slane %v199_v27, 4  ;;  %v178_v32 = vadd.f32 %v177_v22, %v176_v16  ;;  %v194_v33 = vmax.f32 %v192_v17, %v193_v23  ;;  %v219_v35 = vld [vmem:[%s836_s1 + $0x38] sm:$0xff]  ;;  %350 = vmatpush1.msra.mxu1 %v343_v24  ;;  %v340_v36 = vld [vmem:[%s837_s2 + $0xc8] sm:$0xff]  ;;  %v234_v37 = vld [vmem:[%s836_s1 + $0xb0] sm:$0xff] }
  0x14   : > { %530 = vmatprep.subr.mxu0 %v239_v8  ;;  %351 = vmatprep.subr.mxu1 %v342_v28  ;;  %v339_v42 = vld [vmem:[%s837_s2 + $0xc0] sm:$0xff]  ;;  %v218_v43 = vld [vmem:[%s836_s1 + $0x30] sm:$0xff]  ;;  %v338_v44 = vld [vmem:[%s837_s2 + $0xb8] sm:$0xff] }
  0x15   : > { %531 = vmatpush3.msra.mxu0 %v223_v9  ;;  %v185_v38 = vadd.f32 %v184_v30, %v183_v26  ;;  %v201_v39 = vmax.f32 %v199_v27, %v200_v31  ;;  %v179_v40 = vrot.slane %v178_v32, 2  ;;  %v195_v41 = vrot.slane %v194_v33, 2  ;;  %352 = vmatpush1.msra.mxu1 %v341_v34  ;;  %v233_v45 = vld [vmem:[%s836_s1 + $0xa8] sm:$0xff]  ;;  %v337_v50 = vld [vmem:[%s837_s2 + $0xb0] sm:$0xff]  ;;  %v232_v53 = vld [vmem:[%s836_s1 + $0xa0] sm:$0xff] }
  0x16   : > { %532 = vmatprep.subr.mxu0 %v238_v10  ;;  %353 = vmatprep.subr.mxu1 %v340_v36  ;;  %v217_v51 = vld [vmem:[%s836_s1 + $0x28] sm:$0xff]  ;;  %v335_v57 = vld [vmem:[%s837_s2 + $0xa0] sm:$0xff]  ;;  %v334_v59 = vld [vmem:[%s837_s2 + $0x98] sm:$0xff] }
  0x17   : > { %533 = vmatpush3.msra.mxu0 %v222_v11  ;;  %v186_v46 = vrot.slane %v185_v38, 2  ;;  %v202_v47 = vrot.slane %v201_v39, 2  ;;  %v180_v48 = vadd.f32 %v179_v40, %v178_v32  ;;  %v196_v49 = vmax.f32 %v194_v33, %v195_v41  ;;  %354 = vmatpush1.msra.mxu1 %v339_v42  ;;  %v336_v52 = vld [vmem:[%s837_s2 + $0xa8] sm:$0xff]  ;;  %v216_v58 = vld [vmem:[%s836_s1 + $0x20] sm:$0xff]  ;;  %v231_v60 = vld [vmem:[%s836_s1 + $0x98] sm:$0xff] }
  0x18   : > { %534 = vmatprep.subr.mxu0 %v237_v12  ;;  %355 = vmatprep.subr.mxu1 %v338_v44  ;;  %v333_v1 = vld [vmem:[%s837_s2 + $0x90] sm:$0xff]  ;;  %v215_v2 = vld [vmem:[%s836_s1 + $0x18] sm:$0xff]  ;;  %v332_v3 = vld [vmem:[%s837_s2 + $0x88] sm:$0xff] }
  0x19   : > { %535 = vmatpush3.msra.mxu0 %v221_v13  ;;  %v187_v54 = vadd.f32 %v186_v46, %v185_v38  ;;  %v203_v55 = vmax.f32 %v201_v39, %v202_v47  ;;  %v181_v56 = vrot.slane %v180_v48, 1  ;;  %356 = vmatpush1.msra.mxu1 %v337_v50  ;;  %v197_v0 = vrot.slane %v196_v49, 1  ;;  %v230_v4 = vld [vmem:[%s836_s1 + $0x90] sm:$0xff]  ;;  %v331_v7 = vld [vmem:[%s837_s2 + $0x80] sm:$0xff]  ;;  %v330_v9 = vld [vmem:[%s837_s2 + $0x78] sm:$0xff] }
  0x1a   : > { %536 = vmatprep.subr.mxu0 %v236_v21  ;;  %357 = vmatprep.subr.mxu1 %v336_v52  ;;  %v214_v8 = vld [vmem:[%s836_s1 + $0x10] sm:$0xff]  ;;  %v229_v10 = vld [vmem:[%s836_s1 + $0x88] sm:$0xff]  ;;  %v228_v17 = vld [vmem:[%s836_s1 + $0x80] sm:$0xff] }
  0x1b   : > { %537 = vmatpush3.msra.mxu0 %v220_v25  ;;  %v188_v61 = vrot.slane %v187_v54, 1  ;;  %v204_v62 = vrot.slane %v203_v55, 1  ;;  %v182_v63 = vadd.f32 %v181_v56, %v180_v48  ;;  %358 = vmatpush1.msra.mxu1 %v335_v57  ;;  %v198_v13 = vmax.f32 %v196_v49, %v197_v0  ;;  %v213_v15 = vld [vmem:[%s836_s1 + $0x8] sm:$0xff]  ;;  %v329_v16 = vld [vmem:[%s837_s2 + $0x70] sm:$0xff]  ;;  %v212_v20 = vld [vmem:[%s836_s1] sm:$0xff] }
  0x1c   : > { %538 = vmatprep.subr.mxu0 %v235_v29  ;;  %359 = vmatprep.subr.mxu1 %v334_v59  ;;  %v328_v19 = vld [vmem:[%s837_s2 + $0x68] sm:$0xff]  ;;  %v327_v21 = vld [vmem:[%s837_s2 + $0x60] sm:$0xff]  ;;  %v326_v23 = vld [vmem:[%s837_s2 + $0x58] sm:$0xff] }
  0x1d   : > { %539 = vmatpush3.msra.mxu0 %v219_v35  ;;  %v189_v5 = vadd.f32 %v188_v61, %v187_v54  ;;  %v205_v6 = vmax.f32 %v203_v55, %v204_v62  ;;  %360 = vmatpush1.msra.mxu1 %v333_v1  ;;  %v190_v12 = vmul.f32 0.25, %v182_v63  ;;  %v325_v24 = vld [vmem:[%s837_s2 + $0x50] sm:$0xff]  ;;  %v324_v25 = vld [vmem:[%s837_s2 + $0x48] sm:$0xff]  ;;  %v323_v26 = vld [vmem:[%s837_s2 + $0x40] sm:$0xff]  ;;  %v583_v35 = vmov 0.0  }
  0x1e   : > { %540 = vmatprep.subr.mxu0 %v234_v37  ;;  %361 = vmatprep.subr.mxu1 %v332_v3  ;;  %v322_v27 = vld [vmem:[%s837_s2 + $0x38] sm:$0xff]  ;;  %v321_v28 = vld [vmem:[%s837_s2 + $0x30] sm:$0xff]  ;;  %v320_v29 = vld [vmem:[%s837_s2 + $0x28] sm:$0xff]  ;;  %v438_v54 = vlaneseq }
  0x1f   : > { %541 = vmatpush3.msra.mxu0 %v218_v43  ;;  %v191_v11 = vmul.f32 0.25, %v189_v5  ;;  %362 = vmatpush1.msra.mxu1 %v331_v7  ;;  %v207_v22 = vsel %vm206_vm1, %v190_v12, %v198_v13  ;;  %v319_v30 = vld [vmem:[%s837_s2 + $0x20] sm:$0xff]  ;;  %v318_v31 = vld [vmem:[%s837_s2 + $0x18] sm:$0xff]  ;;  %v317_v32 = vld [vmem:[%s837_s2 + $0x10] sm:$0xff] }
  0x20   : > { %542 = vmatprep.subr.mxu0 %v233_v45  ;;  %363 = vmatprep.subr.mxu1 %v330_v9  ;;  %v316_v33 = vld [vmem:[%s837_s2 + $0x8] sm:$0xff]  ;;  %v315_v34 = vld [vmem:[%s837_s2] sm:$0xff]  ;;  %v439_v55 = vshrl.u32 %v438_v54, 7 }
  0x21   : > { %543 = vmatpush3.msra.mxu0 %v217_v51  ;;  %v208_v18 = vsel %vm206_vm1, %v191_v11, %v205_v6  ;;  %364 = vmatpush1.msra.mxu1 %v329_v16 }
  0x22   : > { %544 = vmatprep.subr.mxu0 %v232_v53  ;;  %516 = vmatprep.mubr.msk.f32.mxu0 %vm209_vm2, %v208_v18  ;;  %v440_v56 = vsub.s32 0, %v439_v55 }
  0x23   : > { %545 = vmatpush3.msra.mxu0 %v216_v58  ;;  %365 = vmatprep.subr.mxu1 %v328_v19 }
  0x24   : > { %546 = vmatprep.subr.mxu0 %v231_v60  ;;  %366 = vmatpush1.msra.mxu1 %v327_v21 }
  0x25   : > { %547 = vmatpush3.msra.mxu0 %v215_v2  ;;  %367 = vmatprep.subr.mxu1 %v326_v23 }
  0x26   : > { %548 = vmatprep.subr.mxu0 %v230_v4  ;;  %368 = vmatpush1.msra.mxu1 %v325_v24 }
  0x27   : > { %549 = vmatpush3.msra.mxu0 %v214_v8  ;;  %369 = vmatprep.subr.mxu1 %v324_v25 }
  0x28   : > { %550 = vmatprep.subr.mxu0 %v229_v10  ;;  %370 = vmatpush1.msra.mxu1 %v323_v26 }
  0x29   : > { %551 = vmatpush3.msra.mxu0 %v213_v15  ;;  %371 = vmatprep.subr.mxu1 %v322_v27 }
  0x2a   : > { %552 = vmatprep.subr.mxu0 %v228_v17  ;;  %372 = vmatpush1.msra.mxu1 %v321_v28 }
  0x2b   : > { %553 = vmatpush3.msra.mxu0 %v212_v20  ;;  %373 = vmatprep.subr.mxu1 %v320_v29 }
  0x2c   : > { %517 = vmatmul.mubr.msk.f32.vlgmr.msra.gmra.mxu0 %vm209_vm2, %v207_v22  ;;  %374 = vmatpush1.msra.mxu1 %v319_v30 }
  0x2d   : > { %375 = vmatprep.subr.mxu1 %v318_v31  ;;  %411 = vmatprep.mubr.f32.mxu1 %v583_v35 }
  0x2e   : > { %376 = vmatpush1.msra.mxu1 %v317_v32 }
  0x2f   : > { %377 = vmatprep.subr.mxu1 %v316_v33 }
  0x30   : > { %378 = vmatpush1.msra.mxu1 %v315_v34 }
  0xec   : > { %v554_v36 = vpop.f32.mrf.mxu0 }
  0xee   : > { %v555_v37 = vpop.f32.mrf.mxu0 }
  0xef   : > { %v556_v38 = vadd.f32 %v555_v37, %v554_v36 }
  0xf1   : > { %v314_v39 = vmax.f32 %v556_v38, 0.0 }
  0xf3   : > { %412 = vmatmul.mubr.f32.vlgmr.msra.gmra.mxu1 %v314_v39 }
 0x1b3   : > { %v413_v40 = vpop.f32.mrf.mxu1 }
 0x1b4   : > { %v420_v41 = vrot.slane %v413_v40, 1 }
 0x1b5   : > { %v415_v42 = vpop.f32.mrf.mxu1 }
 0x1b6   : > { %v424_v43 = vadd.f32 %v420_v41, %v413_v40  ;;  %v421_v44 = vrot.slane %v415_v42, 1 }
 0x1b8   : > { %v426_v45 = vsub.f32 0.0, %v424_v43  ;;  %v425_v46 = vadd.f32 %v421_v44, %v415_v42 }
 0x1ba   : > { %v428_v47 = vmul.f32 1.442695, %v426_v45  ;;  %v427_v48 = vsub.f32 0.0, %v425_v46 }
 0x1bc   : > { %567 = vpow2.f32 %v428_v47  ;;  %v430_v49 = vmul.f32 1.442695, %v427_v48 }
 0x1be   : > { %569 = vpow2.f32 %v430_v49 }
 0x1c9   : > { %v568_v50 = vpop.eup %567 }
 0x1ca   : > { %v432_v51 = vadd.f32 1.0, %v568_v50 }
 0x1cb   : > { %v570_v52 = vpop.eup %569 }
 0x1cc   : > { %571 = vrcp.f32 %v432_v51  ;;  %v433_v53 = vadd.f32 1.0, %v570_v52 }
 0x1ce   : > { %573 = vrcp.f32 %v433_v53 }
 0x1d9   : > { %v572_v57 = vpop.eup %571 }
 0x1da   : > { %v441_v59 = vrot.slane %v572_v57, %v440_v56 }
 0x1db   : > { %v574_v58 = vpop.eup %573 }
 0x1dc   : > { %v445_v60 = vrot.slane %v574_v58, %v440_v56 }
 0x1de   : > { %v448_v61 = vcombine.low %v441_v59, %v445_v60 }
 0x1e0   : > { %v450_v62 = vmul.f32 %v448_v61, %v662_v14 }
 0x1e2   : > { %451 = vst [vmem:[%s170_s27] sm:$0xff] %v450_v62 }
 0x1e3 PF: > { %s13_s12 = sadd.s32 1, %s581_s12  }
 0x1e4   : > { %p10_p4 = scmp.ge.s32.totalorder %s13_s12, 4  }
 0x1e6   :  { %12 = sbr.rel (!%p10_p4) target bundleno = 1 (0x1), region = 62 }

// kernel: lw_cbam_alexnet_forward.40
= control target key start
LH: loop header
LB: loop body
LE: loop exit
PB: predicated region body
PF: predicated region fallthrough
CT: control target
= control target key end

     0   :  { %v203_v0 = vmov 0.0   ;;  %vm204_vm0 = vmmov 0   ;;  %s258_s1 = inlined_call_operand.vmem [shape: bf16[128,128], index: 1, kind: input, shape index: {}]   ;;  %s259_s0 = inlined_call_operand.vmem [shape: bf16[8,128], index: 0, kind: input, shape index: {}]   ;;  %s260_s2 = inlined_call_operand.vmem [shape: f32[1,128], index: 2, kind: input, shape index: {}]   ;;  %s261_s3 = inlined_call_operand.vmem [shape: f32[8,128], index: 3, kind: output, shape index: {}]  }
   0x1   :  { %169 = vmatprep.subr.bf16.mxu0 %v203_v0  ;;  %v191_v1 = vld [vmem:[%s258_s1 + $0x38] sm:$0xff]   ;;  %185 = vmatprep.mubr.msk.bf16.mxu0 %vm204_vm0, %v203_v0  ;;  %v192_v2 = vld [vmem:[%s258_s1 + $0x30] sm:$0xff]   ;;  %v193_v3 = vld [vmem:[%s258_s1 + $0x28] sm:$0xff]  }
   0x2   :  { %170 = vmatpush3.bf16.msra.mxu0 %v191_v1  ;;  %v194_v4 = vld [vmem:[%s258_s1 + $0x20] sm:$0xff]   ;;  %v195_v5 = vld [vmem:[%s258_s1 + $0x18] sm:$0xff]   ;;  %v196_v6 = vld [vmem:[%s258_s1 + $0x10] sm:$0xff]  }
   0x3   :  { %171 = vmatprep.subr.bf16.mxu0 %v203_v0  ;;  %v197_v7 = vld [vmem:[%s258_s1 + $0x8] sm:$0xff]   ;;  %v198_v8 = vld [vmem:[%s258_s1] sm:$0xff]  }
   0x4   :  { %v21_v9 = vld [vmem:[%s259_s0] sm:$0xf] }
   0x5   :  { %v159_v10 = vld [vmem:[%s260_s2] ss:$0 sm:$0xff] }
   0x6   :  { %172 = vmatpush3.bf16.msra.mxu0 %v192_v2 }
   0x7   :  { %173 = vmatprep.subr.bf16.mxu0 %v203_v0 }
   0xa   :  { %174 = vmatpush3.bf16.msra.mxu0 %v193_v3 }
   0xb   :  { %175 = vmatprep.subr.bf16.mxu0 %v203_v0 }
   0xe   :  { %176 = vmatpush3.bf16.msra.mxu0 %v194_v4 }
   0xf   :  { %177 = vmatprep.subr.bf16.mxu0 %v203_v0 }
  0x12   :  { %178 = vmatpush3.bf16.msra.mxu0 %v195_v5 }
  0x13   :  { %179 = vmatprep.subr.bf16.mxu0 %v203_v0 }
  0x16   :  { %180 = vmatpush3.bf16.msra.mxu0 %v196_v6 }
  0x17   :  { %181 = vmatprep.subr.bf16.mxu0 %v203_v0 }
  0x1a   :  { %182 = vmatpush3.bf16.msra.mxu0 %v197_v7 }
  0x1b   :  { %183 = vmatprep.subr.bf16.mxu0 %v203_v0 }
  0x1e   :  { %184 = vmatpush3.bf16.msra.mxu0 %v198_v8 }
  0x21   :  { %186 = vmatmul.mubr.bf16.vlgmr.msra.gmra.mxu0 %v21_v9 }
  0xe1   :  { %v120_v11 = vpop.f32.mrf.mxu0 }
  0xe2   :  { %v139_v12 = vadd.f32 %v159_v10, %v120_v11 }
  0xe3   :  { %v187_v13 = vpop.f32.mrf.mxu0 }
  0xe4   :  { %v140_v14 = vsub.f32 0.0, %v139_v12 }
  0xe5   :  { %v123_v15 = vpop.f32.mrf.mxu0 }
  0xe6   :  { %v141_v16 = vmul.f32 1.442695, %v140_v14 }
  0xe7   :  { %v188_v17 = vpop.f32.mrf.mxu0 }
  0xe8   :  { %199 = vpow2.f32 %v141_v16 }
  0xf5   :  { %v200_v18 = vpop.eup %199 }
  0xf6   :  { %v143_v19 = vadd.f32 1.0, %v200_v18 }
  0xf8   :  { %201 = vrcp.f32 %v143_v19 }
 0x105   :  { %v202_v20 = vpop.eup %201 }
 0x106   :  { %146 = vst [vmem:[%s261_s3] sm:$0xff] %v202_v20 }

// kernel: lw_cbam_alexnet_forward.41
= control target key start
LH: loop header
LB: loop body
LE: loop exit
PB: predicated region body
PF: predicated region fallthrough
CT: control target
= control target key end

     0   :  { %v29_v0 = vmov 0   ;;  %s60_s1 = inlined_call_operand.vmem [shape: f32[8,1], index: 1, kind: input, shape index: {}]   ;;  %s61_s0 = inlined_call_operand.vmem [shape: f32[8,256], index: 0, kind: input, shape index: {}]   ;;  %s62_s2 = inlined_call_operand.vmem [shape: f32[8,256], index: 2, kind: output, shape index: {}]  }
   0x1   :  { %28 = vset.pattern.permute.xlu0 %v29_v0  ;;  %v13_v1 = vld [vmem:[%s60_s1] sm:$0xff]  ;;  %v12_v3 = vld [vmem:[%s61_s0 + $0x8] sm:$0xff] }
   0x2   :  { %16 = vperm.xlu0 %28, %v13_v1   ;;  %v11_v2 = vld [vmem:[%s61_s0] sm:$0xff] }
  0x7d   :  { %v17_v4 = vpop.permute.xlu0 %16 }
  0x7e   :  { %v19_v5 = vmul.f32 %v17_v4, %v11_v2  ;;  %v20_v6 = vmul.f32 %v17_v4, %v12_v3 }
  0x80   :  { %21 = vst [vmem:[%s62_s2] sm:$0xff] %v19_v5  ;;  %22 = vst [vmem:[%s62_s2 + $0x8] sm:$0xff] %v20_v6 }

// kernel: lw_cbam_alexnet_forward.42
= control target key start
LH: loop header
LB: loop body
LE: loop exit
PB: predicated region body
PF: predicated region fallthrough
CT: control target
= control target key end

     0   :  { %s564_s15 = smov 0   ;;  %s806_s0 = inlined_call_operand.vmem [shape: f32[2,4,256], index: 0, kind: input, shape index: {}]   ;;  %s807_s1 = inlined_call_operand.vmem [shape: f32[256,256], index: 1, kind: input, shape index: {}]   ;;  %s808_s2 = inlined_call_operand.vmem [shape: f32[1,256], index: 2, kind: input, shape index: {}]   ;;  %s809_s3 = inlined_call_operand.vmem [shape: f32[1,256], index: 3, kind: input, shape index: {}]   ;;  %s810_s4 = inlined_call_operand.vmem [shape: f32[2,4,256], index: 4, kind: output, shape index: {}]  }
   0x1 LB: > { %s503_s16 = sadd.s32 4294967295, %s537_s15   ;;  %p507_p0 = scmp.ge.s32.totalorder %s537_s15, 1  ;;  %s537_s15 = sphi %s564_s15, %s14_s15  }
   0x2   : > { %p162_p1 = scmp.lt.s32.totalorder %s537_s15, 3 }
   0x4   : > { %p163_p2 = pnand %p507_p0, %p162_p1 }
   0x5   : > { %p188_p3 = scmp.lt.s32.totalorder (!%p163_p2), %s503_s16, 1 }
   0x6   : > { %166 = sbr.rel (%p163_p2) target bundleno = 308 (0x134), region = 36 }
   0xb   : > { %v272_v0 = vld [vmem:[%s807_s1 + $0xf8] sm:$0xff]  ;;  %v271_v1 = vld [vmem:[%s807_s1 + $0xf0] sm:$0xff]  ;;  %v270_v2 = vld [vmem:[%s807_s1 + $0xe8] sm:$0xff]  ;;  %s812_s16 = smov (!%p188_p3, %s503_s16), 1  ;;  %vm202_vm0 = vcmask 1043456   ;;  %vm235_vm1 = vcmask 1040384  }
   0xc   : > { %305 = vmatprep.subr.mxu0 %v272_v0  ;;  %v269_v3 = vld [vmem:[%s807_s1 + $0xe0] sm:$0xff]  ;;  %v268_v4 = vld [vmem:[%s807_s1 + $0xd8] sm:$0xff]  ;;  %v267_v5 = vld [vmem:[%s807_s1 + $0xd0] sm:$0xff]  ;;  %s516_s29 = sshll.u32 %s812_s16, 3  ;;  %vm238_vm2 = vcmask 1041408  }
   0xd   : > { %306 = vmatpush1.msra.mxu0 %v271_v1  ;;  %v266_v6 = vld [vmem:[%s807_s1 + $0xc8] sm:$0xff]  ;;  %v265_v7 = vld [vmem:[%s807_s1 + $0xc0] sm:$0xff]  ;;  %v264_v8 = vld [vmem:[%s807_s1 + $0xb8] sm:$0xff]  ;;  %s192_s12 = scalar_lea.vmem %s806_s0, %s516_s29  ;;  %s197_s13 = scalar_lea.vmem %s810_s4, %s516_s29 }
   0xe   : > { %307 = vmatprep.subr.mxu0 %v270_v2  ;;  %v263_v9 = vld [vmem:[%s807_s1 + $0xb0] sm:$0xff]  ;;  %v262_v10 = vld [vmem:[%s807_s1 + $0xa8] sm:$0xff]  ;;  %v261_v11 = vld [vmem:[%s807_s1 + $0xa0] sm:$0xff] }
   0xf   : > { %308 = vmatpush1.msra.mxu0 %v269_v3  ;;  %v260_v12 = vld [vmem:[%s807_s1 + $0x98] sm:$0xff]  ;;  %v259_v13 = vld [vmem:[%s807_s1 + $0x90] sm:$0xff]  ;;  %v258_v14 = vld [vmem:[%s807_s1 + $0x88] sm:$0xff] }
  0x10   : > { %309 = vmatprep.subr.mxu0 %v268_v4  ;;  %v257_v15 = vld [vmem:[%s807_s1 + $0x80] sm:$0xff]  ;;  %v256_v16 = vld [vmem:[%s807_s1 + $0x78] sm:$0xff]  ;;  %v255_v17 = vld [vmem:[%s807_s1 + $0x70] sm:$0xff] }
  0x11   : > { %310 = vmatpush1.msra.mxu0 %v267_v5  ;;  %v254_v18 = vld [vmem:[%s807_s1 + $0x68] sm:$0xff]  ;;  %v253_v19 = vld [vmem:[%s807_s1 + $0x60] sm:$0xff]  ;;  %v252_v20 = vld [vmem:[%s807_s1 + $0x58] sm:$0xff] }
  0x12   : > { %311 = vmatprep.subr.mxu0 %v266_v6  ;;  %v251_v21 = vld [vmem:[%s807_s1 + $0x50] sm:$0xff]  ;;  %v250_v22 = vld [vmem:[%s807_s1 + $0x48] sm:$0xff]  ;;  %v249_v23 = vld [vmem:[%s807_s1 + $0x40] sm:$0xff] }
  0x13   : > { %312 = vmatpush1.msra.mxu0 %v265_v7  ;;  %v656_v24 = vld [vmem:[%s192_s12] sm:$0xff]  ;;  %v248_v25 = vld [vmem:[%s807_s1 + $0x38] sm:$0xff]  ;;  %v247_v28 = vld [vmem:[%s807_s1 + $0x30] sm:$0xff] }
  0x14   : > { %313 = vmatprep.subr.mxu0 %v264_v8  ;;  %v200_v26 = vcombine.high %v656_v24, %v656_v24  ;;  %v217_v27 = vmul.f32 %v656_v24, %v656_v24  ;;  %v246_v29 = vld [vmem:[%s807_s1 + $0x28] sm:$0xff]  ;;  %v245_v32 = vld [vmem:[%s807_s1 + $0x20] sm:$0xff]  ;;  %v244_v34 = vld [vmem:[%s807_s1 + $0x18] sm:$0xff]  ;;  %v203_v55 = vsel %vm202_vm0, %v656_v24, 0.0 }
  0x15   : > { %314 = vmatpush1.msra.mxu0 %v263_v9  ;;  %v243_v36 = vld [vmem:[%s807_s1 + $0x10] sm:$0xff]  ;;  %v242_v39 = vld [vmem:[%s807_s1 + $0x8] sm:$0xff]  ;;  %v241_v40 = vld [vmem:[%s807_s1] sm:$0xff]  ;;  %v204_v61 = vrot.slane %v203_v55, 4 }
  0x16   : > { %315 = vmatprep.subr.mxu0 %v262_v10  ;;  %v210_v30 = vsel %vm202_vm0, %v200_v26, 0.0  ;;  %v219_v31 = vcombine.high %v217_v27, %v217_v27  ;;  %v304_v43 = vld [vmem:[%s807_s1 + $0x1f8] sm:$0xff]  ;;  %v303_v44 = vld [vmem:[%s807_s1 + $0x1f0] sm:$0xff]  ;;  %v302_v47 = vld [vmem:[%s807_s1 + $0x1e8] sm:$0xff]  ;;  %v221_v56 = vsel %vm202_vm0, %v217_v27, 0.0 }
  0x17   : > { %316 = vmatpush1.msra.mxu0 %v261_v11  ;;  %v211_v33 = vrot.slane %v210_v30, 4  ;;  %v301_v48 = vld [vmem:[%s807_s1 + $0x1e0] sm:$0xff]  ;;  %v300_v51 = vld [vmem:[%s807_s1 + $0x1d8] sm:$0xff]  ;;  %v299_v52 = vld [vmem:[%s807_s1 + $0x1d0] sm:$0xff]  ;;  %v222_v62 = vrot.slane %v221_v56, 4  ;;  %v205_v4 = vadd.f32 %v204_v61, %v203_v55 }
  0x18   : > { %317 = vmatprep.subr.mxu0 %v260_v12  ;;  %v228_v35 = vsel %vm202_vm0, %v219_v31, 0.0  ;;  %v298_v57 = vld [vmem:[%s807_s1 + $0x1c8] sm:$0xff]  ;;  %v297_v58 = vld [vmem:[%s807_s1 + $0x1c0] sm:$0xff]  ;;  %v296_v60 = vld [vmem:[%s807_s1 + $0x1b8] sm:$0xff] }
  0x19   : > { %318 = vmatpush1.msra.mxu0 %v259_v13  ;;  %v212_v37 = vadd.f32 %v211_v33, %v210_v30  ;;  %v229_v38 = vrot.slane %v228_v35, 4  ;;  %v295_v63 = vld [vmem:[%s807_s1 + $0x1b0] sm:$0xff]  ;;  %v294_v1 = vld [vmem:[%s807_s1 + $0x1a8] sm:$0xff]  ;;  %v293_v2 = vld [vmem:[%s807_s1 + $0x1a0] sm:$0xff]  ;;  %v223_v5 = vadd.f32 %v222_v62, %v221_v56  ;;  %v206_v10 = vrot.slane %v205_v4, 2 }
  0x1a   : > { %319 = vmatprep.subr.mxu0 %v258_v14  ;;  %v292_v3 = vld [vmem:[%s807_s1 + $0x198] sm:$0xff]  ;;  %v291_v6 = vld [vmem:[%s807_s1 + $0x190] sm:$0xff]  ;;  %v290_v7 = vld [vmem:[%s807_s1 + $0x188] sm:$0xff] }
  0x1b   : > { %320 = vmatpush1.msra.mxu0 %v257_v15  ;;  %v213_v41 = vrot.slane %v212_v37, 2  ;;  %v230_v42 = vadd.f32 %v229_v38, %v228_v35  ;;  %v289_v8 = vld [vmem:[%s807_s1 + $0x180] sm:$0xff]  ;;  %v288_v9 = vld [vmem:[%s807_s1 + $0x178] sm:$0xff]  ;;  %v224_v11 = vrot.slane %v223_v5, 2  ;;  %v287_v12 = vld [vmem:[%s807_s1 + $0x170] sm:$0xff] }
  0x1c   : > { %321 = vmatprep.subr.mxu0 %v256_v16  ;;  %v286_v13 = vld [vmem:[%s807_s1 + $0x168] sm:$0xff]  ;;  %v285_v14 = vld [vmem:[%s807_s1 + $0x160] sm:$0xff]  ;;  %v284_v15 = vld [vmem:[%s807_s1 + $0x158] sm:$0xff]  ;;  %v207_v16 = vadd.f32 %v206_v10, %v205_v4 }
  0x1d   : > { %322 = vmatpush1.msra.mxu0 %v255_v17  ;;  %v214_v45 = vadd.f32 %v213_v41, %v212_v37  ;;  %v231_v46 = vrot.slane %v230_v42, 2  ;;  %v225_v17 = vadd.f32 %v224_v11, %v223_v5  ;;  %v278_v26 = vld [vmem:[%s807_s1 + $0x128] sm:$0xff]  ;;  %v277_v27 = vld [vmem:[%s807_s1 + $0x120] sm:$0xff]  ;;  %v275_v31 = vld [vmem:[%s807_s1 + $0x110] sm:$0xff] }
  0x1e   : > { %323 = vmatprep.subr.mxu0 %v254_v18  ;;  %v283_v18 = vld [vmem:[%s807_s1 + $0x150] sm:$0xff]  ;;  %v273_v33 = vld [vmem:[%s807_s1 + $0x100] sm:$0xff] }
  0x1f   : > { %324 = vmatpush1.msra.mxu0 %v253_v19  ;;  %v215_v49 = vrot.slane %v214_v45, 1  ;;  %v232_v50 = vadd.f32 %v231_v46, %v230_v42  ;;  %v282_v19 = vld [vmem:[%s807_s1 + $0x148] sm:$0xff] }
  0x20   : > { %325 = vmatprep.subr.mxu0 %v252_v20  ;;  %v281_v20 = vld [vmem:[%s807_s1 + $0x140] sm:$0xff] }
  0x21   : > { %326 = vmatpush1.msra.mxu0 %v251_v21  ;;  %v216_v53 = vadd.f32 %v215_v49, %v214_v45  ;;  %v233_v54 = vrot.slane %v232_v50, 1  ;;  %v280_v21 = vld [vmem:[%s807_s1 + $0x138] sm:$0xff] }
  0x22   : > { %327 = vmatprep.subr.mxu0 %v250_v22  ;;  %v208_v22 = vrot.slane %v207_v16, 1 }
  0x23   : > { %328 = vmatpush1.msra.mxu0 %v249_v23  ;;  %v234_v59 = vadd.f32 %v233_v54, %v232_v50  ;;  %v226_v23 = vrot.slane %v225_v17, 1 }
  0x24   : > { %329 = vmatprep.subr.mxu0 %v248_v25  ;;  %v279_v25 = vld [vmem:[%s807_s1 + $0x130] sm:$0xff] }
  0x25   : > { %330 = vmatpush1.msra.mxu0 %v247_v28  ;;  %v237_v0 = vsel %vm235_vm1, %v216_v53, %v234_v59  ;;  %v276_v28 = vld [vmem:[%s807_s1 + $0x118] sm:$0xff]  ;;  %v227_v30 = vadd.f32 %v226_v23, %v225_v17 }
  0x26   : > { %331 = vmatprep.subr.mxu0 %v246_v29  ;;  %512 = vmatprep.mubr.msk.f32.mxu0 %vm238_vm2, %v237_v0  ;;  %v209_v29 = vadd.f32 %v208_v22, %v207_v16 }
  0x27   : > { %332 = vmatpush1.msra.mxu0 %v245_v32  ;;  %v274_v32 = vld [vmem:[%s807_s1 + $0x108] sm:$0xff] }
  0x28   : > { %333 = vmatprep.subr.mxu0 %v244_v34  ;;  %v236_v34 = vsel %vm235_vm1, %v209_v29, %v227_v30 }
  0x29   : > { %334 = vmatpush1.msra.mxu0 %v243_v36 }
  0x2a   : > { %335 = vmatprep.subr.mxu0 %v242_v39 }
  0x2b   : > { %336 = vmatpush1.msra.mxu0 %v241_v40 }
  0x2c   : > { %337 = vmatprep.subr.mxu0 %v304_v43 }
  0x2d   : > { %338 = vmatpush2.msra.mxu0 %v303_v44 }
  0x2e   : > { %339 = vmatprep.subr.mxu0 %v302_v47 }
  0x2f   : > { %340 = vmatpush2.msra.mxu0 %v301_v48  ;;  %v394_v48 = vlaneseq }
  0x30   : > { %341 = vmatprep.subr.mxu0 %v300_v51  ;;  %v407_v51 = vld [vmem:[%s808_s2] sm:$0x3] }
  0x31   : > { %342 = vmatpush2.msra.mxu0 %v299_v52  ;;  %v395_v50 = vshrl.u32 %v394_v48, 7 }
  0x32   : > { %343 = vmatprep.subr.mxu0 %v298_v57 }
  0x33   : > { %344 = vmatpush2.msra.mxu0 %v297_v58  ;;  %v396_v52 = vsub.s32 0, %v395_v50  ;;  %v415_v53 = vsub.s32 1, %v395_v50  ;;  %v434_v58 = vld [vmem:[%s809_s3] sm:$0x3] }
  0x34   : > { %345 = vmatprep.subr.mxu0 %v296_v60 }
  0x35   : > { %346 = vmatpush2.msra.mxu0 %v295_v63  ;;  %v412_v54 = vrot.slane %v407_v51, %v396_v52  ;;  %v416_v56 = vrot.slane %v407_v51, %v415_v53  ;;  %v439_v0 = vrot.slane %v434_v58, %v396_v52 }
  0x36   : > { %347 = vmatprep.subr.mxu0 %v294_v1  ;;  %v443_v1 = vrot.slane %v434_v58, %v415_v53 }
  0x37   : > { %348 = vmatpush2.msra.mxu0 %v293_v2 }
  0x38   : > { %349 = vmatprep.subr.mxu0 %v292_v3 }
  0x39   : > { %350 = vmatpush2.msra.mxu0 %v291_v6  ;;  %v444_v6 = vcombine.low %v439_v0, %v443_v1 }
  0x3a   : > { %351 = vmatprep.subr.mxu0 %v290_v7 }
  0x3b   : > { %352 = vmatpush2.msra.mxu0 %v289_v8 }
  0x3c   : > { %353 = vmatprep.subr.mxu0 %v288_v9 }
  0x3d   : > { %354 = vmatpush2.msra.mxu0 %v287_v12 }
  0x3e   : > { %355 = vmatprep.subr.mxu0 %v286_v13 }
  0x3f   : > { %356 = vmatpush2.msra.mxu0 %v285_v14 }
  0x40   : > { %357 = vmatprep.subr.mxu0 %v284_v15 }
  0x41   : > { %358 = vmatpush2.msra.mxu0 %v283_v18 }
  0x42   : > { %359 = vmatprep.subr.mxu0 %v282_v19 }
  0x43   : > { %360 = vmatpush2.msra.mxu0 %v281_v20 }
  0x44   : > { %361 = vmatprep.subr.mxu0 %v280_v21 }
  0x45   : > { %362 = vmatpush2.msra.mxu0 %v279_v25 }
  0x46   : > { %363 = vmatprep.subr.mxu0 %v278_v26 }
  0x47   : > { %364 = vmatpush2.msra.mxu0 %v277_v27 }
  0x48   : > { %365 = vmatprep.subr.mxu0 %v276_v28 }
  0x49   : > { %366 = vmatpush2.msra.mxu0 %v275_v31 }
  0x4a   : > { %367 = vmatprep.subr.mxu0 %v274_v32 }
  0x4b   : > { %368 = vmatpush2.msra.mxu0 %v273_v33 }
  0x4c   : > { %513 = vmatmul.mubr.msk.f32.vlgmr.msra.gmra.mxu0 %vm238_vm2, %v236_v34 }
 0x10c   : > { %v371_v35 = vpop.f32.mrf.mxu0 }
 0x10d   : > { %v376_v36 = vmul.f32 0.03125, %v371_v35 }
 0x10e   : > { %v373_v37 = vpop.f32.mrf.mxu0 }
 0x10f   : > { %v378_v38 = vmul.f32 %v376_v36, %v376_v36  ;;  %v377_v39 = vmul.f32 0.03125, %v373_v37  ;;  %v397_v59 = vrot.slane %v376_v36, %v396_v52 }
 0x111   : > { %v382_v40 = vrot.slane %v378_v38, 7  ;;  %v379_v41 = vmul.f32 %v377_v39, %v377_v39  ;;  %v401_v55 = vrot.slane %v377_v39, %v396_v52 }
 0x113   : > { %v386_v42 = vsub.f32 %v376_v36, %v382_v40  ;;  %v383_v43 = vrot.slane %v379_v41, 7  ;;  %v404_v62 = vcombine.low %v397_v59, %v401_v55 }
 0x115   : > { %v388_v44 = vmax.f32 %v386_v42, 0.0  ;;  %v387_v45 = vsub.f32 %v377_v39, %v383_v43  ;;  %v406_v4 = vsub.f32 %v656_v24, %v404_v62 }
 0x117   : > { %v390_v46 = vadd.f32 1e-05, %v388_v44  ;;  %v389_v47 = vmax.f32 %v387_v45, 0.0 }
 0x119   : > { %527 = vrsqrt.f32 %v390_v46  ;;  %v391_v49 = vadd.f32 1e-05, %v389_v47 }
 0x11b   : > { %529 = vrsqrt.f32 %v391_v49 }
 0x126   : > { %v528_v57 = vpop.eup %527 }
 0x127   : > { %v419_v60 = vmul.f32 %v528_v57, %v412_v54 }
 0x128   : > { %v530_v61 = vpop.eup %529 }
 0x129   : > { %v420_v63 = vmul.f32 %v530_v61, %v416_v56  ;;  %v424_v2 = vrot.slane %v419_v60, %v415_v53 }
 0x12b   : > { %v428_v3 = vrot.slane %v420_v63, %v415_v53 }
 0x12d   : > { %v431_v5 = vcombine.low %v424_v2, %v428_v3 }
 0x12f   : > { %v433_v7 = vmul.f32 %v431_v5, %v406_v4 }
 0x131   : > { %v446_v8 = vadd.f32 %v444_v6, %v433_v7 }
 0x133   : > { %447 = vst [vmem:[%s197_s13] sm:$0xff] %v446_v8 }
 0x134 PF: > { %s14_s15 = sadd.s32 1, %s537_s15  }
 0x135   : > { %p11_p4 = scmp.ge.s32.totalorder %s14_s15, 4  }
 0x137   :  { %13 = sbr.rel (!%p11_p4) target bundleno = 1 (0x1), region = 66 }

// kernel: lw_cbam_alexnet_forward.43
= control target key start
LH: loop header
LB: loop body
LE: loop exit
PB: predicated region body
PF: predicated region fallthrough
CT: control target
= control target key end

     0   :  { %s1515_s12 = smov 0   ;;  %s1517_s13 = smov 0   ;;  %s1827_s0 = inlined_call_operand.vmem [shape: bf16[8,9216], index: 0, kind: input, shape index: {}]   ;;  %s1828_s1 = inlined_call_operand.vmem [shape: bf16[9216,4096], index: 1, kind: input, shape index: {}]   ;;  %s1829_s2 = inlined_call_operand.vmem [shape: f32[1,4096], index: 2, kind: input, shape index: {}]   ;;  %s1830_s3 = inlined_call_operand.vmem [shape: f32[8,4096], index: 3, kind: output, shape index: {}]  }
   0x1   :  { %s1519_s14 = smov 0   ;;  %s1521_s15 = smov 0  }
   0x2   :  { %s1523_s16 = smov 0   ;;  %s1525_s17 = smov 0  }
   0x3   :  { %s1527_s18 = smov 0  }
   0x4 LB: > { %s25_s19 = sadd.s32 1, %s1484_s16  ;;  %s28_s20 = sadd.s32 1, %s1488_s17  ;;  %s1492_s18 = sphi %s1527_s18, %s13_s18   ;;  %s1488_s17 = sphi %s1525_s17, %s1836_s17   ;;  %s1484_s16 = sphi %s1523_s16, %s1835_s16   ;;  %s1480_s15 = sphi %s1521_s15, %s1834_s15   ;;  %s1476_s14 = sphi %s1519_s14, %s1833_s14   ;;  %s1472_s13 = sphi %s1517_s13, %s1832_s13   ;;  %s1468_s12 = sphi %s1515_s12, %s1831_s12  }
   0x5   : > { %p26_p0 = scmp.ge.s32.totalorder %s25_s19, 18  ;;  %p76_p1 = scmp.ne.s32.totalorder %s1472_s13, %s1468_s12 }
   0x6   : > { %p77_p2 = scmp.eq.s32.totalorder %s1492_s18, 0  ;;  %s69_s24 = sadd.s32 1, %s1472_s13 }
   0x7   : > { %s1838_s19 = smov (%p26_p0, %s25_s19), 0  ;;  %s1840_s20 = smov (!%p26_p0, %s28_s20), %s1488_s17 }
   0x8   : > { %p78_p3 = por %p77_p2, %p76_p1  ;;  %p30_p4 = scmp.ge.s32.totalorder %s1840_s20, 16 }
   0x9   : > { %s64_s21 = ssub.s32 %s1484_s16, %s1838_s19  ;;  %p1195_p6 = scmp.ge.s32.totalorder %s1492_s18, 288 }
   0xa   : > { %s1842_s20 = smov (%p30_p4, %s1840_s20), 0 }
   0xb   : > { %s65_s22 = ssub.s32 %s1488_s17, %s1842_s20  ;;  %156 = sbr.rel (%p1195_p6) target bundleno = 87 (0x57), region = 16 }
   0xc   : > { %s66_s23 = sor.u32 %s65_s22, %s64_s21 }
   0xd   : > { %p67_p5 = scmp.eq.s32.totalorder %s66_s23, 0 }
   0xf   : > { %s1566_s25 = scalar_select %p67_p5, %s1472_s13, %s69_s24  }
  0x10   : > { %172 = sbr.rel (!%p78_p3) target bundleno = 87 (0x57), region = 24  ;;  %s174_s26 = sand.u32 (%p78_p3), 1, %s1472_s13  }
  0x11   : > { %s1198_s27 = sshll.u32 (%p78_p3), %s1488_s17, 1  ;;  %s1196_s28 = sshll.u32 (%p78_p3), %s174_s26, 9 }
  0x12   : > { %s1280_s29 = sshll.u32 (%p78_p3), %s1484_s16, 11  ;;  %s1580_s8 = scalar_lea.vmem (%p78_p3), [#allocation3], %s1196_s28 }
  0x13   : > { %s180_s30 = sadd.s32 (%p78_p3), %s1280_s29, %s1198_s27 }
  0x14   : > { %s1200_s4 = sshll.u32 (%p78_p3), %s180_s30, 2 }
  0x15   : > { %s1575_s7 = scalar_lea.vmem %s1828_s1, %s1200_s4 }
  0x16   : > { %v337_v0 = vld [vmem:[%s1575_s7] sm:$0xff] }
  0x17   : > { %v339_v1 = vld [vmem:[%s1575_s7 + $0x80] sm:$0xff]  ;;  %338 = vst [vmem:[%s1580_s8] sm:$0xff] %v337_v0 }
  0x18   : > { %v341_v2 = vld [vmem:[%s1575_s7 + $0x100] sm:$0xff]  ;;  %340 = vst [vmem:[%s1580_s8 + $0x8] sm:$0xff] %v339_v1 }
  0x19   : > { %342 = vst [vmem:[%s1580_s8 + $0x10] sm:$0xff] %v341_v2  ;;  %v343_v3 = vld [vmem:[%s1575_s7 + $0x180] sm:$0xff] }
  0x1a   : > { %v345_v4 = vld [vmem:[%s1575_s7 + $0x200] sm:$0xff]  ;;  %344 = vst [vmem:[%s1580_s8 + $0x18] sm:$0xff] %v343_v3 }
  0x1b   : > { %v347_v5 = vld [vmem:[%s1575_s7 + $0x280] sm:$0xff]  ;;  %346 = vst [vmem:[%s1580_s8 + $0x20] sm:$0xff] %v345_v4 }
  0x1c   : > { %348 = vst [vmem:[%s1580_s8 + $0x28] sm:$0xff] %v347_v5  ;;  %v349_v6 = vld [vmem:[%s1575_s7 + $0x300] sm:$0xff] }
  0x1d   : > { %v351_v7 = vld [vmem:[%s1575_s7 + $0x380] sm:$0xff]  ;;  %350 = vst [vmem:[%s1580_s8 + $0x30] sm:$0xff] %v349_v6 }
  0x1e   : > { %v353_v8 = vld [vmem:[%s1575_s7 + $0x400] sm:$0xff]  ;;  %352 = vst [vmem:[%s1580_s8 + $0x38] sm:$0xff] %v351_v7 }
  0x1f   : > { %354 = vst [vmem:[%s1580_s8 + $0x40] sm:$0xff] %v353_v8  ;;  %v355_v9 = vld [vmem:[%s1575_s7 + $0x480] sm:$0xff] }
  0x20   : > { %v357_v10 = vld [vmem:[%s1575_s7 + $0x500] sm:$0xff]  ;;  %356 = vst [vmem:[%s1580_s8 + $0x48] sm:$0xff] %v355_v9 }
  0x21   : > { %v359_v11 = vld [vmem:[%s1575_s7 + $0x580] sm:$0xff]  ;;  %358 = vst [vmem:[%s1580_s8 + $0x50] sm:$0xff] %v357_v10 }
  0x22   : > { %360 = vst [vmem:[%s1580_s8 + $0x58] sm:$0xff] %v359_v11  ;;  %v361_v12 = vld [vmem:[%s1575_s7 + $0x600] sm:$0xff] }
  0x23   : > { %v363_v13 = vld [vmem:[%s1575_s7 + $0x680] sm:$0xff]  ;;  %362 = vst [vmem:[%s1580_s8 + $0x60] sm:$0xff] %v361_v12 }
  0x24   : > { %v365_v14 = vld [vmem:[%s1575_s7 + $0x700] sm:$0xff]  ;;  %364 = vst [vmem:[%s1580_s8 + $0x68] sm:$0xff] %v363_v13 }
  0x25   : > { %366 = vst [vmem:[%s1580_s8 + $0x70] sm:$0xff] %v365_v14  ;;  %v367_v15 = vld [vmem:[%s1575_s7 + $0x780] sm:$0xff] }
  0x26   : > { %v369_v16 = vld [vmem:[%s1575_s7 + $0x800] sm:$0xff]  ;;  %368 = vst [vmem:[%s1580_s8 + $0x78] sm:$0xff] %v367_v15 }
  0x27   : > { %v371_v17 = vld [vmem:[%s1575_s7 + $0x880] sm:$0xff]  ;;  %370 = vst [vmem:[%s1580_s8 + $0x80] sm:$0xff] %v369_v16 }
  0x28   : > { %372 = vst [vmem:[%s1580_s8 + $0x88] sm:$0xff] %v371_v17  ;;  %v373_v18 = vld [vmem:[%s1575_s7 + $0x900] sm:$0xff] }
  0x29   : > { %v375_v19 = vld [vmem:[%s1575_s7 + $0x980] sm:$0xff]  ;;  %374 = vst [vmem:[%s1580_s8 + $0x90] sm:$0xff] %v373_v18 }
  0x2a   : > { %v377_v20 = vld [vmem:[%s1575_s7 + $0xa00] sm:$0xff]  ;;  %376 = vst [vmem:[%s1580_s8 + $0x98] sm:$0xff] %v375_v19 }
  0x2b   : > { %378 = vst [vmem:[%s1580_s8 + $0xa0] sm:$0xff] %v377_v20  ;;  %v379_v21 = vld [vmem:[%s1575_s7 + $0xa80] sm:$0xff] }
  0x2c   : > { %v381_v22 = vld [vmem:[%s1575_s7 + $0xb00] sm:$0xff]  ;;  %380 = vst [vmem:[%s1580_s8 + $0xa8] sm:$0xff] %v379_v21 }
  0x2d   : > { %v383_v23 = vld [vmem:[%s1575_s7 + $0xb80] sm:$0xff]  ;;  %382 = vst [vmem:[%s1580_s8 + $0xb0] sm:$0xff] %v381_v22 }
  0x2e   : > { %384 = vst [vmem:[%s1580_s8 + $0xb8] sm:$0xff] %v383_v23  ;;  %v385_v24 = vld [vmem:[%s1575_s7 + $0xc00] sm:$0xff] }
  0x2f   : > { %v387_v25 = vld [vmem:[%s1575_s7 + $0xc80] sm:$0xff]  ;;  %386 = vst [vmem:[%s1580_s8 + $0xc0] sm:$0xff] %v385_v24 }
  0x30   : > { %v389_v26 = vld [vmem:[%s1575_s7 + $0xd00] sm:$0xff]  ;;  %388 = vst [vmem:[%s1580_s8 + $0xc8] sm:$0xff] %v387_v25 }
  0x31   : > { %390 = vst [vmem:[%s1580_s8 + $0xd0] sm:$0xff] %v389_v26  ;;  %v391_v27 = vld [vmem:[%s1575_s7 + $0xd80] sm:$0xff] }
  0x32   : > { %v393_v28 = vld [vmem:[%s1575_s7 + $0xe00] sm:$0xff]  ;;  %392 = vst [vmem:[%s1580_s8 + $0xd8] sm:$0xff] %v391_v27 }
  0x33   : > { %v395_v29 = vld [vmem:[%s1575_s7 + $0xe80] sm:$0xff]  ;;  %394 = vst [vmem:[%s1580_s8 + $0xe0] sm:$0xff] %v393_v28 }
  0x34   : > { %396 = vst [vmem:[%s1580_s8 + $0xe8] sm:$0xff] %v395_v29  ;;  %v397_v30 = vld [vmem:[%s1575_s7 + $0xf00] sm:$0xff] }
  0x35   : > { %v399_v31 = vld [vmem:[%s1575_s7 + $0xf80] sm:$0xff]  ;;  %398 = vst [vmem:[%s1580_s8 + $0xf0] sm:$0xff] %v397_v30 }
  0x36   : > { %v401_v32 = vld [vmem:[%s1575_s7 + $0x1000] sm:$0xff]  ;;  %400 = vst [vmem:[%s1580_s8 + $0xf8] sm:$0xff] %v399_v31 }
  0x37   : > { %402 = vst [vmem:[%s1580_s8 + $0x100] sm:$0xff] %v401_v32  ;;  %v403_v33 = vld [vmem:[%s1575_s7 + $0x1080] sm:$0xff] }
  0x38   : > { %v405_v34 = vld [vmem:[%s1575_s7 + $0x1100] sm:$0xff]  ;;  %404 = vst [vmem:[%s1580_s8 + $0x108] sm:$0xff] %v403_v33 }
  0x39   : > { %v407_v35 = vld [vmem:[%s1575_s7 + $0x1180] sm:$0xff]  ;;  %406 = vst [vmem:[%s1580_s8 + $0x110] sm:$0xff] %v405_v34 }
  0x3a   : > { %408 = vst [vmem:[%s1580_s8 + $0x118] sm:$0xff] %v407_v35  ;;  %v409_v36 = vld [vmem:[%s1575_s7 + $0x1200] sm:$0xff] }
  0x3b   : > { %v411_v37 = vld [vmem:[%s1575_s7 + $0x1280] sm:$0xff]  ;;  %410 = vst [vmem:[%s1580_s8 + $0x120] sm:$0xff] %v409_v36 }
  0x3c   : > { %v413_v38 = vld [vmem:[%s1575_s7 + $0x1300] sm:$0xff]  ;;  %412 = vst [vmem:[%s1580_s8 + $0x128] sm:$0xff] %v411_v37 }
  0x3d   : > { %414 = vst [vmem:[%s1580_s8 + $0x130] sm:$0xff] %v413_v38  ;;  %v415_v39 = vld [vmem:[%s1575_s7 + $0x1380] sm:$0xff] }
  0x3e   : > { %v417_v40 = vld [vmem:[%s1575_s7 + $0x1400] sm:$0xff]  ;;  %416 = vst [vmem:[%s1580_s8 + $0x138] sm:$0xff] %v415_v39 }
  0x3f   : > { %v419_v41 = vld [vmem:[%s1575_s7 + $0x1480] sm:$0xff]  ;;  %418 = vst [vmem:[%s1580_s8 + $0x140] sm:$0xff] %v417_v40 }
  0x40   : > { %420 = vst [vmem:[%s1580_s8 + $0x148] sm:$0xff] %v419_v41  ;;  %v421_v42 = vld [vmem:[%s1575_s7 + $0x1500] sm:$0xff] }
  0x41   : > { %v423_v43 = vld [vmem:[%s1575_s7 + $0x1580] sm:$0xff]  ;;  %422 = vst [vmem:[%s1580_s8 + $0x150] sm:$0xff] %v421_v42 }
  0x42   : > { %v425_v44 = vld [vmem:[%s1575_s7 + $0x1600] sm:$0xff]  ;;  %424 = vst [vmem:[%s1580_s8 + $0x158] sm:$0xff] %v423_v43 }
  0x43   : > { %426 = vst [vmem:[%s1580_s8 + $0x160] sm:$0xff] %v425_v44  ;;  %v427_v45 = vld [vmem:[%s1575_s7 + $0x1680] sm:$0xff] }
  0x44   : > { %v429_v46 = vld [vmem:[%s1575_s7 + $0x1700] sm:$0xff]  ;;  %428 = vst [vmem:[%s1580_s8 + $0x168] sm:$0xff] %v427_v45 }
  0x45   : > { %v431_v47 = vld [vmem:[%s1575_s7 + $0x1780] sm:$0xff]  ;;  %430 = vst [vmem:[%s1580_s8 + $0x170] sm:$0xff] %v429_v46 }
  0x46   : > { %432 = vst [vmem:[%s1580_s8 + $0x178] sm:$0xff] %v431_v47  ;;  %v433_v48 = vld [vmem:[%s1575_s7 + $0x1800] sm:$0xff] }
  0x47   : > { %v435_v49 = vld [vmem:[%s1575_s7 + $0x1880] sm:$0xff]  ;;  %434 = vst [vmem:[%s1580_s8 + $0x180] sm:$0xff] %v433_v48 }
  0x48   : > { %v437_v50 = vld [vmem:[%s1575_s7 + $0x1900] sm:$0xff]  ;;  %436 = vst [vmem:[%s1580_s8 + $0x188] sm:$0xff] %v435_v49 }
  0x49   : > { %438 = vst [vmem:[%s1580_s8 + $0x190] sm:$0xff] %v437_v50  ;;  %v439_v51 = vld [vmem:[%s1575_s7 + $0x1980] sm:$0xff] }
  0x4a   : > { %v441_v52 = vld [vmem:[%s1575_s7 + $0x1a00] sm:$0xff]  ;;  %440 = vst [vmem:[%s1580_s8 + $0x198] sm:$0xff] %v439_v51 }
  0x4b   : > { %v443_v53 = vld [vmem:[%s1575_s7 + $0x1a80] sm:$0xff]  ;;  %442 = vst [vmem:[%s1580_s8 + $0x1a0] sm:$0xff] %v441_v52 }
  0x4c   : > { %444 = vst [vmem:[%s1580_s8 + $0x1a8] sm:$0xff] %v443_v53  ;;  %v445_v54 = vld [vmem:[%s1575_s7 + $0x1b00] sm:$0xff] }
  0x4d   : > { %v447_v55 = vld [vmem:[%s1575_s7 + $0x1b80] sm:$0xff]  ;;  %446 = vst [vmem:[%s1580_s8 + $0x1b0] sm:$0xff] %v445_v54 }
  0x4e   : > { %v449_v56 = vld [vmem:[%s1575_s7 + $0x1c00] sm:$0xff]  ;;  %448 = vst [vmem:[%s1580_s8 + $0x1b8] sm:$0xff] %v447_v55 }
  0x4f   : > { %450 = vst [vmem:[%s1580_s8 + $0x1c0] sm:$0xff] %v449_v56  ;;  %v451_v57 = vld [vmem:[%s1575_s7 + $0x1c80] sm:$0xff] }
  0x50   : > { %v453_v58 = vld [vmem:[%s1575_s7 + $0x1d00] sm:$0xff]  ;;  %452 = vst [vmem:[%s1580_s8 + $0x1c8] sm:$0xff] %v451_v57 }
  0x51   : > { %v455_v59 = vld [vmem:[%s1575_s7 + $0x1d80] sm:$0xff]  ;;  %454 = vst [vmem:[%s1580_s8 + $0x1d0] sm:$0xff] %v453_v58 }
  0x52   : > { %456 = vst [vmem:[%s1580_s8 + $0x1d8] sm:$0xff] %v455_v59  ;;  %v457_v60 = vld [vmem:[%s1575_s7 + $0x1e00] sm:$0xff] }
  0x53   : > { %v459_v61 = vld [vmem:[%s1575_s7 + $0x1e80] sm:$0xff]  ;;  %458 = vst [vmem:[%s1580_s8 + $0x1e0] sm:$0xff] %v457_v60 }
  0x54   : > { %v461_v62 = vld [vmem:[%s1575_s7 + $0x1f00] sm:$0xff]  ;;  %460 = vst [vmem:[%s1580_s8 + $0x1e8] sm:$0xff] %v459_v61 }
  0x55   : > { %462 = vst [vmem:[%s1580_s8 + $0x1f0] sm:$0xff] %v461_v62  ;;  %v463_v63 = vld [vmem:[%s1575_s7 + $0x1f80] sm:$0xff] }
  0x56   : > { %464 = vst [vmem:[%s1580_s8 + $0x1f8] sm:$0xff] %v463_v63 }
  0x57 PF: > { %p1201_p7 = scmp.ge.s32.totalorder %s1492_s18, 1  ;;  %p477_p8 = scmp.lt.s32.totalorder %s1492_s18, 289 }
  0x59   : > { %p478_p9 = pnand %p1201_p7, %p477_p8 }
  0x5a   : > { %s484_s9 = sand.u32 (!%p478_p9), 1, %s1468_s12   ;;  %s1203_s10 = sshll.u32 (!%p478_p9), %s1476_s14, 2 }
  0x5b   : > { %481 = sbr.rel (%p478_p9) target bundleno = 385 (0x181), region = 66  ;;  %s1202_s11 = sshll.u32 (!%p478_p9), %s484_s9, 9 }
  0x5c   : > { %p527_p10 = scmp.lt.s32.totalorder (!%p478_p9), %s1203_s10, 71  ;;  %s1205_s21 = sshll.u32 (!%p478_p9), %s1480_s15, 1 }
  0x5d   : > { %p537_p11 = scmp.lt.s32.totalorder (!%p478_p9), %s1205_s21, 31  ;;  %s1729_s5 = scalar_lea.vmem (!%p478_p9), [#allocation3], %s1202_s11 }
  0x5e   : > { %p1208_p12 = scmp.ne.s32.totalorder (!%p478_p9), %s1476_s14, 0 }
  0x60   : > { %s1844_s10 = smov (!%p527_p10, %s1203_s10), 71  ;;  %s1846_s21 = smov (!%p537_p11, %s1205_s21), 31 }
  0x61   : > { %s1204_s22 = sshll.u32 %s1844_s10, 2  ;;  %s539_s12 = scalar_lea.vmem %s1829_s2, %s1846_s21 }
  0x62   : > { %s1715_s26 = scalar_lea.vmem %s1827_s0, %s1204_s22  ;;  %s1207_s29 = sshll.u32 %s1846_s21, 3 }
  0x63   : > { %s1727_s15 = scalar_lea.vmem %s1830_s3, %s1207_s29  ;;  %554 = sbr.rel (%p1208_p12) target bundleno = 106 (0x6a), region = 74 }
  0x68   : > { %v1494_v0 = vmov 0.0  }
  0x69   : > { %555 = vst [vmem:[#allocation2] sm:$0xff] %v1494_v0  ;;  %556 = vst [vmem:[#allocation2 + $0x8] sm:$0xff] %v1494_v0 }
  0x6a PF: > { %v1338_v1 = vld [vmem:[%s1729_s5 + $0x74] ss:$8 sps:$4 sm:$0xff]   ;;  %v1342_v3 = vld [vmem:[%s1729_s5 + $0x70] ss:$8 sps:$4 sm:$0xff]   ;;  %v1344_v5 = vld [vmem:[%s1729_s5 + $0x64] ss:$8 sps:$4 sm:$0xff]  }
  0x6b   : > { %v1340_v2 = vld [vmem:[%s1729_s5 + $0x174] ss:$8 sps:$4 sm:$0xff]   ;;  %959 = vmatprep.subr.bf16.mxu0 %v1338_v1  ;;  %v1343_v4 = vld [vmem:[%s1729_s5 + $0x170] ss:$8 sps:$4 sm:$0xff]   ;;  %v1346_v6 = vld [vmem:[%s1729_s5 + $0x164] ss:$8 sps:$4 sm:$0xff]  }
  0x6c   : > { %1000 = vmatprep.subr.bf16.mxu1 %v1340_v2  ;;  %960 = vmatpush1.bf16.msra.mxu0 %v1342_v3  ;;  %v1348_v7 = vld [vmem:[%s1729_s5 + $0x60] ss:$8 sps:$4 sm:$0xff]   ;;  %v1350_v9 = vld [vmem:[%s1729_s5 + $0x54] ss:$8 sps:$4 sm:$0xff]   ;;  %v1354_v11 = vld [vmem:[%s1729_s5 + $0x50] ss:$8 sps:$4 sm:$0xff]  }
  0x6d   : > { %1001 = vmatpush1.bf16.msra.mxu1 %v1343_v4  ;;  %961 = vmatprep.subr.bf16.mxu0 %v1344_v5  ;;  %v1349_v8 = vld [vmem:[%s1729_s5 + $0x160] ss:$8 sps:$4 sm:$0xff]   ;;  %v1352_v10 = vld [vmem:[%s1729_s5 + $0x154] ss:$8 sps:$4 sm:$0xff]   ;;  %v1355_v12 = vld [vmem:[%s1729_s5 + $0x150] ss:$8 sps:$4 sm:$0xff]  }
  0x6e   : > { %1002 = vmatprep.subr.bf16.mxu1 %v1346_v6  ;;  %v1356_v13 = vld [vmem:[%s1729_s5 + $0x44] ss:$8 sps:$4 sm:$0xff]   ;;  %v1360_v15 = vld [vmem:[%s1729_s5 + $0x40] ss:$8 sps:$4 sm:$0xff]   ;;  %v1362_v17 = vld [vmem:[%s1729_s5 + $0x34] ss:$8 sps:$4 sm:$0xff]  }
  0x6f   : > { %v1358_v14 = vld [vmem:[%s1729_s5 + $0x144] ss:$8 sps:$4 sm:$0xff]   ;;  %v1361_v16 = vld [vmem:[%s1729_s5 + $0x140] ss:$8 sps:$4 sm:$0xff]   ;;  %v1364_v18 = vld [vmem:[%s1729_s5 + $0x134] ss:$8 sps:$4 sm:$0xff]  }
  0x70   : > { %962 = vmatpush1.bf16.msra.mxu0 %v1348_v7  ;;  %v1366_v19 = vld [vmem:[%s1729_s5 + $0x30] ss:$8 sps:$4 sm:$0xff]   ;;  %v1368_v21 = vld [vmem:[%s1729_s5 + $0x24] ss:$8 sps:$4 sm:$0xff]   ;;  %v1372_v23 = vld [vmem:[%s1729_s5 + $0x20] ss:$8 sps:$4 sm:$0xff]  }
  0x71   : > { %1003 = vmatpush1.bf16.msra.mxu1 %v1349_v8  ;;  %963 = vmatprep.subr.bf16.mxu0 %v1350_v9  ;;  %v1367_v20 = vld [vmem:[%s1729_s5 + $0x130] ss:$8 sps:$4 sm:$0xff]   ;;  %v1370_v22 = vld [vmem:[%s1729_s5 + $0x124] ss:$8 sps:$4 sm:$0xff]   ;;  %v1373_v24 = vld [vmem:[%s1729_s5 + $0x120] ss:$8 sps:$4 sm:$0xff]  }
  0x72   : > { %1004 = vmatprep.subr.bf16.mxu1 %v1352_v10  ;;  %v1374_v25 = vld [vmem:[%s1729_s5 + $0x14] ss:$8 sps:$4 sm:$0xff]   ;;  %v1378_v27 = vld [vmem:[%s1729_s5 + $0x10] ss:$8 sps:$4 sm:$0xff]   ;;  %v1380_v29 = vld [vmem:[%s1729_s5 + $0x4] ss:$8 sps:$4 sm:$0xff]  }
  0x73   : > { %v1376_v26 = vld [vmem:[%s1729_s5 + $0x114] ss:$8 sps:$4 sm:$0xff]   ;;  %v1379_v28 = vld [vmem:[%s1729_s5 + $0x110] ss:$8 sps:$4 sm:$0xff]   ;;  %v1382_v30 = vld [vmem:[%s1729_s5 + $0x104] ss:$8 sps:$4 sm:$0xff]  }
  0x74   : > { %964 = vmatpush1.bf16.msra.mxu0 %v1354_v11  ;;  %v1384_v31 = vld [vmem:[%s1729_s5] ss:$8 sps:$4 sm:$0xff]   ;;  %v1386_v33 = vld [vmem:[%s1729_s5 + $0xf4] ss:$8 sps:$4 sm:$0xff]   ;;  %v1390_v35 = vld [vmem:[%s1729_s5 + $0xf0] ss:$8 sps:$4 sm:$0xff]  }
  0x75   : > { %1005 = vmatpush1.bf16.msra.mxu1 %v1355_v12  ;;  %965 = vmatprep.subr.bf16.mxu0 %v1356_v13  ;;  %v1385_v32 = vld [vmem:[%s1729_s5 + $0x100] ss:$8 sps:$4 sm:$0xff]   ;;  %v1388_v34 = vld [vmem:[%s1729_s5 + $0x1f4] ss:$8 sps:$4 sm:$0xff]   ;;  %v1391_v36 = vld [vmem:[%s1729_s5 + $0x1f0] ss:$8 sps:$4 sm:$0xff]  }
  0x76   : > { %1006 = vmatprep.subr.bf16.mxu1 %v1358_v14  ;;  %v1392_v37 = vld [vmem:[%s1729_s5 + $0xe4] ss:$8 sps:$4 sm:$0xff]   ;;  %v1396_v39 = vld [vmem:[%s1729_s5 + $0xe0] ss:$8 sps:$4 sm:$0xff]   ;;  %v1398_v41 = vld [vmem:[%s1729_s5 + $0xd4] ss:$8 sps:$4 sm:$0xff]  }
  0x77   : > { %v1394_v38 = vld [vmem:[%s1729_s5 + $0x1e4] ss:$8 sps:$4 sm:$0xff]   ;;  %v1397_v40 = vld [vmem:[%s1729_s5 + $0x1e0] ss:$8 sps:$4 sm:$0xff]   ;;  %v1400_v42 = vld [vmem:[%s1729_s5 + $0x1d4] ss:$8 sps:$4 sm:$0xff]  }
  0x78   : > { %966 = vmatpush1.bf16.msra.mxu0 %v1360_v15  ;;  %v1402_v43 = vld [vmem:[%s1729_s5 + $0xd0] ss:$8 sps:$4 sm:$0xff]   ;;  %v1404_v45 = vld [vmem:[%s1729_s5 + $0xc4] ss:$8 sps:$4 sm:$0xff]   ;;  %v1408_v50 = vld [vmem:[%s1729_s5 + $0xc0] ss:$8 sps:$4 sm:$0xff]  }
  0x79   : > { %1007 = vmatpush1.bf16.msra.mxu1 %v1361_v16  ;;  %967 = vmatprep.subr.bf16.mxu0 %v1362_v17  ;;  %v1403_v44 = vld [vmem:[%s1729_s5 + $0x1d0] ss:$8 sps:$4 sm:$0xff]   ;;  %v1406_v46 = vld [vmem:[%s1729_s5 + $0x1c4] ss:$8 sps:$4 sm:$0xff]   ;;  %v1409_v51 = vld [vmem:[%s1729_s5 + $0x1c0] ss:$8 sps:$4 sm:$0xff]  }
  0x7a   : > { %1008 = vmatprep.subr.bf16.mxu1 %v1364_v18  ;;  %v559_v47 = vld [vmem:[%s1715_s26] sm:$0xff]  ;;  %v560_v49 = vld [vmem:[%s1715_s26 + $0x8] sm:$0xff]  ;;  %v1416_v57 = vld [vmem:[%s1729_s5 + $0xa4] ss:$8 sps:$4 sm:$0xff]   ;;  %p1277_p13 = scmp.ne.s32.totalorder %s1476_s14, 17 }
  0x7b   : > { %v1210_v48 = vcombine.high %v559_v47, %v559_v47  ;;  %v1212_v52 = vcombine.high %v560_v49, %v560_v49  ;;  %v1410_v53 = vld [vmem:[%s1729_s5 + $0xb4] ss:$8 sps:$4 sm:$0xff]   ;;  %v1414_v55 = vld [vmem:[%s1729_s5 + $0xb0] ss:$8 sps:$4 sm:$0xff]   ;;  %v1418_v58 = vld [vmem:[%s1729_s5 + $0x1a4] ss:$8 sps:$4 sm:$0xff]   ;;  %v1209_v5 = vcombine.low %v559_v47, %v559_v47  ;;  %v1211_v6 = vcombine.low %v560_v49, %v560_v49 }
  0x7c   : > { %968 = vmatpush1.bf16.msra.mxu0 %v1366_v19  ;;  %v1412_v54 = vld [vmem:[%s1729_s5 + $0x1b4] ss:$8 sps:$4 sm:$0xff]   ;;  %v1415_v56 = vld [vmem:[%s1729_s5 + $0x1b0] ss:$8 sps:$4 sm:$0xff]   ;;  %v1420_v59 = vld [vmem:[%s1729_s5 + $0xa0] ss:$8 sps:$4 sm:$0xff]  }
  0x7d   : > { %1009 = vmatpush1.bf16.msra.mxu1 %v1367_v20  ;;  %969 = vmatprep.subr.bf16.mxu0 %v1368_v21  ;;  %v1421_v60 = vld [vmem:[%s1729_s5 + $0x1a0] ss:$8 sps:$4 sm:$0xff]   ;;  %v1422_v61 = vld [vmem:[%s1729_s5 + $0x94] ss:$8 sps:$4 sm:$0xff]   ;;  %v1426_v63 = vld [vmem:[%s1729_s5 + $0x90] ss:$8 sps:$4 sm:$0xff]  }
  0x7e   : > { %1010 = vmatprep.subr.bf16.mxu1 %v1370_v22  ;;  %991 = vmatprep.mubr.bf16.mxu0 %v1210_v48  ;;  %v1424_v62 = vld [vmem:[%s1729_s5 + $0x194] ss:$8 sps:$4 sm:$0xff]   ;;  %v1427_v0 = vld [vmem:[%s1729_s5 + $0x190] ss:$8 sps:$4 sm:$0xff]   ;;  %v1428_v1 = vld [vmem:[%s1729_s5 + $0x84] ss:$8 sps:$4 sm:$0xff]  }
  0x7f   : > { %1032 = vmatprep.mubr.bf16.mxu1 %v1212_v52  ;;  %v1430_v2 = vld [vmem:[%s1729_s5 + $0x184] ss:$8 sps:$4 sm:$0xff]   ;;  %v1432_v3 = vld [vmem:[%s1729_s5 + $0x80] ss:$8 sps:$4 sm:$0xff]   ;;  %v557_v8 = vld [vmem:[#allocation2] sm:$0xff] }
  0x80   : > { %970 = vmatpush1.bf16.msra.mxu0 %v1372_v23  ;;  %v1433_v4 = vld [vmem:[%s1729_s5 + $0x180] ss:$8 sps:$4 sm:$0xff]   ;;  %v558_v12 = vld [vmem:[#allocation2 + $0x8] sm:$0xff] }
  0x81   : > { %1011 = vmatpush1.bf16.msra.mxu1 %v1373_v24  ;;  %971 = vmatprep.subr.bf16.mxu0 %v1374_v25 }
  0x82   : > { %1012 = vmatprep.subr.bf16.mxu1 %v1376_v26 }
  0x84   : > { %972 = vmatpush1.bf16.msra.mxu0 %v1378_v27 }
  0x85   : > { %1013 = vmatpush1.bf16.msra.mxu1 %v1379_v28  ;;  %973 = vmatprep.subr.bf16.mxu0 %v1380_v29 }
  0x86   : > { %1014 = vmatprep.subr.bf16.mxu1 %v1382_v30 }
  0x88   : > { %974 = vmatpush1.bf16.msra.mxu0 %v1384_v31 }
  0x89   : > { %1015 = vmatpush1.bf16.msra.mxu1 %v1385_v32  ;;  %975 = vmatprep.subr.bf16.mxu0 %v1386_v33 }
  0x8a   : > { %1016 = vmatprep.subr.bf16.mxu1 %v1388_v34 }
  0x8c   : > { %976 = vmatpush2.bf16.msra.mxu0 %v1390_v35 }
  0x8d   : > { %1017 = vmatpush2.bf16.msra.mxu1 %v1391_v36  ;;  %977 = vmatprep.subr.bf16.mxu0 %v1392_v37 }
  0x8e   : > { %1018 = vmatprep.subr.bf16.mxu1 %v1394_v38 }
  0x90   : > { %978 = vmatpush2.bf16.msra.mxu0 %v1396_v39 }
  0x91   : > { %1019 = vmatpush2.bf16.msra.mxu1 %v1397_v40  ;;  %979 = vmatprep.subr.bf16.mxu0 %v1398_v41 }
  0x92   : > { %1020 = vmatprep.subr.bf16.mxu1 %v1400_v42 }
  0x94   : > { %980 = vmatpush2.bf16.msra.mxu0 %v1402_v43 }
  0x95   : > { %1021 = vmatpush2.bf16.msra.mxu1 %v1403_v44  ;;  %981 = vmatprep.subr.bf16.mxu0 %v1404_v45 }
  0x96   : > { %1022 = vmatprep.subr.bf16.mxu1 %v1406_v46 }
  0x98   : > { %982 = vmatpush2.bf16.msra.mxu0 %v1408_v50 }
  0x99   : > { %1023 = vmatpush2.bf16.msra.mxu1 %v1409_v51  ;;  %983 = vmatprep.subr.bf16.mxu0 %v1410_v53 }
  0x9a   : > { %1024 = vmatprep.subr.bf16.mxu1 %v1412_v54 }
  0x9c   : > { %984 = vmatpush2.bf16.msra.mxu0 %v1414_v55 }
  0x9d   : > { %1025 = vmatpush2.bf16.msra.mxu1 %v1415_v56  ;;  %985 = vmatprep.subr.bf16.mxu0 %v1416_v57 }
  0x9e   : > { %1026 = vmatprep.subr.bf16.mxu1 %v1418_v58 }
  0xa0   : > { %986 = vmatpush2.bf16.msra.mxu0 %v1420_v59 }
  0xa1   : > { %1027 = vmatpush2.bf16.msra.mxu1 %v1421_v60  ;;  %987 = vmatprep.subr.bf16.mxu0 %v1422_v61 }
  0xa2   : > { %1028 = vmatprep.subr.bf16.mxu1 %v1424_v62 }
  0xa4   : > { %988 = vmatpush2.bf16.msra.mxu0 %v1426_v63 }
  0xa5   : > { %1029 = vmatpush2.bf16.msra.mxu1 %v1427_v0  ;;  %989 = vmatprep.subr.bf16.mxu0 %v1428_v1 }
  0xa6   : > { %1030 = vmatprep.subr.bf16.mxu1 %v1430_v2 }
  0xa8   : > { %990 = vmatpush2.bf16.msra.mxu0 %v1432_v3 }
  0xa9   : > { %1031 = vmatpush2.bf16.msra.mxu1 %v1433_v4 }
  0xab   : > { %992 = vmatmul.mubr.bf16.vlgmr.msra.gmra.mxu0 %v1209_v5 }
  0xac   : > { %1033 = vmatmul.mubr.bf16.vlgmr.msra.gmra.mxu1 %v1211_v6 }
 0x16b   : > { %v993_v7 = vpop.f32.mrf.mxu0 }
 0x16c   : > { %v1034_v9 = vpop.f32.mrf.mxu1 }
 0x16d   : > { %v1035_v10 = vadd.f32 %v1034_v9, %v993_v7  ;;  %v995_v11 = vpop.f32.mrf.mxu0 }
 0x16e   : > { %v1036_v13 = vpop.f32.mrf.mxu1 }
 0x16f   : > { %v1041_v14 = vadd.f32 %v1035_v10, %v557_v8  ;;  %v1037_v15 = vadd.f32 %v1036_v13, %v995_v11  ;;  %v997_v16 = vpop.f32.mrf.mxu0  ;;  %1048 = sbr.rel (%p1277_p13) target bundleno = 385 (0x181), region = 78 }
 0x170   : > { %v1038_v17 = vpop.f32.mrf.mxu1 }
 0x171   : > { %1043 = vst [vmem:[#allocation2] sm:$0xff] %v1041_v14  ;;  %v1042_v18 = vadd.f32 %v1037_v15, %v558_v12  ;;  %v998_v19 = vpop.f32.mrf.mxu0 }
 0x172   : > { %v1039_v20 = vpop.f32.mrf.mxu1 }
 0x173   : > { %1044 = vst [vmem:[#allocation2 + $0x8] sm:$0xff] %v1042_v18 }
 0x174   : > { %v1053_v21 = vlaneseq  ;;  %v1051_v23 = vld [vmem:[%s539_s12] sm:$0x3] }
 0x176   : > { %v1054_v22 = vshrl.u32 %v1053_v21, 7 }
 0x178   : > { %v1055_v24 = vsub.s32 0, %v1054_v22  ;;  %v1059_v25 = vsub.s32 1, %v1054_v22  ;;  %v1049_v26 = vld [vmem:[#allocation2] sm:$0xff] }
 0x17a   : > { %v1050_v27 = vld [vmem:[#allocation2 + $0x8] sm:$0xff]  ;;  %v1056_v28 = vrot.slane %v1051_v23, %v1055_v24  ;;  %v1060_v29 = vrot.slane %v1051_v23, %v1059_v25 }
 0x17c   : > { %v1063_v30 = vadd.f32 %v1056_v28, %v1049_v26  ;;  %v1064_v31 = vadd.f32 %v1060_v29, %v1050_v27 }
 0x17e   : > { %v1065_v32 = vmax.f32 %v1063_v30, 0.0  ;;  %v1066_v33 = vmax.f32 %v1064_v31, 0.0 }
 0x180   : > { %1067 = vst [vmem:[%s1727_s15] sm:$0xff] %v1065_v32  ;;  %1068 = vst [vmem:[%s1727_s15 + $0x8] sm:$0xff] %v1066_v33 }
 0x181 PF: > { %s13_s18 = sadd.s32 1, %s1492_s18   ;;  %s1831_s12 = smov %s1472_s13 }
 0x182   : > { %p10_p0 = scmp.ge.s32.totalorder %s13_s18, 290   ;;  %s1832_s13 = smov %s1566_s25 }
 0x183   : > { %s1833_s14 = smov %s1484_s16  ;;  %s1834_s15 = smov %s1488_s17 }
 0x184   : > { %s1835_s16 = smov %s1838_s19  ;;  %s1836_s17 = smov %s1842_s20 }
 0x185   :  { %12 = sbr.rel (!%p10_p0) target bundleno = 4 (0x4), region = 119 }

// kernel: lw_cbam_alexnet_forward.45
= control target key start
LH: loop header
LB: loop body
LE: loop exit
PB: predicated region body
PF: predicated region fallthrough
CT: control target
= control target key end

     0   :  { %s940_s12 = smov 0   ;;  %s942_s13 = smov 0   ;;  %s1023_s0 = inlined_call_operand.vmem [shape: bf16[8,4096], index: 0, kind: input, shape index: {}]   ;;  %s1024_s1 = inlined_call_operand.vmem [shape: bf16[4096,128], index: 1, kind: input, shape index: {}]   ;;  %s1025_s2 = inlined_call_operand.vmem [shape: f32[1,128], index: 2, kind: input, shape index: {}]   ;;  %s1026_s3 = inlined_call_operand.vmem [shape: f32[8,128], index: 3, kind: output, shape index: {}]  }
   0x1   :  { %s944_s14 = smov 0  }
   0x2 LB: > { %s25_s15 = sadd.s32 1, %s913_s13  ;;  %p743_p0 = scmp.ge.s32.totalorder %s917_s14, 1  ;;  %s917_s14 = sphi %s944_s14, %s13_s14   ;;  %s913_s13 = sphi %s942_s13, %s1028_s13   ;;  %s909_s12 = sphi %s940_s12, %s1027_s12  }
   0x3   : > { %p26_p1 = scmp.ge.s32.totalorder %s25_s15, 8  ;;  %p189_p2 = scmp.lt.s32.totalorder %s917_s14, 9 }
   0x5   : > { %s1030_s15 = smov (%p26_p1, %s25_s15), 0  ;;  %p190_p3 = pnand %p743_p0, %p189_p2 }
   0x6   : > { %s744_s16 = sshll.u32 (!%p190_p3), %s909_s12, 2  ;;  %s746_s17 = sshll.u32 (!%p190_p3), %s909_s12, 6 }
   0x7   : > { %193 = sbr.rel (%p190_p3) target bundleno = 269 (0x10d), region = 32  ;;  %p233_p4 = scmp.lt.s32.totalorder (!%p190_p3), %s744_s16, 31 }
   0x8   : > { %p241_p5 = scmp.lt.s32.totalorder (!%p190_p3), %s746_s17, 511  ;;  %p748_p6 = scmp.ne.s32.totalorder (!%p190_p3), %s909_s12, 0 }
   0xc   : > { %s1032_s16 = smov (!%p233_p4, %s744_s16), 31  ;;  %s1034_s17 = smov (!%p241_p5, %s746_s17), 511 }
   0xd   : > { %s745_s18 = sshll.u32 %s1032_s16, 2  ;;  %s747_s22 = sshll.u32 %s1034_s17, 2 }
   0xe   : > { %s965_s21 = scalar_lea.vmem %s1023_s0, %s745_s18  ;;  %s970_s25 = scalar_lea.vmem %s1024_s1, %s747_s22 }
   0xf   : > { %263 = sbr.rel (%p748_p6) target bundleno = 22 (0x16), region = 36 }
  0x14   : > { %v919_v0 = vmov 0.0  }
  0x15   : > { %264 = vst [vmem:[#allocation2] sm:$0xff] %v919_v0 }
  0x16 PF: > { %v859_v1 = vld [vmem:[%s970_s25 + $0x78] sm:$0xff]   ;;  %v863_v5 = vld [vmem:[%s970_s25 + $0x70] sm:$0xff]   ;;  %v867_v9 = vld [vmem:[%s970_s25 + $0x68] sm:$0xff]   ;;  %p785_p7 = scmp.ne.s32.totalorder %s909_s12, 7 }
  0x17   : > { %v860_v2 = vld [vmem:[%s970_s25 + $0xf8] sm:$0xff]   ;;  %790 = vmatprep.subr.bf16.mxu0 %v859_v1  ;;  %v864_v6 = vld [vmem:[%s970_s25 + $0xf0] sm:$0xff]   ;;  %v868_v10 = vld [vmem:[%s970_s25 + $0xe8] sm:$0xff]  }
  0x18   : > { %v861_v3 = vld [vmem:[%s970_s25 + $0x38] sm:$0xff]   ;;  %812 = vmatprep.subr.bf16.mxu1 %v860_v2  ;;  %v865_v7 = vld [vmem:[%s970_s25 + $0x30] sm:$0xff]   ;;  %v869_v11 = vld [vmem:[%s970_s25 + $0x28] sm:$0xff]  }
  0x19   : > { %v862_v4 = vld [vmem:[%s970_s25 + $0xb8] sm:$0xff]   ;;  %791 = vmatpush3.bf16.msra.mxu0 %v861_v3  ;;  %v866_v8 = vld [vmem:[%s970_s25 + $0xb0] sm:$0xff]   ;;  %v870_v12 = vld [vmem:[%s970_s25 + $0xa8] sm:$0xff]  }
  0x1a   : > { %813 = vmatpush3.bf16.msra.mxu1 %v862_v4  ;;  %792 = vmatprep.subr.bf16.mxu0 %v863_v5  ;;  %v871_v13 = vld [vmem:[%s970_s25 + $0x60] sm:$0xff]   ;;  %v875_v17 = vld [vmem:[%s970_s25 + $0x58] sm:$0xff]   ;;  %v879_v21 = vld [vmem:[%s970_s25 + $0x50] sm:$0xff]  }
  0x1b   : > { %814 = vmatprep.subr.bf16.mxu1 %v864_v6  ;;  %v872_v14 = vld [vmem:[%s970_s25 + $0xe0] sm:$0xff]   ;;  %v876_v18 = vld [vmem:[%s970_s25 + $0xd8] sm:$0xff]   ;;  %v880_v22 = vld [vmem:[%s970_s25 + $0xd0] sm:$0xff]  }
  0x1c   : > { %v873_v15 = vld [vmem:[%s970_s25 + $0x20] sm:$0xff]   ;;  %v877_v19 = vld [vmem:[%s970_s25 + $0x18] sm:$0xff]   ;;  %v881_v23 = vld [vmem:[%s970_s25 + $0x10] sm:$0xff]  }
  0x1d   : > { %793 = vmatpush3.bf16.msra.mxu0 %v865_v7  ;;  %v874_v16 = vld [vmem:[%s970_s25 + $0xa0] sm:$0xff]   ;;  %v878_v20 = vld [vmem:[%s970_s25 + $0x98] sm:$0xff]   ;;  %v882_v24 = vld [vmem:[%s970_s25 + $0x90] sm:$0xff]  }
  0x1e   : > { %815 = vmatpush3.bf16.msra.mxu1 %v866_v8  ;;  %794 = vmatprep.subr.bf16.mxu0 %v867_v9  ;;  %v883_v25 = vld [vmem:[%s970_s25 + $0x48] sm:$0xff]   ;;  %v887_v29 = vld [vmem:[%s970_s25 + $0x40] sm:$0xff]  }
  0x1f   : > { %816 = vmatprep.subr.bf16.mxu1 %v868_v10  ;;  %v884_v26 = vld [vmem:[%s970_s25 + $0xc8] sm:$0xff]   ;;  %v888_v30 = vld [vmem:[%s970_s25 + $0xc0] sm:$0xff]  }
  0x20   : > { %v885_v27 = vld [vmem:[%s970_s25 + $0x8] sm:$0xff]   ;;  %v889_v31 = vld [vmem:[%s970_s25] sm:$0xff]  }
  0x21   : > { %795 = vmatpush3.bf16.msra.mxu0 %v869_v11  ;;  %v886_v28 = vld [vmem:[%s970_s25 + $0x88] sm:$0xff]   ;;  %v890_v32 = vld [vmem:[%s970_s25 + $0x80] sm:$0xff]  }
  0x22   : > { %817 = vmatpush3.bf16.msra.mxu1 %v870_v12  ;;  %796 = vmatprep.subr.bf16.mxu0 %v871_v13  ;;  %v266_v33 = vld [vmem:[%s965_s21] sm:$0xff]  ;;  %v267_v34 = vld [vmem:[%s965_s21 + $0x8] sm:$0xff] }
  0x23   : > { %818 = vmatprep.subr.bf16.mxu1 %v872_v14  ;;  %v749_v35 = vcombine.low %v266_v33, %v266_v33  ;;  %v750_v36 = vcombine.high %v266_v33, %v266_v33  ;;  %v751_v37 = vcombine.low %v267_v34, %v267_v34  ;;  %v752_v38 = vcombine.high %v267_v34, %v267_v34  ;;  %v265_v45 = vld [vmem:[#allocation2] sm:$0xff] }
  0x25   : > { %797 = vmatpush3.bf16.msra.mxu0 %v873_v15  ;;  %570 = vmatprep.mubr.bf16.mxu0 %v750_v36 }
  0x26   : > { %819 = vmatpush3.bf16.msra.mxu1 %v874_v16  ;;  %798 = vmatprep.subr.bf16.mxu0 %v875_v17 }
  0x27   : > { %820 = vmatprep.subr.bf16.mxu1 %v876_v18  ;;  %610 = vmatprep.mubr.bf16.mxu1 %v752_v38 }
  0x29   : > { %799 = vmatpush3.bf16.msra.mxu0 %v877_v19 }
  0x2a   : > { %821 = vmatpush3.bf16.msra.mxu1 %v878_v20  ;;  %800 = vmatprep.subr.bf16.mxu0 %v879_v21 }
  0x2b   : > { %822 = vmatprep.subr.bf16.mxu1 %v880_v22 }
  0x2d   : > { %801 = vmatpush3.bf16.msra.mxu0 %v881_v23 }
  0x2e   : > { %823 = vmatpush3.bf16.msra.mxu1 %v882_v24  ;;  %802 = vmatprep.subr.bf16.mxu0 %v883_v25 }
  0x2f   : > { %824 = vmatprep.subr.bf16.mxu1 %v884_v26 }
  0x31   : > { %803 = vmatpush3.bf16.msra.mxu0 %v885_v27 }
  0x32   : > { %825 = vmatpush3.bf16.msra.mxu1 %v886_v28  ;;  %804 = vmatprep.subr.bf16.mxu0 %v887_v29 }
  0x33   : > { %826 = vmatprep.subr.bf16.mxu1 %v888_v30 }
  0x35   : > { %805 = vmatpush3.bf16.msra.mxu0 %v889_v31 }
  0x36   : > { %827 = vmatpush3.bf16.msra.mxu1 %v890_v32 }
  0x38   : > { %571 = vmatmul.mubr.bf16.vlgmr.msra.gmra.mxu0 %v749_v35 }
  0x39   : > { %611 = vmatmul.mubr.bf16.vlgmr.msra.gmra.mxu1 %v751_v37 }
  0xf8   : > { %v806_v39 = vpop.f32.mrf.mxu0 }
  0xf9   : > { %v828_v40 = vpop.f32.mrf.mxu1 }
  0xfa   : > { %v807_v41 = vpop.f32.mrf.mxu0 }
  0xfb   : > { %v829_v42 = vpop.f32.mrf.mxu1  ;;  %v808_v43 = vadd.f32 %v807_v41, %v806_v39 }
  0xfc   : > { %v830_v44 = vadd.f32 %v829_v42, %v828_v40  ;;  %v809_v46 = vpop.f32.mrf.mxu0 }
  0xfd   : > { %v831_v47 = vpop.f32.mrf.mxu1 }
  0xfe   : > { %v613_v48 = vadd.f32 %v830_v44, %v808_v43  ;;  %v810_v49 = vpop.f32.mrf.mxu0  ;;  %623 = sbr.rel (%p785_p7) target bundleno = 269 (0x10d), region = 40 }
  0xff   : > { %v832_v50 = vpop.f32.mrf.mxu1 }
 0x100   : > { %v618_v51 = vadd.f32 %v613_v48, %v265_v45 }
 0x102   : > { %619 = vst [vmem:[#allocation2] sm:$0xff] %v618_v51 }
 0x103   : > { %v786_v53 = vld [vmem:[%s1025_s2] ss:$0 sm:$0xff] }
 0x109   : > { %v624_v52 = vld [vmem:[#allocation2] sm:$0xff] }
 0x10a   : > { %v632_v54 = vadd.f32 %v786_v53, %v624_v52 }
 0x10c   : > { %633 = vst [vmem:[%s1026_s3] sm:$0xff] %v632_v54 }
 0x10d PF: > { %s13_s14 = sadd.s32 1, %s917_s14   ;;  %s1027_s12 = smov %s913_s13 }
 0x10e   : > { %p10_p8 = scmp.ge.s32.totalorder %s13_s14, 10   ;;  %s1028_s13 = smov %s1030_s15 }
 0x110   :  { %12 = sbr.rel (!%p10_p8) target bundleno = 2 (0x2), region = 76 }

// kernel: lw_cbam_alexnet_forward.44
= control target key start
LH: loop header
LB: loop body
LE: loop exit
PB: predicated region body
PF: predicated region fallthrough
CT: control target
= control target key end

     0   :  { %8 = vsyncpa [#allocation4], 0  ;;  %s1526_s0 = inlined_call_operand.vmem [shape: bf16[8,4096], index: 0, kind: input, shape index: {}]   ;;  %s1527_s1 = inlined_call_operand.hbm [shape: bf16[4096,4096], index: 1, kind: input, shape index: {}]   ;;  %s1528_s2 = inlined_call_operand.vmem [shape: f32[1,4096], index: 2, kind: input, shape index: {}]   ;;  %s1529_s3 = inlined_call_operand.vmem [shape: f32[8,4096], index: 3, kind: output, shape index: {}]  }
   0x1   :  { %10 = vsyncpa [#allocation4 + $0x1], 0  ;;  %s1314_s12 = smov 0   ;;  %s1316_s13 = smov 0  }
   0x2   :  { %s1318_s14 = smov 0   ;;  %s1320_s15 = smov 0  }
   0x3   :  { %s1322_s16 = smov 0   ;;  %s1324_s17 = smov 0  }
   0x4   :  { %s1326_s18 = smov 0   ;;  %s1328_s19 = smov 0  }
   0x5 LB: > { %s929_s20 = sadd.s32 4294967295, %s1287_s19   ;;  %s28_s21 = sadd.s32 1, %s1279_s17  ;;  %s1287_s19 = sphi %s1328_s19, %s16_s19   ;;  %s1283_s18 = sphi %s1326_s18, %s1539_s18   ;;  %s1279_s17 = sphi %s1324_s17, %s1538_s17   ;;  %s1275_s16 = sphi %s1322_s16, %s1537_s16   ;;  %s1271_s15 = sphi %s1320_s15, %s1536_s15   ;;  %s1267_s14 = sphi %s1318_s14, %s1535_s14   ;;  %s1263_s13 = sphi %s1316_s13, %s1534_s13   ;;  %s1259_s12 = sphi %s1314_s12, %s1533_s12  }
   0x6   : > { %p29_p0 = scmp.ge.s32.totalorder %s28_s21, 8  ;;  %s31_s22 = sadd.s32 1, %s1283_s18 }
   0x7   : > { %s72_s23 = sadd.s32 1, %s1267_s14  ;;  %p79_p1 = scmp.ne.s32.totalorder %s1267_s14, %s1263_s13 }
   0x8   : > { %s1541_s21 = smov (%p29_p0, %s28_s21), 0  ;;  %s1543_s22 = smov (!%p29_p0, %s31_s22), %s1283_s18 }
   0x9   : > { %s67_s24 = ssub.s32 %s1279_s17, %s1541_s21  ;;  %p80_p2 = scmp.eq.s32.totalorder %s1287_s19, 0 }
   0xa   : > { %p33_p3 = scmp.ge.s32.totalorder %s1543_s22, 16  ;;  %p85_p4 = scmp.ne.s32.totalorder %s1263_s13, %s1259_s12 }
   0xb   : > { %p1365_p5 = por %p80_p2, %p79_p1  ;;  %p86_p6 = scmp.eq.s32.totalorder %s929_s20, 0 }
   0xc   : > { %s1545_s22 = smov (%p33_p3, %s1543_s22), 0  ;;  %p1024_p8 = scmp.lt.s32.totalorder %s1287_s19, 128 }
   0xd   : > { %p1371_p7 = por %p86_p6, %p85_p4  ;;  %s68_s27 = ssub.s32 %s1283_s18, %s1545_s22 }
   0xe   : > { %s69_s28 = sor.u32 %s68_s27, %s67_s24  ;;  %s176_s29 = sand.u32 1, %s1267_s14  }
   0xf   : > { %p70_p9 = scmp.eq.s32.totalorder %s69_s28, 0  ;;  %s933_s30 = sshll.u32 %s176_s29, 9 }
  0x10   : > { %s935_s4 = sshll.u32 %s1283_s18, 1  ;;  %s1017_s6 = sshll.u32 %s1279_s17, 11 }
  0x11   : > { %s1381_s5 = scalar_select %p70_p9, %s1267_s14, %s72_s23  }
  0x12   : > { %s187_s7 = sadd.s32 %s1017_s6, %s935_s4  ;;  %s180_s8 = scalar_lea.vmem [#allocation3], %s933_s30 }
  0x13   : > { %s190_s9 = sshll.u32 %s180_s8, 4  ;;  %s937_s10 = sshll.u32 %s187_s7, 6  ;;  %s191_s9 = int_to_ptr.vmem [resolvable:$true] %s190_s9 }
  0x14   : > { %s189_s20 = scalar_lea.hbm %s1527_s1, %s937_s10  ;;  %p1391_p10 = pnand %p1024_p8, %p1365_p5 }
  0x15   : > { %s177_s27 = scalar_lea.sflag [#allocation4], %s176_s29  ;;  %s1206_s23 = scalar_lea.vmem %s191_s9, 8192 }
  0x16   : > { %p1195_p11 = pneg %p1391_p10  ;;  %p1207_p12 = scmp.ne.s32.totalorder %s191_s9, %s1206_s23 }
  0x17   : > { %s1289_s28 = smov [#allocation3]  }
  0x18   : > { %p1209_p13 = pnand %p1207_p12, %p1195_p11  ;;  %s1211_s30 = sshll.u32 %s1289_s28, 4  ;;  %s1212_s30 = int_to_ptr.vmem [resolvable:$false] %s1211_s30 }
  0x19   : > { %s1213_s4 = scalar_lea.vmem %s1212_s30, 16384  ;;  %p1214_p1 = scmp.lt.s32.totalorder %s191_s9, %s1212_s30 }
  0x1a   : > { %p1210_p0 = pneg %p1209_p13  ;;  %p1215_p2 = scmp.lt.s32.totalorder %s1213_s4, %s1206_s23 }
  0x1c   : > { %p1216_p3 = por %p1215_p2, %p1214_p1 }
  0x1e   : > { %p1217_p4 = pnand %p1216_p3, %p1210_p0 }
  0x20   : > { %1220 = shalt.err (!%p1217_p4)
}
  0x21   : > { %s1290_s25 = smov 2048   ;;  %s1291_s29 = smov 128  }
  0x22   : > { %s1292_s6 = smov 8   ;;  %p938_p5 = scmp.ge.s32.totalorder %s1287_s19, 1 }
  0x23   : > { %1023 = dma.hbm_to_vmem [thread:$0]  (!%p1391_p10), %s189_s20, 8192, %s191_s9, %s177_s27, %s1290_s25, %s1291_s29, %s1292_s6  }
  0x24   : > { %p206_p6 = scmp.lt.s32.totalorder %s1287_s19, 129 }
  0x26   : > { %p207_p8 = pnand %p938_p5, %p206_p6 }
  0x27   : > { %s212_s7 = sand.u32 (!%p207_p8), 1, %s1263_s13  }
  0x28   : > { %210 = sbr.rel (%p207_p8) target bundleno = 338 (0x152), region = 32  ;;  %s939_s8 = sshll.u32 (!%p207_p8), %s212_s7, 9 }
  0x29   : > { %s213_s10 = scalar_lea.sflag (!%p207_p8), [#allocation4], %s212_s7  ;;  %s1402_s11 = scalar_lea.vmem (!%p207_p8), [#allocation3], %s939_s8 }
  0x2d   : > { %1254 = dma.done.wait (%p1371_p7), %s213_s10, 8192  }
  0x2e   : > { %1256 = vsyncadd (%p1371_p7), %s213_s10, 4294959104  ;;  %s940_s12 = sshll.u32 %s1271_s15, 2  ;;  %s942_s9 = sshll.u32 %s1275_s16, 1 }
  0x2f   : > { %p259_p9 = scmp.lt.s32.totalorder %s940_s12, 31  ;;  %p269_p10 = scmp.lt.s32.totalorder %s942_s9, 31 }
  0x30   : > { %p945_p7 = scmp.ne.s32.totalorder %s1271_s15, 0 }
  0x31   : > { %s1547_s12 = smov (!%p259_p9, %s940_s12), 31  ;;  %s1549_s9 = smov (!%p269_p10, %s942_s9), 31 }
  0x32   : > { %s941_s20 = sshll.u32 %s1547_s12, 2  ;;  %s271_s30 = scalar_lea.vmem %s1528_s2, %s1549_s9 }
  0x33   : > { %s1415_s23 = scalar_lea.vmem %s1526_s0, %s941_s20  ;;  %s944_s4 = sshll.u32 %s1549_s9, 3 }
  0x34   : > { %s1425_s29 = scalar_lea.vmem %s1529_s3, %s944_s4  ;;  %286 = sbr.rel (%p945_p7) target bundleno = 59 (0x3b), region = 40 }
  0x39   : > { %v1293_v0 = vmov 0.0  }
  0x3a   : > { %287 = vst [vmem:[#allocation2] sm:$0xff] %v1293_v0  ;;  %288 = vst [vmem:[#allocation2 + $0x8] sm:$0xff] %v1293_v0 }
  0x3b PF: > { %v1093_v1 = vld [vmem:[%s1402_s11 + $0x74] ss:$8 sps:$4 sm:$0xff]   ;;  %v1097_v3 = vld [vmem:[%s1402_s11 + $0x70] ss:$8 sps:$4 sm:$0xff]   ;;  %v1099_v5 = vld [vmem:[%s1402_s11 + $0x64] ss:$8 sps:$4 sm:$0xff]  }
  0x3c   : > { %v1095_v2 = vld [vmem:[%s1402_s11 + $0x174] ss:$8 sps:$4 sm:$0xff]   ;;  %691 = vmatprep.subr.bf16.mxu0 %v1093_v1  ;;  %v1098_v4 = vld [vmem:[%s1402_s11 + $0x170] ss:$8 sps:$4 sm:$0xff]   ;;  %v1101_v6 = vld [vmem:[%s1402_s11 + $0x164] ss:$8 sps:$4 sm:$0xff]  }
  0x3d   : > { %732 = vmatprep.subr.bf16.mxu1 %v1095_v2  ;;  %692 = vmatpush1.bf16.msra.mxu0 %v1097_v3  ;;  %v1103_v7 = vld [vmem:[%s1402_s11 + $0x60] ss:$8 sps:$4 sm:$0xff]   ;;  %v1105_v9 = vld [vmem:[%s1402_s11 + $0x54] ss:$8 sps:$4 sm:$0xff]   ;;  %v1109_v11 = vld [vmem:[%s1402_s11 + $0x50] ss:$8 sps:$4 sm:$0xff]  }
  0x3e   : > { %733 = vmatpush1.bf16.msra.mxu1 %v1098_v4  ;;  %693 = vmatprep.subr.bf16.mxu0 %v1099_v5  ;;  %v1104_v8 = vld [vmem:[%s1402_s11 + $0x160] ss:$8 sps:$4 sm:$0xff]   ;;  %v1107_v10 = vld [vmem:[%s1402_s11 + $0x154] ss:$8 sps:$4 sm:$0xff]   ;;  %v1110_v12 = vld [vmem:[%s1402_s11 + $0x150] ss:$8 sps:$4 sm:$0xff]  }
  0x3f   : > { %734 = vmatprep.subr.bf16.mxu1 %v1101_v6  ;;  %v1111_v13 = vld [vmem:[%s1402_s11 + $0x44] ss:$8 sps:$4 sm:$0xff]   ;;  %v1115_v15 = vld [vmem:[%s1402_s11 + $0x40] ss:$8 sps:$4 sm:$0xff]   ;;  %v1117_v17 = vld [vmem:[%s1402_s11 + $0x34] ss:$8 sps:$4 sm:$0xff]  }
  0x40   : > { %v1113_v14 = vld [vmem:[%s1402_s11 + $0x144] ss:$8 sps:$4 sm:$0xff]   ;;  %v1116_v16 = vld [vmem:[%s1402_s11 + $0x140] ss:$8 sps:$4 sm:$0xff]   ;;  %v1119_v18 = vld [vmem:[%s1402_s11 + $0x134] ss:$8 sps:$4 sm:$0xff]  }
  0x41   : > { %694 = vmatpush1.bf16.msra.mxu0 %v1103_v7  ;;  %v1121_v19 = vld [vmem:[%s1402_s11 + $0x30] ss:$8 sps:$4 sm:$0xff]   ;;  %v1123_v21 = vld [vmem:[%s1402_s11 + $0x24] ss:$8 sps:$4 sm:$0xff]   ;;  %v1127_v23 = vld [vmem:[%s1402_s11 + $0x20] ss:$8 sps:$4 sm:$0xff]  }
  0x42   : > { %735 = vmatpush1.bf16.msra.mxu1 %v1104_v8  ;;  %695 = vmatprep.subr.bf16.mxu0 %v1105_v9  ;;  %v1122_v20 = vld [vmem:[%s1402_s11 + $0x130] ss:$8 sps:$4 sm:$0xff]   ;;  %v1125_v22 = vld [vmem:[%s1402_s11 + $0x124] ss:$8 sps:$4 sm:$0xff]   ;;  %v1128_v24 = vld [vmem:[%s1402_s11 + $0x120] ss:$8 sps:$4 sm:$0xff]  }
  0x43   : > { %736 = vmatprep.subr.bf16.mxu1 %v1107_v10  ;;  %v1129_v25 = vld [vmem:[%s1402_s11 + $0x14] ss:$8 sps:$4 sm:$0xff]   ;;  %v1133_v27 = vld [vmem:[%s1402_s11 + $0x10] ss:$8 sps:$4 sm:$0xff]   ;;  %v1135_v29 = vld [vmem:[%s1402_s11 + $0x4] ss:$8 sps:$4 sm:$0xff]  }
  0x44   : > { %v1131_v26 = vld [vmem:[%s1402_s11 + $0x114] ss:$8 sps:$4 sm:$0xff]   ;;  %v1134_v28 = vld [vmem:[%s1402_s11 + $0x110] ss:$8 sps:$4 sm:$0xff]   ;;  %v1137_v30 = vld [vmem:[%s1402_s11 + $0x104] ss:$8 sps:$4 sm:$0xff]  }
  0x45   : > { %696 = vmatpush1.bf16.msra.mxu0 %v1109_v11  ;;  %v1139_v31 = vld [vmem:[%s1402_s11] ss:$8 sps:$4 sm:$0xff]   ;;  %v1141_v33 = vld [vmem:[%s1402_s11 + $0xf4] ss:$8 sps:$4 sm:$0xff]   ;;  %v1145_v35 = vld [vmem:[%s1402_s11 + $0xf0] ss:$8 sps:$4 sm:$0xff]  }
  0x46   : > { %737 = vmatpush1.bf16.msra.mxu1 %v1110_v12  ;;  %697 = vmatprep.subr.bf16.mxu0 %v1111_v13  ;;  %v1140_v32 = vld [vmem:[%s1402_s11 + $0x100] ss:$8 sps:$4 sm:$0xff]   ;;  %v1143_v34 = vld [vmem:[%s1402_s11 + $0x1f4] ss:$8 sps:$4 sm:$0xff]   ;;  %v1146_v36 = vld [vmem:[%s1402_s11 + $0x1f0] ss:$8 sps:$4 sm:$0xff]  }
  0x47   : > { %738 = vmatprep.subr.bf16.mxu1 %v1113_v14  ;;  %v1147_v37 = vld [vmem:[%s1402_s11 + $0xe4] ss:$8 sps:$4 sm:$0xff]   ;;  %v1151_v39 = vld [vmem:[%s1402_s11 + $0xe0] ss:$8 sps:$4 sm:$0xff]   ;;  %v1153_v41 = vld [vmem:[%s1402_s11 + $0xd4] ss:$8 sps:$4 sm:$0xff]  }
  0x48   : > { %v1149_v38 = vld [vmem:[%s1402_s11 + $0x1e4] ss:$8 sps:$4 sm:$0xff]   ;;  %v1152_v40 = vld [vmem:[%s1402_s11 + $0x1e0] ss:$8 sps:$4 sm:$0xff]   ;;  %v1155_v42 = vld [vmem:[%s1402_s11 + $0x1d4] ss:$8 sps:$4 sm:$0xff]  }
  0x49   : > { %698 = vmatpush1.bf16.msra.mxu0 %v1115_v15  ;;  %v1157_v43 = vld [vmem:[%s1402_s11 + $0xd0] ss:$8 sps:$4 sm:$0xff]   ;;  %v1159_v45 = vld [vmem:[%s1402_s11 + $0xc4] ss:$8 sps:$4 sm:$0xff]   ;;  %v1163_v50 = vld [vmem:[%s1402_s11 + $0xc0] ss:$8 sps:$4 sm:$0xff]  }
  0x4a   : > { %739 = vmatpush1.bf16.msra.mxu1 %v1116_v16  ;;  %699 = vmatprep.subr.bf16.mxu0 %v1117_v17  ;;  %v1158_v44 = vld [vmem:[%s1402_s11 + $0x1d0] ss:$8 sps:$4 sm:$0xff]   ;;  %v1161_v46 = vld [vmem:[%s1402_s11 + $0x1c4] ss:$8 sps:$4 sm:$0xff]   ;;  %v1164_v51 = vld [vmem:[%s1402_s11 + $0x1c0] ss:$8 sps:$4 sm:$0xff]  }
  0x4b   : > { %740 = vmatprep.subr.bf16.mxu1 %v1119_v18  ;;  %v291_v47 = vld [vmem:[%s1415_s23] sm:$0xff]  ;;  %v292_v49 = vld [vmem:[%s1415_s23 + $0x8] sm:$0xff]  ;;  %v1171_v57 = vld [vmem:[%s1402_s11 + $0xa4] ss:$8 sps:$4 sm:$0xff]   ;;  %p1014_p11 = scmp.ne.s32.totalorder %s1271_s15, 7 }
  0x4c   : > { %v947_v48 = vcombine.high %v291_v47, %v291_v47  ;;  %v949_v52 = vcombine.high %v292_v49, %v292_v49  ;;  %v1165_v53 = vld [vmem:[%s1402_s11 + $0xb4] ss:$8 sps:$4 sm:$0xff]   ;;  %v1169_v55 = vld [vmem:[%s1402_s11 + $0xb0] ss:$8 sps:$4 sm:$0xff]   ;;  %v1173_v58 = vld [vmem:[%s1402_s11 + $0x1a4] ss:$8 sps:$4 sm:$0xff]   ;;  %v946_v5 = vcombine.low %v291_v47, %v291_v47  ;;  %v948_v6 = vcombine.low %v292_v49, %v292_v49 }
  0x4d   : > { %700 = vmatpush1.bf16.msra.mxu0 %v1121_v19  ;;  %v1167_v54 = vld [vmem:[%s1402_s11 + $0x1b4] ss:$8 sps:$4 sm:$0xff]   ;;  %v1170_v56 = vld [vmem:[%s1402_s11 + $0x1b0] ss:$8 sps:$4 sm:$0xff]   ;;  %v1175_v59 = vld [vmem:[%s1402_s11 + $0xa0] ss:$8 sps:$4 sm:$0xff]  }
  0x4e   : > { %741 = vmatpush1.bf16.msra.mxu1 %v1122_v20  ;;  %701 = vmatprep.subr.bf16.mxu0 %v1123_v21  ;;  %v1176_v60 = vld [vmem:[%s1402_s11 + $0x1a0] ss:$8 sps:$4 sm:$0xff]   ;;  %v1177_v61 = vld [vmem:[%s1402_s11 + $0x94] ss:$8 sps:$4 sm:$0xff]   ;;  %v1181_v63 = vld [vmem:[%s1402_s11 + $0x90] ss:$8 sps:$4 sm:$0xff]  }
  0x4f   : > { %742 = vmatprep.subr.bf16.mxu1 %v1125_v22  ;;  %723 = vmatprep.mubr.bf16.mxu0 %v947_v48  ;;  %v1179_v62 = vld [vmem:[%s1402_s11 + $0x194] ss:$8 sps:$4 sm:$0xff]   ;;  %v1182_v0 = vld [vmem:[%s1402_s11 + $0x190] ss:$8 sps:$4 sm:$0xff]   ;;  %v1183_v1 = vld [vmem:[%s1402_s11 + $0x84] ss:$8 sps:$4 sm:$0xff]  }
  0x50   : > { %764 = vmatprep.mubr.bf16.mxu1 %v949_v52  ;;  %v1185_v2 = vld [vmem:[%s1402_s11 + $0x184] ss:$8 sps:$4 sm:$0xff]   ;;  %v1187_v3 = vld [vmem:[%s1402_s11 + $0x80] ss:$8 sps:$4 sm:$0xff]   ;;  %v289_v8 = vld [vmem:[#allocation2] sm:$0xff] }
  0x51   : > { %702 = vmatpush1.bf16.msra.mxu0 %v1127_v23  ;;  %v1188_v4 = vld [vmem:[%s1402_s11 + $0x180] ss:$8 sps:$4 sm:$0xff]   ;;  %v290_v12 = vld [vmem:[#allocation2 + $0x8] sm:$0xff] }
  0x52   : > { %743 = vmatpush1.bf16.msra.mxu1 %v1128_v24  ;;  %703 = vmatprep.subr.bf16.mxu0 %v1129_v25 }
  0x53   : > { %744 = vmatprep.subr.bf16.mxu1 %v1131_v26 }
  0x55   : > { %704 = vmatpush1.bf16.msra.mxu0 %v1133_v27 }
  0x56   : > { %745 = vmatpush1.bf16.msra.mxu1 %v1134_v28  ;;  %705 = vmatprep.subr.bf16.mxu0 %v1135_v29 }
  0x57   : > { %746 = vmatprep.subr.bf16.mxu1 %v1137_v30 }
  0x59   : > { %706 = vmatpush1.bf16.msra.mxu0 %v1139_v31 }
  0x5a   : > { %747 = vmatpush1.bf16.msra.mxu1 %v1140_v32  ;;  %707 = vmatprep.subr.bf16.mxu0 %v1141_v33 }
  0x5b   : > { %748 = vmatprep.subr.bf16.mxu1 %v1143_v34 }
  0x5d   : > { %708 = vmatpush2.bf16.msra.mxu0 %v1145_v35 }
  0x5e   : > { %749 = vmatpush2.bf16.msra.mxu1 %v1146_v36  ;;  %709 = vmatprep.subr.bf16.mxu0 %v1147_v37 }
  0x5f   : > { %750 = vmatprep.subr.bf16.mxu1 %v1149_v38 }
  0x61   : > { %710 = vmatpush2.bf16.msra.mxu0 %v1151_v39 }
  0x62   : > { %751 = vmatpush2.bf16.msra.mxu1 %v1152_v40  ;;  %711 = vmatprep.subr.bf16.mxu0 %v1153_v41 }
  0x63   : > { %752 = vmatprep.subr.bf16.mxu1 %v1155_v42 }
  0x65   : > { %712 = vmatpush2.bf16.msra.mxu0 %v1157_v43 }
  0x66   : > { %753 = vmatpush2.bf16.msra.mxu1 %v1158_v44  ;;  %713 = vmatprep.subr.bf16.mxu0 %v1159_v45 }
  0x67   : > { %754 = vmatprep.subr.bf16.mxu1 %v1161_v46 }
  0x69   : > { %714 = vmatpush2.bf16.msra.mxu0 %v1163_v50 }
  0x6a   : > { %755 = vmatpush2.bf16.msra.mxu1 %v1164_v51  ;;  %715 = vmatprep.subr.bf16.mxu0 %v1165_v53 }
  0x6b   : > { %756 = vmatprep.subr.bf16.mxu1 %v1167_v54 }
  0x6d   : > { %716 = vmatpush2.bf16.msra.mxu0 %v1169_v55 }
  0x6e   : > { %757 = vmatpush2.bf16.msra.mxu1 %v1170_v56  ;;  %717 = vmatprep.subr.bf16.mxu0 %v1171_v57 }
  0x6f   : > { %758 = vmatprep.subr.bf16.mxu1 %v1173_v58 }
  0x71   : > { %718 = vmatpush2.bf16.msra.mxu0 %v1175_v59 }
  0x72   : > { %759 = vmatpush2.bf16.msra.mxu1 %v1176_v60  ;;  %719 = vmatprep.subr.bf16.mxu0 %v1177_v61 }
  0x73   : > { %760 = vmatprep.subr.bf16.mxu1 %v1179_v62 }
  0x75   : > { %720 = vmatpush2.bf16.msra.mxu0 %v1181_v63 }
  0x76   : > { %761 = vmatpush2.bf16.msra.mxu1 %v1182_v0  ;;  %721 = vmatprep.subr.bf16.mxu0 %v1183_v1 }
  0x77   : > { %762 = vmatprep.subr.bf16.mxu1 %v1185_v2 }
  0x79   : > { %722 = vmatpush2.bf16.msra.mxu0 %v1187_v3 }
  0x7a   : > { %763 = vmatpush2.bf16.msra.mxu1 %v1188_v4 }
  0x7c   : > { %724 = vmatmul.mubr.bf16.vlgmr.msra.gmra.mxu0 %v946_v5 }
  0x7d   : > { %765 = vmatmul.mubr.bf16.vlgmr.msra.gmra.mxu1 %v948_v6 }
 0x13c   : > { %v725_v7 = vpop.f32.mrf.mxu0 }
 0x13d   : > { %v766_v9 = vpop.f32.mrf.mxu1 }
 0x13e   : > { %v767_v10 = vadd.f32 %v766_v9, %v725_v7  ;;  %v727_v11 = vpop.f32.mrf.mxu0 }
 0x13f   : > { %v768_v13 = vpop.f32.mrf.mxu1 }
 0x140   : > { %v773_v14 = vadd.f32 %v767_v10, %v289_v8  ;;  %v769_v15 = vadd.f32 %v768_v13, %v727_v11  ;;  %v729_v16 = vpop.f32.mrf.mxu0  ;;  %780 = sbr.rel (%p1014_p11) target bundleno = 338 (0x152), region = 44 }
 0x141   : > { %v770_v17 = vpop.f32.mrf.mxu1 }
 0x142   : > { %775 = vst [vmem:[#allocation2] sm:$0xff] %v773_v14  ;;  %v774_v18 = vadd.f32 %v769_v15, %v290_v12  ;;  %v730_v19 = vpop.f32.mrf.mxu0 }
 0x143   : > { %v771_v20 = vpop.f32.mrf.mxu1 }
 0x144   : > { %776 = vst [vmem:[#allocation2 + $0x8] sm:$0xff] %v774_v18 }
 0x145   : > { %v785_v21 = vlaneseq  ;;  %v783_v23 = vld [vmem:[%s271_s30] sm:$0x3] }
 0x147   : > { %v786_v22 = vshrl.u32 %v785_v21, 7 }
 0x149   : > { %v787_v24 = vsub.s32 0, %v786_v22  ;;  %v791_v25 = vsub.s32 1, %v786_v22  ;;  %v781_v26 = vld [vmem:[#allocation2] sm:$0xff] }
 0x14b   : > { %v782_v27 = vld [vmem:[#allocation2 + $0x8] sm:$0xff]  ;;  %v788_v28 = vrot.slane %v783_v23, %v787_v24  ;;  %v792_v29 = vrot.slane %v783_v23, %v791_v25 }
 0x14d   : > { %v795_v30 = vadd.f32 %v788_v28, %v781_v26  ;;  %v796_v31 = vadd.f32 %v792_v29, %v782_v27 }
 0x14f   : > { %v797_v32 = vmax.f32 %v795_v30, 0.0  ;;  %v798_v33 = vmax.f32 %v796_v31, 0.0 }
 0x151   : > { %799 = vst [vmem:[%s1425_s29] sm:$0xff] %v797_v32  ;;  %800 = vst [vmem:[%s1425_s29 + $0x8] sm:$0xff] %v798_v33 }
 0x152 PF: > { %s16_s19 = sadd.s32 1, %s1287_s19   ;;  %s1533_s12 = smov %s1263_s13 }
 0x153   : > { %p13_p12 = scmp.ge.s32.totalorder %s16_s19, 130   ;;  %s1534_s13 = smov %s1267_s14 }
 0x154   : > { %s1535_s14 = smov %s1381_s5  ;;  %s1536_s15 = smov %s1279_s17 }
 0x155   : > { %s1537_s16 = smov %s1283_s18  ;;  %s1538_s17 = smov %s1541_s21 }
 0x156   : > { %s1539_s18 = smov %s1545_s22  ;;  %15 = sbr.rel (!%p13_p12) target bundleno = 5 (0x5), region = 86 }
 0x15b   :  { %831 = vsyncpa [#allocation4], 1 }
 0x15c   :  { %833 = vsyncpa [#allocation4 + $0x1], 1 }

</bundles_post_ra>
